<compile_context>
chip_gen: v7x
topology: tpu7x:2x2x1
jax: 0.10.0
libtpu: 0.0.40
codegen_flags: <defaults>
</compile_context>

<pallas_src>
import functools

import numpy as np
import jax
import jax.numpy as jnp
from jax.experimental import pallas as pl
from jax.experimental.pallas import tpu as pltpu


# ---------------------------------------------------------------------------
# Dense layer: fused bf16 GEMM + bias (f32 accumulate), grid over N tiles.
# ---------------------------------------------------------------------------
def _dense_kernel(z_ref, w_ref, b_ref, o_ref):
    acc = jnp.dot(z_ref[...], w_ref[...], preferred_element_type=jnp.float32)
    acc = acc + b_ref[...]
    o_ref[...] = acc.astype(o_ref.dtype)


def dense(z, w, b, *, tn=2048, out_dtype=jnp.bfloat16):
    """out = z @ w + b.  z:(B,K) bf16, w:(K,N) bf16, b:(1,N) f32."""
    B, K = z.shape
    K2, N = w.shape
    assert K == K2 and K % 128 == 0 and N % tn == 0
    return pl.pallas_call(
        _dense_kernel,
        out_shape=jax.ShapeDtypeStruct((B, N), out_dtype),
        grid_spec=pltpu.PrefetchScalarGridSpec(
            num_scalar_prefetch=0,
            grid=(N // tn,),
            in_specs=[
                pl.BlockSpec((B, K), lambda j: (0, 0)),
                pl.BlockSpec((K, tn), lambda j: (0, j)),
                pl.BlockSpec((1, tn), lambda j: (0, j)),
            ],
            out_specs=pl.BlockSpec((B, tn), lambda j: (0, j)),
        ),
        compiler_params=pltpu.CompilerParams(
            dimension_semantics=("parallel",)),
    )(z, w, b)


# ---------------------------------------------------------------------------
# ConvTranspose2d(k=4, s=2, p=1) via sub-pixel phase decomposition.
#
# out[2m+py, 2n+px, co] = sum_{dy,dx,ci} x_pad[m+dy, n+dx, ci] * Wfold[dy,dx, ci, (py,px,co)]
# where Wfold embeds each phase's 2x2 taps inside a shared 3x3 window (the
# unused (dy,py)/(dx,px) combinations are structural zeros).  The padded image
# is passed spatially flattened, so tap (dy,dx) over ALL output positions is
# one contiguous row-slice at offset dy*(W+2)+dx.  Rows with n in {W, W+1}
# are junk (window wraps across the padding columns) and are sliced away.
# ---------------------------------------------------------------------------
def _convT_kernel(x_ref, w_ref, b_ref, o_ref, *, n_rows, row_stride, activation):
    # x_ref: ((H+2)*(W+2)+2, Ci)  bf16 -- padded NHWC image, flattened spatially
    # w_ref: (9, Ci, 4*Co)        bf16 -- 3x3 taps, 4 phases folded into N
    # b_ref: (1, 4*Co)            f32
    # o_ref: (n_rows, 4*Co)            -- n_rows = H*(W+2)
    acc = jnp.dot(x_ref[pl.ds(0, n_rows), :], w_ref[0],
                  preferred_element_type=jnp.float32)
    for t in range(1, 9):
        dy, dx = divmod(t, 3)
        a = x_ref[pl.ds(dy * row_stride + dx, n_rows), :]
        acc = acc + jnp.dot(a, w_ref[t], preferred_element_type=jnp.float32)
    acc = acc + b_ref[...]
    if activation == "relu":
        acc = jnp.maximum(acc, 0.0)
    elif activation == "tanh":
        acc = jnp.tanh(acc)
    o_ref[...] = acc.astype(o_ref.dtype)


def conv_transpose_phase(x, w_fold, b_fold, *, activation, out_dtype):
    """ConvTranspose2d(k=4,s=2,p=1) + activation; NHWC in, NHWC out (2H, 2W)."""
    B, H, W, Ci = x.shape
    Co4 = w_fold.shape[-1]
    Co = Co4 // 4
    Wp2 = W + 2
    n_rows = H * Wp2                       # valid rows + 2 junk columns per row
    S = (H + 2) * Wp2 + 2                  # flattened padded image + 2 tail rows

    xp = jnp.pad(x, ((0, 0), (1, 1), (1, 1), (0, 0)))            # (B,H+2,W+2,Ci)
    xf = jnp.pad(xp.reshape(B, (H + 2) * Wp2, Ci), ((0, 0), (0, 2), (0, 0)))

    kern = functools.partial(_convT_kernel, n_rows=n_rows, row_stride=Wp2,
                             activation=activation)
    out = pl.pallas_call(
        kern,
        out_shape=jax.ShapeDtypeStruct((B, n_rows, Co4), out_dtype),
        grid_spec=pltpu.PrefetchScalarGridSpec(
            num_scalar_prefetch=0,
            grid=(B,),
            in_specs=[
                pl.BlockSpec((None, S, Ci), lambda b: (b, 0, 0)),
                pl.BlockSpec((9, Ci, Co4), lambda b: (0, 0, 0)),
                pl.BlockSpec((1, Co4), lambda b: (0, 0)),
            ],
            out_specs=pl.BlockSpec((None, n_rows, Co4), lambda b: (b, 0, 0)),
        ),
        compiler_params=pltpu.CompilerParams(
            dimension_semantics=("parallel",)),
    )(xf, w_fold, b_fold)

    # depth-to-space: (B, H*(W+2), (py,px,co)) -> (B, 2H, 2W, Co)
    y = out.reshape(B, H, Wp2, 2, 2, Co)[:, :, :W]
    y = y.transpose(0, 1, 3, 2, 4, 5).reshape(B, 2 * H, 2 * W, Co)
    return y


# ---------------------------------------------------------------------------
# Parameters: PyTorch layouts at init; one-time packing for the kernels.
# ---------------------------------------------------------------------------
def init_params(key, z_dim):
    """PyTorch-layout params (Linear: (out,in); ConvTranspose2d: (Ci,Co,4,4))."""
    ks = jax.random.split(key, 8)

    def unif(k, shape, fan_in):
        bound = 1.0 / np.sqrt(fan_in)
        return jax.random.uniform(k, shape, jnp.float32, -bound, bound)

    return {
        "dense_w": unif(ks[0], (256 * 4 * 4, z_dim), z_dim),
        "dense_b": unif(ks[1], (256 * 4 * 4,), z_dim),
        "w1": unif(ks[2], (256, 128, 4, 4), 128 * 16),
        "b1": unif(ks[3], (128,), 128 * 16),
        "w2": unif(ks[4], (128, 64, 4, 4), 64 * 16),
        "b2": unif(ks[5], (64,), 64 * 16),
        "w3": unif(ks[6], (64, 3, 4, 4), 3 * 16),
        "b3": unif(ks[7], (3,), 3 * 16),
    }


# (window offset d, output phase p) -> ConvTranspose kernel tap k, from o = 2*i - 1 + k:
#   phase 0 (even outputs): d=0 -> k=3, d=1 -> k=1 ; phase 1 (odd): d=1 -> k=2, d=2 -> k=0
_TAP_K = {(0, 0): 3, (1, 0): 1, (1, 1): 2, (2, 1): 0}


def _fold_convT_weight(w, b):
    """(Ci,Co,4,4) PyTorch ConvT weight -> (9, Ci, 4*Co) bf16 + (1, 4*Co) f32."""
    w = np.asarray(w, np.float32)
    b = np.asarray(b, np.float32)
    Ci, Co = w.shape[0], w.shape[1]
    wm = np.zeros((9, Ci, 4 * Co), np.float32)
    for dy in range(3):
        for py in range(2):
            ky = _TAP_K.get((dy, py))
            if ky is None:
                continue
            for dx in range(3):
                for px in range(2):
                    kx = _TAP_K.get((dx, px))
                    if kx is None:
                        continue
                    n0 = (py * 2 + px) * Co
                    wm[dy * 3 + dx, :, n0:n0 + Co] = w[:, :, ky, kx]
    bm = np.tile(b, 4)[None, :]
    return jnp.asarray(wm, jnp.bfloat16), jnp.asarray(bm, jnp.float32)


def prepare_params(params):
    """One-time packing (outside the per-call path): dense columns permuted to
    NHWC order, conv weights phase-folded, everything cast to bf16/f32."""
    z_dim = params["dense_w"].shape[1]
    assert z_dim % 128 == 0, "pad z_dim to a multiple of 128 for the MXU"

    # dense output columns reordered from (c, y, x) [NCHW view] to (y, x, c) [NHWC]
    y_i, x_i, c_i = np.meshgrid(np.arange(4), np.arange(4), np.arange(256),
                                indexing="ij")
    perm = (c_i * 16 + y_i * 4 + x_i).reshape(-1)
    dw = np.asarray(params["dense_w"], np.float32).T[:, perm]       # (z_dim, 4096)
    db = np.asarray(params["dense_b"], np.float32)[perm][None, :]   # (1, 4096)

    kp = {"dense_w": jnp.asarray(dw, jnp.bfloat16),
          "dense_b": jnp.asarray(db, jnp.float32)}
    for i in (1, 2, 3):
        kp[f"w{i}"], kp[f"b{i}"] = _fold_convT_weight(params[f"w{i}"],
                                                      params[f"b{i}"])
    return kp


# ---------------------------------------------------------------------------
# Forward pass (NHWC internally; NCHW only at the module boundary).
# ---------------------------------------------------------------------------
@jax.jit
def generator_forward(kparams, z, y):
    assert z.shape[0] == y.shape[0]   # y is unused (the original module ignores it)
    B = z.shape[0]
    h = dense(z.astype(jnp.bfloat16), kparams["dense_w"], kparams["dense_b"])
    h = h.reshape(B, 4, 4, 256)                                     # NHWC
    h = conv_transpose_phase(h, kparams["w1"], kparams["b1"],
                             activation="relu", out_dtype=jnp.bfloat16)
    h = conv_transpose_phase(h, kparams["w2"], kparams["b2"],
                             activation="relu", out_dtype=jnp.bfloat16)
    h = conv_transpose_phase(h, kparams["w3"], kparams["b3"],
                             activation="tanh", out_dtype=jnp.float32)
    return h.transpose(0, 3, 1, 2)                                  # NCHW out


# ---------------------------------------------------------------------------
# Pure-JAX f32 reference (scatter form of ConvTranspose2d) for validation.
# ---------------------------------------------------------------------------
def _conv_transpose2d_ref(x, w, b):
    B, Ci, H, W = x.shape
    Co = w.shape[1]
    contrib = jnp.einsum("ncij,cokl->noijkl", x, w)
    full = jnp.zeros((B, Co, 2 * H + 2, 2 * W + 2), jnp.float32)
    for ky in range(4):
        for kx in range(4):
            full = full.at[:, :, ky:ky + 2 * H - 1:2, kx:kx + 2 * W - 1:2].add(
                contrib[..., ky, kx])
    return full[:, :, 1:-1, 1:-1] + b[None, :, None, None]


def generator_forward_ref(params, z, y):
    h = z @ params["dense_w"].T + params["dense_b"]
    h = h.reshape(z.shape[0], 256, 4, 4)
    h = jax.nn.relu(_conv_transpose2d_ref(h, params["w1"], params["b1"]))
    h = jax.nn.relu(_conv_transpose2d_ref(h, params["w2"], params["b2"]))
    h = jnp.tanh(_conv_transpose2d_ref(h, params["w3"], params["b3"]))
    return h


if __name__ == "__main__":
    B, z_dim, nlabels = 2, 128, 10
    key = jax.random.PRNGKey(0)
    kparam, kz, kyl = jax.random.split(key, 3)

    params = init_params(kparam, z_dim)
    kparams = prepare_params(params)            # one-time weight packing

    z = jax.random.normal(kz, (B, z_dim), jnp.float32)
    y = jax.random.randint(kyl, (B,), 0, nlabels)

    out = jax.block_until_ready(generator_forward(kparams, z, y))
    assert out.shape == (B, 3, 32, 32), out.shape

    ref = jax.block_until_ready(generator_forward_ref(params, z, y))
    err = float(np.max(np.abs(np.asarray(out, np.float32) - np.asarray(ref))))
    assert err < 3e-2, f"max abs err {err}"

    print("KERNEL_OK")
</pallas_src>

<mosaic_0001>
module attributes {stable_mosaic.version = 11 : i64} {
  func.func @_dense_kernel(%arg0: i32, %arg1: memref<2x128xbf16, #tpu.memory_space<vmem>>, %arg2: memref<128x2048xbf16, #tpu.memory_space<vmem>>, %arg3: memref<1x2048xf32, #tpu.memory_space<vmem>>, %arg4: memref<2x2048xbf16, #tpu.memory_space<vmem>>) attributes {dimension_semantics = [#tpu.dimension_semantics<parallel>], iteration_bounds = array<i64: 2>, scalar_prefetch = 0 : i64, scratch_operands = 0 : i64, tpu.core_type = #tpu.core_type<tc>, window_params = [{pipeline_mode = #tpu.pipeline_mode<synchronous>, transform_indices = @transform_0, window_bounds = array<i64: 2, 128>}, {transform_indices = @transform_1, window_bounds = array<i64: 128, 2048>}, {transform_indices = @transform_2, window_bounds = array<i64: 1, 2048>}, {transform_indices = @transform_3, window_bounds = array<i64: 2, 2048>}]} {
    %c0 = arith.constant 0 : index
    %c0_0 = arith.constant 0 : index
    %0 = vector.load %arg1[%c0, %c0_0] : memref<2x128xbf16, #tpu.memory_space<vmem>>, vector<2x128xbf16>
    %c0_1 = arith.constant 0 : index
    %c0_2 = arith.constant 0 : index
    %1 = vector.load %arg2[%c0_1, %c0_2] : memref<128x2048xbf16, #tpu.memory_space<vmem>>, vector<128x2048xbf16>
    %cst = arith.constant dense<0.000000e+00> : vector<2x2048xf32>
    %2 = tpu.matmul %0, %1, %cst {dimension_numbers = #tpu.dot_dimension_numbers<[1], [0], [0], [1], [0, 0, 1, 1], [], []>} : vector<2x128xbf16>, vector<128x2048xbf16>, vector<2x2048xf32> -> vector<2x2048xf32>
    %c0_3 = arith.constant 0 : index
    %c0_4 = arith.constant 0 : index
    %3 = vector.load %arg3[%c0_3, %c0_4] : memref<1x2048xf32, #tpu.memory_space<vmem>>, vector<1x2048xf32>
    %4 = vector.broadcast %3 : vector<1x2048xf32> to vector<2x2048xf32>
    %5 = arith.addf %2, %4 : vector<2x2048xf32>
    %6 = arith.truncf %5 : vector<2x2048xf32> to vector<2x2048xbf16>
    %c0_5 = arith.constant 0 : index
    %c0_6 = arith.constant 0 : index
    %7 = vector.load %arg4[%c0_5, %c0_6] : memref<2x2048xbf16, #tpu.memory_space<vmem>>, vector<2x2048xbf16>
    tpu.vector_store %arg4[%c0_5, %c0_6], %6 {strides = array<i32>} : memref<2x2048xbf16, #tpu.memory_space<vmem>>, vector<2x2048xbf16>,
    return
  }
  func.func @transform_0(%arg0: i32) -> (i32, i32) {
    %c0_i32 = arith.constant 0 : i32
    %c0_i32_0 = arith.constant 0 : i32
    %c0_i32_1 = arith.constant 0 : i32
    return %c0_i32, %c0_i32_0 : i32, i32
  }
  func.func @transform_1(%arg0: i32) -> (i32, i32) {
    %c0_i32 = arith.constant 0 : i32
    %c0_i32_0 = arith.constant 0 : i32
    return %c0_i32, %arg0 : i32, i32
  }
  func.func @transform_2(%arg0: i32) -> (i32, i32) {
    %c0_i32 = arith.constant 0 : i32
    %c0_i32_0 = arith.constant 0 : i32
    return %c0_i32, %arg0 : i32, i32
  }
  func.func @transform_3(%arg0: i32) -> (i32, i32) {
    %c0_i32 = arith.constant 0 : i32
    %c0_i32_0 = arith.constant 0 : i32
    return %c0_i32, %arg0 : i32, i32
  }
}

module attributes {stable_mosaic.version = 11 : i64} {
  func.func @_convT_kernel(%arg0: i32, %arg1: memref<1x38x256xbf16, #tpu.memory_space<vmem>>, %arg2: memref<9x256x512xbf16, #tpu.memory_space<vmem>>, %arg3: memref<1x512xf32, #tpu.memory_space<vmem>>, %arg4: memref<1x24x512xbf16, #tpu.memory_space<vmem>>) attributes {dimension_semantics = [#tpu.dimension_semantics<parallel>], iteration_bounds = array<i64: 2>, scalar_prefetch = 0 : i64, scratch_operands = 0 : i64, tpu.core_type = #tpu.core_type<tc>, window_params = [{transform_indices = @transform_0, window_bounds = array<i64: 1, 38, 256>}, {pipeline_mode = #tpu.pipeline_mode<synchronous>, transform_indices = @transform_1, window_bounds = array<i64: 9, 256, 512>}, {pipeline_mode = #tpu.pipeline_mode<synchronous>, transform_indices = @transform_2, window_bounds = array<i64: 1, 512>}, {transform_indices = @transform_3, window_bounds = array<i64: 1, 24, 512>}]} {
    %c0 = arith.constant 0 : index
    %c0_0 = arith.constant 0 : index
    %c0_1 = arith.constant 0 : index
    %0 = vector.load %arg1[%c0, %c0_0, %c0_1] : memref<1x38x256xbf16, #tpu.memory_space<vmem>>, vector<1x24x256xbf16>
    %1 = vector.shape_cast %0 : vector<1x24x256xbf16> to vector<24x256xbf16>
    %c0_2 = arith.constant 0 : index
    %c0_3 = arith.constant 0 : index
    %c0_4 = arith.constant 0 : index
    %2 = vector.load %arg2[%c0_2, %c0_3, %c0_4] : memref<9x256x512xbf16, #tpu.memory_space<vmem>>, vector<1x256x512xbf16>
    %3 = vector.shape_cast %2 : vector<1x256x512xbf16> to vector<256x512xbf16>
    %cst = arith.constant dense<0.000000e+00> : vector<24x512xf32>
    %4 = tpu.matmul %1, %3, %cst {dimension_numbers = #tpu.dot_dimension_numbers<[1], [0], [0], [1], [0, 0, 1, 1], [], []>} : vector<24x256xbf16>, vector<256x512xbf16>, vector<24x512xf32> -> vector<24x512xf32>
    %c0_5 = arith.constant 0 : index
    %c1 = arith.constant 1 : index
    %c0_6 = arith.constant 0 : index
    %5 = vector.load %arg1[%c0_5, %c1, %c0_6] : memref<1x38x256xbf16, #tpu.memory_space<vmem>>, vector<1x24x256xbf16>
    %6 = vector.shape_cast %5 : vector<1x24x256xbf16> to vector<24x256xbf16>
    %c1_7 = arith.constant 1 : index
    %c0_8 = arith.constant 0 : index
    %c0_9 = arith.constant 0 : index
    %7 = vector.load %arg2[%c1_7, %c0_8, %c0_9] : memref<9x256x512xbf16, #tpu.memory_space<vmem>>, vector<1x256x512xbf16>
    %8 = vector.shape_cast %7 : vector<1x256x512xbf16> to vector<256x512xbf16>
    %cst_10 = arith.constant dense<0.000000e+00> : vector<24x512xf32>
    %9 = tpu.matmul %6, %8, %cst_10 {dimension_numbers = #tpu.dot_dimension_numbers<[1], [0], [0], [1], [0, 0, 1, 1], [], []>} : vector<24x256xbf16>, vector<256x512xbf16>, vector<24x512xf32> -> vector<24x512xf32>
    %10 = arith.addf %4, %9 : vector<24x512xf32>
    %c0_11 = arith.constant 0 : index
    %c2 = arith.constant 2 : index
    %c0_12 = arith.constant 0 : index
    %11 = vector.load %arg1[%c0_11, %c2, %c0_12] : memref<1x38x256xbf16, #tpu.memory_space<vmem>>, vector<1x24x256xbf16>
    %12 = vector.shape_cast %11 : vector<1x24x256xbf16> to vector<24x256xbf16>
    %c2_13 = arith.constant 2 : index
    %c0_14 = arith.constant 0 : index
    %c0_15 = arith.constant 0 : index
    %13 = vector.load %arg2[%c2_13, %c0_14, %c0_15] : memref<9x256x512xbf16, #tpu.memory_space<vmem>>, vector<1x256x512xbf16>
    %14 = vector.shape_cast %13 : vector<1x256x512xbf16> to vector<256x512xbf16>
    %cst_16 = arith.constant dense<0.000000e+00> : vector<24x512xf32>
    %15 = tpu.matmul %12, %14, %cst_16 {dimension_numbers = #tpu.dot_dimension_numbers<[1], [0], [0], [1], [0, 0, 1, 1], [], []>} : vector<24x256xbf16>, vector<256x512xbf16>, vector<24x512xf32> -> vector<24x512xf32>
    %16 = arith.addf %10, %15 : vector<24x512xf32>
    %c0_17 = arith.constant 0 : index
    %c6 = arith.constant 6 : index
    %c0_18 = arith.constant 0 : index
    %17 = vector.load %arg1[%c0_17, %c6, %c0_18] : memref<1x38x256xbf16, #tpu.memory_space<vmem>>, vector<1x24x256xbf16>
    %18 = vector.shape_cast %17 : vector<1x24x256xbf16> to vector<24x256xbf16>
    %c3 = arith.constant 3 : index
    %c0_19 = arith.constant 0 : index
    %c0_20 = arith.constant 0 : index
    %19 = vector.load %arg2[%c3, %c0_19, %c0_20] : memref<9x256x512xbf16, #tpu.memory_space<vmem>>, vector<1x256x512xbf16>
    %20 = vector.shape_cast %19 : vector<1x256x512xbf16> to vector<256x512xbf16>
    %cst_21 = arith.constant dense<0.000000e+00> : vector<24x512xf32>
    %21 = tpu.matmul %18, %20, %cst_21 {dimension_numbers = #tpu.dot_dimension_numbers<[1], [0], [0], [1], [0, 0, 1, 1], [], []>} : vector<24x256xbf16>, vector<256x512xbf16>, vector<24x512xf32> -> vector<24x512xf32>
    %22 = arith.addf %16, %21 : vector<24x512xf32>
    %c0_22 = arith.constant 0 : index
    %c7 = arith.constant 7 : index
    %c0_23 = arith.constant 0 : index
    %23 = vector.load %arg1[%c0_22, %c7, %c0_23] : memref<1x38x256xbf16, #tpu.memory_space<vmem>>, vector<1x24x256xbf16>
    %24 = vector.shape_cast %23 : vector<1x24x256xbf16> to vector<24x256xbf16>
    %c4 = arith.constant 4 : index
    %c0_24 = arith.constant 0 : index
    %c0_25 = arith.constant 0 : index
    %25 = vector.load %arg2[%c4, %c0_24, %c0_25] : memref<9x256x512xbf16, #tpu.memory_space<vmem>>, vector<1x256x512xbf16>
    %26 = vector.shape_cast %25 : vector<1x256x512xbf16> to vector<256x512xbf16>
    %cst_26 = arith.constant dense<0.000000e+00> : vector<24x512xf32>
    %27 = tpu.matmul %24, %26, %cst_26 {dimension_numbers = #tpu.dot_dimension_numbers<[1], [0], [0], [1], [0, 0, 1, 1], [], []>} : vector<24x256xbf16>, vector<256x512xbf16>, vector<24x512xf32> -> vector<24x512xf32>
    %28 = arith.addf %22, %27 : vector<24x512xf32>
    %c0_27 = arith.constant 0 : index
    %c8 = arith.constant 8 : index
    %c0_28 = arith.constant 0 : index
    %29 = vector.load %arg1[%c0_27, %c8, %c0_28] : memref<1x38x256xbf16, #tpu.memory_space<vmem>>, vector<1x24x256xbf16>
    %30 = vector.shape_cast %29 : vector<1x24x256xbf16> to vector<24x256xbf16>
    %c5 = arith.constant 5 : index
    %c0_29 = arith.constant 0 : index
    %c0_30 = arith.constant 0 : index
    %31 = vector.load %arg2[%c5, %c0_29, %c0_30] : memref<9x256x512xbf16, #tpu.memory_space<vmem>>, vector<1x256x512xbf16>
    %32 = vector.shape_cast %31 : vector<1x256x512xbf16> to vector<256x512xbf16>
    %cst_31 = arith.constant dense<0.000000e+00> : vector<24x512xf32>
    %33 = tpu.matmul %30, %32, %cst_31 {dimension_numbers = #tpu.dot_dimension_numbers<[1], [0], [0], [1], [0, 0, 1, 1], [], []>} : vector<24x256xbf16>, vector<256x512xbf16>, vector<24x512xf32> -> vector<24x512xf32>
    %34 = arith.addf %28, %33 : vector<24x512xf32>
    %c0_32 = arith.constant 0 : index
    %c12 = arith.constant 12 : index
    %c0_33 = arith.constant 0 : index
    %35 = vector.load %arg1[%c0_32, %c12, %c0_33] : memref<1x38x256xbf16, #tpu.memory_space<vmem>>, vector<1x24x256xbf16>
    %36 = vector.shape_cast %35 : vector<1x24x256xbf16> to vector<24x256xbf16>
    %c6_34 = arith.constant 6 : index
    %c0_35 = arith.constant 0 : index
    %c0_36 = arith.constant 0 : index
    %37 = vector.load %arg2[%c6_34, %c0_35, %c0_36] : memref<9x256x512xbf16, #tpu.memory_space<vmem>>, vector<1x256x512xbf16>
    %38 = vector.shape_cast %37 : vector<1x256x512xbf16> to vector<256x512xbf16>
    %cst_37 = arith.constant dense<0.000000e+00> : vector<24x512xf32>
    %39 = tpu.matmul %36, %38, %cst_37 {dimension_numbers = #tpu.dot_dimension_numbers<[1], [0], [0], [1], [0, 0, 1, 1], [], []>} : vector<24x256xbf16>, vector<256x512xbf16>, vector<24x512xf32> -> vector<24x512xf32>
    %40 = arith.addf %34, %39 : vector<24x512xf32>
    %c0_38 = arith.constant 0 : index
    %c13 = arith.constant 13 : index
    %c0_39 = arith.constant 0 : index
    %41 = vector.load %arg1[%c0_38, %c13, %c0_39] : memref<1x38x256xbf16, #tpu.memory_space<vmem>>, vector<1x24x256xbf16>
    %42 = vector.shape_cast %41 : vector<1x24x256xbf16> to vector<24x256xbf16>
    %c7_40 = arith.constant 7 : index
    %c0_41 = arith.constant 0 : index
    %c0_42 = arith.constant 0 : index
    %43 = vector.load %arg2[%c7_40, %c0_41, %c0_42] : memref<9x256x512xbf16, #tpu.memory_space<vmem>>, vector<1x256x512xbf16>
    %44 = vector.shape_cast %43 : vector<1x256x512xbf16> to vector<256x512xbf16>
    %cst_43 = arith.constant dense<0.000000e+00> : vector<24x512xf32>
    %45 = tpu.matmul %42, %44, %cst_43 {dimension_numbers = #tpu.dot_dimension_numbers<[1], [0], [0], [1], [0, 0, 1, 1], [], []>} : vector<24x256xbf16>, vector<256x512xbf16>, vector<24x512xf32> -> vector<24x512xf32>
    %46 = arith.addf %40, %45 : vector<24x512xf32>
    %c0_44 = arith.constant 0 : index
    %c14 = arith.constant 14 : index
    %c0_45 = arith.constant 0 : index
    %47 = vector.load %arg1[%c0_44, %c14, %c0_45] : memref<1x38x256xbf16, #tpu.memory_space<vmem>>, vector<1x24x256xbf16>
    %48 = vector.shape_cast %47 : vector<1x24x256xbf16> to vector<24x256xbf16>
    %c8_46 = arith.constant 8 : index
    %c0_47 = arith.constant 0 : index
    %c0_48 = arith.constant 0 : index
    %49 = vector.load %arg2[%c8_46, %c0_47, %c0_48] : memref<9x256x512xbf16, #tpu.memory_space<vmem>>, vector<1x256x512xbf16>
    %50 = vector.shape_cast %49 : vector<1x256x512xbf16> to vector<256x512xbf16>
    %cst_49 = arith.constant dense<0.000000e+00> : vector<24x512xf32>
    %51 = tpu.matmul %48, %50, %cst_49 {dimension_numbers = #tpu.dot_dimension_numbers<[1], [0], [0], [1], [0, 0, 1, 1], [], []>} : vector<24x256xbf16>, vector<256x512xbf16>, vector<24x512xf32> -> vector<24x512xf32>
    %52 = arith.addf %46, %51 : vector<24x512xf32>
    %c0_50 = arith.constant 0 : index
    %c0_51 = arith.constant 0 : index
    %53 = vector.load %arg3[%c0_50, %c0_51] : memref<1x512xf32, #tpu.memory_space<vmem>>, vector<1x512xf32>
    %54 = vector.broadcast %53 : vector<1x512xf32> to vector<24x512xf32>
    %55 = arith.addf %52, %54 : vector<24x512xf32>
    %cst_52 = arith.constant 0.000000e+00 : f32
    %56 = vector.broadcast %cst_52 : f32 to vector<24x512xf32>
    %57 = arith.maximumf %55, %56 : vector<24x512xf32>
    %58 = arith.truncf %57 : vector<24x512xf32> to vector<24x512xbf16>
    %c0_53 = arith.constant 0 : index
    %c0_54 = arith.constant 0 : index
    %c0_55 = arith.constant 0 : index
    %59 = vector.load %arg4[%c0_53, %c0_54, %c0_55] : memref<1x24x512xbf16, #tpu.memory_space<vmem>>, vector<1x24x512xbf16>
    %60 = vector.shape_cast %59 : vector<1x24x512xbf16> to vector<24x512xbf16>
    %61 = vector.shape_cast %58 : vector<24x512xbf16> to vector<1x24x512xbf16>
    tpu.vector_store %arg4[%c0_53, %c0_54, %c0_55], %61 {strides = array<i32>} : memref<1x24x512xbf16, #tpu.memory_space<vmem>>, vector<1x24x512xbf16>,
    return
  }
  func.func @transform_0(%arg0: i32) -> (i32, i32, i32) {
    %c0_i32 = arith.constant 0 : i32
    %c0_i32_0 = arith.constant 0 : i32
    %c0_i32_1 = arith.constant 0 : i32
    return %arg0, %c0_i32, %c0_i32_0 : i32, i32, i32
  }
  func.func @transform_1(%arg0: i32) -> (i32, i32, i32) {
    %c0_i32 = arith.constant 0 : i32
    %c0_i32_0 = arith.constant 0 : i32
    %c0_i32_1 = arith.constant 0 : i32
    %c0_i32_2 = arith.constant 0 : i32
    return %c0_i32, %c0_i32_0, %c0_i32_1 : i32, i32, i32
  }
  func.func @transform_2(%arg0: i32) -> (i32, i32) {
    %c0_i32 = arith.constant 0 : i32
    %c0_i32_0 = arith.constant 0 : i32
    %c0_i32_1 = arith.constant 0 : i32
    return %c0_i32, %c0_i32_0 : i32, i32
  }
  func.func @transform_3(%arg0: i32) -> (i32, i32, i32) {
    %c0_i32 = arith.constant 0 : i32
    %c0_i32_0 = arith.constant 0 : i32
    %c0_i32_1 = arith.constant 0 : i32
    return %arg0, %c0_i32, %c0_i32_0 : i32, i32, i32
  }
}

module attributes {stable_mosaic.version = 11 : i64} {
  func.func @_convT_kernel(%arg0: i32, %arg1: memref<1x102x128xbf16, #tpu.memory_space<vmem>>, %arg2: memref<9x128x256xbf16, #tpu.memory_space<vmem>>, %arg3: memref<1x256xf32, #tpu.memory_space<vmem>>, %arg4: memref<1x80x256xbf16, #tpu.memory_space<vmem>>) attributes {dimension_semantics = [#tpu.dimension_semantics<parallel>], iteration_bounds = array<i64: 2>, scalar_prefetch = 0 : i64, scratch_operands = 0 : i64, tpu.core_type = #tpu.core_type<tc>, window_params = [{transform_indices = @transform_0, window_bounds = array<i64: 1, 102, 128>}, {pipeline_mode = #tpu.pipeline_mode<synchronous>, transform_indices = @transform_1, window_bounds = array<i64: 9, 128, 256>}, {pipeline_mode = #tpu.pipeline_mode<synchronous>, transform_indices = @transform_2, window_bounds = array<i64: 1, 256>}, {transform_indices = @transform_3, window_bounds = array<i64: 1, 80, 256>}]} {
    %c0 = arith.constant 0 : index
    %c0_0 = arith.constant 0 : index
    %c0_1 = arith.constant 0 : index
    %0 = vector.load %arg1[%c0, %c0_0, %c0_1] : memref<1x102x128xbf16, #tpu.memory_space<vmem>>, vector<1x80x128xbf16>
    %1 = vector.shape_cast %0 : vector<1x80x128xbf16> to vector<80x128xbf16>
    %c0_2 = arith.constant 0 : index
    %c0_3 = arith.constant 0 : index
    %c0_4 = arith.constant 0 : index
    %2 = vector.load %arg2[%c0_2, %c0_3, %c0_4] : memref<9x128x256xbf16, #tpu.memory_space<vmem>>, vector<1x128x256xbf16>
    %3 = vector.shape_cast %2 : vector<1x128x256xbf16> to vector<128x256xbf16>
    %cst = arith.constant dense<0.000000e+00> : vector<80x256xf32>
    %4 = tpu.matmul %1, %3, %cst {dimension_numbers = #tpu.dot_dimension_numbers<[1], [0], [0], [1], [0, 0, 1, 1], [], []>} : vector<80x128xbf16>, vector<128x256xbf16>, vector<80x256xf32> -> vector<80x256xf32>
    %c0_5 = arith.constant 0 : index
    %c1 = arith.constant 1 : index
    %c0_6 = arith.constant 0 : index
    %5 = vector.load %arg1[%c0_5, %c1, %c0_6] : memref<1x102x128xbf16, #tpu.memory_space<vmem>>, vector<1x80x128xbf16>
    %6 = vector.shape_cast %5 : vector<1x80x128xbf16> to vector<80x128xbf16>
    %c1_7 = arith.constant 1 : index
    %c0_8 = arith.constant 0 : index
    %c0_9 = arith.constant 0 : index
    %7 = vector.load %arg2[%c1_7, %c0_8, %c0_9] : memref<9x128x256xbf16, #tpu.memory_space<vmem>>, vector<1x128x256xbf16>
    %8 = vector.shape_cast %7 : vector<1x128x256xbf16> to vector<128x256xbf16>
    %cst_10 = arith.constant dense<0.000000e+00> : vector<80x256xf32>
    %9 = tpu.matmul %6, %8, %cst_10 {dimension_numbers = #tpu.dot_dimension_numbers<[1], [0], [0], [1], [0, 0, 1, 1], [], []>} : vector<80x128xbf16>, vector<128x256xbf16>, vector<80x256xf32> -> vector<80x256xf32>
    %10 = arith.addf %4, %9 : vector<80x256xf32>
    %c0_11 = arith.constant 0 : index
    %c2 = arith.constant 2 : index
    %c0_12 = arith.constant 0 : index
    %11 = vector.load %arg1[%c0_11, %c2, %c0_12] : memref<1x102x128xbf16, #tpu.memory_space<vmem>>, vector<1x80x128xbf16>
    %12 = vector.shape_cast %11 : vector<1x80x128xbf16> to vector<80x128xbf16>
    %c2_13 = arith.constant 2 : index
    %c0_14 = arith.constant 0 : index
    %c0_15 = arith.constant 0 : index
    %13 = vector.load %arg2[%c2_13, %c0_14, %c0_15] : memref<9x128x256xbf16, #tpu.memory_space<vmem>>, vector<1x128x256xbf16>
    %14 = vector.shape_cast %13 : vector<1x128x256xbf16> to vector<128x256xbf16>
    %cst_16 = arith.constant dense<0.000000e+00> : vector<80x256xf32>
    %15 = tpu.matmul %12, %14, %cst_16 {dimension_numbers = #tpu.dot_dimension_numbers<[1], [0], [0], [1], [0, 0, 1, 1], [], []>} : vector<80x128xbf16>, vector<128x256xbf16>, vector<80x256xf32> -> vector<80x256xf32>
    %16 = arith.addf %10, %15 : vector<80x256xf32>
    %c0_17 = arith.constant 0 : index
    %c10 = arith.constant 10 : index
    %c0_18 = arith.constant 0 : index
    %17 = vector.load %arg1[%c0_17, %c10, %c0_18] : memref<1x102x128xbf16, #tpu.memory_space<vmem>>, vector<1x80x128xbf16>
    %18 = vector.shape_cast %17 : vector<1x80x128xbf16> to vector<80x128xbf16>
    %c3 = arith.constant 3 : index
    %c0_19 = arith.constant 0 : index
    %c0_20 = arith.constant 0 : index
    %19 = vector.load %arg2[%c3, %c0_19, %c0_20] : memref<9x128x256xbf16, #tpu.memory_space<vmem>>, vector<1x128x256xbf16>
    %20 = vector.shape_cast %19 : vector<1x128x256xbf16> to vector<128x256xbf16>
    %cst_21 = arith.constant dense<0.000000e+00> : vector<80x256xf32>
    %21 = tpu.matmul %18, %20, %cst_21 {dimension_numbers = #tpu.dot_dimension_numbers<[1], [0], [0], [1], [0, 0, 1, 1], [], []>} : vector<80x128xbf16>, vector<128x256xbf16>, vector<80x256xf32> -> vector<80x256xf32>
    %22 = arith.addf %16, %21 : vector<80x256xf32>
    %c0_22 = arith.constant 0 : index
    %c11 = arith.constant 11 : index
    %c0_23 = arith.constant 0 : index
    %23 = vector.load %arg1[%c0_22, %c11, %c0_23] : memref<1x102x128xbf16, #tpu.memory_space<vmem>>, vector<1x80x128xbf16>
    %24 = vector.shape_cast %23 : vector<1x80x128xbf16> to vector<80x128xbf16>
    %c4 = arith.constant 4 : index
    %c0_24 = arith.constant 0 : index
    %c0_25 = arith.constant 0 : index
    %25 = vector.load %arg2[%c4, %c0_24, %c0_25] : memref<9x128x256xbf16, #tpu.memory_space<vmem>>, vector<1x128x256xbf16>
    %26 = vector.shape_cast %25 : vector<1x128x256xbf16> to vector<128x256xbf16>
    %cst_26 = arith.constant dense<0.000000e+00> : vector<80x256xf32>
    %27 = tpu.matmul %24, %26, %cst_26 {dimension_numbers = #tpu.dot_dimension_numbers<[1], [0], [0], [1], [0, 0, 1, 1], [], []>} : vector<80x128xbf16>, vector<128x256xbf16>, vector<80x256xf32> -> vector<80x256xf32>
    %28 = arith.addf %22, %27 : vector<80x256xf32>
    %c0_27 = arith.constant 0 : index
    %c12 = arith.constant 12 : index
    %c0_28 = arith.constant 0 : index
    %29 = vector.load %arg1[%c0_27, %c12, %c0_28] : memref<1x102x128xbf16, #tpu.memory_space<vmem>>, vector<1x80x128xbf16>
    %30 = vector.shape_cast %29 : vector<1x80x128xbf16> to vector<80x128xbf16>
    %c5 = arith.constant 5 : index
    %c0_29 = arith.constant 0 : index
    %c0_30 = arith.constant 0 : index
    %31 = vector.load %arg2[%c5, %c0_29, %c0_30] : memref<9x128x256xbf16, #tpu.memory_space<vmem>>, vector<1x128x256xbf16>
    %32 = vector.shape_cast %31 : vector<1x128x256xbf16> to vector<128x256xbf16>
    %cst_31 = arith.constant dense<0.000000e+00> : vector<80x256xf32>
    %33 = tpu.matmul %30, %32, %cst_31 {dimension_numbers = #tpu.dot_dimension_numbers<[1], [0], [0], [1], [0, 0, 1, 1], [], []>} : vector<80x128xbf16>, vector<128x256xbf16>, vector<80x256xf32> -> vector<80x256xf32>
    %34 = arith.addf %28, %33 : vector<80x256xf32>
    %c0_32 = arith.constant 0 : index
    %c20 = arith.constant 20 : index
    %c0_33 = arith.constant 0 : index
    %35 = vector.load %arg1[%c0_32, %c20, %c0_33] : memref<1x102x128xbf16, #tpu.memory_space<vmem>>, vector<1x80x128xbf16>
    %36 = vector.shape_cast %35 : vector<1x80x128xbf16> to vector<80x128xbf16>
    %c6 = arith.constant 6 : index
    %c0_34 = arith.constant 0 : index
    %c0_35 = arith.constant 0 : index
    %37 = vector.load %arg2[%c6, %c0_34, %c0_35] : memref<9x128x256xbf16, #tpu.memory_space<vmem>>, vector<1x128x256xbf16>
    %38 = vector.shape_cast %37 : vector<1x128x256xbf16> to vector<128x256xbf16>
    %cst_36 = arith.constant dense<0.000000e+00> : vector<80x256xf32>
    %39 = tpu.matmul %36, %38, %cst_36 {dimension_numbers = #tpu.dot_dimension_numbers<[1], [0], [0], [1], [0, 0, 1, 1], [], []>} : vector<80x128xbf16>, vector<128x256xbf16>, vector<80x256xf32> -> vector<80x256xf32>
    %40 = arith.addf %34, %39 : vector<80x256xf32>
    %c0_37 = arith.constant 0 : index
    %c21 = arith.constant 21 : index
    %c0_38 = arith.constant 0 : index
    %41 = vector.load %arg1[%c0_37, %c21, %c0_38] : memref<1x102x128xbf16, #tpu.memory_space<vmem>>, vector<1x80x128xbf16>
    %42 = vector.shape_cast %41 : vector<1x80x128xbf16> to vector<80x128xbf16>
    %c7 = arith.constant 7 : index
    %c0_39 = arith.constant 0 : index
    %c0_40 = arith.constant 0 : index
    %43 = vector.load %arg2[%c7, %c0_39, %c0_40] : memref<9x128x256xbf16, #tpu.memory_space<vmem>>, vector<1x128x256xbf16>
    %44 = vector.shape_cast %43 : vector<1x128x256xbf16> to vector<128x256xbf16>
    %cst_41 = arith.constant dense<0.000000e+00> : vector<80x256xf32>
    %45 = tpu.matmul %42, %44, %cst_41 {dimension_numbers = #tpu.dot_dimension_numbers<[1], [0], [0], [1], [0, 0, 1, 1], [], []>} : vector<80x128xbf16>, vector<128x256xbf16>, vector<80x256xf32> -> vector<80x256xf32>
    %46 = arith.addf %40, %45 : vector<80x256xf32>
    %c0_42 = arith.constant 0 : index
    %c22 = arith.constant 22 : index
    %c0_43 = arith.constant 0 : index
    %47 = vector.load %arg1[%c0_42, %c22, %c0_43] : memref<1x102x128xbf16, #tpu.memory_space<vmem>>, vector<1x80x128xbf16>
    %48 = vector.shape_cast %47 : vector<1x80x128xbf16> to vector<80x128xbf16>
    %c8 = arith.constant 8 : index
    %c0_44 = arith.constant 0 : index
    %c0_45 = arith.constant 0 : index
    %49 = vector.load %arg2[%c8, %c0_44, %c0_45] : memref<9x128x256xbf16, #tpu.memory_space<vmem>>, vector<1x128x256xbf16>
    %50 = vector.shape_cast %49 : vector<1x128x256xbf16> to vector<128x256xbf16>
    %cst_46 = arith.constant dense<0.000000e+00> : vector<80x256xf32>
    %51 = tpu.matmul %48, %50, %cst_46 {dimension_numbers = #tpu.dot_dimension_numbers<[1], [0], [0], [1], [0, 0, 1, 1], [], []>} : vector<80x128xbf16>, vector<128x256xbf16>, vector<80x256xf32> -> vector<80x256xf32>
    %52 = arith.addf %46, %51 : vector<80x256xf32>
    %c0_47 = arith.constant 0 : index
    %c0_48 = arith.constant 0 : index
    %53 = vector.load %arg3[%c0_47, %c0_48] : memref<1x256xf32, #tpu.memory_space<vmem>>, vector<1x256xf32>
    %54 = vector.broadcast %53 : vector<1x256xf32> to vector<80x256xf32>
    %55 = arith.addf %52, %54 : vector<80x256xf32>
    %cst_49 = arith.constant 0.000000e+00 : f32
    %56 = vector.broadcast %cst_49 : f32 to vector<80x256xf32>
    %57 = arith.maximumf %55, %56 : vector<80x256xf32>
    %58 = arith.truncf %57 : vector<80x256xf32> to vector<80x256xbf16>
    %c0_50 = arith.constant 0 : index
    %c0_51 = arith.constant 0 : index
    %c0_52 = arith.constant 0 : index
    %59 = vector.load %arg4[%c0_50, %c0_51, %c0_52] : memref<1x80x256xbf16, #tpu.memory_space<vmem>>, vector<1x80x256xbf16>
    %60 = vector.shape_cast %59 : vector<1x80x256xbf16> to vector<80x256xbf16>
    %61 = vector.shape_cast %58 : vector<80x256xbf16> to vector<1x80x256xbf16>
    tpu.vector_store %arg4[%c0_50, %c0_51, %c0_52], %61 {strides = array<i32>} : memref<1x80x256xbf16, #tpu.memory_space<vmem>>, vector<1x80x256xbf16>,
    return
  }
  func.func @transform_0(%arg0: i32) -> (i32, i32, i32) {
    %c0_i32 = arith.constant 0 : i32
    %c0_i32_0 = arith.constant 0 : i32
    %c0_i32_1 = arith.constant 0 : i32
    return %arg0, %c0_i32, %c0_i32_0 : i32, i32, i32
  }
  func.func @transform_1(%arg0: i32) -> (i32, i32, i32) {
    %c0_i32 = arith.constant 0 : i32
    %c0_i32_0 = arith.constant 0 : i32
    %c0_i32_1 = arith.constant 0 : i32
    %c0_i32_2 = arith.constant 0 : i32
    return %c0_i32, %c0_i32_0, %c0_i32_1 : i32, i32, i32
  }
  func.func @transform_2(%arg0: i32) -> (i32, i32) {
    %c0_i32 = arith.constant 0 : i32
    %c0_i32_0 = arith.constant 0 : i32
    %c0_i32_1 = arith.constant 0 : i32
    return %c0_i32, %c0_i32_0 : i32, i32
  }
  func.func @transform_3(%arg0: i32) -> (i32, i32, i32) {
    %c0_i32 = arith.constant 0 : i32
    %c0_i32_0 = arith.constant 0 : i32
    %c0_i32_1 = arith.constant 0 : i32
    return %arg0, %c0_i32, %c0_i32_0 : i32, i32, i32
  }
}

module attributes {stable_mosaic.version = 11 : i64} {
  func.func @_convT_kernel(%arg0: i32, %arg1: memref<1x326x64xbf16, #tpu.memory_space<vmem>>, %arg2: memref<9x64x12xbf16, #tpu.memory_space<vmem>>, %arg3: memref<1x12xf32, #tpu.memory_space<vmem>>, %arg4: memref<1x288x12xf32, #tpu.memory_space<vmem>>) attributes {dimension_semantics = [#tpu.dimension_semantics<parallel>], iteration_bounds = array<i64: 2>, scalar_prefetch = 0 : i64, scratch_operands = 0 : i64, tpu.core_type = #tpu.core_type<tc>, window_params = [{transform_indices = @transform_0, window_bounds = array<i64: 1, 326, 64>}, {pipeline_mode = #tpu.pipeline_mode<synchronous>, transform_indices = @transform_1, window_bounds = array<i64: 9, 64, 12>}, {pipeline_mode = #tpu.pipeline_mode<synchronous>, transform_indices = @transform_2, window_bounds = array<i64: 1, 12>}, {transform_indices = @transform_3, window_bounds = array<i64: 1, 288, 12>}]} {
    %c0 = arith.constant 0 : index
    %c0_0 = arith.constant 0 : index
    %c0_1 = arith.constant 0 : index
    %0 = vector.load %arg1[%c0, %c0_0, %c0_1] : memref<1x326x64xbf16, #tpu.memory_space<vmem>>, vector<1x288x64xbf16>
    %1 = vector.shape_cast %0 : vector<1x288x64xbf16> to vector<288x64xbf16>
    %c0_2 = arith.constant 0 : index
    %c0_3 = arith.constant 0 : index
    %c0_4 = arith.constant 0 : index
    %2 = vector.load %arg2[%c0_2, %c0_3, %c0_4] : memref<9x64x12xbf16, #tpu.memory_space<vmem>>, vector<1x64x12xbf16>
    %3 = vector.shape_cast %2 : vector<1x64x12xbf16> to vector<64x12xbf16>
    %cst = arith.constant dense<0.000000e+00> : vector<288x12xf32>
    %4 = tpu.matmul %1, %3, %cst {dimension_numbers = #tpu.dot_dimension_numbers<[1], [0], [0], [1], [0, 0, 1, 1], [], []>} : vector<288x64xbf16>, vector<64x12xbf16>, vector<288x12xf32> -> vector<288x12xf32>
    %c0_5 = arith.constant 0 : index
    %c1 = arith.constant 1 : index
    %c0_6 = arith.constant 0 : index
    %5 = vector.load %arg1[%c0_5, %c1, %c0_6] : memref<1x326x64xbf16, #tpu.memory_space<vmem>>, vector<1x288x64xbf16>
    %6 = vector.shape_cast %5 : vector<1x288x64xbf16> to vector<288x64xbf16>
    %c1_7 = arith.constant 1 : index
    %c0_8 = arith.constant 0 : index
    %c0_9 = arith.constant 0 : index
    %7 = vector.load %arg2[%c1_7, %c0_8, %c0_9] : memref<9x64x12xbf16, #tpu.memory_space<vmem>>, vector<1x64x12xbf16>
    %8 = vector.shape_cast %7 : vector<1x64x12xbf16> to vector<64x12xbf16>
    %cst_10 = arith.constant dense<0.000000e+00> : vector<288x12xf32>
    %9 = tpu.matmul %6, %8, %cst_10 {dimension_numbers = #tpu.dot_dimension_numbers<[1], [0], [0], [1], [0, 0, 1, 1], [], []>} : vector<288x64xbf16>, vector<64x12xbf16>, vector<288x12xf32> -> vector<288x12xf32>
    %10 = arith.addf %4, %9 : vector<288x12xf32>
    %c0_11 = arith.constant 0 : index
    %c2 = arith.constant 2 : index
    %c0_12 = arith.constant 0 : index
    %11 = vector.load %arg1[%c0_11, %c2, %c0_12] : memref<1x326x64xbf16, #tpu.memory_space<vmem>>, vector<1x288x64xbf16>
    %12 = vector.shape_cast %11 : vector<1x288x64xbf16> to vector<288x64xbf16>
    %c2_13 = arith.constant 2 : index
    %c0_14 = arith.constant 0 : index
    %c0_15 = arith.constant 0 : index
    %13 = vector.load %arg2[%c2_13, %c0_14, %c0_15] : memref<9x64x12xbf16, #tpu.memory_space<vmem>>, vector<1x64x12xbf16>
    %14 = vector.shape_cast %13 : vector<1x64x12xbf16> to vector<64x12xbf16>
    %cst_16 = arith.constant dense<0.000000e+00> : vector<288x12xf32>
    %15 = tpu.matmul %12, %14, %cst_16 {dimension_numbers = #tpu.dot_dimension_numbers<[1], [0], [0], [1], [0, 0, 1, 1], [], []>} : vector<288x64xbf16>, vector<64x12xbf16>, vector<288x12xf32> -> vector<288x12xf32>
    %16 = arith.addf %10, %15 : vector<288x12xf32>
    %c0_17 = arith.constant 0 : index
    %c18 = arith.constant 18 : index
    %c0_18 = arith.constant 0 : index
    %17 = vector.load %arg1[%c0_17, %c18, %c0_18] : memref<1x326x64xbf16, #tpu.memory_space<vmem>>, vector<1x288x64xbf16>
    %18 = vector.shape_cast %17 : vector<1x288x64xbf16> to vector<288x64xbf16>
    %c3 = arith.constant 3 : index
    %c0_19 = arith.constant 0 : index
    %c0_20 = arith.constant 0 : index
    %19 = vector.load %arg2[%c3, %c0_19, %c0_20] : memref<9x64x12xbf16, #tpu.memory_space<vmem>>, vector<1x64x12xbf16>
    %20 = vector.shape_cast %19 : vector<1x64x12xbf16> to vector<64x12xbf16>
    %cst_21 = arith.constant dense<0.000000e+00> : vector<288x12xf32>
    %21 = tpu.matmul %18, %20, %cst_21 {dimension_numbers = #tpu.dot_dimension_numbers<[1], [0], [0], [1], [0, 0, 1, 1], [], []>} : vector<288x64xbf16>, vector<64x12xbf16>, vector<288x12xf32> -> vector<288x12xf32>
    %22 = arith.addf %16, %21 : vector<288x12xf32>
    %c0_22 = arith.constant 0 : index
    %c19 = arith.constant 19 : index
    %c0_23 = arith.constant 0 : index
    %23 = vector.load %arg1[%c0_22, %c19, %c0_23] : memref<1x326x64xbf16, #tpu.memory_space<vmem>>, vector<1x288x64xbf16>
    %24 = vector.shape_cast %23 : vector<1x288x64xbf16> to vector<288x64xbf16>
    %c4 = arith.constant 4 : index
    %c0_24 = arith.constant 0 : index
    %c0_25 = arith.constant 0 : index
    %25 = vector.load %arg2[%c4, %c0_24, %c0_25] : memref<9x64x12xbf16, #tpu.memory_space<vmem>>, vector<1x64x12xbf16>
    %26 = vector.shape_cast %25 : vector<1x64x12xbf16> to vector<64x12xbf16>
    %cst_26 = arith.constant dense<0.000000e+00> : vector<288x12xf32>
    %27 = tpu.matmul %24, %26, %cst_26 {dimension_numbers = #tpu.dot_dimension_numbers<[1], [0], [0], [1], [0, 0, 1, 1], [], []>} : vector<288x64xbf16>, vector<64x12xbf16>, vector<288x12xf32> -> vector<288x12xf32>
    %28 = arith.addf %22, %27 : vector<288x12xf32>
    %c0_27 = arith.constant 0 : index
    %c20 = arith.constant 20 : index
    %c0_28 = arith.constant 0 : index
    %29 = vector.load %arg1[%c0_27, %c20, %c0_28] : memref<1x326x64xbf16, #tpu.memory_space<vmem>>, vector<1x288x64xbf16>
    %30 = vector.shape_cast %29 : vector<1x288x64xbf16> to vector<288x64xbf16>
    %c5 = arith.constant 5 : index
    %c0_29 = arith.constant 0 : index
    %c0_30 = arith.constant 0 : index
    %31 = vector.load %arg2[%c5, %c0_29, %c0_30] : memref<9x64x12xbf16, #tpu.memory_space<vmem>>, vector<1x64x12xbf16>
    %32 = vector.shape_cast %31 : vector<1x64x12xbf16> to vector<64x12xbf16>
    %cst_31 = arith.constant dense<0.000000e+00> : vector<288x12xf32>
    %33 = tpu.matmul %30, %32, %cst_31 {dimension_numbers = #tpu.dot_dimension_numbers<[1], [0], [0], [1], [0, 0, 1, 1], [], []>} : vector<288x64xbf16>, vector<64x12xbf16>, vector<288x12xf32> -> vector<288x12xf32>
    %34 = arith.addf %28, %33 : vector<288x12xf32>
    %c0_32 = arith.constant 0 : index
    %c36 = arith.constant 36 : index
    %c0_33 = arith.constant 0 : index
    %35 = vector.load %arg1[%c0_32, %c36, %c0_33] : memref<1x326x64xbf16, #tpu.memory_space<vmem>>, vector<1x288x64xbf16>
    %36 = vector.shape_cast %35 : vector<1x288x64xbf16> to vector<288x64xbf16>
    %c6 = arith.constant 6 : index
    %c0_34 = arith.constant 0 : index
    %c0_35 = arith.constant 0 : index
    %37 = vector.load %arg2[%c6, %c0_34, %c0_35] : memref<9x64x12xbf16, #tpu.memory_space<vmem>>, vector<1x64x12xbf16>
    %38 = vector.shape_cast %37 : vector<1x64x12xbf16> to vector<64x12xbf16>
    %cst_36 = arith.constant dense<0.000000e+00> : vector<288x12xf32>
    %39 = tpu.matmul %36, %38, %cst_36 {dimension_numbers = #tpu.dot_dimension_numbers<[1], [0], [0], [1], [0, 0, 1, 1], [], []>} : vector<288x64xbf16>, vector<64x12xbf16>, vector<288x12xf32> -> vector<288x12xf32>
    %40 = arith.addf %34, %39 : vector<288x12xf32>
    %c0_37 = arith.constant 0 : index
    %c37 = arith.constant 37 : index
    %c0_38 = arith.constant 0 : index
    %41 = vector.load %arg1[%c0_37, %c37, %c0_38] : memref<1x326x64xbf16, #tpu.memory_space<vmem>>, vector<1x288x64xbf16>
    %42 = vector.shape_cast %41 : vector<1x288x64xbf16> to vector<288x64xbf16>
    %c7 = arith.constant 7 : index
    %c0_39 = arith.constant 0 : index
    %c0_40 = arith.constant 0 : index
    %43 = vector.load %arg2[%c7, %c0_39, %c0_40] : memref<9x64x12xbf16, #tpu.memory_space<vmem>>, vector<1x64x12xbf16>
    %44 = vector.shape_cast %43 : vector<1x64x12xbf16> to vector<64x12xbf16>
    %cst_41 = arith.constant dense<0.000000e+00> : vector<288x12xf32>
    %45 = tpu.matmul %42, %44, %cst_41 {dimension_numbers = #tpu.dot_dimension_numbers<[1], [0], [0], [1], [0, 0, 1, 1], [], []>} : vector<288x64xbf16>, vector<64x12xbf16>, vector<288x12xf32> -> vector<288x12xf32>
    %46 = arith.addf %40, %45 : vector<288x12xf32>
    %c0_42 = arith.constant 0 : index
    %c38 = arith.constant 38 : index
    %c0_43 = arith.constant 0 : index
    %47 = vector.load %arg1[%c0_42, %c38, %c0_43] : memref<1x326x64xbf16, #tpu.memory_space<vmem>>, vector<1x288x64xbf16>
    %48 = vector.shape_cast %47 : vector<1x288x64xbf16> to vector<288x64xbf16>
    %c8 = arith.constant 8 : index
    %c0_44 = arith.constant 0 : index
    %c0_45 = arith.constant 0 : index
    %49 = vector.load %arg2[%c8, %c0_44, %c0_45] : memref<9x64x12xbf16, #tpu.memory_space<vmem>>, vector<1x64x12xbf16>
    %50 = vector.shape_cast %49 : vector<1x64x12xbf16> to vector<64x12xbf16>
    %cst_46 = arith.constant dense<0.000000e+00> : vector<288x12xf32>
    %51 = tpu.matmul %48, %50, %cst_46 {dimension_numbers = #tpu.dot_dimension_numbers<[1], [0], [0], [1], [0, 0, 1, 1], [], []>} : vector<288x64xbf16>, vector<64x12xbf16>, vector<288x12xf32> -> vector<288x12xf32>
    %52 = arith.addf %46, %51 : vector<288x12xf32>
    %c0_47 = arith.constant 0 : index
    %c0_48 = arith.constant 0 : index
    %53 = vector.load %arg3[%c0_47, %c0_48] : memref<1x12xf32, #tpu.memory_space<vmem>>, vector<1x12xf32>
    %54 = vector.broadcast %53 : vector<1x12xf32> to vector<288x12xf32>
    %55 = arith.addf %52, %54 : vector<288x12xf32>
    %56 = math.tanh %55 : vector<288x12xf32>
    %c0_49 = arith.constant 0 : index
    %c0_50 = arith.constant 0 : index
    %c0_51 = arith.constant 0 : index
    %57 = vector.load %arg4[%c0_49, %c0_50, %c0_51] : memref<1x288x12xf32, #tpu.memory_space<vmem>>, vector<1x288x12xf32>
    %58 = vector.shape_cast %57 : vector<1x288x12xf32> to vector<288x12xf32>
    %59 = vector.shape_cast %56 : vector<288x12xf32> to vector<1x288x12xf32>
    tpu.vector_store %arg4[%c0_49, %c0_50, %c0_51], %59 {strides = array<i32>} : memref<1x288x12xf32, #tpu.memory_space<vmem>>, vector<1x288x12xf32>,
    return
  }
  func.func @transform_0(%arg0: i32) -> (i32, i32, i32) {
    %c0_i32 = arith.constant 0 : i32
    %c0_i32_0 = arith.constant 0 : i32
    %c0_i32_1 = arith.constant 0 : i32
    return %arg0, %c0_i32, %c0_i32_0 : i32, i32, i32
  }
  func.func @transform_1(%arg0: i32) -> (i32, i32, i32) {
    %c0_i32 = arith.constant 0 : i32
    %c0_i32_0 = arith.constant 0 : i32
    %c0_i32_1 = arith.constant 0 : i32
    %c0_i32_2 = arith.constant 0 : i32
    return %c0_i32, %c0_i32_0, %c0_i32_1 : i32, i32, i32
  }
  func.func @transform_2(%arg0: i32) -> (i32, i32) {
    %c0_i32 = arith.constant 0 : i32
    %c0_i32_0 = arith.constant 0 : i32
    %c0_i32_1 = arith.constant 0 : i32
    return %c0_i32, %c0_i32_0 : i32, i32
  }
  func.func @transform_3(%arg0: i32) -> (i32, i32, i32) {
    %c0_i32 = arith.constant 0 : i32
    %c0_i32_0 = arith.constant 0 : i32
    %c0_i32_1 = arith.constant 0 : i32
    return %arg0, %c0_i32, %c0_i32_0 : i32, i32, i32
  }
}

</mosaic_0001>

<bundles_post_ra>
// kernel: generator_forward.4
= control target key start
LH: loop header
LB: loop body
LE: loop exit
PB: predicated region body
PF: predicated region fallthrough
CT: control target
= control target key end

     0   :  { %8 = vsyncpa [#allocation3], 0  ;;  %s2301_s0 = inlined_call_operand.vmem [shape: bf16[2,128], index: 0, kind: input, shape index: {}]   ;;  %s2302_s1 = inlined_call_operand.hbm [shape: bf16[128,4096], index: 1, kind: input, shape index: {}]   ;;  %s2303_s2 = inlined_call_operand.hbm [shape: f32[1,4096], index: 2, kind: input, shape index: {}]   ;;  %s2304_s3 = inlined_call_operand.vmem [shape: bf16[2,4096], index: 3, kind: output, shape index: {}]  }
   0x1   :  { %10 = vsyncpa [#allocation3 + $0x1], 0 }
   0x2   :  { %11 = vsyncpa [#allocation5], 0 }
   0x3   :  { %13 = vsyncpa [#allocation5 + $0x1], 0  ;;  %s1960_s12 = smov 0   ;;  %s1962_s13 = smov 0  }
   0x4   :  { %s1964_s14 = smov 0   ;;  %s1966_s15 = smov 0  }
   0x5 LB: > { %s1630_s16 = sadd.s32 4294967295, %s1931_s15   ;;  %s1980_s17 = sadd.s32 1, %s1931_s15   ;;  %s1931_s15 = sphi %s1966_s15, %s2314_s15   ;;  %s1927_s14 = sphi %s1964_s14, %s2313_s14   ;;  %s1923_s13 = sphi %s1962_s13, %s2312_s13   ;;  %s1919_s12 = sphi %s1960_s12, %s2311_s12  }
   0x6   : > { %s44_s18 = ssub.s32 %s1931_s15, %s1980_s17  ;;  %s47_s19 = sadd.s32 1, %s1927_s14 }
   0x7   : > { %p45_p0 = scmp.eq.s32.totalorder %s44_s18, 0  ;;  %p54_p1 = scmp.ne.s32.totalorder %s1927_s14, %s1923_s13 }
   0x8   : > { %p55_p2 = scmp.eq.s32.totalorder %s1931_s15, 0  ;;  %p60_p3 = scmp.ne.s32.totalorder %s1923_s13, %s1919_s12 }
   0x9   : > { %s1990_s20 = scalar_select %p45_p0, %s1927_s14, %s47_s19  }
   0xa   : > { %p56_p4 = por %p55_p2, %p54_p1  ;;  %p61_p5 = scmp.eq.s32.totalorder %s1630_s16, 0 }
   0xb   : > { %p1795_p6 = scmp.lt.s32.totalorder %s1931_s15, 2  ;;  %s2000_s22 = sand.u32 1, %s1927_s14  }
   0xc   : > { %p1995_p7 = por %p61_p5, %p60_p3  ;;  %s1634_s23 = sshll.u32 %s2000_s22, 10 }
   0xd   : > { %s1782_s24 = sshll.u32 %s1931_s15, 10  ;;  %s143_s28 = scalar_lea.vmem [#allocation2], %s1634_s23 }
   0xe   : > { %s2306_s21 = scalar_select %p1995_p7, 1, 0 }
   0xf   : > { %s2007_s27 = scalar_lea.hbm %s2302_s1, %s1782_s24  ;;  %s150_s29 = sshll.u32 %s143_s28, 4  ;;  %s2009_s29 = int_to_ptr.vmem [resolvable:$true] %s150_s29 }
  0x10   : > { %p2011_p8 = pnand %p1795_p6, %p56_p4  ;;  %s140_s4 = scalar_lea.sflag [#allocation3], %s2000_s22 }
  0x11   : > { %s1833_s5 = scalar_lea.hbm %s2007_s27, 16384  ;;  %s1838_s8 = scalar_lea.hbm %s2302_s1, 32768 }
  0x12   : > { %p1834_p9 = scmp.ne.s32.totalorder %s2007_s27, %s1833_s5  ;;  %p1835_p10 = pneg %p2011_p8 }
  0x13   : > { %p1839_p13 = scmp.lt.u32.totalorder %s2007_s27, %s2302_s1  ;;  %p1840_p0 = scmp.lt.u32.totalorder %s1838_s8, %s1833_s5 }
  0x14   : > { %p1836_p11 = pnand %p1835_p10, %p1834_p9  ;;  %p1842_p2 = scmp.lt.u32.totalorder %s1833_s5, %s2007_s27 }
  0x15   : > { %p1841_p1 = por %p1840_p0, %p1839_p13 }
  0x16   : > { %p1837_p12 = pneg %p1836_p11 }
  0x17   : > { %p1843_p3 = por %p1842_p2, %p1841_p1 }
  0x19   : > { %p1844_p4 = pnand %p1843_p3, %p1837_p12 }
  0x1b   : > { %1847 = shalt.err (!%p1844_p4)
}
  0x1c   : > { %s1848_s11 = scalar_lea.vmem %s2009_s29, 16384  ;;  %s1933_s12 = smov [#allocation2]  }
  0x1d   : > { %p1849_p5 = scmp.ne.s32.totalorder %s2009_s29, %s1848_s11  ;;  %s1853_s18 = sshll.u32 %s1933_s12, 4  ;;  %s1854_s18 = int_to_ptr.vmem [resolvable:$false] %s1853_s18 }
  0x1e   : > { %s1855_s19 = scalar_lea.vmem %s1854_s18, 32768  ;;  %p1856_p11 = scmp.lt.s32.totalorder %s2009_s29, %s1854_s18 }
  0x1f   : > { %p1851_p6 = pnand %p1849_p5, %p1835_p10  ;;  %p1857_p13 = scmp.lt.s32.totalorder %s1855_s19, %s1848_s11 }
  0x21   : > { %p1852_p9 = pneg %p1851_p6  ;;  %p1858_p0 = por %p1857_p13, %p1856_p11 }
  0x23   : > { %p1859_p1 = pnand %p1858_p0, %p1852_p9 }
  0x25   : > { %1862 = shalt.err (!%p1859_p1)
}
  0x26   : > { %s1934_s23 = smov 2048   ;;  %s1935_s24 = smov 1024  }
  0x27   : > { %s1936_s25 = smov 64   ;;  %p1640_p12 = scmp.ge.s32.totalorder %s1931_s15, 1 }
  0x28   : > { %1791 = dma.hbm_to_vmem [thread:$0]  (!%p2011_p8), %s2007_s27, 16384, %s2009_s29, %s140_s4, %s1934_s23, %s1935_s24, %s1936_s25  }
  0x29   : > { %p177_p2 = scmp.lt.s32.totalorder %s1931_s15, 3  ;;  %s1637_s26 = sshll.u32 %s2000_s22, 4 }
  0x2a   : > { %s1783_s5 = sshll.u32 %s1931_s15, 8  ;;  %s164_s6 = scalar_lea.vmem [#allocation4], %s1637_s26 }
  0x2b   : > { %p2046_p3 = pnand %p1640_p12, %p177_p2  ;;  %s172_s7 = sshll.u32 %s164_s6, 4  ;;  %s173_s7 = int_to_ptr.vmem [resolvable:$true] %s172_s7 }
  0x2c   : > { %s2054_s10 = scalar_lea.hbm %s2303_s2, %s1783_s5  ;;  %s161_s27 = scalar_lea.sflag [#allocation5], %s2000_s22 }
  0x2d   : > { %s2308_s28 = scalar_select %p2046_p3, 1, 0 }
  0x2e   : > { %s1863_s29 = scalar_lea.hbm %s2054_s10, 256  ;;  %s1868_s12 = scalar_lea.hbm %s2303_s2, 512 }
  0x2f   : > { %p1864_p4 = scmp.ne.s32.totalorder %s2054_s10, %s1863_s29  ;;  %p1869_p9 = scmp.lt.u32.totalorder %s2054_s10, %s2303_s2 }
  0x30   : > { %p1870_p11 = scmp.lt.u32.totalorder %s1868_s12, %s1863_s29  ;;  %p1872_p0 = scmp.lt.u32.totalorder %s1863_s29, %s2054_s10 }
  0x31   : > { %p1866_p5 = pnand %p1864_p4, %p1835_p10 }
  0x32   : > { %p1871_p13 = por %p1870_p11, %p1869_p9 }
  0x33   : > { %p1867_p6 = pneg %p1866_p5 }
  0x34   : > { %p1873_p1 = por %p1872_p0, %p1871_p13 }
  0x36   : > { %p1874_p12 = pnand %p1873_p1, %p1867_p6 }
  0x38   : > { %1877 = shalt.err (!%p1874_p12)
}
  0x39   : > { %s1878_s22 = scalar_lea.vmem %s173_s7, 256  ;;  %s1937_s23 = smov [#allocation4]  }
  0x3a   : > { %p1879_p2 = scmp.ne.s32.totalorder %s173_s7, %s1878_s22  ;;  %s1883_s24 = sshll.u32 %s1937_s23, 4  ;;  %s1884_s24 = int_to_ptr.vmem [resolvable:$false] %s1883_s24 }
  0x3b   : > { %s1885_s25 = scalar_lea.vmem %s1884_s24, 512  ;;  %p1886_p7 = scmp.lt.s32.totalorder %s173_s7, %s1884_s24 }
  0x3c   : > { %p1881_p4 = pnand %p1879_p2, %p1835_p10  ;;  %p1887_p3 = scmp.lt.s32.totalorder %s1885_s25, %s1878_s22 }
  0x3e   : > { %p1882_p5 = pneg %p1881_p4  ;;  %p1888_p9 = por %p1887_p3, %p1886_p7 }
  0x40   : > { %p1889_p11 = pnand %p1888_p9, %p1882_p5 }
  0x42   : > { %1892 = shalt.err (!%p1889_p11)
}
  0x43   : > { %1794 = dma.hbm_to_vmem [thread:$0]  (!%p2011_p8), %s2054_s10, 256, %s173_s7, %s161_s27  }
  0x44   : > { %p2309_p6 = scmp.ne.s32.totalorder %s2308_s28, 0 }
  0x45   : > { %s183_s26 = sand.u32 (!%p2309_p6), 1, %s1923_s13   ;;  %p2310_p10 = scmp.ne.s32.totalorder (!%p2309_p6), %s2306_s21, 0 }
  0x46   : > { %181 = sbr.rel (%p2309_p6) target bundleno = 439 (0x1b7), region = 32  ;;  %s1641_s5 = sshll.u32 (!%p2309_p6), %s183_s26, 10 }
  0x47   : > { %s184_s6 = scalar_lea.sflag (!%p2309_p6), [#allocation3], %s183_s26  ;;  %s2079_s8 = scalar_lea.vmem (!%p2309_p6), [#allocation2], %s1641_s5 }
  0x4d   : > { %1910 = dma.done.wait (%p2310_p10), %s184_s6, 16384  }
  0x4e   : > { %1912 = vsyncadd (%p2310_p10), %s184_s6, 4294950912  ;;  %s1642_s9 = sshll.u32 %s183_s26, 4  ;;  %s193_s30 = scalar_lea.sflag [#allocation5], %s183_s26 }
  0x4f   : > { %s2085_s29 = scalar_lea.vmem [#allocation4], %s1642_s9 }
  0x50   : > { %1914 = dma.done.wait (%p2310_p10), %s193_s30, 256  }
  0x51   : > { %1916 = vsyncadd (%p2310_p10), %s193_s30, 4294967040  ;;  %v1938_v0 = vmov 0   ;;  %v232_v1 = vld [vmem:[%s2079_s8] sm:$0xff]  ;;  %v233_v3 = vld [vmem:[%s2079_s8 + $0x8] sm:$0xff]  ;;  %s1643_s7 = sshll.u32 %s1630_s16, 4 }
  0x52   : > { %1116 = vmatprep.mubr.bf16.mxu0 %v1938_v0  ;;  %1157 = vmatprep.mubr.bf16.mxu1 %v1938_v0  ;;  %v240_v2 = vld [vmem:[%s2079_s8 + $0x40] sm:$0xff]  ;;  %v241_v5 = vld [vmem:[%s2079_s8 + $0x48] sm:$0xff]  ;;  %v234_v63 = vld [vmem:[%s2079_s8 + $0x10] sm:$0xff]  ;;  %p226_p7 = scmp.lt.s32.totalorder %s1643_s7, 31 }
  0x53   : > { %v1645_v4 = vcombine.high %v232_v1, %v240_v2  ;;  %v1644_v6 = vcombine.low %v232_v1, %v240_v2  ;;  %v248_v7 = vld [vmem:[%s2079_s8 + $0x80] sm:$0xff]  ;;  %v1647_v9 = vcombine.high %v233_v3, %v241_v5  ;;  %v1646_v10 = vcombine.low %v233_v3, %v241_v5  ;;  %v249_v12 = vld [vmem:[%s2079_s8 + $0x88] sm:$0xff]  ;;  %v242_v1 = vld [vmem:[%s2079_s8 + $0x50] sm:$0xff] }
  0x54   : > { %v256_v8 = vld [vmem:[%s2079_s8 + $0xc0] sm:$0xff]  ;;  %v257_v13 = vld [vmem:[%s2079_s8 + $0xc8] sm:$0xff]  ;;  %v235_v2 = vld [vmem:[%s2079_s8 + $0x18] sm:$0xff]  ;;  %s2316_s7 = smov (!%p226_p7, %s1643_s7), 31 }
  0x55   : > { %v1661_v11 = vcombine.high %v248_v7, %v256_v8  ;;  %v264_v14 = vld [vmem:[%s2079_s8 + $0x100] sm:$0xff]  ;;  %1084 = vmatprep.subr.bf16.mxu0 %v1645_v4  ;;  %v1663_v15 = vcombine.high %v249_v12, %v257_v13  ;;  %v265_v17 = vld [vmem:[%s2079_s8 + $0x108] sm:$0xff]  ;;  %1125 = vmatprep.subr.bf16.mxu1 %v1647_v9  ;;  %v1660_v19 = vcombine.low %v248_v7, %v256_v8  ;;  %v243_v3 = vld [vmem:[%s2079_s8 + $0x58] sm:$0xff]  ;;  %s2271_s10 = scalar_lea.vmem %s2304_s3, %s2316_s7 }
  0x56   : > { %v272_v16 = vld [vmem:[%s2079_s8 + $0x140] sm:$0xff]  ;;  %v273_v18 = vld [vmem:[%s2079_s8 + $0x148] sm:$0xff]  ;;  %1085 = vmatpush1.bf16.msra.mxu0 %v1644_v6  ;;  %1126 = vmatpush1.bf16.msra.mxu1 %v1646_v10  ;;  %v1662_v20 = vcombine.low %v249_v12, %v257_v13  ;;  %v1649_v6 = vcombine.high %v234_v63, %v242_v1  ;;  %v1651_v7 = vcombine.high %v235_v2, %v243_v3  ;;  %v250_v8 = vld [vmem:[%s2079_s8 + $0x90] sm:$0xff] }
  0x57   : > { %1086 = vmatprep.subr.bf16.mxu0 %v1661_v11  ;;  %v1677_v21 = vcombine.high %v264_v14, %v272_v16  ;;  %1127 = vmatprep.subr.bf16.mxu1 %v1663_v15  ;;  %v1679_v22 = vcombine.high %v265_v17, %v273_v18  ;;  %v280_v23 = vld [vmem:[%s2079_s8 + $0x180] sm:$0xff]  ;;  %v281_v25 = vld [vmem:[%s2079_s8 + $0x188] sm:$0xff]  ;;  %v1676_v27 = vcombine.low %v264_v14, %v272_v16  ;;  %v258_v9 = vld [vmem:[%s2079_s8 + $0xd0] sm:$0xff] }
  0x58   : > { %v288_v24 = vld [vmem:[%s2079_s8 + $0x1c0] sm:$0xff]  ;;  %v289_v26 = vld [vmem:[%s2079_s8 + $0x1c8] sm:$0xff]  ;;  %v1678_v28 = vcombine.low %v265_v17, %v273_v18  ;;  %v251_v10 = vld [vmem:[%s2079_s8 + $0x98] sm:$0xff]  ;;  %v1648_v13 = vcombine.low %v234_v63, %v242_v1  ;;  %v1650_v14 = vcombine.low %v235_v2, %v243_v3  ;;  %v1665_v15 = vcombine.high %v250_v8, %v258_v9 }
  0x59   : > { %v1693_v29 = vcombine.high %v280_v23, %v288_v24  ;;  %v1695_v30 = vcombine.high %v281_v25, %v289_v26  ;;  %v296_v31 = vld [vmem:[%s2079_s8 + $0x200] sm:$0xff]  ;;  %v297_v33 = vld [vmem:[%s2079_s8 + $0x208] sm:$0xff]  ;;  %v1692_v35 = vcombine.low %v280_v23, %v288_v24  ;;  %v1694_v36 = vcombine.low %v281_v25, %v289_v26  ;;  %v259_v11 = vld [vmem:[%s2079_s8 + $0xd8] sm:$0xff] }
  0x5a   : > { %1087 = vmatpush1.bf16.msra.mxu0 %v1660_v19  ;;  %1128 = vmatpush1.bf16.msra.mxu1 %v1662_v20  ;;  %v304_v32 = vld [vmem:[%s2079_s8 + $0x240] sm:$0xff]  ;;  %v305_v34 = vld [vmem:[%s2079_s8 + $0x248] sm:$0xff]  ;;  %v1667_v16 = vcombine.high %v251_v10, %v259_v11  ;;  %v266_v17 = vld [vmem:[%s2079_s8 + $0x110] sm:$0xff] }
  0x5b   : > { %1088 = vmatprep.subr.bf16.mxu0 %v1677_v21  ;;  %1129 = vmatprep.subr.bf16.mxu1 %v1679_v22  ;;  %v1709_v37 = vcombine.high %v296_v31, %v304_v32  ;;  %v1711_v38 = vcombine.high %v297_v33, %v305_v34  ;;  %v312_v39 = vld [vmem:[%s2079_s8 + $0x280] sm:$0xff]  ;;  %v313_v41 = vld [vmem:[%s2079_s8 + $0x288] sm:$0xff]  ;;  %v1708_v43 = vcombine.low %v296_v31, %v304_v32  ;;  %v274_v18 = vld [vmem:[%s2079_s8 + $0x150] sm:$0xff] }
  0x5c   : > { %v320_v40 = vld [vmem:[%s2079_s8 + $0x2c0] sm:$0xff]  ;;  %v321_v42 = vld [vmem:[%s2079_s8 + $0x2c8] sm:$0xff]  ;;  %v1710_v44 = vcombine.low %v297_v33, %v305_v34  ;;  %v267_v19 = vld [vmem:[%s2079_s8 + $0x118] sm:$0xff]  ;;  %v1664_v21 = vcombine.low %v250_v8, %v258_v9  ;;  %v1666_v22 = vcombine.low %v251_v10, %v259_v11  ;;  %v1681_v23 = vcombine.high %v266_v17, %v274_v18 }
  0x5d   : > { %v1725_v45 = vcombine.high %v312_v39, %v320_v40  ;;  %v1727_v46 = vcombine.high %v313_v41, %v321_v42  ;;  %v328_v47 = vld [vmem:[%s2079_s8 + $0x300] sm:$0xff]  ;;  %v329_v49 = vld [vmem:[%s2079_s8 + $0x308] sm:$0xff]  ;;  %v1724_v51 = vcombine.low %v312_v39, %v320_v40  ;;  %v1726_v52 = vcombine.low %v313_v41, %v321_v42  ;;  %v275_v20 = vld [vmem:[%s2079_s8 + $0x158] sm:$0xff] }
  0x5e   : > { %1089 = vmatpush1.bf16.msra.mxu0 %v1676_v27  ;;  %1130 = vmatpush1.bf16.msra.mxu1 %v1678_v28  ;;  %v336_v48 = vld [vmem:[%s2079_s8 + $0x340] sm:$0xff]  ;;  %v337_v50 = vld [vmem:[%s2079_s8 + $0x348] sm:$0xff]  ;;  %v1683_v24 = vcombine.high %v267_v19, %v275_v20  ;;  %v282_v25 = vld [vmem:[%s2079_s8 + $0x190] sm:$0xff] }
  0x5f   : > { %1090 = vmatprep.subr.bf16.mxu0 %v1693_v29  ;;  %1131 = vmatprep.subr.bf16.mxu1 %v1695_v30  ;;  %v1741_v53 = vcombine.high %v328_v47, %v336_v48  ;;  %v1743_v54 = vcombine.high %v329_v49, %v337_v50  ;;  %v344_v55 = vld [vmem:[%s2079_s8 + $0x380] sm:$0xff]  ;;  %v345_v57 = vld [vmem:[%s2079_s8 + $0x388] sm:$0xff]  ;;  %v1740_v59 = vcombine.low %v328_v47, %v336_v48  ;;  %v290_v26 = vld [vmem:[%s2079_s8 + $0x1d0] sm:$0xff] }
  0x60   : > { %v352_v56 = vld [vmem:[%s2079_s8 + $0x3c0] sm:$0xff]  ;;  %v353_v58 = vld [vmem:[%s2079_s8 + $0x3c8] sm:$0xff]  ;;  %v1742_v60 = vcombine.low %v329_v49, %v337_v50  ;;  %v283_v27 = vld [vmem:[%s2079_s8 + $0x198] sm:$0xff]  ;;  %v1680_v29 = vcombine.low %v266_v17, %v274_v18  ;;  %v1682_v30 = vcombine.low %v267_v19, %v275_v20  ;;  %v1697_v31 = vcombine.high %v282_v25, %v290_v26 }
  0x61   : > { %v1757_v61 = vcombine.high %v344_v55, %v352_v56  ;;  %v1759_v62 = vcombine.high %v345_v57, %v353_v58  ;;  %v1756_v4 = vcombine.low %v344_v55, %v352_v56  ;;  %v1758_v5 = vcombine.low %v345_v57, %v353_v58  ;;  %v2136_v12 = vld [vmem:[%s2301_s0] sm:$0x1]  ;;  %v291_v28 = vld [vmem:[%s2079_s8 + $0x1d8] sm:$0xff]  ;;  %v298_v33 = vld [vmem:[%s2079_s8 + $0x210] sm:$0xff] }
  0x62   : > { %1091 = vmatpush1.bf16.msra.mxu0 %v1692_v35  ;;  %1132 = vmatpush1.bf16.msra.mxu1 %v1694_v36  ;;  %v1699_v32 = vcombine.high %v283_v27, %v291_v28  ;;  %v306_v34 = vld [vmem:[%s2079_s8 + $0x250] sm:$0xff]  ;;  %v299_v35 = vld [vmem:[%s2079_s8 + $0x218] sm:$0xff]  ;;  %v236_v2 = vld [vmem:[%s2079_s8 + $0x20] sm:$0xff] }
  0x63   : > { %1092 = vmatprep.subr.bf16.mxu0 %v1709_v37  ;;  %1133 = vmatprep.subr.bf16.mxu1 %v1711_v38  ;;  %v307_v36 = vld [vmem:[%s2079_s8 + $0x258] sm:$0xff]  ;;  %v1696_v37 = vcombine.low %v282_v25, %v290_v26  ;;  %v1698_v38 = vcombine.low %v283_v27, %v291_v28  ;;  %v1713_v39 = vcombine.high %v298_v33, %v306_v34  ;;  %v314_v41 = vld [vmem:[%s2079_s8 + $0x290] sm:$0xff]  ;;  %v244_v3 = vld [vmem:[%s2079_s8 + $0x60] sm:$0xff] }
  0x64   : > { %v1715_v40 = vcombine.high %v299_v35, %v307_v36  ;;  %v322_v42 = vld [vmem:[%s2079_s8 + $0x2d0] sm:$0xff]  ;;  %v1653_v8 = vcombine.high %v236_v2, %v244_v3  ;;  %v252_v10 = vld [vmem:[%s2079_s8 + $0xa0] sm:$0xff] }
  0x65   : > { %v1729_v47 = vcombine.high %v314_v41, %v322_v42  ;;  %v330_v49 = vld [vmem:[%s2079_s8 + $0x310] sm:$0xff]  ;;  %v260_v11 = vld [vmem:[%s2079_s8 + $0xe0] sm:$0xff] }
  0x66   : > { %1093 = vmatpush1.bf16.msra.mxu0 %v1708_v43  ;;  %1134 = vmatpush1.bf16.msra.mxu1 %v1710_v44  ;;  %v315_v43 = vld [vmem:[%s2079_s8 + $0x298] sm:$0xff]  ;;  %v338_v50 = vld [vmem:[%s2079_s8 + $0x350] sm:$0xff]  ;;  %v1669_v17 = vcombine.high %v252_v10, %v260_v11  ;;  %v268_v19 = vld [vmem:[%s2079_s8 + $0x120] sm:$0xff] }
  0x67   : > { %1094 = vmatprep.subr.bf16.mxu0 %v1725_v45  ;;  %1135 = vmatprep.subr.bf16.mxu1 %v1727_v46  ;;  %v323_v44 = vld [vmem:[%s2079_s8 + $0x2d8] sm:$0xff]  ;;  %v1712_v45 = vcombine.low %v298_v33, %v306_v34  ;;  %v1714_v46 = vcombine.low %v299_v35, %v307_v36  ;;  %v1745_v55 = vcombine.high %v330_v49, %v338_v50  ;;  %v346_v57 = vld [vmem:[%s2079_s8 + $0x390] sm:$0xff]  ;;  %v276_v20 = vld [vmem:[%s2079_s8 + $0x160] sm:$0xff] }
  0x68   : > { %v1731_v48 = vcombine.high %v315_v43, %v323_v44  ;;  %v354_v58 = vld [vmem:[%s2079_s8 + $0x3d0] sm:$0xff]  ;;  %v1685_v25 = vcombine.high %v268_v19, %v276_v20  ;;  %v284_v27 = vld [vmem:[%s2079_s8 + $0x1a0] sm:$0xff] }
  0x69   : > { %v1761_v63 = vcombine.high %v346_v57, %v354_v58  ;;  %v292_v28 = vld [vmem:[%s2079_s8 + $0x1e0] sm:$0xff] }
  0x6a   : > { %1095 = vmatpush1.bf16.msra.mxu0 %v1724_v51  ;;  %1136 = vmatpush1.bf16.msra.mxu1 %v1726_v52  ;;  %v331_v51 = vld [vmem:[%s2079_s8 + $0x318] sm:$0xff]  ;;  %v1701_v33 = vcombine.high %v284_v27, %v292_v28  ;;  %v300_v35 = vld [vmem:[%s2079_s8 + $0x220] sm:$0xff] }
  0x6b   : > { %1096 = vmatprep.subr.bf16.mxu0 %v1741_v53  ;;  %1137 = vmatprep.subr.bf16.mxu1 %v1743_v54  ;;  %v339_v52 = vld [vmem:[%s2079_s8 + $0x358] sm:$0xff]  ;;  %v1728_v53 = vcombine.low %v314_v41, %v322_v42  ;;  %v1730_v54 = vcombine.low %v315_v43, %v323_v44  ;;  %v308_v36 = vld [vmem:[%s2079_s8 + $0x260] sm:$0xff] }
  0x6c   : > { %v1747_v56 = vcombine.high %v331_v51, %v339_v52  ;;  %v1717_v41 = vcombine.high %v300_v35, %v308_v36  ;;  %v316_v43 = vld [vmem:[%s2079_s8 + $0x2a0] sm:$0xff] }
  0x6d   : > { %v324_v44 = vld [vmem:[%s2079_s8 + $0x2e0] sm:$0xff] }
  0x6e   : > { %1097 = vmatpush1.bf16.msra.mxu0 %v1740_v59  ;;  %1138 = vmatpush1.bf16.msra.mxu1 %v1742_v60  ;;  %v347_v59 = vld [vmem:[%s2079_s8 + $0x398] sm:$0xff] }
  0x6f   : > { %1098 = vmatprep.subr.bf16.mxu0 %v1757_v61  ;;  %1139 = vmatprep.subr.bf16.mxu1 %v1759_v62  ;;  %v355_v60 = vld [vmem:[%s2079_s8 + $0x3d8] sm:$0xff]  ;;  %v1744_v61 = vcombine.low %v330_v49, %v338_v50  ;;  %v1746_v62 = vcombine.low %v331_v51, %v339_v52  ;;  %v1733_v49 = vcombine.high %v316_v43, %v324_v44  ;;  %v332_v51 = vld [vmem:[%s2079_s8 + $0x320] sm:$0xff] }
  0x70   : > { %v1763_v1 = vcombine.high %v347_v59, %v355_v60  ;;  %v340_v52 = vld [vmem:[%s2079_s8 + $0x360] sm:$0xff] }
  0x72   : > { %1099 = vmatpush1.bf16.msra.mxu0 %v1756_v4  ;;  %1140 = vmatpush1.bf16.msra.mxu1 %v1758_v5  ;;  %v237_v4 = vld [vmem:[%s2079_s8 + $0x28] sm:$0xff] }
  0x73   : > { %1166 = vmatprep.subr.bf16.mxu0 %v1649_v6  ;;  %1207 = vmatprep.subr.bf16.mxu1 %v1651_v7  ;;  %v245_v5 = vld [vmem:[%s2079_s8 + $0x68] sm:$0xff]  ;;  %v1760_v6 = vcombine.low %v346_v57, %v354_v58  ;;  %v1762_v7 = vcombine.low %v347_v59, %v355_v60  ;;  %v1749_v57 = vcombine.high %v332_v51, %v340_v52  ;;  %v348_v59 = vld [vmem:[%s2079_s8 + $0x3a0] sm:$0xff] }
  0x74   : > { %v1655_v9 = vcombine.high %v237_v4, %v245_v5  ;;  %v356_v60 = vld [vmem:[%s2079_s8 + $0x3e0] sm:$0xff] }
  0x75   : > { %1117 = vmatmul.mubr.bf16.vlgmr.msra.gmra.mrb[0].mxu0 %v2136_v12  ;;  %1158 = vmatmul.mubr.bf16.vlgmr.msra.gmra.mrb[0].mxu1 %v2136_v12 }
  0x76   : > { %1167 = vmatpush1.bf16.msra.mxu0 %v1648_v13  ;;  %1208 = vmatpush1.bf16.msra.mxu1 %v1650_v14  ;;  %v253_v13 = vld [vmem:[%s2079_s8 + $0xa8] sm:$0xff] }
  0x77   : > { %1168 = vmatprep.subr.bf16.mxu0 %v1665_v15  ;;  %1209 = vmatprep.subr.bf16.mxu1 %v1667_v16  ;;  %v261_v14 = vld [vmem:[%s2079_s8 + $0xe8] sm:$0xff]  ;;  %v1652_v15 = vcombine.low %v236_v2, %v244_v3  ;;  %v1654_v16 = vcombine.low %v237_v4, %v245_v5  ;;  %v1765_v2 = vcombine.high %v348_v59, %v356_v60  ;;  %v238_v4 = vld [vmem:[%s2079_s8 + $0x30] sm:$0xff] }
  0x78   : > { %1198 = vmatprep.mubr.bf16.mxu0 %v1938_v0  ;;  %1239 = vmatprep.mubr.bf16.mxu1 %v1938_v0  ;;  %v1671_v18 = vcombine.high %v253_v13, %v261_v14  ;;  %v246_v5 = vld [vmem:[%s2079_s8 + $0x70] sm:$0xff] }
  0x7a   : > { %1169 = vmatpush1.bf16.msra.mxu0 %v1664_v21  ;;  %1210 = vmatpush1.bf16.msra.mxu1 %v1666_v22  ;;  %v269_v21 = vld [vmem:[%s2079_s8 + $0x128] sm:$0xff] }
  0x7b   : > { %1170 = vmatprep.subr.bf16.mxu0 %v1681_v23  ;;  %1211 = vmatprep.subr.bf16.mxu1 %v1683_v24  ;;  %v277_v22 = vld [vmem:[%s2079_s8 + $0x168] sm:$0xff]  ;;  %v1668_v23 = vcombine.low %v252_v10, %v260_v11  ;;  %v1670_v24 = vcombine.low %v253_v13, %v261_v14  ;;  %v1657_v10 = vcombine.high %v238_v4, %v246_v5  ;;  %v254_v13 = vld [vmem:[%s2079_s8 + $0xb0] sm:$0xff] }
  0x7c   : > { %v1687_v26 = vcombine.high %v269_v21, %v277_v22  ;;  %v262_v14 = vld [vmem:[%s2079_s8 + $0xf0] sm:$0xff] }
  0x7e   : > { %1171 = vmatpush1.bf16.msra.mxu0 %v1680_v29  ;;  %1212 = vmatpush1.bf16.msra.mxu1 %v1682_v30  ;;  %v285_v29 = vld [vmem:[%s2079_s8 + $0x1a8] sm:$0xff] }
  0x7f   : > { %1172 = vmatprep.subr.bf16.mxu0 %v1697_v31  ;;  %1213 = vmatprep.subr.bf16.mxu1 %v1699_v32  ;;  %v293_v30 = vld [vmem:[%s2079_s8 + $0x1e8] sm:$0xff]  ;;  %v1684_v31 = vcombine.low %v268_v19, %v276_v20  ;;  %v1686_v32 = vcombine.low %v269_v21, %v277_v22  ;;  %v1673_v19 = vcombine.high %v254_v13, %v262_v14  ;;  %v270_v21 = vld [vmem:[%s2079_s8 + $0x130] sm:$0xff] }
  0x80   : > { %v1703_v34 = vcombine.high %v285_v29, %v293_v30  ;;  %v278_v22 = vld [vmem:[%s2079_s8 + $0x170] sm:$0xff] }
  0x82   : > { %1173 = vmatpush1.bf16.msra.mxu0 %v1696_v37  ;;  %1214 = vmatpush1.bf16.msra.mxu1 %v1698_v38  ;;  %v301_v37 = vld [vmem:[%s2079_s8 + $0x228] sm:$0xff] }
  0x83   : > { %1174 = vmatprep.subr.bf16.mxu0 %v1713_v39  ;;  %1215 = vmatprep.subr.bf16.mxu1 %v1715_v40  ;;  %v309_v38 = vld [vmem:[%s2079_s8 + $0x268] sm:$0xff]  ;;  %v1700_v39 = vcombine.low %v284_v27, %v292_v28  ;;  %v1702_v40 = vcombine.low %v285_v29, %v293_v30  ;;  %v1689_v27 = vcombine.high %v270_v21, %v278_v22  ;;  %v286_v29 = vld [vmem:[%s2079_s8 + $0x1b0] sm:$0xff] }
  0x84   : > { %v1719_v42 = vcombine.high %v301_v37, %v309_v38  ;;  %v294_v30 = vld [vmem:[%s2079_s8 + $0x1f0] sm:$0xff] }
  0x86   : > { %1175 = vmatpush1.bf16.msra.mxu0 %v1712_v45  ;;  %1216 = vmatpush1.bf16.msra.mxu1 %v1714_v46  ;;  %v317_v45 = vld [vmem:[%s2079_s8 + $0x2a8] sm:$0xff] }
  0x87   : > { %1176 = vmatprep.subr.bf16.mxu0 %v1729_v47  ;;  %1217 = vmatprep.subr.bf16.mxu1 %v1731_v48  ;;  %v325_v46 = vld [vmem:[%s2079_s8 + $0x2e8] sm:$0xff]  ;;  %v1716_v47 = vcombine.low %v300_v35, %v308_v36  ;;  %v1718_v48 = vcombine.low %v301_v37, %v309_v38  ;;  %v1705_v35 = vcombine.high %v286_v29, %v294_v30  ;;  %v302_v37 = vld [vmem:[%s2079_s8 + $0x230] sm:$0xff] }
  0x88   : > { %v1735_v50 = vcombine.high %v317_v45, %v325_v46  ;;  %v310_v38 = vld [vmem:[%s2079_s8 + $0x270] sm:$0xff] }
  0x8a   : > { %1177 = vmatpush1.bf16.msra.mxu0 %v1728_v53  ;;  %1218 = vmatpush1.bf16.msra.mxu1 %v1730_v54  ;;  %v333_v53 = vld [vmem:[%s2079_s8 + $0x328] sm:$0xff] }
  0x8b   : > { %1178 = vmatprep.subr.bf16.mxu0 %v1745_v55  ;;  %1219 = vmatprep.subr.bf16.mxu1 %v1747_v56  ;;  %v341_v54 = vld [vmem:[%s2079_s8 + $0x368] sm:$0xff]  ;;  %v1732_v55 = vcombine.low %v316_v43, %v324_v44  ;;  %v1734_v56 = vcombine.low %v317_v45, %v325_v46  ;;  %v318_v44 = vld [vmem:[%s2079_s8 + $0x2b0] sm:$0xff]  ;;  %v319_v46 = vld [vmem:[%s2079_s8 + $0x2b8] sm:$0xff] }
  0x8c   : > { %v1751_v58 = vcombine.high %v333_v53, %v341_v54  ;;  %v326_v45 = vld [vmem:[%s2079_s8 + $0x2f0] sm:$0xff] }
  0x8e   : > { %1179 = vmatpush1.bf16.msra.mxu0 %v1744_v61  ;;  %1220 = vmatpush1.bf16.msra.mxu1 %v1746_v62  ;;  %v349_v61 = vld [vmem:[%s2079_s8 + $0x3a8] sm:$0xff] }
  0x8f   : > { %1180 = vmatprep.subr.bf16.mxu0 %v1761_v63  ;;  %1221 = vmatprep.subr.bf16.mxu1 %v1763_v1  ;;  %v357_v62 = vld [vmem:[%s2079_s8 + $0x3e8] sm:$0xff]  ;;  %v1748_v63 = vcombine.low %v332_v51, %v340_v52  ;;  %v1750_v1 = vcombine.low %v333_v53, %v341_v54  ;;  %v334_v52 = vld [vmem:[%s2079_s8 + $0x330] sm:$0xff]  ;;  %v335_v54 = vld [vmem:[%s2079_s8 + $0x338] sm:$0xff] }
  0x90   : > { %v1767_v3 = vcombine.high %v349_v61, %v357_v62  ;;  %v342_v53 = vld [vmem:[%s2079_s8 + $0x370] sm:$0xff] }
  0x92   : > { %1181 = vmatpush1.bf16.msra.mxu0 %v1760_v6  ;;  %1222 = vmatpush1.bf16.msra.mxu1 %v1762_v7  ;;  %v239_v6 = vld [vmem:[%s2079_s8 + $0x38] sm:$0xff] }
  0x93   : > { %1248 = vmatprep.subr.bf16.mxu0 %v1653_v8  ;;  %1289 = vmatprep.subr.bf16.mxu1 %v1655_v9  ;;  %v247_v7 = vld [vmem:[%s2079_s8 + $0x78] sm:$0xff]  ;;  %v1764_v8 = vcombine.low %v348_v59, %v356_v60  ;;  %v1766_v9 = vcombine.low %v349_v61, %v357_v62  ;;  %v350_v60 = vld [vmem:[%s2079_s8 + $0x3b0] sm:$0xff] }
  0x94   : > { %v1659_v11 = vcombine.high %v239_v6, %v247_v7  ;;  %v358_v61 = vld [vmem:[%s2079_s8 + $0x3f0] sm:$0xff]  ;;  %v351_v62 = vld [vmem:[%s2079_s8 + $0x3b8] sm:$0xff] }
  0x95   : > { %1199 = vmatmul.mubr.bf16.vlgmr.msra.gmra.mrb[4].mxu0 %v2136_v12  ;;  %1240 = vmatmul.mubr.bf16.vlgmr.msra.gmra.mrb[4].mxu1 %v2136_v12 }
  0x96   : > { %1249 = vmatpush1.bf16.msra.mxu0 %v1652_v15  ;;  %1290 = vmatpush1.bf16.msra.mxu1 %v1654_v16  ;;  %v255_v15 = vld [vmem:[%s2079_s8 + $0xb8] sm:$0xff] }
  0x97   : > { %1250 = vmatprep.subr.bf16.mxu0 %v1669_v17  ;;  %1291 = vmatprep.subr.bf16.mxu1 %v1671_v18  ;;  %v263_v16 = vld [vmem:[%s2079_s8 + $0xf8] sm:$0xff]  ;;  %v1656_v17 = vcombine.low %v238_v4, %v246_v5  ;;  %v1658_v18 = vcombine.low %v239_v6, %v247_v7  ;;  %v1768_v5 = vcombine.low %v350_v60, %v358_v61  ;;  %v364_v7 = vlaneseq }
  0x98   : > { %1280 = vmatprep.mubr.bf16.mxu0 %v1938_v0  ;;  %1321 = vmatprep.mubr.bf16.mxu1 %v1938_v0  ;;  %v1675_v20 = vcombine.high %v255_v15, %v263_v16 }
  0x9a   : > { %1251 = vmatpush1.bf16.msra.mxu0 %v1668_v23  ;;  %1292 = vmatpush1.bf16.msra.mxu1 %v1670_v24  ;;  %v271_v23 = vld [vmem:[%s2079_s8 + $0x138] sm:$0xff] }
  0x9b   : > { %1252 = vmatprep.subr.bf16.mxu0 %v1685_v25  ;;  %1293 = vmatprep.subr.bf16.mxu1 %v1687_v26  ;;  %v279_v24 = vld [vmem:[%s2079_s8 + $0x178] sm:$0xff]  ;;  %v1672_v25 = vcombine.low %v254_v13, %v262_v14  ;;  %v1674_v26 = vcombine.low %v255_v15, %v263_v16  ;;  %v1939_v14 = vmov 1966171168  }
  0x9c   : > { %v1691_v28 = vcombine.high %v271_v23, %v279_v24  ;;  %v1449_v15 = vunpack.c.l.s4 %v1939_v14 }
  0x9e   : > { %1253 = vmatpush1.bf16.msra.mxu0 %v1684_v31  ;;  %1294 = vmatpush1.bf16.msra.mxu1 %v1686_v32  ;;  %v287_v31 = vld [vmem:[%s2079_s8 + $0x1b8] sm:$0xff] }
  0x9f   : > { %1254 = vmatprep.subr.bf16.mxu0 %v1701_v33  ;;  %1295 = vmatprep.subr.bf16.mxu1 %v1703_v34  ;;  %v295_v32 = vld [vmem:[%s2079_s8 + $0x1f8] sm:$0xff]  ;;  %v1688_v33 = vcombine.low %v270_v21, %v278_v22  ;;  %v1690_v34 = vcombine.low %v271_v23, %v279_v24 }
  0xa0   : > { %v1707_v36 = vcombine.high %v287_v31, %v295_v32 }
  0xa2   : > { %1255 = vmatpush1.bf16.msra.mxu0 %v1700_v39  ;;  %1296 = vmatpush1.bf16.msra.mxu1 %v1702_v40  ;;  %v303_v39 = vld [vmem:[%s2079_s8 + $0x238] sm:$0xff] }
  0xa3   : > { %1256 = vmatprep.subr.bf16.mxu0 %v1717_v41  ;;  %1297 = vmatprep.subr.bf16.mxu1 %v1719_v42  ;;  %v311_v40 = vld [vmem:[%s2079_s8 + $0x278] sm:$0xff]  ;;  %v1704_v41 = vcombine.low %v286_v29, %v294_v30  ;;  %v1721_v42 = vcombine.high %v302_v37, %v310_v38 }
  0xa4   : > { %v1723_v43 = vcombine.high %v303_v39, %v311_v40 }
  0xa6   : > { %1257 = vmatpush1.bf16.msra.mxu0 %v1716_v47  ;;  %1298 = vmatpush1.bf16.msra.mxu1 %v1718_v48  ;;  %v327_v47 = vld [vmem:[%s2079_s8 + $0x2f8] sm:$0xff]  ;;  %v1720_v48 = vcombine.low %v302_v37, %v310_v38 }
  0xa7   : > { %1258 = vmatprep.subr.bf16.mxu0 %v1733_v49  ;;  %1299 = vmatprep.subr.bf16.mxu1 %v1735_v50  ;;  %v1722_v49 = vcombine.low %v303_v39, %v311_v40  ;;  %v1737_v50 = vcombine.high %v318_v44, %v326_v45  ;;  %v1739_v51 = vcombine.high %v319_v46, %v327_v47 }
  0xaa   : > { %1259 = vmatpush1.bf16.msra.mxu0 %v1732_v55  ;;  %1300 = vmatpush1.bf16.msra.mxu1 %v1734_v56  ;;  %v343_v55 = vld [vmem:[%s2079_s8 + $0x378] sm:$0xff]  ;;  %v1736_v56 = vcombine.low %v318_v44, %v326_v45 }
  0xab   : > { %1260 = vmatprep.subr.bf16.mxu0 %v1749_v57  ;;  %1301 = vmatprep.subr.bf16.mxu1 %v1751_v58  ;;  %v1738_v57 = vcombine.low %v319_v46, %v327_v47  ;;  %v1753_v58 = vcombine.high %v334_v52, %v342_v53  ;;  %v1755_v59 = vcombine.high %v335_v54, %v343_v55 }
  0xae   : > { %1261 = vmatpush1.bf16.msra.mxu0 %v1748_v63  ;;  %1302 = vmatpush1.bf16.msra.mxu1 %v1750_v1  ;;  %v359_v63 = vld [vmem:[%s2079_s8 + $0x3f8] sm:$0xff]  ;;  %v1752_v1 = vcombine.low %v334_v52, %v342_v53 }
  0xaf   : > { %1262 = vmatprep.subr.bf16.mxu0 %v1765_v2  ;;  %1303 = vmatprep.subr.bf16.mxu1 %v1767_v3  ;;  %v1754_v2 = vcombine.low %v335_v54, %v343_v55  ;;  %v1769_v3 = vcombine.high %v350_v60, %v358_v61  ;;  %v1771_v4 = vcombine.high %v351_v62, %v359_v63 }
  0xb0   : > { %v1770_v6 = vcombine.low %v351_v62, %v359_v63 }
  0xb2   : > { %1263 = vmatpush1.bf16.msra.mxu0 %v1764_v8  ;;  %1304 = vmatpush1.bf16.msra.mxu1 %v1766_v9  ;;  %v2240_v8 = vshrl.u32 %v364_v7, 7 }
  0xb3   : > { %1330 = vmatprep.subr.bf16.mxu0 %v1657_v10  ;;  %1371 = vmatprep.subr.bf16.mxu1 %v1659_v11  ;;  %v360_v10 = vld [vmem:[%s2085_s29] sm:$0xff] }
  0xb4   : > { %v366_v9 = vsub.s32 0, %v2240_v8  ;;  %v374_v11 = vsub.s32 2, %v2240_v8  ;;  %v370_v13 = vsub.s32 1, %v2240_v8  ;;  %v378_v16 = vsub.s32 3, %v2240_v8 }
  0xb5   : > { %1281 = vmatmul.mubr.bf16.vlgmr.msra.gmra.mrb[8].mxu0 %v2136_v12  ;;  %1322 = vmatmul.mubr.bf16.vlgmr.msra.gmra.mrb[8].mxu1 %v2136_v12  ;;  %v382_v39 = vsub.s32 4, %v2240_v8  ;;  %v390_v40 = vsub.s32 6, %v2240_v8 }
  0xb6   : > { %1331 = vmatpush1.bf16.msra.mxu0 %v1656_v17  ;;  %1372 = vmatpush1.bf16.msra.mxu1 %v1658_v18  ;;  %v367_v17 = vrot.slane %v360_v10, %v366_v9  ;;  %v371_v18 = vrot.slane %v360_v10, %v370_v13 }
  0xb7   : > { %1332 = vmatprep.subr.bf16.mxu0 %v1673_v19  ;;  %1373 = vmatprep.subr.bf16.mxu1 %v1675_v20  ;;  %v1450_v19 = vunpack.c.0.s8 %v1449_v15  ;;  %v379_v20 = vrot.slane %v360_v10, %v378_v16 }
  0xb8   : > { %1362 = vmatprep.mubr.bf16.mxu0 %v1938_v0  ;;  %1403 = vmatprep.mubr.bf16.mxu1 %v1938_v0  ;;  %v1706_v0 = vcombine.low %v287_v31, %v295_v32 }
  0xba   : > { %1333 = vmatpush1.bf16.msra.mxu0 %v1672_v25  ;;  %1374 = vmatpush1.bf16.msra.mxu1 %v1674_v26 }
  0xbb   : > { %1334 = vmatprep.subr.bf16.mxu0 %v1689_v27  ;;  %1375 = vmatprep.subr.bf16.mxu1 %v1691_v28  ;;  %v2254_v27 = vsub.s32 %v1450_v19, %v2240_v8 }
  0xbe   : > { %1335 = vmatpush1.bf16.msra.mxu0 %v1688_v33  ;;  %1376 = vmatpush1.bf16.msra.mxu1 %v1690_v34 }
  0xbf   : > { %1336 = vmatprep.subr.bf16.mxu0 %v1705_v35  ;;  %1377 = vmatprep.subr.bf16.mxu1 %v1707_v36 }
  0xc2   : > { %1337 = vmatpush1.bf16.msra.mxu0 %v1704_v41  ;;  %1378 = vmatpush1.bf16.msra.mxu1 %v1706_v0  ;;  %v386_v41 = vsub.s32 5, %v2240_v8  ;;  %v394_v0 = vsub.s32 7, %v2240_v8 }
  0xc3   : > { %1338 = vmatprep.subr.bf16.mxu0 %v1721_v42  ;;  %1379 = vmatprep.subr.bf16.mxu1 %v1723_v43  ;;  %v383_v42 = vrot.slane %v360_v10, %v382_v39  ;;  %v391_v43 = vrot.slane %v360_v10, %v390_v40 }
  0xc4   : > { %v387_v44 = vrot.slane %v360_v10, %v386_v41  ;;  %v395_v45 = vrot.slane %v360_v10, %v394_v0 }
  0xc6   : > { %1339 = vmatpush1.bf16.msra.mxu0 %v1720_v48  ;;  %1380 = vmatpush1.bf16.msra.mxu1 %v1722_v49 }
  0xc7   : > { %1340 = vmatprep.subr.bf16.mxu0 %v1737_v50  ;;  %1381 = vmatprep.subr.bf16.mxu1 %v1739_v51 }
  0xca   : > { %1341 = vmatpush1.bf16.msra.mxu0 %v1736_v56  ;;  %1382 = vmatpush1.bf16.msra.mxu1 %v1738_v57 }
  0xcb   : > { %1342 = vmatprep.subr.bf16.mxu0 %v1753_v58  ;;  %1383 = vmatprep.subr.bf16.mxu1 %v1755_v59 }
  0xce   : > { %1343 = vmatpush1.bf16.msra.mxu0 %v1752_v1  ;;  %1384 = vmatpush1.bf16.msra.mxu1 %v1754_v2 }
  0xcf   : > { %1344 = vmatprep.subr.bf16.mxu0 %v1769_v3  ;;  %1385 = vmatprep.subr.bf16.mxu1 %v1771_v4  ;;  %v361_v3 = vld [vmem:[%s2085_s29 + $0x8] sm:$0xff] }
  0xd0   : > { %v399_v4 = vrot.slane %v361_v3, %v366_v9  ;;  %v411_v7 = vrot.slane %v361_v3, %v378_v16  ;;  %v415_v16 = vrot.slane %v361_v3, %v382_v39 }
  0xd2   : > { %1345 = vmatpush1.bf16.msra.mxu0 %v1768_v5  ;;  %1386 = vmatpush1.bf16.msra.mxu1 %v1770_v6  ;;  %v407_v5 = vrot.slane %v361_v3, %v374_v11  ;;  %v403_v6 = vrot.slane %v361_v3, %v370_v13 }
  0xd5   : > { %1363 = vmatmul.mubr.bf16.vlgmr.msra.gmra.mrb[12].mxu0 %v2136_v12  ;;  %1404 = vmatmul.mubr.bf16.vlgmr.msra.gmra.mrb[12].mxu1 %v2136_v12  ;;  %v375_v12 = vrot.slane %v360_v10, %v374_v11 }
 0x148   : > { %v1118_v21 = vpop.f32.mrb[0].mxu0  ;;  %v1159_v23 = vpop.f32.mrb[0].mxu1 }
 0x149   : > { %v1119_v22 = vadd.f32 %v1118_v21, %v367_v17  ;;  %v1120_v24 = vpop.f32.mrb[1].mxu0  ;;  %v1160_v25 = vadd.f32 %v1159_v23, %v375_v12  ;;  %v1161_v28 = vpop.f32.mrb[1].mxu1 }
 0x14a   : > { %v1121_v26 = vadd.f32 %v1120_v24, %v371_v18  ;;  %v1122_v29 = vpop.f32.mrb[2].mxu0  ;;  %v1162_v30 = vadd.f32 %v1161_v28, %v379_v20  ;;  %v1163_v31 = vpop.f32.mrb[2].mxu1  ;;  %v419_v28 = vrot.slane %v361_v3, %v386_v41 }
 0x14b   : > { %v1123_v32 = vpop.f32.mrb[3].mxu0  ;;  %v1164_v34 = vpop.f32.mrb[3].mxu1  ;;  %v427_v29 = vrot.slane %v361_v3, %v394_v0 }
 0x14c   : > { %v1772_v33 = vpack.c.bf16 %v1121_v26, %v1119_v22  ;;  %v1773_v35 = vpack.c.bf16 %v1162_v30, %v1160_v25  ;;  %v423_v26 = vrot.slane %v361_v3, %v390_v40 }
 0x14e   : > { %v1454_v36 = vrot.slane %v1772_v33, %v2254_v27  ;;  %v1461_v37 = vrot.slane %v1773_v35, %v2254_v27 }
 0x150   : > { %v1476_v38 = vcombine.low %v1454_v36, %v1461_v37 }
 0x152   : > { %v1484_v63 = vrot.slane %v1476_v38, %v2254_v27 }
 0x168   : > { %v1200_v46 = vpop.f32.mrb[4].mxu0  ;;  %v1241_v48 = vpop.f32.mrb[4].mxu1 }
 0x169   : > { %v1201_v47 = vadd.f32 %v1200_v46, %v383_v42  ;;  %v1202_v49 = vpop.f32.mrb[5].mxu0  ;;  %v1242_v50 = vadd.f32 %v1241_v48, %v391_v43  ;;  %v1243_v52 = vpop.f32.mrb[5].mxu1 }
 0x16a   : > { %v1203_v51 = vadd.f32 %v1202_v49, %v387_v44  ;;  %v1204_v53 = vpop.f32.mrb[6].mxu0  ;;  %v1244_v54 = vadd.f32 %v1243_v52, %v395_v45  ;;  %v1245_v55 = vpop.f32.mrb[6].mxu1 }
 0x16b   : > { %v1205_v56 = vpop.f32.mrb[7].mxu0  ;;  %v1246_v58 = vpop.f32.mrb[7].mxu1 }
 0x16c   : > { %v1774_v57 = vpack.c.bf16 %v1203_v51, %v1201_v47  ;;  %v1775_v59 = vpack.c.bf16 %v1244_v54, %v1242_v50 }
 0x16e   : > { %v1468_v60 = vrot.slane %v1774_v57, %v2254_v27  ;;  %v1475_v61 = vrot.slane %v1775_v59, %v2254_v27 }
 0x170   : > { %v1477_v62 = vcombine.low %v1468_v60, %v1475_v61 }
 0x172   : > { %v1491_v1 = vrot.slane %v1477_v62, %v2254_v27 }
 0x174   : > { %v1492_v2 = vcombine.low %v1484_v63, %v1491_v1 }
 0x176   : > { %1544 = vst [vmem:[%s2271_s10] sm:$0xff] %v1492_v2 }
 0x188   : > { %v1282_v10 = vpop.f32.mrb[8].mxu0  ;;  %v1323_v15 = vpop.f32.mrb[8].mxu1 }
 0x189   : > { %v1283_v14 = vadd.f32 %v1282_v10, %v399_v4  ;;  %v1284_v17 = vpop.f32.mrb[9].mxu0  ;;  %v1324_v12 = vadd.f32 %v1323_v15, %v407_v5  ;;  %v1325_v19 = vpop.f32.mrb[9].mxu1 }
 0x18a   : > { %v1285_v18 = vadd.f32 %v1284_v17, %v403_v6  ;;  %v1286_v20 = vpop.f32.mrb[10].mxu0  ;;  %v1326_v21 = vadd.f32 %v1325_v19, %v411_v7  ;;  %v1327_v22 = vpop.f32.mrb[10].mxu1 }
 0x18b   : > { %v1287_v23 = vpop.f32.mrb[11].mxu0  ;;  %v1328_v9 = vpop.f32.mrb[11].mxu1 }
 0x18c   : > { %v1776_v24 = vpack.c.bf16 %v1285_v18, %v1283_v14  ;;  %v1777_v25 = vpack.c.bf16 %v1326_v21, %v1324_v12 }
 0x18e   : > { %v1503_v11 = vrot.slane %v1776_v24, %v2254_v27  ;;  %v1510_v8 = vrot.slane %v1777_v25, %v2254_v27 }
 0x190   : > { %v1525_v13 = vcombine.low %v1503_v11, %v1510_v8 }
 0x192   : > { %v1533_v0 = vrot.slane %v1525_v13, %v2254_v27 }
 0x1a8   : > { %v1364_v30 = vpop.f32.mrb[12].mxu0  ;;  %v1405_v32 = vpop.f32.mrb[12].mxu1 }
 0x1a9   : > { %v1365_v31 = vadd.f32 %v1364_v30, %v415_v16  ;;  %v1366_v33 = vpop.f32.mrb[13].mxu0  ;;  %v1406_v34 = vadd.f32 %v1405_v32, %v423_v26  ;;  %v1407_v36 = vpop.f32.mrb[13].mxu1 }
 0x1aa   : > { %v1367_v35 = vadd.f32 %v1366_v33, %v419_v28  ;;  %v1368_v37 = vpop.f32.mrb[14].mxu0  ;;  %v1408_v38 = vadd.f32 %v1407_v36, %v427_v29  ;;  %v1409_v42 = vpop.f32.mrb[14].mxu1 }
 0x1ab   : > { %v1369_v43 = vpop.f32.mrb[15].mxu0  ;;  %v1410_v45 = vpop.f32.mrb[15].mxu1 }
 0x1ac   : > { %v1778_v44 = vpack.c.bf16 %v1367_v35, %v1365_v31  ;;  %v1779_v46 = vpack.c.bf16 %v1408_v38, %v1406_v34 }
 0x1ae   : > { %v1517_v39 = vrot.slane %v1778_v44, %v2254_v27  ;;  %v1524_v40 = vrot.slane %v1779_v46, %v2254_v27 }
 0x1b0   : > { %v1526_v41 = vcombine.low %v1517_v39, %v1524_v40 }
 0x1b2   : > { %v1540_v47 = vrot.slane %v1526_v41, %v2254_v27 }
 0x1b4   : > { %v1541_v48 = vcombine.low %v1533_v0, %v1540_v47 }
 0x1b6   : > { %1545 = vst [vmem:[%s2271_s10 + $0x8] sm:$0xff] %v1541_v48 }
 0x1b7 PF: > { %p16_p8 = scmp.ge.s32.totalorder %s1980_s17, 4   ;;  %s2311_s12 = smov %s1923_s13 }
 0x1b8   : > { %s2312_s13 = smov %s1927_s14  ;;  %s2313_s14 = smov %s1990_s20 }
 0x1b9   : > { %s2314_s15 = smov %s1980_s17  ;;  %18 = sbr.rel (!%p16_p8) target bundleno = 5 (0x5), region = 85 }
 0x1c0   :  { %1566 = vsyncpa [#allocation3], 1 }
 0x1c1   :  { %1568 = vsyncpa [#allocation3 + $0x1], 1 }
 0x1c2   :  { %1569 = vsyncpa [#allocation5], 1 }
 0x1c3   :  { %1571 = vsyncpa [#allocation5 + $0x1], 1 }

// kernel: generator_forward.6
= control target key start
LH: loop header
LB: loop body
LE: loop exit
PB: predicated region body
PF: predicated region fallthrough
CT: control target
= control target key end

     0   :  { %s3280_s12 = smov 0   ;;  %s4072_s0 = inlined_call_operand.vmem [shape: bf16[2,102,128], index: 0, kind: input, shape index: {}]   ;;  %s4073_s1 = inlined_call_operand.vmem [shape: bf16[9,128,256], index: 1, kind: input, shape index: {}]   ;;  %s4074_s2 = inlined_call_operand.vmem [shape: f32[1,256], index: 2, kind: input, shape index: {}]   ;;  %s4075_s3 = inlined_call_operand.vmem [shape: bf16[2,80,256], index: 3, kind: output, shape index: {}]  }
   0x1 LB: > { %s2501_s13 = sadd.s32 4294967295, %s3257_s12   ;;  %p2505_p0 = scmp.ge.s32.totalorder %s3257_s12, 1  ;;  %s3257_s12 = sphi %s3280_s12, %s13_s12  }
   0x2   : > { %p137_p1 = scmp.lt.s32.totalorder %s3257_s12, 3 }
   0x4   : > { %p138_p2 = pnand %p2505_p0, %p137_p1 }
   0x5   : > { %v3012_v0 = vld [vmem:[%s4073_s1 + $0x84] ss:$8 sps:$4 sm:$0xff] (!%p138_p2)   ;;  %v3259_v2 = vmov (!%p138_p2), 0   ;;  %v3016_v3 = vld [vmem:[%s4073_s1 + $0x80] ss:$8 sps:$4 sm:$0xff] (!%p138_p2)   ;;  %p161_p3 = scmp.lt.s32.totalorder (!%p138_p2), %s2501_s13, 1 }
   0x6   : > { %141 = sbr.rel (%p138_p2) target bundleno = 439 (0x1b7), region = 32  ;;  %v3014_v1 = vld [vmem:[%s4073_s1 + $0x204] ss:$8 sps:$4 sm:$0xff] (!%p138_p2)   ;;  %406 = vmatprep.mubr.bf16.mxu1 (!%p138_p2), %v3259_v2  ;;  %1293 = vmatprep.mubr.bf16.mxu0 (!%p138_p2), %v3259_v2  ;;  %v3017_v4 = vld [vmem:[%s4073_s1 + $0x200] ss:$8 sps:$4 sm:$0xff] (!%p138_p2)   ;;  %vm646_vm2 = vcmask (!%p138_p2), 1046528  }
   0x7   : > { %374 = vmatprep.subr.bf16.mxu1 (!%p138_p2), %v3012_v0  ;;  %1261 = vmatprep.subr.bf16.mxu0 (!%p138_p2), %v3014_v1  ;;  %v3018_v5 = vld [vmem:[%s4073_s1 + $0x94] ss:$8 sps:$4 sm:$0xff] (!%p138_p2)   ;;  %v3022_v7 = vld [vmem:[%s4073_s1 + $0x90] ss:$8 sps:$4 sm:$0xff] (!%p138_p2)   ;;  %v3024_v9 = vld [vmem:[%s4073_s1 + $0xa4] ss:$8 sps:$4 sm:$0xff] (!%p138_p2)  }
   0x8   : > { %375 = vmatpush1.bf16.msra.mxu1 (!%p138_p2), %v3016_v3  ;;  %1262 = vmatpush1.bf16.msra.mxu0 (!%p138_p2), %v3017_v4  ;;  %v3020_v6 = vld [vmem:[%s4073_s1 + $0x214] ss:$8 sps:$4 sm:$0xff] (!%p138_p2)   ;;  %v3023_v8 = vld [vmem:[%s4073_s1 + $0x210] ss:$8 sps:$4 sm:$0xff] (!%p138_p2)   ;;  %v3026_v10 = vld [vmem:[%s4073_s1 + $0x224] ss:$8 sps:$4 sm:$0xff] (!%p138_p2)  }
   0x9   : > { %376 = vmatprep.subr.bf16.mxu1 (!%p138_p2), %v3018_v5  ;;  %1263 = vmatprep.subr.bf16.mxu0 (!%p138_p2), %v3020_v6  ;;  %v3028_v11 = vld [vmem:[%s4073_s1 + $0xa0] ss:$8 sps:$4 sm:$0xff] (!%p138_p2)   ;;  %v3030_v13 = vld [vmem:[%s4073_s1 + $0xb4] ss:$8 sps:$4 sm:$0xff] (!%p138_p2)   ;;  %v3034_v15 = vld [vmem:[%s4073_s1 + $0xb0] ss:$8 sps:$4 sm:$0xff] (!%p138_p2)  }
   0xa   : > { %v3029_v12 = vld [vmem:[%s4073_s1 + $0x220] ss:$8 sps:$4 sm:$0xff] (!%p138_p2)   ;;  %v3032_v14 = vld [vmem:[%s4073_s1 + $0x234] ss:$8 sps:$4 sm:$0xff] (!%p138_p2)   ;;  %v3035_v16 = vld [vmem:[%s4073_s1 + $0x230] ss:$8 sps:$4 sm:$0xff] (!%p138_p2)  }
   0xb   : > { %v3036_v17 = vld [vmem:[%s4073_s1 + $0xc4] ss:$8 sps:$4 sm:$0xff] (!%p138_p2)   ;;  %v3040_v19 = vld [vmem:[%s4073_s1 + $0xc0] ss:$8 sps:$4 sm:$0xff] (!%p138_p2)   ;;  %v3042_v21 = vld [vmem:[%s4073_s1 + $0xd4] ss:$8 sps:$4 sm:$0xff] (!%p138_p2)  }
   0xc   : > { %377 = vmatpush1.bf16.msra.mxu1 (!%p138_p2), %v3022_v7  ;;  %1264 = vmatpush1.bf16.msra.mxu0 (!%p138_p2), %v3023_v8  ;;  %v3038_v18 = vld [vmem:[%s4073_s1 + $0x244] ss:$8 sps:$4 sm:$0xff] (!%p138_p2)   ;;  %v3041_v20 = vld [vmem:[%s4073_s1 + $0x240] ss:$8 sps:$4 sm:$0xff] (!%p138_p2)   ;;  %v3044_v22 = vld [vmem:[%s4073_s1 + $0x254] ss:$8 sps:$4 sm:$0xff] (!%p138_p2)  }
   0xd   : > { %378 = vmatprep.subr.bf16.mxu1 %v3024_v9  ;;  %1265 = vmatprep.subr.bf16.mxu0 %v3026_v10  ;;  %s4077_s13 = smov (!%p161_p3, %s2501_s13), 1  ;;  %v3046_v23 = vld [vmem:[%s4073_s1 + $0xd0] ss:$8 sps:$4 sm:$0xff]   ;;  %v3048_v25 = vld [vmem:[%s4073_s1 + $0xe4] ss:$8 sps:$4 sm:$0xff]   ;;  %vm1385_vm3 = vcmask 1045504  }
   0xe   : > { %s3001_s25 = smul.u32 52, %s4077_s13  ;;  %v3047_v24 = vld [vmem:[%s4073_s1 + $0x250] ss:$8 sps:$4 sm:$0xff]   ;;  %v3050_v26 = vld [vmem:[%s4073_s1 + $0x264] ss:$8 sps:$4 sm:$0xff]   ;;  %vm2124_vm4 = vcmask 1044480  }
   0xf   : > { %v3052_v29 = vld [vmem:[%s4073_s1 + $0xe0] ss:$8 sps:$4 sm:$0xff]   ;;  %v3054_v33 = vld [vmem:[%s4073_s1 + $0xf4] ss:$8 sps:$4 sm:$0xff]   ;;  %vm244_vm0 = vsmask.f32 7424 }
  0x10   : > { %379 = vmatpush1.bf16.msra.mxu1 %v3028_v11  ;;  %1266 = vmatpush1.bf16.msra.mxu0 %v3029_v12  ;;  %s3366_s9 = scalar_lea.vmem %s4072_s0, %s3001_s25  ;;  %v3053_v30 = vld [vmem:[%s4073_s1 + $0x260] ss:$8 sps:$4 sm:$0xff]   ;;  %v3056_v41 = vld [vmem:[%s4073_s1 + $0x274] ss:$8 sps:$4 sm:$0xff]   ;;  %v3058_v42 = vld [vmem:[%s4073_s1 + $0xf0] ss:$8 sps:$4 sm:$0xff]  }
  0x11   : > { %380 = vmatprep.subr.bf16.mxu1 %v3030_v13  ;;  %1267 = vmatprep.subr.bf16.mxu0 %v3032_v14  ;;  %v172_v27 = vld [vmem:[%s3366_s9] sm:$0xf]  ;;  %v3382_v28 = vld [vmem:[%s3366_s9 + $0x4] sm:$0xf]  ;;  %v3394_v32 = vld [vmem:[%s3366_s9 + $0x8] sm:$0xff]   ;;  %s3002_s17 = smul.u32 80, %s4077_s13 }
  0x12   : > { %v3391_v31 = vcombine.low %v172_v27, %v3382_v28  ;;  %v846_v34 = vld [vmem:[%s3366_s9 + $0x4] sm:$0xe]  ;;  %v3401_v35 = vld [vmem:[%s3366_s9 + $0x8] sm:$0xf]  ;;  %v253_v38 = vshll.u32 %v3394_v32, 16  ;;  %v3410_v40 = vld [vmem:[%s3366_s9 + $0xc] sm:$0xff]  }
  0x13   : > { %v3407_v39 = vcombine.low %v846_v34, %v3401_v35  ;;  %v3059_v43 = vld [vmem:[%s4073_s1 + $0x270] ss:$8 sps:$4 sm:$0xff]   ;;  %v1132_v48 = vshrl.u32 %v3410_v40, 16  ;;  %v1135_v49 = vshll.u32 %v3410_v40, 16  ;;  %v3066_v53 = vld [vmem:[%s4073_s1 + $0x284] ss:$8 sps:$4 sm:$0xff]   ;;  %s4036_s19 = scalar_lea.vmem %s4075_s3, %s3002_s17 }
  0x14   : > { %381 = vmatpush1.bf16.msra.mxu1 %v3034_v15  ;;  %1268 = vmatpush1.bf16.msra.mxu0 %v3035_v16  ;;  %v246_v36 = vshrl.u32 %v3391_v31, 16  ;;  %v248_v37 = vshll.u32 %v3391_v31, 16  ;;  %v255_v47 = vrot.slane %v253_v38, 1  ;;  %v3429_v56 = vld [vmem:[%s3366_s9 + $0x10] sm:$0xff]   ;;  %vm1122_vm1 = vsmask.f32 6400 }
  0x15   : > { %382 = vmatprep.subr.bf16.mxu1 %v3036_v17  ;;  %1269 = vmatprep.subr.bf16.mxu0 %v3038_v18  ;;  %v1124_v45 = vshrl.u32 %v3407_v39, 16  ;;  %v1127_v46 = vshll.u32 %v3407_v39, 16  ;;  %v1134_v54 = vrot.slane %v1132_v48, 1  ;;  %v1137_v55 = vrot.slane %v1135_v49, 2  ;;  %v3073_v59 = vld [vmem:[%s4073_s1 + $0x4] ss:$8 sps:$4 sm:$0xff]  }
  0x16   : > { %v250_v44 = vrot.slane %v248_v37, 1  ;;  %v257_v58 = vshrl.u32 %v3394_v32, 16  ;;  %v261_v61 = vshll.u32 %v3429_v56, 16  ;;  %v3437_v62 = vld [vmem:[%s3366_s9 + $0x14] sm:$0xff]   ;;  %v3064_v0 = vld [vmem:[%s4073_s1 + $0x280] ss:$8 sps:$4 sm:$0xff]  }
  0x17   : > { %v1126_v51 = vrot.slane %v1124_v45, 1  ;;  %v1129_v52 = vrot.slane %v1127_v46, 2  ;;  %v1138_v60 = vor.u32 %v1137_v55, %v1134_v54  ;;  %v648_v1 = vrot.slane %v3394_v32, 1  ;;  %v3069_v5 = vld [vmem:[%s4073_s1 + $0x294] ss:$8 sps:$4 sm:$0xff]  }
  0x18   : > { %383 = vmatpush1.bf16.msra.mxu1 %v3040_v19  ;;  %1270 = vmatpush1.bf16.msra.mxu0 %v3041_v20  ;;  %v251_v50 = vor.u32 %v250_v44, %v246_v36  ;;  %v650_v3 = vrot.slane %v3429_v56, 1  ;;  %v1141_v6 = vshrl.u32 %v3437_v62, 16  ;;  %v1144_v7 = vshll.u32 %v3437_v62, 16  ;;  %v3067_v8 = vld [vmem:[%s4073_s1 + $0x290] ss:$8 sps:$4 sm:$0xff]  }
  0x19   : > { %384 = vmatprep.subr.bf16.mxu1 %v3042_v21  ;;  %1271 = vmatprep.subr.bf16.mxu0 %v3044_v22  ;;  %v1130_v57 = vor.u32 %v1129_v52, %v1126_v51  ;;  %v263_v9 = vrot.slane %v261_v61, 1  ;;  %v3071_v10 = vld [vmem:[%s4073_s1] ss:$8 sps:$4 sm:$0xff]   ;;  %v259_v12 = vor.u32 %v257_v58, %v255_v47  ;;  %v3080_v15 = vld [vmem:[%s4073_s1 + $0x14] ss:$8 sps:$4 sm:$0xff]   ;;  %v902_v19 = vrot.slane %v3407_v39, 1 }
  0x1a   : > { %v256_v63 = vsel %vm244_vm0, %v251_v50, %v255_v47  ;;  %v3460_v11 = vsel %vm646_vm2, %v648_v1, %v650_v3  ;;  %v1143_v13 = vrot.slane %v1141_v6, 1  ;;  %v1146_v14 = vrot.slane %v1144_v7, 2  ;;  %v3077_v16 = vld [vmem:[%s4073_s1 + $0x2a4] ss:$8 sps:$4 sm:$0xff]   ;;  %v3471_v18 = vld [vmem:[%s3366_s9 + $0x18] sm:$0xff]  }
  0x1b   : > { %v1139_v4 = vsel %vm1122_vm1, %v1130_v57, %v1138_v60  ;;  %v903_v20 = vrot.slane %v3410_v40, 1  ;;  %v905_v21 = vrot.slane %v3437_v62, 1  ;;  %v3075_v22 = vld [vmem:[%s4073_s1 + $0x2a0] ss:$8 sps:$4 sm:$0xff]   ;;  %v652_v34 = vrot.slane %v3471_v18, 1 }
  0x1c   : > { %385 = vmatpush1.bf16.msra.mxu1 %v3046_v23  ;;  %1272 = vmatpush1.bf16.msra.mxu0 %v3047_v24  ;;  %v1147_v17 = vor.u32 %v1146_v14, %v1143_v13  ;;  %v3078_v23 = vld [vmem:[%s4073_s1 + $0x10] ss:$8 sps:$4 sm:$0xff]   ;;  %v264_v24 = vsel %vm244_vm0, %v259_v12, %v263_v9  ;;  %v3085_v37 = vld [vmem:[%s4073_s1 + $0x20] ss:$8 sps:$4 sm:$0xff]   ;;  %v3091_v49 = vld [vmem:[%s4073_s1 + $0x34] ss:$8 sps:$4 sm:$0xff]  }
  0x1d   : > { %386 = vmatprep.subr.bf16.mxu1 %v3048_v25  ;;  %1273 = vmatprep.subr.bf16.mxu0 %v3050_v26  ;;  %v265_v25 = vshrl.u32 %v3429_v56, 16  ;;  %v3485_v26 = vld [vmem:[%s3366_s9 + $0x1c] sm:$0xff]   ;;  %v3488_v27 = vsel %vm646_vm2, %v902_v19, %v903_v20  ;;  %v3499_v36 = vsel %vm646_vm2, %v903_v20, %v905_v21  ;;  %v3516_v44 = vsel %vm646_vm2, %v650_v3, %v652_v34  ;;  %v3094_v50 = vld [vmem:[%s4073_s1 + $0x2c4] ss:$8 sps:$4 sm:$0xff]   ;;  %v3100_v7 = vld [vmem:[%s4073_s1 + $0x2d0] ss:$8 sps:$4 sm:$0xff]  }
  0x1e   : > { %v1150_v38 = vshrl.u32 %v3485_v26, 16  ;;  %v1153_v39 = vshll.u32 %v3485_v26, 16  ;;  %v3526_v51 = vld [vmem:[%s3366_s9 + $0x24] sm:$0xff]   ;;  %v273_v55 = vshrl.u32 %v3471_v18, 16  ;;  %v3105_v12 = vld [vmem:[%s4073_s1 + $0x54] ss:$8 sps:$4 sm:$0xff]  }
  0x1f   : > { %v267_v47 = vor.u32 %v265_v25, %v263_v9  ;;  %v1162_v54 = vshll.u32 %v3526_v51, 16  ;;  %v3092_v61 = vld [vmem:[%s4073_s1 + $0x2c0] ss:$8 sps:$4 sm:$0xff]   ;;  %v3098_v3 = vld [vmem:[%s4073_s1 + $0x44] ss:$8 sps:$4 sm:$0xff]   ;;  %v909_v9 = vrot.slane %v3526_v51, 1 }
  0x20   : > { %387 = vmatpush1.bf16.msra.mxu1 %v3052_v29  ;;  %1274 = vmatpush1.bf16.msra.mxu0 %v3053_v30  ;;  %v1148_v29 = vsel %vm1122_vm1, %v1138_v60, %v1147_v17  ;;  %v3083_v30 = vld [vmem:[%s4073_s1 + $0x2b4] ss:$8 sps:$4 sm:$0xff]   ;;  %v1152_v45 = vrot.slane %v1150_v38, 1  ;;  %v1155_v46 = vrot.slane %v1153_v39, 2  ;;  %v3089_v60 = vld [vmem:[%s4073_s1 + $0x30] ss:$8 sps:$4 sm:$0xff]  }
  0x21   : > { %388 = vmatprep.subr.bf16.mxu1 %v3054_v33  ;;  %1275 = vmatprep.subr.bf16.mxu0 %v3056_v41  ;;  %v269_v33 = vshll.u32 %v3471_v18, 16  ;;  %v3081_v41 = vld [vmem:[%s4073_s1 + $0x2b0] ss:$8 sps:$4 sm:$0xff]   ;;  %v3096_v6 = vld [vmem:[%s4073_s1 + $0x40] ss:$8 sps:$4 sm:$0xff]  }
  0x22   : > { %v1156_v52 = vor.u32 %v1155_v46, %v1152_v45  ;;  %v3108_v13 = vld [vmem:[%s4073_s1 + $0x2e4] ss:$8 sps:$4 sm:$0xff]   ;;  %v3109_v19 = vld [vmem:[%s3366_s9 + $0x28] ss:$0 sps:$4 sm:$0x11]  }
  0x23   : > { %v271_v48 = vrot.slane %v269_v33, 1  ;;  %v3103_v33 = vld [vmem:[%s4073_s1 + $0x50] ss:$8 sps:$4 sm:$0xff]   ;;  %v3106_v38 = vld [vmem:[%s4073_s1 + $0x2e0] ss:$8 sps:$4 sm:$0xff]  }
  0x24   : > { %389 = vmatpush1.bf16.msra.mxu1 %v3058_v42  ;;  %1276 = vmatpush1.bf16.msra.mxu0 %v3059_v43  ;;  %v3087_v42 = vld [vmem:[%s4073_s1 + $0x24] ss:$8 sps:$4 sm:$0xff]   ;;  %v3116_v45 = vld [vmem:[%s4073_s1 + $0x2f4] ss:$8 sps:$4 sm:$0xff]   ;;  %vm1861_vm5 = vsmask.f32 5376 }
  0x25   : > { %1482 = vmatprep.subr.bf16.mxu0 %v3066_v53  ;;  %542 = vmatprep.subr.bf16.mxu1 %v3073_v59  ;;  %v3513_v43 = vld [vmem:[%s3366_s9 + $0x20] sm:$0xff]   ;;  %v1159_v53 = vshrl.u32 %v3526_v51, 16  ;;  %v272_v58 = vsel %vm244_vm0, %v267_v47, %v271_v48  ;;  %v1157_v59 = vsel %vm1122_vm1, %v1147_v17, %v1156_v52 }
  0x26   : > { %v277_v57 = vshll.u32 %v3513_v43, 16  ;;  %v3112_v39 = vld [vmem:[%s4073_s1 + $0x64] ss:$8 sps:$4 sm:$0xff]  }
  0x27   : > { %407 = vmatmul.mubr.bf16.vlgmr.msra.gmra.mrb[0].mxu1 %v256_v63  ;;  %1294 = vmatmul.mubr.bf16.vlgmr.msra.gmra.mrb[0].mxu0 %v1139_v4  ;;  %v1161_v63 = vrot.slane %v1159_v53, 1  ;;  %v654_v4 = vrot.slane %v3513_v43, 1  ;;  %v1364_v53 = vld [vmem:[%s3366_s9 + $0x4] sm:$0xc] }
  0x28   : > { %1483 = vmatpush1.bf16.msra.mxu0 %v3064_v0  ;;  %416 = vmatprep.mubr.bf16.mxu1 %v3259_v2  ;;  %v1164_v0 = vrot.slane %v1162_v54, 2  ;;  %v3123_v54 = vld [vmem:[%s4073_s1 + $0x304] ss:$8 sps:$4 sm:$0xff]  }
  0x29   : > { %1484 = vmatprep.subr.bf16.mxu0 %v3069_v5  ;;  %1303 = vmatprep.mubr.bf16.mxu0 %v3259_v2  ;;  %v907_v5 = vrot.slane %v3485_v26, 1  ;;  %v3563_v14 = vsel %vm646_vm2, %v652_v34, %v654_v4  ;;  %v285_v34 = vshll.u32 %v3109_v19, 16 }
  0x2a   : > { %543 = vmatpush1.bf16.msra.mxu1 %v3071_v10  ;;  %v279_v10 = vrot.slane %v277_v57, 1  ;;  %v1165_v17 = vor.u32 %v1164_v0, %v1161_v63  ;;  %v1387_v63 = vrot.slane %v3410_v40, 2  ;;  %v3121_v0 = vld [vmem:[%s4073_s1 + $0x300] ss:$8 sps:$4 sm:$0xff]   ;;  %v3135_v40 = vld [vmem:[%s4073_s1 + $0x114] ss:$8 sps:$4 sm:$0xff]  }
  0x2b   : > { %544 = vmatprep.subr.bf16.mxu1 %v3080_v15  ;;  %v3568_v15 = vsel %vm646_vm2, %v905_v21, %v907_v5  ;;  %v3574_v20 = vsel %vm646_vm2, %v907_v5, %v909_v9  ;;  %v656_v21 = vrot.slane %v3109_v19, 1  ;;  %v287_v47 = vrot.slane %v285_v34, 1  ;;  %v3124_v5 = vld [vmem:[%s4073_s1 + $0x310] ss:$8 sps:$4 sm:$0xff]   ;;  %v3139_v19 = vld [vmem:[%s4073_s1 + $0x120] ss:$8 sps:$4 sm:$0xff]  }
  0x2c   : > { %1485 = vmatpush1.bf16.msra.mxu0 %v3067_v8  ;;  %v3102_v8 = vld [vmem:[%s4073_s1 + $0x2d4] ss:$8 sps:$4 sm:$0xff]  }
  0x2d   : > { %1486 = vmatprep.subr.bf16.mxu0 %v3077_v16  ;;  %v275_v16 = vor.u32 %v273_v55, %v271_v48  ;;  %v3110_v48 = vld [vmem:[%s4073_s1 + $0x60] ss:$8 sps:$4 sm:$0xff]   ;;  %v3704_v34 = vld [vmem:[%s3366_s9 + $0x10] sm:$0xff]  }
  0x2e   : > { %545 = vmatpush1.bf16.msra.mxu1 %v3078_v23  ;;  %v281_v23 = vshrl.u32 %v3513_v43, 16 }
  0x2f   : > { %417 = vmatmul.mubr.bf16.gmra.mrb[4].mxu1 %v264_v24  ;;  %1304 = vmatmul.mubr.bf16.gmra.mrb[4].mxu0 %v1148_v29  ;;  %v280_v29 = vsel %vm244_vm0, %v275_v16, %v279_v10 }
  0x30   : > { %1487 = vmatpush1.bf16.msra.mxu0 %v3075_v22  ;;  %426 = vmatprep.mubr.bf16.mxu1 %v3259_v2  ;;  %v3579_v22 = vld [vmem:[%s3366_s9 + $0x2c] ss:$0 sps:$4 sm:$0x33]   ;;  %v283_v46 = vor.u32 %v281_v23, %v279_v10 }
  0x31   : > { %1313 = vmatprep.mubr.bf16.mxu0 %v3259_v2  ;;  %1488 = vmatprep.subr.bf16.mxu0 %v3083_v30  ;;  %v1168_v24 = vshrl.u32 %v3579_v22, 16  ;;  %v1171_v25 = vshll.u32 %v3579_v22, 16  ;;  %v1166_v30 = vsel %vm1122_vm1, %v1156_v52, %v1165_v17  ;;  %v3119_v52 = vld [vmem:[%s4073_s1 + $0x74] ss:$8 sps:$4 sm:$0xff]  }
  0x32   : > { %546 = vmatprep.subr.bf16.mxu1 %v3087_v42  ;;  %v288_v55 = vsel %vm244_vm0, %v283_v46, %v287_v47  ;;  %v2126_v46 = vrot.slane %v3704_v34, 3 }
  0x33   : > { %547 = vmatpush1.bf16.msra.mxu1 %v3085_v37  ;;  %v3590_v37 = vsel %vm646_vm2, %v654_v4, %v656_v21  ;;  %v1173_v42 = vrot.slane %v1171_v25, 2  ;;  %v3127_v4 = vld [vmem:[%s4073_s1 + $0x100] ss:$8 sps:$4 sm:$0xff]   ;;  %v1391_v21 = vrot.slane %v3485_v26, 2  ;;  %v3147_v26 = vld [vmem:[%s4073_s1 + $0x344] ss:$8 sps:$4 sm:$0xff]  }
  0x34   : > { %1489 = vmatpush1.bf16.msra.mxu0 %v3081_v41  ;;  %548 = vmatprep.subr.bf16.mxu1 %v3091_v49  ;;  %v1170_v41 = vrot.slane %v1168_v24, 1  ;;  %v3144_v24 = vld [vmem:[%s4073_s1 + $0x134] ss:$8 sps:$4 sm:$0xff]  }
  0x35   : > { %1490 = vmatprep.subr.bf16.mxu0 %v3094_v50  ;;  %v3114_v50 = vld [vmem:[%s4073_s1 + $0x2f0] ss:$8 sps:$4 sm:$0xff]  }
  0x36   : > { %v1174_v49 = vor.u32 %v1173_v42, %v1170_v41  ;;  %v3151_v41 = vld [vmem:[%s4073_s1 + $0x350] ss:$8 sps:$4 sm:$0xff]   ;;  %v3156_v42 = vld [vmem:[%s4073_s1 + $0x154] ss:$8 sps:$4 sm:$0xff]  }
  0x37   : > { %427 = vmatmul.mubr.bf16.gmra.mrb[8].mxu1 %v272_v58  ;;  %1314 = vmatmul.mubr.bf16.gmra.mrb[8].mxu0 %v1157_v59  ;;  %v3117_v58 = vld [vmem:[%s4073_s1 + $0x70] ss:$8 sps:$4 sm:$0xff]   ;;  %v2682_v59 = vcombine.low %v1364_v53, %v3401_v35 }
  0x38   : > { %549 = vmatpush1.bf16.msra.mxu1 %v3089_v60  ;;  %1491 = vmatpush1.bf16.msra.mxu0 %v3092_v61  ;;  %v1175_v57 = vsel %vm1122_vm1, %v1165_v17, %v1174_v49  ;;  %v3129_v60 = vld [vmem:[%s4073_s1 + $0x104] ss:$8 sps:$4 sm:$0xff]   ;;  %v3136_v17 = vld [vmem:[%s4073_s1 + $0x330] ss:$8 sps:$4 sm:$0xff]  }
  0x39   : > { %436 = vmatprep.mubr.bf16.mxu1 %v3259_v2  ;;  %1323 = vmatprep.mubr.bf16.mxu0 %v3259_v2  ;;  %v1386_v61 = vrot.slane %v2682_v59, 2  ;;  %v1395_v59 = vrot.slane %v3579_v22, 2 }
  0x3a   : > { %550 = vmatprep.subr.bf16.mxu1 %v3098_v3  ;;  %1492 = vmatprep.subr.bf16.mxu0 %v3102_v8  ;;  %v3126_v3 = vld [vmem:[%s4073_s1 + $0x314] ss:$8 sps:$4 sm:$0xff]   ;;  %v625_v8 = vld [vmem:[%s3366_s9] sm:$0xe] }
  0x3b   : > { %v1388_v35 = vsel %vm1385_vm3, %v1386_v61, %v1387_v63  ;;  %v2578_v10 = vcombine.low %v625_v8, %v3382_v28  ;;  %v3141_v28 = vld [vmem:[%s4073_s1 + $0x124] ss:$8 sps:$4 sm:$0xff]   ;;  %v3168_v61 = vld [vmem:[%s4073_s1 + $0x174] ss:$8 sps:$4 sm:$0xff]  }
  0x3c   : > { %551 = vmatpush1.bf16.msra.mxu1 %v3096_v6  ;;  %1493 = vmatpush1.bf16.msra.mxu0 %v3100_v7  ;;  %v1389_v6 = vrot.slane %v3437_v62, 2  ;;  %v3133_v7 = vld [vmem:[%s4073_s1 + $0x110] ss:$8 sps:$4 sm:$0xff]   ;;  %v3130_v62 = vld [vmem:[%s4073_s1 + $0x320] ss:$8 sps:$4 sm:$0xff]  }
  0x3d   : > { %552 = vmatprep.subr.bf16.mxu1 %v3105_v12  ;;  %1494 = vmatprep.subr.bf16.mxu0 %v3108_v13  ;;  %v3138_v13 = vld [vmem:[%s4073_s1 + $0x334] ss:$8 sps:$4 sm:$0xff]   ;;  %v647_v16 = vrot.slane %v2578_v10, 1  ;;  %v3175_v10 = vld [vmem:[%s4073_s1 + $0x390] ss:$8 sps:$4 sm:$0xff]  }
  0x3e   : > { %v1390_v12 = vsel %vm1385_vm3, %v1387_v63, %v1389_v6  ;;  %v1392_v25 = vsel %vm1385_vm3, %v1389_v6, %v1391_v21  ;;  %v1586_v63 = vld [vmem:[%s3366_s9 + $0xc] sm:$0xf]  ;;  %v3187_v8 = vld [vmem:[%s4073_s1 + $0x194] ss:$8 sps:$4 sm:$0xff]  }
  0x3f   : > { %437 = vmatmul.mubr.bf16.gmra.mrb[12].mxu1 %v280_v29  ;;  %1324 = vmatmul.mubr.bf16.gmra.mrb[12].mxu0 %v1166_v30  ;;  %v3677_v23 = vsel %vm646_vm2, %v647_v16, %v648_v1  ;;  %v3145_v1 = vld [vmem:[%s4073_s1 + $0x340] ss:$8 sps:$4 sm:$0xff]   ;;  %v3150_v29 = vld [vmem:[%s4073_s1 + $0x144] ss:$8 sps:$4 sm:$0xff]   ;;  %v3153_v30 = vld [vmem:[%s4073_s1 + $0x354] ss:$8 sps:$4 sm:$0xff]  }
  0x40   : > { %553 = vmatpush1.bf16.msra.mxu1 %v3103_v33  ;;  %446 = vmatprep.mubr.bf16.mxu1 %v3259_v2  ;;  %v3148_v33 = vld [vmem:[%s4073_s1 + $0x140] ss:$8 sps:$4 sm:$0xff]   ;;  %v3185_v16 = vld [vmem:[%s4073_s1 + $0x190] ss:$8 sps:$4 sm:$0xff]  }
  0x41   : > { %1333 = vmatprep.mubr.bf16.mxu0 %v3259_v2  ;;  %1495 = vmatpush1.bf16.msra.mxu0 %v3106_v38  ;;  %v3707_v38 = vld [vmem:[%s3366_s9 + $0x18] sm:$0xff]  }
  0x42   : > { %554 = vmatprep.subr.bf16.mxu1 %v3112_v39  ;;  %1496 = vmatprep.subr.bf16.mxu0 %v3116_v45  ;;  %v1393_v39 = vrot.slane %v3526_v51, 2  ;;  %v3718_v45 = vld [vmem:[%s3366_s9 + $0x20] sm:$0xff]   ;;  %v2128_v47 = vrot.slane %v3707_v38, 3 }
  0x44   : > { %555 = vmatpush1.bf16.msra.mxu1 %v3110_v48  ;;  %v2130_v48 = vrot.slane %v3718_v45, 3  ;;  %v3731_v49 = vsel %vm2124_vm4, %v2126_v46, %v2128_v47  ;;  %v1396_v22 = vsel %vm1385_vm3, %v1393_v39, %v1395_v59  ;;  %v3216_v59 = vld [vmem:[%s4073_s1 + $0x1e4] ss:$8 sps:$4 sm:$0xff]  }
  0x45   : > { %556 = vmatprep.subr.bf16.mxu1 %v3119_v52  ;;  %1497 = vmatpush1.bf16.msra.mxu0 %v3114_v50  ;;  %v1394_v50 = vsel %vm1385_vm3, %v1391_v21, %v1393_v39  ;;  %v3154_v52 = vld [vmem:[%s4073_s1 + $0x150] ss:$8 sps:$4 sm:$0xff]   ;;  %v3198_v39 = vld [vmem:[%s4073_s1 + $0x3c0] ss:$8 sps:$4 sm:$0xff]  }
  0x46   : > { %1737 = vmatprep.subr.bf16.mxu0 %v3123_v54  ;;  %v3740_v53 = vsel %vm2124_vm4, %v2128_v47, %v2130_v48  ;;  %v3157_v54 = vld [vmem:[%s4073_s1 + $0x360] ss:$8 sps:$4 sm:$0xff]  }
  0x47   : > { %447 = vmatmul.mubr.bf16.gmra.mrb[16].mxu1 %v288_v55  ;;  %1334 = vmatmul.mubr.bf16.gmra.mrb[16].mxu0 %v1175_v57  ;;  %v3162_v55 = vld [vmem:[%s4073_s1 + $0x164] ss:$8 sps:$4 sm:$0xff]   ;;  %v3165_v57 = vld [vmem:[%s4073_s1 + $0x374] ss:$8 sps:$4 sm:$0xff]   ;;  %v3201_v47 = vld [vmem:[%s4073_s1 + $0x1c0] ss:$8 sps:$4 sm:$0xff]  }
  0x48   : > { %557 = vmatpush1.bf16.msra.mxu1 %v3117_v58  ;;  %574 = vmatprep.mubr.bf16.mxu1 %v3259_v2  ;;  %v3160_v58 = vld [vmem:[%s4073_s1 + $0x160] ss:$8 sps:$4 sm:$0xff]  }
  0x49   : > { %1514 = vmatprep.mubr.bf16.mxu0 %v3259_v2  ;;  %743 = vmatprep.subr.bf16.mxu1 %v3129_v60  ;;  %v3163_v60 = vld [vmem:[%s4073_s1 + $0x370] ss:$8 sps:$4 sm:$0xff]  }
  0x4f   : > { %575 = vmatmul.mubr.bf16.vlgmr.msra.gmra.mrb[0].mxu1 %v3391_v31  ;;  %1515 = vmatmul.mubr.bf16.vlgmr.msra.gmra.mrb[0].mxu0 %v1388_v35  ;;  %v3132_v31 = vld [vmem:[%s4073_s1 + $0x324] ss:$8 sps:$4 sm:$0xff]  }
  0x50   : > { %1738 = vmatpush1.bf16.msra.mxu0 %v3121_v0  ;;  %584 = vmatprep.mubr.bf16.mxu1 %v3259_v2  ;;  %v3174_v35 = vld [vmem:[%s4073_s1 + $0x384] ss:$8 sps:$4 sm:$0xff]   ;;  %v3166_v0 = vld [vmem:[%s4073_s1 + $0x170] ss:$8 sps:$4 sm:$0xff]  }
  0x51   : > { %1739 = vmatprep.subr.bf16.mxu0 %v3126_v3  ;;  %1524 = vmatprep.mubr.bf16.mxu0 %v3259_v2 }
  0x52   : > { %744 = vmatpush1.bf16.msra.mxu1 %v3127_v4  ;;  %v3180_v4 = vld [vmem:[%s4073_s1 + $0x184] ss:$8 sps:$4 sm:$0xff]  }
  0x53   : > { %745 = vmatprep.subr.bf16.mxu1 %v3135_v40 }
  0x54   : > { %1740 = vmatpush1.bf16.msra.mxu0 %v3124_v5  ;;  %v1642_v5 = vrot.slane %v3704_v34, 2 }
  0x55   : > { %1741 = vmatprep.subr.bf16.mxu0 %v3132_v31  ;;  %v3172_v31 = vld [vmem:[%s4073_s1 + $0x380] ss:$8 sps:$4 sm:$0xff]  }
  0x56   : > { %746 = vmatpush1.bf16.msra.mxu1 %v3133_v7  ;;  %v3178_v7 = vld [vmem:[%s4073_s1 + $0x180] ss:$8 sps:$4 sm:$0xff]  }
  0x57   : > { %585 = vmatmul.mubr.bf16.gmra.mrb[4].mxu1 %v3394_v32  ;;  %1525 = vmatmul.mubr.bf16.gmra.mrb[4].mxu0 %v1390_v12  ;;  %v3142_v32 = vld [vmem:[%s4073_s1 + $0x130] ss:$8 sps:$4 sm:$0xff]   ;;  %v1644_v12 = vrot.slane %v3707_v38, 2 }
  0x58   : > { %1742 = vmatpush1.bf16.msra.mxu0 %v3130_v62  ;;  %594 = vmatprep.mubr.bf16.mxu1 %v3259_v2  ;;  %v3184_v62 = vld [vmem:[%s4073_s1 + $0x3a4] ss:$8 sps:$4 sm:$0xff]  }
  0x59   : > { %1534 = vmatprep.mubr.bf16.mxu0 %v3259_v2  ;;  %1743 = vmatprep.subr.bf16.mxu0 %v3138_v13  ;;  %v2103_v13 = vld [vmem:[%s3366_s9 + $0x8] sm:$0x8] }
  0x5a   : > { %747 = vmatprep.subr.bf16.mxu1 %v3141_v28  ;;  %v1645_v28 = vsel %vm1385_vm3, %v1642_v5, %v1644_v12 }
  0x5b   : > { %748 = vmatpush1.bf16.msra.mxu1 %v3139_v19  ;;  %v3182_v19 = vld [vmem:[%s4073_s1 + $0x3a0] ss:$8 sps:$4 sm:$0xff]  }
  0x5c   : > { %1744 = vmatpush1.bf16.msra.mxu0 %v3136_v17  ;;  %749 = vmatprep.subr.bf16.mxu1 %v3144_v24  ;;  %v2786_v17 = vcombine.low %v2103_v13, %v1586_v63  ;;  %v3193_v24 = vld [vmem:[%s4073_s1 + $0x1a4] ss:$8 sps:$4 sm:$0xff]  }
  0x5d   : > { %1745 = vmatprep.subr.bf16.mxu0 %v3147_v26 }
  0x5e   : > { %v2125_v21 = vrot.slane %v2786_v17, 3  ;;  %v3229_v17 = vld [vmem:[%s4073_s1 + $0x414] ss:$8 sps:$4 sm:$0xff]  }
  0x5f   : > { %595 = vmatmul.mubr.bf16.gmra.mrb[8].mxu1 %v3429_v56  ;;  %1535 = vmatmul.mubr.bf16.gmra.mrb[8].mxu0 %v1392_v25  ;;  %v3159_v56 = vld [vmem:[%s4073_s1 + $0x364] ss:$8 sps:$4 sm:$0xff]   ;;  %v1646_v25 = vrot.slane %v3718_v45, 2 }
  0x60   : > { %750 = vmatpush1.bf16.msra.mxu1 %v3142_v32  ;;  %1746 = vmatpush1.bf16.msra.mxu0 %v3145_v1  ;;  %v3823_v26 = vsel %vm2124_vm4, %v2125_v21, %v2126_v46  ;;  %v3191_v32 = vld [vmem:[%s4073_s1 + $0x1a0] ss:$8 sps:$4 sm:$0xff]   ;;  %v3188_v1 = vld [vmem:[%s4073_s1 + $0x3b0] ss:$8 sps:$4 sm:$0xff]   ;;  %v3207_v46 = vld [vmem:[%s4073_s1 + $0x3d4] ss:$8 sps:$4 sm:$0xff]  }
  0x61   : > { %604 = vmatprep.mubr.bf16.mxu1 %v3259_v2  ;;  %1544 = vmatprep.mubr.bf16.mxu0 %v3259_v2  ;;  %v1892_v21 = vshll.u32 %v3718_v45, 16 }
  0x62   : > { %751 = vmatprep.subr.bf16.mxu1 %v3150_v29  ;;  %1747 = vmatprep.subr.bf16.mxu0 %v3153_v30  ;;  %v3197_v29 = vld [vmem:[%s4073_s1 + $0x1b4] ss:$8 sps:$4 sm:$0xff]   ;;  %v1647_v30 = vsel %vm1385_vm3, %v1644_v12, %v1646_v25  ;;  %v1883_v12 = vshll.u32 %v3707_v38, 16 }
  0x64   : > { %752 = vmatpush1.bf16.msra.mxu1 %v3148_v33  ;;  %1748 = vmatpush1.bf16.msra.mxu0 %v3151_v41  ;;  %v3195_v33 = vld [vmem:[%s4073_s1 + $0x1b0] ss:$8 sps:$4 sm:$0xff]   ;;  %v3849_v41 = vld [vmem:[%s3366_s9 + $0x28] sm:$0xff]  }
  0x65   : > { %753 = vmatprep.subr.bf16.mxu1 %v3156_v42  ;;  %1749 = vmatprep.subr.bf16.mxu0 %v3159_v56  ;;  %v3203_v42 = vld [vmem:[%s4073_s1 + $0x1c4] ss:$8 sps:$4 sm:$0xff]   ;;  %v1648_v56 = vrot.slane %v3849_v41, 2 }
  0x67   : > { %605 = vmatmul.mubr.bf16.gmra.mrb[12].mxu1 %v3471_v18  ;;  %1545 = vmatmul.mubr.bf16.gmra.mrb[12].mxu0 %v1394_v50  ;;  %v1585_v18 = vld [vmem:[%s3366_s9 + $0x8] sm:$0xc]  ;;  %v3205_v50 = vld [vmem:[%s4073_s1 + $0x3d0] ss:$8 sps:$4 sm:$0xff]  }
  0x68   : > { %754 = vmatpush1.bf16.msra.mxu1 %v3154_v52  ;;  %614 = vmatprep.mubr.bf16.mxu1 %v3259_v2  ;;  %v3773_v3 = vcombine.low %v1585_v18, %v1586_v63  ;;  %v3213_v52 = vld [vmem:[%s4073_s1 + $0x3e4] ss:$8 sps:$4 sm:$0xff]   ;;  %v3214_v18 = vld [vmem:[%s4073_s1 + $0x1e0] ss:$8 sps:$4 sm:$0xff]  }
  0x69   : > { %1554 = vmatprep.mubr.bf16.mxu0 %v3259_v2  ;;  %1750 = vmatpush1.bf16.msra.mxu0 %v3157_v54  ;;  %v1649_v54 = vsel %vm1385_vm3, %v1646_v25, %v1648_v56  ;;  %v3235_v25 = vld [vmem:[%s4073_s1 + $0x434] ss:$8 sps:$4 sm:$0xff]  }
  0x6a   : > { %755 = vmatprep.subr.bf16.mxu1 %v3162_v55  ;;  %1751 = vmatprep.subr.bf16.mxu0 %v3165_v57  ;;  %v1641_v40 = vrot.slane %v3773_v3, 2  ;;  %v3208_v55 = vld [vmem:[%s4073_s1 + $0x1d0] ss:$8 sps:$4 sm:$0xff]  }
  0x6b   : > { %v3217_v57 = vld [vmem:[%s3366_s9 + $0x30] ss:$0 sps:$4 sm:$0x33]  }
  0x6c   : > { %756 = vmatpush1.bf16.msra.mxu1 %v3160_v58  ;;  %v1643_v6 = vsel %vm1385_vm3, %v1641_v40, %v1642_v5  ;;  %v3211_v58 = vld [vmem:[%s4073_s1 + $0x3e0] ss:$8 sps:$4 sm:$0xff]   ;;  %v1650_v63 = vrot.slane %v3217_v57, 2  ;;  %v3221_v5 = vld [vmem:[%s4073_s1 + $0x1f0] ss:$8 sps:$4 sm:$0xff]  }
  0x6d   : > { %757 = vmatprep.subr.bf16.mxu1 %v3168_v61  ;;  %1752 = vmatpush1.bf16.msra.mxu0 %v3163_v60  ;;  %v3220_v60 = vld [vmem:[%s4073_s1 + $0x3f4] ss:$8 sps:$4 sm:$0xff]   ;;  %v1863_v61 = vshrl.u32 %v3773_v3, 16  ;;  %v3244_v57 = vld [vmem:[%s4073_s1 + $0x464] ss:$8 sps:$4 sm:$0xff]  }
  0x6e   : > { %2000 = vmatprep.subr.bf16.mxu0 %v3174_v35  ;;  %v1866_v35 = vshll.u32 %v3773_v3, 16  ;;  %v3226_v3 = vld [vmem:[%s4073_s1 + $0x404] ss:$8 sps:$4 sm:$0xff]  }
  0x6f   : > { %615 = vmatmul.mubr.bf16.gmra.mrb[16].mxu1 %v3513_v43  ;;  %1555 = vmatmul.mubr.bf16.gmra.mrb[16].mxu0 %v1396_v22  ;;  %v3177_v43 = vld [vmem:[%s4073_s1 + $0x394] ss:$8 sps:$4 sm:$0xff]   ;;  %v1871_v22 = vshrl.u32 %v3704_v34, 16  ;;  %v1865_v40 = vrot.slane %v1863_v61, 2  ;;  %v3242_v61 = vld [vmem:[%s4073_s1 + $0x460] ss:$8 sps:$4 sm:$0xff]  }
  0x70   : > { %758 = vmatpush1.bf16.msra.mxu1 %v3166_v0  ;;  %775 = vmatprep.mubr.bf16.mxu1 %v3259_v2  ;;  %v1874_v0 = vshll.u32 %v3704_v34, 16  ;;  %v1651_v34 = vsel %vm1385_vm3, %v1648_v56, %v1650_v63  ;;  %v3246_v56 = vld [vmem:[%s3366_s9 + $0x30] ss:$0 sps:$4 sm:$0x77]  }
  0x71   : > { %1769 = vmatprep.mubr.bf16.mxu0 %v3259_v2  ;;  %998 = vmatprep.subr.bf16.mxu1 %v3180_v4  ;;  %v3223_v4 = vld [vmem:[%s4073_s1 + $0x1f4] ss:$8 sps:$4 sm:$0xff]  }
  0x77   : > { %776 = vmatmul.mubr.bf16.vlgmr.msra.gmra.mrb[0].mxu1 %v3677_v23  ;;  %1770 = vmatmul.mubr.bf16.vlgmr.msra.gmra.mrb[0].mxu0 %v1643_v6  ;;  %v3190_v23 = vld [vmem:[%s4073_s1 + $0x3b4] ss:$8 sps:$4 sm:$0xff]   ;;  %v1868_v6 = vrot.slane %v1866_v35, 3 }
  0x78   : > { %2001 = vmatpush1.bf16.msra.mxu0 %v3172_v31  ;;  %785 = vmatprep.mubr.bf16.mxu1 %v3259_v2  ;;  %v1873_v31 = vrot.slane %v1871_v22, 2  ;;  %v3247_v22 = vld [vmem:[%s4073_s1 + $0x470] ss:$8 sps:$4 sm:$0xff]  }
  0x79   : > { %2002 = vmatprep.subr.bf16.mxu0 %v3177_v43  ;;  %1779 = vmatprep.mubr.bf16.mxu0 %v3259_v2  ;;  %v1876_v43 = vrot.slane %v1874_v0, 3 }
  0x7a   : > { %999 = vmatpush1.bf16.msra.mxu1 %v3178_v7  ;;  %v1869_v7 = vor.u32 %v1868_v6, %v1865_v40 }
  0x7b   : > { %1000 = vmatprep.subr.bf16.mxu1 %v3187_v8  ;;  %v1877_v8 = vor.u32 %v1876_v43, %v1873_v31 }
  0x7c   : > { %2003 = vmatpush1.bf16.msra.mxu0 %v3175_v10  ;;  %v1880_v10 = vshrl.u32 %v3707_v38, 16  ;;  %v3227_v38 = vld [vmem:[%s4073_s1 + $0x410] ss:$8 sps:$4 sm:$0xff]  }
  0x7d   : > { %2004 = vmatprep.subr.bf16.mxu0 %v3184_v62  ;;  %v1878_v62 = vsel %vm1861_vm5, %v1869_v7, %v1877_v8 }
  0x7e   : > { %1001 = vmatpush1.bf16.msra.mxu1 %v3185_v16  ;;  %v1882_v13 = vrot.slane %v1880_v10, 2  ;;  %v1885_v16 = vrot.slane %v1883_v12, 3 }
  0x7f   : > { %786 = vmatmul.mubr.bf16.gmra.mrb[4].mxu1 %v3460_v11  ;;  %1780 = vmatmul.mubr.bf16.gmra.mrb[4].mxu0 %v1645_v28  ;;  %v3200_v11 = vld [vmem:[%s4073_s1 + $0x3c4] ss:$8 sps:$4 sm:$0xff]  }
  0x80   : > { %2005 = vmatpush1.bf16.msra.mxu0 %v3182_v19  ;;  %795 = vmatprep.mubr.bf16.mxu1 %v3259_v2  ;;  %v1886_v28 = vor.u32 %v1885_v16, %v1882_v13  ;;  %v1889_v19 = vshrl.u32 %v3718_v45, 16 }
  0x81   : > { %1789 = vmatprep.mubr.bf16.mxu0 %v3259_v2  ;;  %2006 = vmatprep.subr.bf16.mxu0 %v3190_v23 }
  0x82   : > { %1002 = vmatprep.subr.bf16.mxu1 %v3193_v24  ;;  %v1887_v23 = vsel %vm1861_vm5, %v1877_v8, %v1886_v28  ;;  %v3230_v24 = vld [vmem:[%s4073_s1 + $0x420] ss:$8 sps:$4 sm:$0xff]  }
  0x83   : > { %1003 = vmatpush1.bf16.msra.mxu1 %v3191_v32  ;;  %v1891_v32 = vrot.slane %v1889_v19, 2 }
  0x84   : > { %2007 = vmatpush1.bf16.msra.mxu0 %v3188_v1  ;;  %1004 = vmatprep.subr.bf16.mxu1 %v3197_v29  ;;  %v1894_v1 = vrot.slane %v1892_v21, 3  ;;  %v1898_v29 = vshrl.u32 %v3849_v41, 16 }
  0x85   : > { %2008 = vmatprep.subr.bf16.mxu0 %v3200_v11  ;;  %v3233_v11 = vld [vmem:[%s4073_s1 + $0x430] ss:$8 sps:$4 sm:$0xff]  }
  0x87   : > { %796 = vmatmul.mubr.bf16.gmra.mrb[8].mxu1 %v3516_v44  ;;  %1790 = vmatmul.mubr.bf16.gmra.mrb[8].mxu0 %v1647_v30  ;;  %v3210_v44 = vld [vmem:[%s4073_s1 + $0x1d4] ss:$8 sps:$4 sm:$0xff]   ;;  %v1895_v30 = vor.u32 %v1894_v1, %v1891_v32 }
  0x88   : > { %1005 = vmatpush1.bf16.msra.mxu1 %v3195_v33  ;;  %2009 = vmatpush1.bf16.msra.mxu0 %v3198_v39  ;;  %v1901_v33 = vshll.u32 %v3849_v41, 16  ;;  %v1900_v39 = vrot.slane %v1898_v29, 2 }
  0x89   : > { %805 = vmatprep.mubr.bf16.mxu1 %v3259_v2  ;;  %1799 = vmatprep.mubr.bf16.mxu0 %v3259_v2 }
  0x8a   : > { %1006 = vmatprep.subr.bf16.mxu1 %v3203_v42  ;;  %2010 = vmatprep.subr.bf16.mxu0 %v3207_v46  ;;  %v1896_v42 = vsel %vm1861_vm5, %v1886_v28, %v1895_v30  ;;  %v3236_v46 = vld [vmem:[%s4073_s1 + $0x440] ss:$8 sps:$4 sm:$0xff]  }
  0x8c   : > { %1007 = vmatpush1.bf16.msra.mxu1 %v3201_v47  ;;  %2011 = vmatpush1.bf16.msra.mxu0 %v3205_v50  ;;  %v1903_v47 = vrot.slane %v1901_v33, 3  ;;  %v3241_v50 = vld [vmem:[%s4073_s1 + $0x454] ss:$8 sps:$4 sm:$0xff]  }
  0x8d   : > { %1008 = vmatprep.subr.bf16.mxu1 %v3210_v44  ;;  %2012 = vmatprep.subr.bf16.mxu0 %v3213_v52  ;;  %v3239_v52 = vld [vmem:[%s4073_s1 + $0x450] ss:$8 sps:$4 sm:$0xff]  }
  0x8e   : > { %v1904_v44 = vor.u32 %v1903_v47, %v1900_v39 }
  0x8f   : > { %806 = vmatmul.mubr.bf16.gmra.mrb[12].mxu1 %v3563_v14  ;;  %1800 = vmatmul.mubr.bf16.gmra.mrb[12].mxu0 %v1649_v54  ;;  %v3218_v14 = vld [vmem:[%s4073_s1 + $0x3f0] ss:$8 sps:$4 sm:$0xff]   ;;  %v1907_v54 = vshrl.u32 %v3246_v56, 16 }
  0x90   : > { %1009 = vmatpush1.bf16.msra.mxu1 %v3208_v55  ;;  %815 = vmatprep.mubr.bf16.mxu1 %v3259_v2  ;;  %v1910_v55 = vshll.u32 %v3246_v56, 16 }
  0x91   : > { %1809 = vmatprep.mubr.bf16.mxu0 %v3259_v2  ;;  %2013 = vmatpush1.bf16.msra.mxu0 %v3211_v58  ;;  %v3245_v58 = vld [vmem:[%s3366_s9 + $0x2c] ss:$0 sps:$4 sm:$0x11]  }
  0x92   : > { %1010 = vmatprep.subr.bf16.mxu1 %v3216_v59  ;;  %2014 = vmatprep.subr.bf16.mxu0 %v3220_v60  ;;  %v1909_v59 = vrot.slane %v1907_v54, 2  ;;  %v1912_v60 = vrot.slane %v1910_v55, 3  ;;  %v911_v63 = vrot.slane %v3245_v58, 1 }
  0x94   : > { %1011 = vmatpush1.bf16.msra.mxu1 %v3214_v18  ;;  %v3249_v18 = vld [vmem:[%s4073_s1 + $0x474] ss:$8 sps:$4 sm:$0xff]   ;;  %v1913_v35 = vor.u32 %v1912_v60, %v1909_v59  ;;  %v912_v0 = vsel %vm646_vm2, %v909_v9, %v911_v63  ;;  %v2134_v9 = vrot.slane %v3246_v56, 3 }
  0x95   : > { %1012 = vmatprep.subr.bf16.mxu1 %v3223_v4  ;;  %2015 = vmatpush1.bf16.msra.mxu0 %v3218_v14  ;;  %v2132_v14 = vrot.slane %v3849_v41, 3 }
  0x96   : > { %2221 = vmatprep.subr.bf16.mxu0 %v3226_v3 }
  0x97   : > { %816 = vmatmul.mubr.bf16.gmra.mrb[16].mxu1 %v3590_v37  ;;  %1810 = vmatmul.mubr.bf16.gmra.mrb[16].mxu0 %v1651_v34  ;;  %v3224_v37 = vld [vmem:[%s4073_s1 + $0x400] ss:$8 sps:$4 sm:$0xff]   ;;  %v2133_v51 = vsel %vm2124_vm4, %v2130_v48, %v2132_v14  ;;  %v2135_v4 = vsel %vm2124_vm4, %v2132_v14, %v2134_v9 }
  0x98   : > { %1013 = vmatpush1.bf16.msra.mxu1 %v3221_v5  ;;  %1030 = vmatprep.mubr.bf16.mxu1 %v3259_v2 }
  0x99   : > { %2032 = vmatprep.mubr.bf16.mxu0 %v3259_v2  ;;  %2825 = vmatprep.subr.bf16.mxu1 %v3226_v3 }
  0x9f   : > { %1031 = vmatmul.mubr.bf16.vlgmr.msra.gmra.mrb[0].mxu1 %v3488_v27  ;;  %2033 = vmatmul.mubr.bf16.vlgmr.msra.gmra.mrb[0].mxu0 %v1878_v62  ;;  %v3232_v27 = vld [vmem:[%s4073_s1 + $0x424] ss:$8 sps:$4 sm:$0xff]  }
  0xa0   : > { %2222 = vmatpush1.bf16.msra.mxu0 %v3224_v37  ;;  %1040 = vmatprep.mubr.bf16.mxu1 %v3259_v2 }
  0xa1   : > { %2223 = vmatprep.subr.bf16.mxu0 %v3229_v17  ;;  %2042 = vmatprep.mubr.bf16.mxu0 %v3259_v2 }
  0xa2   : > { %2833 = vmatpush1.bf16.msra.mxu1 %v3224_v37 }
  0xa3   : > { %2826 = vmatprep.subr.bf16.mxu1 %v3229_v17 }
  0xa4   : > { %2224 = vmatpush1.bf16.msra.mxu0 %v3227_v38 }
  0xa5   : > { %2225 = vmatprep.subr.bf16.mxu0 %v3232_v27 }
  0xa6   : > { %2834 = vmatpush1.bf16.msra.mxu1 %v3227_v38  ;;  %v2326_v38 = vlaneseq }
  0xa7   : > { %1041 = vmatmul.mubr.bf16.gmra.mrb[4].mxu1 %v3499_v36  ;;  %2043 = vmatmul.mubr.bf16.gmra.mrb[4].mxu0 %v1887_v23  ;;  %v3238_v36 = vld [vmem:[%s4073_s1 + $0x444] ss:$8 sps:$4 sm:$0xff]  }
  0xa8   : > { %2226 = vmatpush1.bf16.msra.mxu0 %v3230_v24  ;;  %1050 = vmatprep.mubr.bf16.mxu1 %v3259_v2  ;;  %v2327_v19 = vshrl.u32 %v2326_v38, 7 }
  0xa9   : > { %2052 = vmatprep.mubr.bf16.mxu0 %v3259_v2  ;;  %2227 = vmatprep.subr.bf16.mxu0 %v3235_v25 }
  0xaa   : > { %2827 = vmatprep.subr.bf16.mxu1 %v3232_v27 }
  0xab   : > { %2835 = vmatpush1.bf16.msra.mxu1 %v3230_v24 }
  0xac   : > { %2228 = vmatpush1.bf16.msra.mxu0 %v3233_v11  ;;  %2828 = vmatprep.subr.bf16.mxu1 %v3235_v25 }
  0xad   : > { %2229 = vmatprep.subr.bf16.mxu0 %v3238_v36 }
  0xaf   : > { %1051 = vmatmul.mubr.bf16.gmra.mrb[8].mxu1 %v3568_v15  ;;  %2053 = vmatmul.mubr.bf16.gmra.mrb[8].mxu0 %v1896_v42  ;;  %v1905_v15 = vsel %vm1861_vm5, %v1895_v30, %v1904_v44  ;;  %v2324_v42 = vld [vmem:[%s4074_s2] sm:$0x3] }
  0xb0   : > { %2836 = vmatpush1.bf16.msra.mxu1 %v3233_v11  ;;  %2230 = vmatpush1.bf16.msra.mxu0 %v3236_v46 }
  0xb1   : > { %1060 = vmatprep.mubr.bf16.mxu1 %v3259_v2  ;;  %2062 = vmatprep.mubr.bf16.mxu0 %v3259_v2 }
  0xb2   : > { %2829 = vmatprep.subr.bf16.mxu1 %v3238_v36  ;;  %2231 = vmatprep.subr.bf16.mxu0 %v3241_v50  ;;  %v2328_v36 = vsub.s32 0, %v2327_v19 }
  0xb4   : > { %2837 = vmatpush1.bf16.msra.mxu1 %v3236_v46  ;;  %2232 = vmatpush1.bf16.msra.mxu0 %v3239_v52  ;;  %v2332_v46 = vsub.s32 1, %v2327_v19  ;;  %v4020_v47 = vrot.slane %v2324_v42, %v2328_v36 }
  0xb5   : > { %2830 = vmatprep.subr.bf16.mxu1 %v3241_v50  ;;  %2233 = vmatprep.subr.bf16.mxu0 %v3244_v57 }
  0xb7   : > { %1061 = vmatmul.mubr.bf16.gmra.mrb[12].mxu1 %v3574_v20  ;;  %2063 = vmatmul.mubr.bf16.gmra.mrb[12].mxu0 %v1905_v15  ;;  %v1914_v20 = vsel %vm1861_vm5, %v1904_v44, %v1913_v35  ;;  %v4022_v44 = vrot.slane %v2324_v42, %v2332_v46 }
  0xb8   : > { %2838 = vmatpush1.bf16.msra.mxu1 %v3239_v52  ;;  %1070 = vmatprep.mubr.bf16.mxu1 %v3259_v2 }
  0xb9   : > { %2072 = vmatprep.mubr.bf16.mxu0 %v3259_v2  ;;  %2234 = vmatpush1.bf16.msra.mxu0 %v3242_v61 }
  0xba   : > { %2831 = vmatprep.subr.bf16.mxu1 %v3244_v57  ;;  %2235 = vmatprep.subr.bf16.mxu0 %v3249_v18 }
  0xbc   : > { %2839 = vmatpush1.bf16.msra.mxu1 %v3242_v61 }
  0xbd   : > { %2832 = vmatprep.subr.bf16.mxu1 %v3249_v18  ;;  %2236 = vmatpush1.bf16.msra.mxu0 %v3247_v22 }
  0xbf   : > { %1071 = vmatmul.mubr.bf16.gmra.mrb[16].mxu1 %v912_v0  ;;  %2073 = vmatmul.mubr.bf16.gmra.mrb[16].mxu0 %v1914_v20 }
  0xc0   : > { %2840 = vmatpush1.bf16.msra.mxu1 %v3247_v22  ;;  %2253 = vmatprep.mubr.bf16.mxu0 %v3259_v2 }
  0xc1   : > { %2283 = vmatprep.mubr.bf16.mxu1 %v3259_v2 }
  0xc7   : > { %2254 = vmatmul.mubr.bf16.vlgmr.msra.gmra.mrb[0].mxu0 %v3823_v26  ;;  %2284 = vmatmul.mubr.bf16.vlgmr.msra.gmra.mrb[20].mxu1 %v2133_v51 }
  0xc8   : > { %2263 = vmatprep.mubr.bf16.mxu0 %v3259_v2  ;;  %2293 = vmatprep.mubr.bf16.mxu1 %v3259_v2 }
  0xcf   : > { %2264 = vmatmul.mubr.bf16.gmra.mrb[4].mxu0 %v3731_v49  ;;  %2294 = vmatmul.mubr.bf16.gmra.mrb[24].mxu1 %v2135_v4 }
  0xd0   : > { %2273 = vmatprep.mubr.bf16.mxu0 %v3259_v2 }
  0xd7   : > { %2274 = vmatmul.mubr.bf16.gmra.mrb[8].mxu0 %v3740_v53 }
 0x172   : > { %v1032_v45 = vpop.f32.mrb[0].mxu1 }
 0x173   : > { %v1034_v41 = vpop.f32.mrb[1].mxu1 }
 0x174   : > { %v1036_v48 = vpop.f32.mrb[2].mxu1 }
 0x175   : > { %v1038_v3 = vpop.f32.mrb[3].mxu1 }
 0x17a   : > { %v3999_v26 = vpop.f32.mrb[4].mxu1 }
 0x17b   : > { %v4001_v40 = vpop.f32.mrb[5].mxu1 }
 0x17c   : > { %v4003_v34 = vpop.f32.mrb[6].mxu1 }
 0x17d   : > { %v4005_v5 = vpop.f32.mrb[7].mxu1 }
 0x182   : > { %v4007_v6 = vpop.f32.mrb[8].mxu1 }
 0x183   : > { %v4009_v49 = vpop.f32.mrb[9].mxu1 }
 0x184   : > { %v4011_v31 = vpop.f32.mrb[10].mxu1 }
 0x185   : > { %v4013_v2 = vpop.f32.mrb[11].mxu1 }
 0x18a   : > { %v1062_v53 = vpop.f32.mrb[12].mxu1  ;;  %v2064_v43 = vpop.f32.mrb[12].mxu0 }
 0x18b   : > { %v2853_v7 = vadd.f32 %v2064_v43, %v1062_v53  ;;  %v1064_v8 = vpop.f32.mrb[13].mxu1  ;;  %v2066_v10 = vpop.f32.mrb[13].mxu0 }
 0x18c   : > { %v2855_v12 = vadd.f32 %v2066_v10, %v1064_v8  ;;  %v1066_v62 = vpop.f32.mrb[14].mxu1  ;;  %v2068_v37 = vpop.f32.mrb[14].mxu0 }
 0x18d   : > { %v2857_v13 = vadd.f32 %v2068_v37, %v1066_v62  ;;  %v1068_v16 = vpop.f32.mrb[15].mxu1  ;;  %v2070_v17 = vpop.f32.mrb[15].mxu0 }
 0x18e   : > { %v2859_v28 = vadd.f32 %v2070_v17, %v1068_v16 }
 0x192   : > { %v1072_v21 = vpop.f32.mrb[16].mxu1  ;;  %v2074_v27 = vpop.f32.mrb[16].mxu0 }
 0x193   : > { %v2861_v23 = vadd.f32 %v2074_v27, %v1072_v21  ;;  %v1074_v24 = vpop.f32.mrb[17].mxu1  ;;  %v2076_v32 = vpop.f32.mrb[17].mxu0 }
 0x194   : > { %v2863_v1 = vadd.f32 %v2076_v32, %v1074_v24  ;;  %v1076_v25 = vpop.f32.mrb[18].mxu1  ;;  %v2078_v29 = vpop.f32.mrb[18].mxu0 }
 0x195   : > { %v2865_v11 = vadd.f32 %v2078_v29, %v1076_v25  ;;  %v1078_v30 = vpop.f32.mrb[19].mxu1  ;;  %v2080_v33 = vpop.f32.mrb[19].mxu0 }
 0x196   : > { %v4015_v39 = vadd.f32 %v2080_v33, %v1078_v30 }
 0x19a   : > { %v2255_v56 = vpop.f32.mrb[0].mxu0  ;;  %v2285_v50 = vpop.f32.mrb[20].mxu1 }
 0x19b   : > { %v2841_v52 = vadd.f32 %v2255_v56, %v1032_v45  ;;  %v2854_v54 = vadd.f32 %v2853_v7, %v2285_v50  ;;  %v2257_v55 = vpop.f32.mrb[1].mxu0  ;;  %v2287_v57 = vpop.f32.mrb[21].mxu1 }
 0x19c   : > { %v2842_v15 = vadd.f32 %v2257_v55, %v1034_v41  ;;  %v2856_v58 = vadd.f32 %v2855_v12, %v2287_v57  ;;  %v2259_v59 = vpop.f32.mrb[2].mxu0  ;;  %v2289_v60 = vpop.f32.mrb[22].mxu1 }
 0x19d   : > { %v2336_v61 = vadd.f32 %v2841_v52, %v4020_v47  ;;  %v2348_v18 = vadd.f32 %v2854_v54, %v4020_v47  ;;  %v2843_v63 = vadd.f32 %v2259_v59, %v1036_v48  ;;  %v2858_v35 = vadd.f32 %v2857_v13, %v2289_v60  ;;  %v2261_v22 = vpop.f32.mrb[3].mxu0  ;;  %v2291_v0 = vpop.f32.mrb[23].mxu1 }
 0x19e   : > { %v2337_v20 = vadd.f32 %v2842_v15, %v4022_v44  ;;  %v2349_v14 = vadd.f32 %v2856_v58, %v4022_v44  ;;  %v2844_v51 = vadd.f32 %v2261_v22, %v1038_v3  ;;  %v2860_v9 = vadd.f32 %v2859_v28, %v2291_v0 }
 0x19f   : > { %v2356_v4 = vmax.f32 %v2336_v61, 0.0  ;;  %v2368_v45 = vmax.f32 %v2348_v18, 0.0  ;;  %v2338_v41 = vadd.f32 %v2843_v63, %v4020_v47  ;;  %v2350_v53 = vadd.f32 %v2858_v35, %v4020_v47 }
 0x1a0   : > { %v2357_v43 = vmax.f32 %v2337_v20, 0.0  ;;  %v2369_v7 = vmax.f32 %v2349_v14, 0.0  ;;  %v2339_v8 = vadd.f32 %v2844_v51, %v4022_v44  ;;  %v2351_v48 = vadd.f32 %v2860_v9, %v4022_v44 }
 0x1a1   : > { %v2358_v3 = vmax.f32 %v2338_v41, 0.0  ;;  %v2370_v10 = vmax.f32 %v2350_v53, 0.0 }
 0x1a2   : > { %v2815_v12 = vpack.c.bf16 %v2357_v43, %v2356_v4  ;;  %v2821_v62 = vpack.c.bf16 %v2369_v7, %v2368_v45  ;;  %v2359_v37 = vmax.f32 %v2339_v8, 0.0  ;;  %v2371_v13 = vmax.f32 %v2351_v48, 0.0  ;;  %v2265_v16 = vpop.f32.mrb[4].mxu0  ;;  %v2295_v17 = vpop.f32.mrb[24].mxu1 }
 0x1a3   : > { %v2845_v38 = vadd.f32 %v2265_v16, %v3999_v26  ;;  %v2862_v28 = vadd.f32 %v2861_v23, %v2295_v17  ;;  %v2267_v19 = vpop.f32.mrb[5].mxu0  ;;  %v2297_v21 = vpop.f32.mrb[25].mxu1 }
 0x1a4   : > { %2436 = vst [vmem:[%s4036_s19] sm:$0xff] %v2815_v12  ;;  %2442 = vst [vmem:[%s4036_s19 + $0x30] sm:$0xff] %v2821_v62  ;;  %v2816_v27 = vpack.c.bf16 %v2359_v37, %v2358_v3  ;;  %v2822_v24 = vpack.c.bf16 %v2371_v13, %v2370_v10  ;;  %v2846_v32 = vadd.f32 %v2267_v19, %v4001_v40  ;;  %v2269_v29 = vpop.f32.mrb[6].mxu0  ;;  %v2299_v30 = vpop.f32.mrb[26].mxu1 }
 0x1a5   : > { %v2864_v25 = vadd.f32 %v2863_v1, %v2297_v21  ;;  %v2340_v33 = vadd.f32 %v2845_v38, %v4020_v47  ;;  %v2352_v36 = vadd.f32 %v2862_v28, %v4020_v47  ;;  %v2847_v26 = vadd.f32 %v2269_v29, %v4003_v34  ;;  %v2271_v42 = vpop.f32.mrb[7].mxu0  ;;  %v2301_v46 = vpop.f32.mrb[27].mxu1 }
 0x1a6   : > { %v2866_v23 = vadd.f32 %v2865_v11, %v2299_v30  ;;  %2437 = vst [vmem:[%s4036_s19 + $0x8] sm:$0xff] %v2816_v27  ;;  %2443 = vst [vmem:[%s4036_s19 + $0x38] sm:$0xff] %v2822_v24  ;;  %v2341_v56 = vadd.f32 %v2846_v32, %v4022_v44  ;;  %v2848_v40 = vadd.f32 %v2271_v42, %v4005_v5 }
 0x1a7   : > { %v2353_v50 = vadd.f32 %v2864_v25, %v4022_v44  ;;  %v2868_v1 = vadd.f32 %v4015_v39, %v2301_v46  ;;  %v2360_v52 = vmax.f32 %v2340_v33, 0.0  ;;  %v2372_v54 = vmax.f32 %v2352_v36, 0.0 }
 0x1a8   : > { %v2342_v55 = vadd.f32 %v2847_v26, %v4020_v47  ;;  %v2354_v34 = vadd.f32 %v2866_v23, %v4020_v47  ;;  %v2361_v11 = vmax.f32 %v2341_v56, 0.0  ;;  %v2343_v15 = vadd.f32 %v2848_v40, %v4022_v44 }
 0x1a9   : > { %v2373_v57 = vmax.f32 %v2353_v50, 0.0  ;;  %v2355_v58 = vadd.f32 %v2868_v1, %v4022_v44 }
 0x1aa   : > { %v2362_v59 = vmax.f32 %v2342_v55, 0.0  ;;  %v2374_v60 = vmax.f32 %v2354_v34, 0.0  ;;  %v2817_v61 = vpack.c.bf16 %v2361_v11, %v2360_v52  ;;  %v2363_v39 = vmax.f32 %v2343_v15, 0.0  ;;  %v2275_v63 = vpop.f32.mrb[8].mxu0 }
 0x1ab   : > { %v2823_v5 = vpack.c.bf16 %v2373_v57, %v2372_v54  ;;  %v2375_v18 = vmax.f32 %v2355_v58, 0.0  ;;  %v2849_v35 = vadd.f32 %v2275_v63, %v4007_v6  ;;  %v2277_v22 = vpop.f32.mrb[9].mxu0 }
 0x1ac   : > { %2438 = vst [vmem:[%s4036_s19 + $0x10] sm:$0xff] %v2817_v61  ;;  %v2818_v0 = vpack.c.bf16 %v2363_v39, %v2362_v59  ;;  %v2850_v14 = vadd.f32 %v2277_v22, %v4009_v49  ;;  %v2279_v51 = vpop.f32.mrb[10].mxu0 }
 0x1ad   : > { %2444 = vst [vmem:[%s4036_s19 + $0x40] sm:$0xff] %v2823_v5  ;;  %v2824_v20 = vpack.c.bf16 %v2375_v18, %v2374_v60  ;;  %v2344_v9 = vadd.f32 %v2849_v35, %v4020_v47  ;;  %v2851_v4 = vadd.f32 %v2279_v51, %v4011_v31  ;;  %v2281_v45 = vpop.f32.mrb[11].mxu0 }
 0x1ae   : > { %2439 = vst [vmem:[%s4036_s19 + $0x18] sm:$0xff] %v2818_v0  ;;  %v2345_v41 = vadd.f32 %v2850_v14, %v4022_v44  ;;  %v2852_v6 = vadd.f32 %v2281_v45, %v4013_v2 }
 0x1af   : > { %2445 = vst [vmem:[%s4036_s19 + $0x48] sm:$0xff] %v2824_v20  ;;  %v2364_v53 = vmax.f32 %v2344_v9, 0.0  ;;  %v2346_v43 = vadd.f32 %v2851_v4, %v4020_v47 }
 0x1b0   : > { %v2365_v7 = vmax.f32 %v2345_v41, 0.0  ;;  %v2347_v49 = vadd.f32 %v2852_v6, %v4022_v44 }
 0x1b1   : > { %v2366_v8 = vmax.f32 %v2346_v43, 0.0 }
 0x1b2   : > { %v2819_v48 = vpack.c.bf16 %v2365_v7, %v2364_v53  ;;  %v2367_v3 = vmax.f32 %v2347_v49, 0.0 }
 0x1b4   : > { %2440 = vst [vmem:[%s4036_s19 + $0x20] sm:$0xff] %v2819_v48  ;;  %v2820_v10 = vpack.c.bf16 %v2367_v3, %v2366_v8 }
 0x1b6   : > { %2441 = vst [vmem:[%s4036_s19 + $0x28] sm:$0xff] %v2820_v10 }
 0x1b7 PF: > { %s13_s12 = sadd.s32 1, %s3257_s12  }
 0x1b8   : > { %p10_p4 = scmp.ge.s32.totalorder %s13_s12, 4  }
 0x1ba   :  { %12 = sbr.rel (!%p10_p4) target bundleno = 1 (0x1), region = 70 }

// kernel: generator_forward.5
= control target key start
LH: loop header
LB: loop body
LE: loop exit
PB: predicated region body
PF: predicated region fallthrough
CT: control target
= control target key end

     0   :  { %8 = vsyncpa [#allocation3], 0  ;;  %s7156_s0 = inlined_call_operand.vmem [shape: bf16[2,38,256], index: 0, kind: input, shape index: {}]   ;;  %s7157_s1 = inlined_call_operand.hbm [shape: bf16[9,256,512], index: 1, kind: input, shape index: {}]   ;;  %s7158_s2 = inlined_call_operand.hbm [shape: f32[1,512], index: 2, kind: input, shape index: {}]   ;;  %s7159_s3 = inlined_call_operand.vmem [shape: bf16[2,24,512], index: 3, kind: output, shape index: {}]  }
   0x1   :  { %9 = vsyncpa [#allocation5], 0  ;;  %s6795_s12 = smov 0  }
   0x2 LB: > { %s6801_s13 = sadd.s32 4294967295, %s6769_s12   ;;  %p5082_p0 = scmp.ge.s32.totalorder %s6769_s12, 1  ;;  %s6769_s12 = sphi %s6795_s12, %s15_s12  }
   0x3   : > { %p114_p1 = scmp.lt.s32.totalorder %s6769_s12, 3  ;;  %s6771_s14 = smov [#allocation2]  }
   0x4   : > { %s126_s15 = sshll.u32 %s6771_s14, 4  ;;  %p7160_p3 = scmp.eq.s32.totalorder %s6801_s13, 0  ;;  %s127_s15 = int_to_ptr.vmem [resolvable:$true] %s126_s15 }
   0x5   : > { %p6805_p2 = pnand %p5082_p0, %p114_p1  ;;  %s6772_s17 = smov [#allocation4]  }
   0x6   : > { %s140_s18 = sshll.u32 %s6772_s17, 4  ;;  %s6699_s22 = scalar_lea.hbm %s7157_s1, 73728  ;;  %s6818_s18 = int_to_ptr.vmem [resolvable:$true] %s140_s18 }
   0x7   : > { %s7162_s16 = scalar_select %p6805_p2, 1, 0 }
   0x8   : > { %p5781_p4 = pneg %p6805_p2  ;;  %p6700_p6 = scmp.ne.s32.totalorder %s7157_s1, %s6699_s22 }
   0x9   : > { %p6706_p10 = scmp.lt.u32.totalorder %s6699_s22, %s7157_s1 }
   0xa   : > { %p6814_p5 = pnand %p7160_p3, %p5781_p4 }
   0xc   : > { %p6701_p7 = pneg %p6814_p5 }
   0xe   : > { %p6702_p8 = pnand %p6701_p7, %p6700_p6 }
  0x10   : > { %p6703_p9 = pneg %p6702_p8 }
  0x12   : > { %p6708_p11 = pnand %p6706_p10, %p6703_p9 }
  0x14   : > { %6711 = shalt.err (!%p6708_p11)
}
  0x15   : > { %s6712_s27 = scalar_lea.vmem %s127_s15, 73728  ;;  %p6720_p1 = scmp.lt.s32.totalorder %s127_s15, %s127_s15 }
  0x16   : > { %p6713_p12 = scmp.ne.s32.totalorder %s127_s15, %s6712_s27  ;;  %p6721_p4 = scmp.lt.s32.totalorder %s6712_s27, %s6712_s27 }
  0x18   : > { %p6715_p13 = pnand %p6713_p12, %p6701_p7  ;;  %p6722_p3 = por %p6721_p4, %p6720_p1 }
  0x1a   : > { %p6716_p0 = pneg %p6715_p13 }
  0x1c   : > { %p6723_p2 = pnand %p6722_p3, %p6716_p0 }
  0x1e   : > { %6726 = shalt.err (!%p6723_p2)
}
  0x1f   : > { %s6773_s28 = smov 256   ;;  %s6774_s29 = smov 16  }
  0x20   : > { %5784 = dma.hbm_to_vmem [thread:$0]  (!%p6814_p5), %s7157_s1, 73728, %s127_s15, [#allocation3], %s6773_s28, %s6773_s28, %s6774_s29  }
  0x21   : > { %s6727_s7 = scalar_lea.hbm %s7158_s2, 64 }
  0x22   : > { %p6728_p6 = scmp.ne.s32.totalorder %s7158_s2, %s6727_s7  ;;  %p6734_p8 = scmp.lt.u32.totalorder %s6727_s7, %s7158_s2 }
  0x24   : > { %p6730_p2 = pnand %p6728_p6, %p6701_p7 }
  0x26   : > { %p6731_p3 = pneg %p6730_p2 }
  0x28   : > { %p6736_p9 = pnand %p6734_p8, %p6731_p3 }
  0x2a   : > { %6739 = shalt.err (!%p6736_p9)
}
  0x2b   : > { %s6740_s14 = scalar_lea.vmem %s6818_s18, 64  ;;  %p6748_p13 = scmp.lt.s32.totalorder %s6818_s18, %s6818_s18 }
  0x2c   : > { %p6741_p10 = scmp.ne.s32.totalorder %s6818_s18, %s6740_s14  ;;  %p6749_p0 = scmp.lt.s32.totalorder %s6740_s14, %s6740_s14 }
  0x2e   : > { %p6743_p11 = pnand %p6741_p10, %p6701_p7  ;;  %p6750_p1 = por %p6749_p0, %p6748_p13 }
  0x30   : > { %p6744_p12 = pneg %p6743_p11 }
  0x32   : > { %p6751_p4 = pnand %p6750_p1, %p6744_p12 }
  0x34   : > { %6754 = shalt.err (!%p6751_p4)
}
  0x35   : > { %5787 = dma.hbm_to_vmem [thread:$0]  (!%p6814_p5), %s7158_s2, 64, %s6818_s18, [#allocation5]  }
  0x36   : > { %p7164_p6 = scmp.ne.s32.totalorder %s7162_s16, 0 }
  0x37   : > { %p7165_p2 = scmp.eq.s32.totalorder (!%p7164_p6), %s6801_s13, 0 }
  0x38   : > { %161 = sbr.rel (%p7164_p6) target bundleno = 874 (0x36a), region = 32 }
  0x3f   : > { %6760 = dma.done.wait (%p7165_p2), [#allocation3], 73728   ;;  %p7166_p7 = pmov %p7165_p2 }
  0x40   : > { %p7167_p3 = pmov %p7165_p2 }
  0x41   : > { %6762 = vsyncadd (%p7166_p7), [#allocation3], 4294893568 }
  0x42   : > { %6764 = dma.done.wait (%p7167_p3), [#allocation5], 64   ;;  %p7168_p8 = pmov %p7165_p2 }
  0x43   : > { %v5804_v0 = vld [vmem:[#allocation2 + $0x204] ss:$16 sps:$4 sm:$0xff]   ;;  %v5806_v1 = vld [vmem:[#allocation2 + $0x20c] ss:$16 sps:$4 sm:$0xff]   ;;  %v5808_v2 = vld [vmem:[#allocation2 + $0x200] ss:$16 sps:$4 sm:$0xff]  }
  0x44   : > { %6766 = vsyncadd (%p7168_p8), [#allocation5], 4294967232  ;;  %703 = vmatprep.subr.bf16.mxu0 %v5804_v0  ;;  %v5809_v3 = vld [vmem:[#allocation2 + $0x208] ss:$16 sps:$4 sm:$0xff]   ;;  %754 = vmatprep.subr.bf16.mxu1 %v5806_v1  ;;  %v5810_v4 = vld [vmem:[#allocation2 + $0x224] ss:$16 sps:$4 sm:$0xff]  }
  0x45   : > { %704 = vmatpush1.bf16.msra.mxu0 %v5808_v2  ;;  %755 = vmatpush1.bf16.msra.mxu1 %v5809_v3  ;;  %v5812_v5 = vld [vmem:[#allocation2 + $0x22c] ss:$16 sps:$4 sm:$0xff]   ;;  %v5814_v6 = vld [vmem:[#allocation2 + $0x220] ss:$16 sps:$4 sm:$0xff]   ;;  %v5815_v7 = vld [vmem:[#allocation2 + $0x228] ss:$16 sps:$4 sm:$0xff]  }
  0x46   : > { %705 = vmatprep.subr.bf16.mxu0 %v5810_v4  ;;  %756 = vmatprep.subr.bf16.mxu1 %v5812_v5  ;;  %v5816_v8 = vld [vmem:[#allocation2 + $0x244] ss:$16 sps:$4 sm:$0xff]   ;;  %v5818_v9 = vld [vmem:[#allocation2 + $0x24c] ss:$16 sps:$4 sm:$0xff]   ;;  %v5820_v10 = vld [vmem:[#allocation2 + $0x240] ss:$16 sps:$4 sm:$0xff]  }
  0x47   : > { %v5821_v11 = vld [vmem:[#allocation2 + $0x248] ss:$16 sps:$4 sm:$0xff]   ;;  %v5822_v12 = vld [vmem:[#allocation2 + $0x264] ss:$16 sps:$4 sm:$0xff]   ;;  %v5824_v13 = vld [vmem:[#allocation2 + $0x26c] ss:$16 sps:$4 sm:$0xff]  }
  0x48   : > { %v5826_v14 = vld [vmem:[#allocation2 + $0x260] ss:$16 sps:$4 sm:$0xff]   ;;  %v5827_v15 = vld [vmem:[#allocation2 + $0x268] ss:$16 sps:$4 sm:$0xff]   ;;  %v5828_v16 = vld [vmem:[#allocation2 + $0x284] ss:$16 sps:$4 sm:$0xff]  }
  0x49   : > { %706 = vmatpush1.bf16.msra.mxu0 %v5814_v6  ;;  %757 = vmatpush1.bf16.msra.mxu1 %v5815_v7  ;;  %v5830_v17 = vld [vmem:[#allocation2 + $0x28c] ss:$16 sps:$4 sm:$0xff]   ;;  %v5832_v18 = vld [vmem:[#allocation2 + $0x280] ss:$16 sps:$4 sm:$0xff]   ;;  %v5833_v19 = vld [vmem:[#allocation2 + $0x288] ss:$16 sps:$4 sm:$0xff]  }
  0x4a   : > { %707 = vmatprep.subr.bf16.mxu0 %v5816_v8  ;;  %758 = vmatprep.subr.bf16.mxu1 %v5818_v9  ;;  %v5834_v20 = vld [vmem:[#allocation2 + $0x2a4] ss:$16 sps:$4 sm:$0xff]   ;;  %v5836_v21 = vld [vmem:[#allocation2 + $0x2ac] ss:$16 sps:$4 sm:$0xff]   ;;  %v5838_v22 = vld [vmem:[#allocation2 + $0x2a0] ss:$16 sps:$4 sm:$0xff]  }
  0x4b   : > { %v5839_v23 = vld [vmem:[#allocation2 + $0x2a8] ss:$16 sps:$4 sm:$0xff]   ;;  %v5840_v24 = vld [vmem:[#allocation2 + $0x2c4] ss:$16 sps:$4 sm:$0xff]   ;;  %v5842_v25 = vld [vmem:[#allocation2 + $0x2cc] ss:$16 sps:$4 sm:$0xff]  }
  0x4c   : > { %v5844_v26 = vld [vmem:[#allocation2 + $0x2c0] ss:$16 sps:$4 sm:$0xff]   ;;  %v5845_v27 = vld [vmem:[#allocation2 + $0x2c8] ss:$16 sps:$4 sm:$0xff]   ;;  %v5846_v28 = vld [vmem:[#allocation2 + $0x2e4] ss:$16 sps:$4 sm:$0xff]  }
  0x4d   : > { %708 = vmatpush1.bf16.msra.mxu0 %v5820_v10  ;;  %759 = vmatpush1.bf16.msra.mxu1 %v5821_v11  ;;  %v5848_v29 = vld [vmem:[#allocation2 + $0x2ec] ss:$16 sps:$4 sm:$0xff]   ;;  %v5850_v30 = vld [vmem:[#allocation2 + $0x2e0] ss:$16 sps:$4 sm:$0xff]   ;;  %p189_p5 = scmp.lt.s32.totalorder %s6801_s13, 1  ;;  %vm1304_vm1 = vcmask 1046528  }
  0x4e   : > { %709 = vmatprep.subr.bf16.mxu0 %v5822_v12  ;;  %760 = vmatprep.subr.bf16.mxu1 %v5824_v13  ;;  %v5851_v31 = vld [vmem:[#allocation2 + $0x2e8] ss:$16 sps:$4 sm:$0xff]   ;;  %v5852_v32 = vld [vmem:[#allocation2 + $0x304] ss:$16 sps:$4 sm:$0xff]   ;;  %v5854_v33 = vld [vmem:[#allocation2 + $0x30c] ss:$16 sps:$4 sm:$0xff]  }
  0x4f   : > { %v5856_v34 = vld [vmem:[#allocation2 + $0x300] ss:$16 sps:$4 sm:$0xff]   ;;  %v5857_v35 = vld [vmem:[#allocation2 + $0x308] ss:$16 sps:$4 sm:$0xff]   ;;  %s7170_s13 = smov (!%p189_p5, %s6801_s13), 1  ;;  %vm1826_vm2 = vcmask 1044480  }
  0x50   : > { %v5858_v36 = vld [vmem:[#allocation2 + $0x324] ss:$16 sps:$4 sm:$0xff]   ;;  %v5860_v37 = vld [vmem:[#allocation2 + $0x32c] ss:$16 sps:$4 sm:$0xff]   ;;  %v5862_v38 = vld [vmem:[#allocation2 + $0x320] ss:$16 sps:$4 sm:$0xff]  }
  0x51   : > { %710 = vmatpush1.bf16.msra.mxu0 %v5826_v14  ;;  %761 = vmatpush1.bf16.msra.mxu1 %v5827_v15  ;;  %s5771_s16 = smul.u32 40, %s7170_s13  ;;  %v5863_v39 = vld [vmem:[#allocation2 + $0x328] ss:$16 sps:$4 sm:$0xff]   ;;  %v5864_v40 = vld [vmem:[#allocation2 + $0x344] ss:$16 sps:$4 sm:$0xff]   ;;  %vm3407_vm4 = vcmask 1045504  }
  0x52   : > { %711 = vmatprep.subr.bf16.mxu0 %v5828_v16  ;;  %762 = vmatprep.subr.bf16.mxu1 %v5830_v17  ;;  %v5866_v41 = vld [vmem:[#allocation2 + $0x34c] ss:$16 sps:$4 sm:$0xff]   ;;  %v5868_v42 = vld [vmem:[#allocation2 + $0x340] ss:$16 sps:$4 sm:$0xff]   ;;  %v5869_v43 = vld [vmem:[#allocation2 + $0x348] ss:$16 sps:$4 sm:$0xff]  }
  0x53   : > { %s6885_s20 = scalar_lea.vmem %s7156_s0, %s5771_s16  ;;  %v5870_v44 = vld [vmem:[#allocation2 + $0x364] ss:$16 sps:$4 sm:$0xff]   ;;  %v5872_v45 = vld [vmem:[#allocation2 + $0x36c] ss:$16 sps:$4 sm:$0xff]   ;;  %v5874_v46 = vld [vmem:[#allocation2 + $0x360] ss:$16 sps:$4 sm:$0xff]  }
  0x54   : > { %v5875_v47 = vld [vmem:[#allocation2 + $0x368] ss:$16 sps:$4 sm:$0xff]   ;;  %v199_v48 = vld [vmem:[%s6885_s20] sm:$0xff]  ;;  %v6892_v50 = vld [vmem:[%s6885_s20 + $0x10] sm:$0xff]  ;;  %vm348_vm0 = vsmask.f32 7424 }
  0x55   : > { %712 = vmatpush1.bf16.msra.mxu0 %v5832_v18  ;;  %763 = vmatpush1.bf16.msra.mxu1 %v5833_v19  ;;  %v6889_v49 = vld [vmem:[%s6885_s20 + $0x8] sm:$0xff]  ;;  %v266_v51 = vld [vmem:[%s6885_s20 + $0x18] sm:$0x11]  ;;  %v5876_v52 = vld [vmem:[#allocation2 + $0x384] ss:$16 sps:$4 sm:$0xff]   ;;  %s5772_s21 = smul.u32 48, %s7170_s13 }
  0x56   : > { %713 = vmatprep.subr.bf16.mxu0 %v5834_v20  ;;  %764 = vmatprep.subr.bf16.mxu1 %v5836_v21  ;;  %v6896_v53 = vcombine.high %v199_v48, %v6889_v49  ;;  %v6899_v54 = vcombine.high %v6892_v50, %v266_v51  ;;  %v5878_v55 = vld [vmem:[#allocation2 + $0x38c] ss:$16 sps:$4 sm:$0xff]   ;;  %v5880_v59 = vld [vmem:[#allocation2 + $0x380] ss:$16 sps:$4 sm:$0xff]   ;;  %v5881_v60 = vld [vmem:[#allocation2 + $0x388] ss:$16 sps:$4 sm:$0xff]   ;;  %v6905_v0 = vcombine.low %v199_v48, %v6889_v49 }
  0x57   : > { %v5882_v61 = vld [vmem:[#allocation2 + $0x3a4] ss:$16 sps:$4 sm:$0xff]   ;;  %v5884_v1 = vld [vmem:[#allocation2 + $0x3ac] ss:$16 sps:$4 sm:$0xff]   ;;  %v5886_v3 = vld [vmem:[#allocation2 + $0x3a0] ss:$16 sps:$4 sm:$0xff]   ;;  %v6909_v7 = vcombine.low %v6892_v50, %v266_v51  ;;  %s7145_s13 = scalar_lea.vmem %s7159_s3, %s5772_s21 }
  0x58   : > { %v362_v56 = vshrl.u32 %v6896_v53, 16  ;;  %v364_v57 = vshll.u32 %v6896_v53, 16  ;;  %v369_v58 = vshll.u32 %v6899_v54, 16  ;;  %v5887_v4 = vld [vmem:[#allocation2 + $0x3a8] ss:$16 sps:$4 sm:$0xff]   ;;  %v352_v8 = vshll.u32 %v6905_v0, 16 }
  0x59   : > { %714 = vmatpush1.bf16.msra.mxu0 %v5838_v22  ;;  %765 = vmatpush1.bf16.msra.mxu1 %v5839_v23  ;;  %v5888_v5 = vld [vmem:[#allocation2 + $0x3c4] ss:$16 sps:$4 sm:$0xff]   ;;  %v5890_v9 = vld [vmem:[#allocation2 + $0x3cc] ss:$16 sps:$4 sm:$0xff]   ;;  %v5892_v10 = vld [vmem:[#allocation2 + $0x3c0] ss:$16 sps:$4 sm:$0xff]  }
  0x5a   : > { %715 = vmatprep.subr.bf16.mxu0 %v5840_v24  ;;  %766 = vmatprep.subr.bf16.mxu1 %v5842_v25  ;;  %v366_v62 = vrot.slane %v364_v57, 1  ;;  %v371_v63 = vrot.slane %v369_v58, 1  ;;  %v5893_v11 = vld [vmem:[#allocation2 + $0x3c8] ss:$16 sps:$4 sm:$0xff]   ;;  %v5894_v12 = vld [vmem:[#allocation2 + $0x3e4] ss:$16 sps:$4 sm:$0xff]  }
  0x5b   : > { %v350_v13 = vshrl.u32 %v6905_v0, 16  ;;  %v354_v14 = vrot.slane %v352_v8, 1  ;;  %v357_v15 = vshll.u32 %v6909_v7, 16  ;;  %v5896_v16 = vld [vmem:[#allocation2 + $0x3ec] ss:$16 sps:$4 sm:$0xff]   ;;  %v376_v23 = vshrl.u32 %v6899_v54, 16 }
  0x5c   : > { %v367_v2 = vor.u32 %v366_v62, %v362_v56  ;;  %v5898_v17 = vld [vmem:[#allocation2 + $0x3e0] ss:$16 sps:$4 sm:$0xff]   ;;  %v5899_v18 = vld [vmem:[#allocation2 + $0x3e8] ss:$16 sps:$4 sm:$0xff]   ;;  %v5904_v19 = vld [vmem:[#allocation2 + $0x4] ss:$16 sps:$4 sm:$0xff]  }
  0x5d   : > { %716 = vmatpush1.bf16.msra.mxu0 %v5844_v26  ;;  %767 = vmatpush1.bf16.msra.mxu1 %v5845_v27  ;;  %v355_v20 = vor.u32 %v354_v14, %v350_v13  ;;  %v359_v21 = vrot.slane %v357_v15, 1  ;;  %v5907_v22 = vld [vmem:[#allocation2 + $0xc] ss:$16 sps:$4 sm:$0xff]   ;;  %v5902_v24 = vld [vmem:[#allocation2] ss:$16 sps:$4 sm:$0xff]  }
  0x5e   : > { %717 = vmatprep.subr.bf16.mxu0 %v5846_v28  ;;  %768 = vmatprep.subr.bf16.mxu1 %v5848_v29  ;;  %v372_v6 = vsel %vm348_vm0, %v367_v2, %v371_v63  ;;  %v5905_v25 = vld [vmem:[#allocation2 + $0x8] ss:$16 sps:$4 sm:$0xff]   ;;  %v5912_v27 = vld [vmem:[#allocation2 + $0x24] ss:$16 sps:$4 sm:$0xff]   ;;  %v5915_v28 = vld [vmem:[#allocation2 + $0x2c] ss:$16 sps:$4 sm:$0xff]   ;;  %v378_v29 = vor.u32 %v376_v23, %v371_v63 }
  0x5f   : > { %735 = vmatprep.mubr.bf16.mxu0 %v372_v6  ;;  %786 = vmatprep.mubr.bf16.mxu1 %v372_v6  ;;  %v360_v26 = vsel %vm348_vm0, %v355_v20, %v359_v21  ;;  %v5934_v48 = vld [vmem:[#allocation2 + $0xa0] ss:$16 sps:$4 sm:$0xff]   ;;  %v5937_v51 = vld [vmem:[#allocation2 + $0xa8] ss:$16 sps:$4 sm:$0xff]   ;;  %v5948_v57 = vld [vmem:[#allocation2 + $0xe4] ss:$16 sps:$4 sm:$0xff]  }
  0x60   : > { %v5940_v56 = vld [vmem:[#allocation2 + $0xc0] ss:$16 sps:$4 sm:$0xff]   ;;  %v5951_v58 = vld [vmem:[#allocation2 + $0xec] ss:$16 sps:$4 sm:$0xff]   ;;  %v5960_v2 = vld [vmem:[#allocation2 + $0x124] ss:$16 sps:$4 sm:$0xff]  }
  0x61   : > { %718 = vmatpush1.bf16.msra.mxu0 %v5850_v30  ;;  %769 = vmatpush1.bf16.msra.mxu1 %v5851_v31  ;;  %v5910_v30 = vld [vmem:[#allocation2 + $0x20] ss:$16 sps:$4 sm:$0xff]   ;;  %v373_v31 = vshrl.u32 %v6909_v7, 16  ;;  %v5957_v62 = vld [vmem:[#allocation2 + $0x10c] ss:$16 sps:$4 sm:$0xff]  }
  0x62   : > { %719 = vmatprep.subr.bf16.mxu0 %v5852_v32  ;;  %770 = vmatprep.subr.bf16.mxu1 %v5854_v33  ;;  %v5913_v32 = vld [vmem:[#allocation2 + $0x28] ss:$16 sps:$4 sm:$0xff]   ;;  %v5918_v33 = vld [vmem:[#allocation2 + $0x44] ss:$16 sps:$4 sm:$0xff]   ;;  %v5952_v63 = vld [vmem:[#allocation2 + $0x100] ss:$16 sps:$4 sm:$0xff]  }
  0x63   : > { %v5966_v6 = vld [vmem:[#allocation2 + $0x144] ss:$16 sps:$4 sm:$0xff]   ;;  %v5969_v8 = vld [vmem:[#allocation2 + $0x14c] ss:$16 sps:$4 sm:$0xff]   ;;  %v5970_v13 = vld [vmem:[#allocation2 + $0x160] ss:$16 sps:$4 sm:$0xff]  }
  0x64   : > { %v5973_v14 = vld [vmem:[#allocation2 + $0x168] ss:$16 sps:$4 sm:$0xff]   ;;  %v5978_v15 = vld [vmem:[#allocation2 + $0x184] ss:$16 sps:$4 sm:$0xff]   ;;  %v5987_v20 = vld [vmem:[#allocation2 + $0x1ac] ss:$16 sps:$4 sm:$0xff]  }
  0x65   : > { %720 = vmatpush1.bf16.msra.mxu0 %v5856_v34  ;;  %771 = vmatpush1.bf16.msra.mxu1 %v5857_v35  ;;  %v5921_v34 = vld [vmem:[#allocation2 + $0x4c] ss:$16 sps:$4 sm:$0xff]   ;;  %v5916_v35 = vld [vmem:[#allocation2 + $0x40] ss:$16 sps:$4 sm:$0xff]   ;;  %v5990_v23 = vld [vmem:[#allocation2 + $0x1c4] ss:$16 sps:$4 sm:$0xff]  }
  0x66   : > { %721 = vmatprep.subr.bf16.mxu0 %v5858_v36  ;;  %772 = vmatprep.subr.bf16.mxu1 %v5860_v37  ;;  %v375_v36 = vor.u32 %v373_v31, %v359_v21  ;;  %v5919_v37 = vld [vmem:[#allocation2 + $0x48] ss:$16 sps:$4 sm:$0xff]   ;;  %v5982_v21 = vld [vmem:[#allocation2 + $0x1a0] ss:$16 sps:$4 sm:$0xff]   ;;  %v6002_v31 = vld [vmem:[#allocation2 + $0x404] ss:$16 sps:$4 sm:$0xff]  }
  0x67   : > { %vm2342_vm3 = vsmask.f32 4352  ;;  %vm3923_vm5 = vsmask.f32 5376 }
  0x69   : > { %722 = vmatpush1.bf16.msra.mxu0 %v5862_v38  ;;  %773 = vmatpush1.bf16.msra.mxu1 %v5863_v39  ;;  %v5924_v38 = vld [vmem:[#allocation2 + $0x64] ss:$16 sps:$4 sm:$0xff]   ;;  %v5927_v39 = vld [vmem:[#allocation2 + $0x6c] ss:$16 sps:$4 sm:$0xff]  }
  0x6a   : > { %723 = vmatprep.subr.bf16.mxu0 %v5864_v40  ;;  %774 = vmatprep.subr.bf16.mxu1 %v5866_v41  ;;  %v5922_v40 = vld [vmem:[#allocation2 + $0x60] ss:$16 sps:$4 sm:$0xff]   ;;  %v5925_v41 = vld [vmem:[#allocation2 + $0x68] ss:$16 sps:$4 sm:$0xff]  }
  0x6d   : > { %724 = vmatpush1.bf16.msra.mxu0 %v5868_v42  ;;  %775 = vmatpush1.bf16.msra.mxu1 %v5869_v43  ;;  %v5930_v42 = vld [vmem:[#allocation2 + $0x84] ss:$16 sps:$4 sm:$0xff]   ;;  %v5933_v43 = vld [vmem:[#allocation2 + $0x8c] ss:$16 sps:$4 sm:$0xff]  }
  0x6e   : > { %725 = vmatprep.subr.bf16.mxu0 %v5870_v44  ;;  %776 = vmatprep.subr.bf16.mxu1 %v5872_v45  ;;  %v5928_v44 = vld [vmem:[#allocation2 + $0x80] ss:$16 sps:$4 sm:$0xff]   ;;  %v5931_v45 = vld [vmem:[#allocation2 + $0x88] ss:$16 sps:$4 sm:$0xff]  }
  0x71   : > { %726 = vmatpush1.bf16.msra.mxu0 %v5874_v46  ;;  %777 = vmatpush1.bf16.msra.mxu1 %v5875_v47  ;;  %v5936_v46 = vld [vmem:[#allocation2 + $0xa4] ss:$16 sps:$4 sm:$0xff]   ;;  %v5939_v47 = vld [vmem:[#allocation2 + $0xac] ss:$16 sps:$4 sm:$0xff]  }
  0x72   : > { %727 = vmatprep.subr.bf16.mxu0 %v5876_v52  ;;  %778 = vmatprep.subr.bf16.mxu1 %v5878_v55  ;;  %v5942_v52 = vld [vmem:[#allocation2 + $0xc4] ss:$16 sps:$4 sm:$0xff]   ;;  %v5945_v55 = vld [vmem:[#allocation2 + $0xcc] ss:$16 sps:$4 sm:$0xff]  }
  0x75   : > { %728 = vmatpush1.bf16.msra.mxu0 %v5880_v59  ;;  %779 = vmatpush1.bf16.msra.mxu1 %v5881_v60  ;;  %v5946_v59 = vld [vmem:[#allocation2 + $0xe0] ss:$16 sps:$4 sm:$0xff]   ;;  %v5949_v60 = vld [vmem:[#allocation2 + $0xe8] ss:$16 sps:$4 sm:$0xff]  }
  0x76   : > { %729 = vmatprep.subr.bf16.mxu0 %v5882_v61  ;;  %780 = vmatprep.subr.bf16.mxu1 %v5884_v1  ;;  %v5954_v61 = vld [vmem:[#allocation2 + $0x104] ss:$16 sps:$4 sm:$0xff]   ;;  %v5955_v1 = vld [vmem:[#allocation2 + $0x108] ss:$16 sps:$4 sm:$0xff]  }
  0x79   : > { %730 = vmatpush1.bf16.msra.mxu0 %v5886_v3  ;;  %781 = vmatpush1.bf16.msra.mxu1 %v5887_v4  ;;  %v5963_v3 = vld [vmem:[#allocation2 + $0x12c] ss:$16 sps:$4 sm:$0xff]   ;;  %v5958_v4 = vld [vmem:[#allocation2 + $0x120] ss:$16 sps:$4 sm:$0xff]  }
  0x7a   : > { %731 = vmatprep.subr.bf16.mxu0 %v5888_v5  ;;  %782 = vmatprep.subr.bf16.mxu1 %v5890_v9  ;;  %v5961_v5 = vld [vmem:[#allocation2 + $0x128] ss:$16 sps:$4 sm:$0xff]   ;;  %v5964_v9 = vld [vmem:[#allocation2 + $0x140] ss:$16 sps:$4 sm:$0xff]  }
  0x7d   : > { %732 = vmatpush1.bf16.msra.mxu0 %v5892_v10  ;;  %783 = vmatpush1.bf16.msra.mxu1 %v5893_v11  ;;  %v5967_v10 = vld [vmem:[#allocation2 + $0x148] ss:$16 sps:$4 sm:$0xff]   ;;  %v5972_v11 = vld [vmem:[#allocation2 + $0x164] ss:$16 sps:$4 sm:$0xff]  }
  0x7e   : > { %733 = vmatprep.subr.bf16.mxu0 %v5894_v12  ;;  %784 = vmatprep.subr.bf16.mxu1 %v5896_v16  ;;  %v5975_v12 = vld [vmem:[#allocation2 + $0x16c] ss:$16 sps:$4 sm:$0xff]  }
  0x7f   : > { %v5981_v16 = vld [vmem:[#allocation2 + $0x18c] ss:$16 sps:$4 sm:$0xff]  }
  0x81   : > { %734 = vmatpush1.bf16.msra.mxu0 %v5898_v17  ;;  %785 = vmatpush1.bf16.msra.mxu1 %v5899_v18  ;;  %v5976_v17 = vld [vmem:[#allocation2 + $0x180] ss:$16 sps:$4 sm:$0xff]   ;;  %v5979_v18 = vld [vmem:[#allocation2 + $0x188] ss:$16 sps:$4 sm:$0xff]  }
  0x82   : > { %1131 = vmatprep.subr.bf16.mxu0 %v5904_v19  ;;  %1182 = vmatprep.subr.bf16.mxu1 %v5907_v22  ;;  %v5984_v19 = vld [vmem:[#allocation2 + $0x1a4] ss:$16 sps:$4 sm:$0xff]   ;;  %v5985_v22 = vld [vmem:[#allocation2 + $0x1a8] ss:$16 sps:$4 sm:$0xff]  }
  0x84   : > { %736 = vmatmul.mubr.bf16.vlgmr.msra.gmra.mrb[0].mxu0 %v360_v26  ;;  %787 = vmatmul.mubr.bf16.vlgmr.msra.gmra.mrb[0].mxu1 %v360_v26  ;;  %v5991_v26 = vld [vmem:[#allocation2 + $0x1c8] ss:$16 sps:$4 sm:$0xff]  }
  0x85   : > { %1132 = vmatpush1.bf16.msra.mxu0 %v5902_v24  ;;  %1183 = vmatpush1.bf16.msra.mxu1 %v5905_v25  ;;  %v5993_v24 = vld [vmem:[#allocation2 + $0x1cc] ss:$16 sps:$4 sm:$0xff]   ;;  %v5988_v25 = vld [vmem:[#allocation2 + $0x1c0] ss:$16 sps:$4 sm:$0xff]  }
  0x86   : > { %1133 = vmatprep.subr.bf16.mxu0 %v5912_v27  ;;  %1184 = vmatprep.subr.bf16.mxu1 %v5915_v28  ;;  %v5996_v27 = vld [vmem:[#allocation2 + $0x1e4] ss:$16 sps:$4 sm:$0xff]   ;;  %v5999_v28 = vld [vmem:[#allocation2 + $0x1ec] ss:$16 sps:$4 sm:$0xff]  }
  0x87   : > { %745 = vmatprep.mubr.bf16.mxu0 %v378_v29  ;;  %796 = vmatprep.mubr.bf16.mxu1 %v378_v29  ;;  %v5994_v29 = vld [vmem:[#allocation2 + $0x1e0] ss:$16 sps:$4 sm:$0xff]  }
  0x89   : > { %1134 = vmatpush1.bf16.msra.mxu0 %v5910_v30  ;;  %1185 = vmatpush1.bf16.msra.mxu1 %v5913_v32  ;;  %v5997_v30 = vld [vmem:[#allocation2 + $0x1e8] ss:$16 sps:$4 sm:$0xff]   ;;  %v6005_v32 = vld [vmem:[#allocation2 + $0x40c] ss:$16 sps:$4 sm:$0xff]  }
  0x8a   : > { %1135 = vmatprep.subr.bf16.mxu0 %v5918_v33  ;;  %1186 = vmatprep.subr.bf16.mxu1 %v5921_v34  ;;  %v6000_v33 = vld [vmem:[#allocation2 + $0x400] ss:$16 sps:$4 sm:$0xff]   ;;  %v6003_v34 = vld [vmem:[#allocation2 + $0x408] ss:$16 sps:$4 sm:$0xff]  }
  0x8c   : > { %746 = vmatmul.mubr.bf16.gmra.mrb[4].mxu0 %v375_v36  ;;  %797 = vmatmul.mubr.bf16.gmra.mrb[4].mxu1 %v375_v36  ;;  %v6011_v36 = vld [vmem:[#allocation2 + $0x42c] ss:$16 sps:$4 sm:$0xff]  }
  0x8d   : > { %1136 = vmatpush1.bf16.msra.mxu0 %v5916_v35  ;;  %1187 = vmatpush1.bf16.msra.mxu1 %v5919_v37  ;;  %v6008_v35 = vld [vmem:[#allocation2 + $0x424] ss:$16 sps:$4 sm:$0xff]   ;;  %v5160_v37 = vcombine.high %v6892_v50, %v6892_v50 }
  0x8e   : > { %1137 = vmatprep.subr.bf16.mxu0 %v5924_v38  ;;  %1188 = vmatprep.subr.bf16.mxu1 %v5927_v39  ;;  %v6922_v38 = vld [vmem:[%s6885_s20] sm:$0xee] }
  0x8f   : > { %1163 = vmatprep.mubr.bf16.mxu0 %v6896_v53  ;;  %1214 = vmatprep.mubr.bf16.mxu1 %v6896_v53  ;;  %v5943_v53 = vld [vmem:[#allocation2 + $0xc8] ss:$16 sps:$4 sm:$0xff]   ;;  %v6006_v39 = vld [vmem:[#allocation2 + $0x420] ss:$16 sps:$4 sm:$0xff]  }
  0x91   : > { %1138 = vmatpush1.bf16.msra.mxu0 %v5922_v40  ;;  %1189 = vmatpush1.bf16.msra.mxu1 %v5925_v41  ;;  %v6009_v40 = vld [vmem:[#allocation2 + $0x428] ss:$16 sps:$4 sm:$0xff]   ;;  %v5226_v41 = vcombine.high %v6922_v38, %v6889_v49  ;;  %v6022_v49 = vld [vmem:[#allocation2 + $0x464] ss:$16 sps:$4 sm:$0xff]  }
  0x92   : > { %1139 = vmatprep.subr.bf16.mxu0 %v5930_v42  ;;  %1190 = vmatprep.subr.bf16.mxu1 %v5933_v43  ;;  %v6016_v42 = vld [vmem:[#allocation2 + $0x444] ss:$16 sps:$4 sm:$0xff]   ;;  %v6019_v43 = vld [vmem:[#allocation2 + $0x44c] ss:$16 sps:$4 sm:$0xff]  }
  0x95   : > { %1140 = vmatpush1.bf16.msra.mxu0 %v5928_v44  ;;  %1191 = vmatpush1.bf16.msra.mxu1 %v5931_v45  ;;  %v6929_v44 = vrot.slane %v6899_v54, 1  ;;  %v5159_v45 = vcombine.low %v6892_v50, %v6892_v50  ;;  %v6028_v50 = vld [vmem:[#allocation2 + $0x484] ss:$16 sps:$4 sm:$0xff]  }
  0x96   : > { %1141 = vmatprep.subr.bf16.mxu0 %v5936_v46  ;;  %1192 = vmatprep.subr.bf16.mxu1 %v5939_v47  ;;  %v6017_v46 = vld [vmem:[#allocation2 + $0x448] ss:$16 sps:$4 sm:$0xff]   ;;  %v1308_v47 = vrot.slane %v5226_v41, 1 }
  0x97   : > { %v6095_v41 = vld [vmem:[#allocation2 + $0x5e8] ss:$16 sps:$4 sm:$0xff]  }
  0x98   : > { %v1310_v54 = vsel %vm1304_vm1, %v1308_v47, %v6929_v44  ;;  %v6103_v47 = vld [vmem:[#allocation2 + $0x608] ss:$16 sps:$4 sm:$0xff]  }
  0x99   : > { %1142 = vmatpush1.bf16.msra.mxu0 %v5934_v48  ;;  %1193 = vmatpush1.bf16.msra.mxu1 %v5937_v51  ;;  %v6025_v48 = vld [vmem:[#allocation2 + $0x46c] ss:$16 sps:$4 sm:$0xff]   ;;  %v6020_v51 = vld [vmem:[#allocation2 + $0x460] ss:$16 sps:$4 sm:$0xff]  }
  0x9a   : > { %1143 = vmatprep.subr.bf16.mxu0 %v5942_v52  ;;  %1194 = vmatprep.subr.bf16.mxu1 %v5945_v55  ;;  %v6023_v52 = vld [vmem:[#allocation2 + $0x468] ss:$16 sps:$4 sm:$0xff]   ;;  %v6031_v55 = vld [vmem:[#allocation2 + $0x48c] ss:$16 sps:$4 sm:$0xff]  }
  0x9d   : > { %1144 = vmatpush1.bf16.msra.mxu0 %v5940_v56  ;;  %1195 = vmatpush1.bf16.msra.mxu1 %v5943_v53  ;;  %v6026_v56 = vld [vmem:[#allocation2 + $0x480] ss:$16 sps:$4 sm:$0xff]   ;;  %v6029_v53 = vld [vmem:[#allocation2 + $0x488] ss:$16 sps:$4 sm:$0xff]  }
  0x9e   : > { %1145 = vmatprep.subr.bf16.mxu0 %v5948_v57  ;;  %1196 = vmatprep.subr.bf16.mxu1 %v5951_v58  ;;  %v6034_v57 = vld [vmem:[#allocation2 + $0x4a4] ss:$16 sps:$4 sm:$0xff]   ;;  %v6037_v58 = vld [vmem:[#allocation2 + $0x4ac] ss:$16 sps:$4 sm:$0xff]  }
  0xa1   : > { %1146 = vmatpush1.bf16.msra.mxu0 %v5946_v59  ;;  %1197 = vmatpush1.bf16.msra.mxu1 %v5949_v60  ;;  %v6032_v59 = vld [vmem:[#allocation2 + $0x4a0] ss:$16 sps:$4 sm:$0xff]   ;;  %v6035_v60 = vld [vmem:[#allocation2 + $0x4a8] ss:$16 sps:$4 sm:$0xff]  }
  0xa2   : > { %1147 = vmatprep.subr.bf16.mxu0 %v5954_v61  ;;  %1198 = vmatprep.subr.bf16.mxu1 %v5957_v62  ;;  %v6040_v61 = vld [vmem:[#allocation2 + $0x4c4] ss:$16 sps:$4 sm:$0xff]   ;;  %v6043_v62 = vld [vmem:[#allocation2 + $0x4cc] ss:$16 sps:$4 sm:$0xff]  }
  0xa5   : > { %1148 = vmatpush1.bf16.msra.mxu0 %v5952_v63  ;;  %1199 = vmatpush1.bf16.msra.mxu1 %v5955_v1  ;;  %v6038_v63 = vld [vmem:[#allocation2 + $0x4c0] ss:$16 sps:$4 sm:$0xff]   ;;  %v6041_v1 = vld [vmem:[#allocation2 + $0x4c8] ss:$16 sps:$4 sm:$0xff]  }
  0xa6   : > { %1149 = vmatprep.subr.bf16.mxu0 %v5960_v2  ;;  %1200 = vmatprep.subr.bf16.mxu1 %v5963_v3  ;;  %v6046_v2 = vld [vmem:[#allocation2 + $0x4e4] ss:$16 sps:$4 sm:$0xff]   ;;  %v6049_v3 = vld [vmem:[#allocation2 + $0x4ec] ss:$16 sps:$4 sm:$0xff]  }
  0xa9   : > { %1150 = vmatpush1.bf16.msra.mxu0 %v5958_v4  ;;  %1201 = vmatpush1.bf16.msra.mxu1 %v5961_v5  ;;  %v6044_v4 = vld [vmem:[#allocation2 + $0x4e0] ss:$16 sps:$4 sm:$0xff]   ;;  %v6047_v5 = vld [vmem:[#allocation2 + $0x4e8] ss:$16 sps:$4 sm:$0xff]  }
  0xaa   : > { %1151 = vmatprep.subr.bf16.mxu0 %v5966_v6  ;;  %1202 = vmatprep.subr.bf16.mxu1 %v5969_v8  ;;  %v6052_v6 = vld [vmem:[#allocation2 + $0x504] ss:$16 sps:$4 sm:$0xff]   ;;  %v6055_v8 = vld [vmem:[#allocation2 + $0x50c] ss:$16 sps:$4 sm:$0xff]  }
  0xad   : > { %1152 = vmatpush1.bf16.msra.mxu0 %v5964_v9  ;;  %1203 = vmatpush1.bf16.msra.mxu1 %v5967_v10  ;;  %v6050_v9 = vld [vmem:[#allocation2 + $0x500] ss:$16 sps:$4 sm:$0xff]   ;;  %v6053_v10 = vld [vmem:[#allocation2 + $0x508] ss:$16 sps:$4 sm:$0xff]  }
  0xae   : > { %1153 = vmatprep.subr.bf16.mxu0 %v5972_v11  ;;  %1204 = vmatprep.subr.bf16.mxu1 %v5975_v12  ;;  %v6058_v11 = vld [vmem:[#allocation2 + $0x524] ss:$16 sps:$4 sm:$0xff]   ;;  %v6061_v12 = vld [vmem:[#allocation2 + $0x52c] ss:$16 sps:$4 sm:$0xff]  }
  0xb1   : > { %1154 = vmatpush1.bf16.msra.mxu0 %v5970_v13  ;;  %1205 = vmatpush1.bf16.msra.mxu1 %v5973_v14  ;;  %v6056_v13 = vld [vmem:[#allocation2 + $0x520] ss:$16 sps:$4 sm:$0xff]   ;;  %v6059_v14 = vld [vmem:[#allocation2 + $0x528] ss:$16 sps:$4 sm:$0xff]  }
  0xb2   : > { %1155 = vmatprep.subr.bf16.mxu0 %v5978_v15  ;;  %1206 = vmatprep.subr.bf16.mxu1 %v5981_v16  ;;  %v6064_v15 = vld [vmem:[#allocation2 + $0x544] ss:$16 sps:$4 sm:$0xff]   ;;  %v6067_v16 = vld [vmem:[#allocation2 + $0x54c] ss:$16 sps:$4 sm:$0xff]  }
  0xb5   : > { %1156 = vmatpush1.bf16.msra.mxu0 %v5976_v17  ;;  %1207 = vmatpush1.bf16.msra.mxu1 %v5979_v18  ;;  %v6062_v17 = vld [vmem:[#allocation2 + $0x540] ss:$16 sps:$4 sm:$0xff]   ;;  %v6065_v18 = vld [vmem:[#allocation2 + $0x548] ss:$16 sps:$4 sm:$0xff]  }
  0xb6   : > { %1157 = vmatprep.subr.bf16.mxu0 %v5984_v19  ;;  %1208 = vmatprep.subr.bf16.mxu1 %v5987_v20  ;;  %v6070_v19 = vld [vmem:[#allocation2 + $0x564] ss:$16 sps:$4 sm:$0xff]   ;;  %v6073_v20 = vld [vmem:[#allocation2 + $0x56c] ss:$16 sps:$4 sm:$0xff]  }
  0xb9   : > { %1158 = vmatpush1.bf16.msra.mxu0 %v5982_v21  ;;  %1209 = vmatpush1.bf16.msra.mxu1 %v5985_v22  ;;  %v6068_v21 = vld [vmem:[#allocation2 + $0x560] ss:$16 sps:$4 sm:$0xff]   ;;  %v6071_v22 = vld [vmem:[#allocation2 + $0x568] ss:$16 sps:$4 sm:$0xff]  }
  0xba   : > { %1159 = vmatprep.subr.bf16.mxu0 %v5990_v23  ;;  %1210 = vmatprep.subr.bf16.mxu1 %v5993_v24  ;;  %v6076_v23 = vld [vmem:[#allocation2 + $0x584] ss:$16 sps:$4 sm:$0xff]   ;;  %v6079_v24 = vld [vmem:[#allocation2 + $0x58c] ss:$16 sps:$4 sm:$0xff]  }
  0xbd   : > { %1160 = vmatpush1.bf16.msra.mxu0 %v5988_v25  ;;  %1211 = vmatpush1.bf16.msra.mxu1 %v5991_v26  ;;  %v6074_v25 = vld [vmem:[#allocation2 + $0x580] ss:$16 sps:$4 sm:$0xff]   ;;  %v6077_v26 = vld [vmem:[#allocation2 + $0x588] ss:$16 sps:$4 sm:$0xff]  }
  0xbe   : > { %1161 = vmatprep.subr.bf16.mxu0 %v5996_v27  ;;  %1212 = vmatprep.subr.bf16.mxu1 %v5999_v28  ;;  %v6082_v27 = vld [vmem:[#allocation2 + $0x5a4] ss:$16 sps:$4 sm:$0xff]   ;;  %v6085_v28 = vld [vmem:[#allocation2 + $0x5ac] ss:$16 sps:$4 sm:$0xff]  }
  0xc1   : > { %1162 = vmatpush1.bf16.msra.mxu0 %v5994_v29  ;;  %1213 = vmatpush1.bf16.msra.mxu1 %v5997_v30  ;;  %v6080_v29 = vld [vmem:[#allocation2 + $0x5a0] ss:$16 sps:$4 sm:$0xff]   ;;  %v6083_v30 = vld [vmem:[#allocation2 + $0x5a8] ss:$16 sps:$4 sm:$0xff]  }
  0xc2   : > { %1635 = vmatprep.subr.bf16.mxu0 %v6002_v31  ;;  %1686 = vmatprep.subr.bf16.mxu1 %v6005_v32  ;;  %v6088_v31 = vld [vmem:[#allocation2 + $0x5c4] ss:$16 sps:$4 sm:$0xff]   ;;  %v6091_v32 = vld [vmem:[#allocation2 + $0x5cc] ss:$16 sps:$4 sm:$0xff]  }
  0xc4   : > { %1164 = vmatmul.mubr.bf16.vlgmr.msra.gmra.mrb[0].mxu0 %v6905_v0  ;;  %1215 = vmatmul.mubr.bf16.vlgmr.msra.gmra.mrb[0].mxu1 %v6905_v0  ;;  %v6014_v0 = vld [vmem:[#allocation2 + $0x440] ss:$16 sps:$4 sm:$0xff]  }
  0xc5   : > { %1636 = vmatpush1.bf16.msra.mxu0 %v6000_v33  ;;  %1687 = vmatpush1.bf16.msra.mxu1 %v6003_v34  ;;  %v6086_v33 = vld [vmem:[#allocation2 + $0x5c0] ss:$16 sps:$4 sm:$0xff]   ;;  %v6089_v34 = vld [vmem:[#allocation2 + $0x5c8] ss:$16 sps:$4 sm:$0xff]  }
  0xc6   : > { %1637 = vmatprep.subr.bf16.mxu0 %v6008_v35  ;;  %1688 = vmatprep.subr.bf16.mxu1 %v6011_v36  ;;  %v6094_v35 = vld [vmem:[#allocation2 + $0x5e4] ss:$16 sps:$4 sm:$0xff]   ;;  %v6936_v36 = vld [vmem:[%s6885_s20 + $0x8] sm:$0xff] }
  0xc7   : > { %1173 = vmatprep.mubr.bf16.mxu0 %v5160_v37  ;;  %1224 = vmatprep.mubr.bf16.mxu1 %v5160_v37  ;;  %v5225_v37 = vcombine.low %v6922_v38, %v6936_v36  ;;  %v6108_v38 = vld [vmem:[#allocation2 + $0x624] ss:$16 sps:$4 sm:$0xff]  }
  0xc9   : > { %1638 = vmatpush1.bf16.msra.mxu0 %v6006_v39  ;;  %1689 = vmatpush1.bf16.msra.mxu1 %v6009_v40  ;;  %v6097_v39 = vld [vmem:[#allocation2 + $0x5ec] ss:$16 sps:$4 sm:$0xff]   ;;  %v6092_v40 = vld [vmem:[#allocation2 + $0x5e0] ss:$16 sps:$4 sm:$0xff]  }
  0xca   : > { %1639 = vmatprep.subr.bf16.mxu0 %v6016_v42  ;;  %1690 = vmatprep.subr.bf16.mxu1 %v6019_v43  ;;  %v1305_v42 = vrot.slane %v5225_v37, 1  ;;  %v1306_v43 = vrot.slane %v6909_v7, 1  ;;  %v6106_v7 = vld [vmem:[#allocation2 + $0x620] ss:$16 sps:$4 sm:$0xff]   ;;  %v6174_v37 = vld [vmem:[#allocation2 + $0x784] ss:$16 sps:$4 sm:$0xff]  }
  0xcc   : > { %1174 = vmatmul.mubr.bf16.gmra.mrb[8].mxu0 %v5159_v45  ;;  %1225 = vmatmul.mubr.bf16.gmra.mrb[8].mxu1 %v5159_v45  ;;  %v6102_v45 = vld [vmem:[#allocation2 + $0x604] ss:$16 sps:$4 sm:$0xff]  }
  0xcd   : > { %1640 = vmatpush1.bf16.msra.mxu0 %v6014_v0  ;;  %1691 = vmatpush1.bf16.msra.mxu1 %v6017_v46  ;;  %v6105_v0 = vld [vmem:[#allocation2 + $0x60c] ss:$16 sps:$4 sm:$0xff]   ;;  %v6100_v46 = vld [vmem:[#allocation2 + $0x600] ss:$16 sps:$4 sm:$0xff]  }
  0xce   : > { %1641 = vmatprep.subr.bf16.mxu0 %v6022_v49  ;;  %1692 = vmatprep.subr.bf16.mxu1 %v6025_v48  ;;  %v6942_v49 = vld [vmem:[%s6885_s20] sm:$0x88]  ;;  %v1307_v48 = vsel %vm1304_vm1, %v1305_v42, %v1306_v43 }
  0xcf   : > { %1667 = vmatprep.mubr.bf16.mxu0 %v1310_v54  ;;  %1718 = vmatprep.mubr.bf16.mxu1 %v1310_v54  ;;  %v6109_v54 = vld [vmem:[#allocation2 + $0x628] ss:$16 sps:$4 sm:$0xff]   ;;  %v6180_v42 = vld [vmem:[#allocation2 + $0x7a4] ss:$16 sps:$4 sm:$0xff]  }
  0xd1   : > { %1642 = vmatpush1.bf16.msra.mxu0 %v6020_v51  ;;  %1693 = vmatpush1.bf16.msra.mxu1 %v6023_v52  ;;  %v6946_v51 = vld [vmem:[%s6885_s20 + $0x18] sm:$0x77] }
  0xd2   : > { %1643 = vmatprep.subr.bf16.mxu0 %v6028_v50  ;;  %1694 = vmatprep.subr.bf16.mxu1 %v6031_v55  ;;  %v6111_v52 = vld [vmem:[#allocation2 + $0x62c] ss:$16 sps:$4 sm:$0xff]   ;;  %v6950_v50 = vcombine.high %v6942_v49, %v6936_v36  ;;  %v6953_v55 = vld [vmem:[%s6885_s20 + $0x10] sm:$0xff] }
  0xd5   : > { %1644 = vmatpush1.bf16.msra.mxu0 %v6026_v56  ;;  %1695 = vmatpush1.bf16.msra.mxu1 %v6029_v53  ;;  %v5294_v56 = vcombine.high %v6953_v55, %v6946_v51  ;;  %v6114_v53 = vld [vmem:[#allocation2 + $0x644] ss:$16 sps:$4 sm:$0xff]  }
  0xd6   : > { %1645 = vmatprep.subr.bf16.mxu0 %v6034_v57  ;;  %1696 = vmatprep.subr.bf16.mxu1 %v6037_v58  ;;  %v6117_v57 = vld [vmem:[#allocation2 + $0x64c] ss:$16 sps:$4 sm:$0xff]   ;;  %v6112_v58 = vld [vmem:[#allocation2 + $0x640] ss:$16 sps:$4 sm:$0xff]  }
  0xd9   : > { %1646 = vmatpush1.bf16.msra.mxu0 %v6032_v59  ;;  %1697 = vmatpush1.bf16.msra.mxu1 %v6035_v60  ;;  %v6115_v59 = vld [vmem:[#allocation2 + $0x648] ss:$16 sps:$4 sm:$0xff]   ;;  %v1830_v60 = vrot.slane %v6950_v50, 3 }
  0xda   : > { %1647 = vmatprep.subr.bf16.mxu0 %v6040_v61  ;;  %1698 = vmatprep.subr.bf16.mxu1 %v6043_v62  ;;  %v6960_v61 = vrot.slane %v5294_v56, 3  ;;  %v6120_v62 = vld [vmem:[#allocation2 + $0x664] ss:$16 sps:$4 sm:$0xff]  }
  0xdb   : > { %v6192_v56 = vld [vmem:[#allocation2 + $0x7e4] ss:$16 sps:$4 sm:$0xff]  }
  0xdd   : > { %1648 = vmatpush1.bf16.msra.mxu0 %v6038_v63  ;;  %1699 = vmatpush1.bf16.msra.mxu1 %v6041_v1  ;;  %v6123_v63 = vld [vmem:[#allocation2 + $0x66c] ss:$16 sps:$4 sm:$0xff]   ;;  %v6118_v1 = vld [vmem:[#allocation2 + $0x660] ss:$16 sps:$4 sm:$0xff]  }
  0xde   : > { %1649 = vmatprep.subr.bf16.mxu0 %v6046_v2  ;;  %1700 = vmatprep.subr.bf16.mxu1 %v6049_v3  ;;  %v6121_v2 = vld [vmem:[#allocation2 + $0x668] ss:$16 sps:$4 sm:$0xff]   ;;  %v6126_v3 = vld [vmem:[#allocation2 + $0x684] ss:$16 sps:$4 sm:$0xff]  }
  0xe1   : > { %1650 = vmatpush1.bf16.msra.mxu0 %v6044_v4  ;;  %1701 = vmatpush1.bf16.msra.mxu1 %v6047_v5  ;;  %v6129_v4 = vld [vmem:[#allocation2 + $0x68c] ss:$16 sps:$4 sm:$0xff]   ;;  %v6124_v5 = vld [vmem:[#allocation2 + $0x680] ss:$16 sps:$4 sm:$0xff]  }
  0xe2   : > { %1651 = vmatprep.subr.bf16.mxu0 %v6052_v6  ;;  %1702 = vmatprep.subr.bf16.mxu1 %v6055_v8  ;;  %v6127_v6 = vld [vmem:[#allocation2 + $0x688] ss:$16 sps:$4 sm:$0xff]   ;;  %v6132_v8 = vld [vmem:[#allocation2 + $0x6a4] ss:$16 sps:$4 sm:$0xff]  }
  0xe5   : > { %1652 = vmatpush1.bf16.msra.mxu0 %v6050_v9  ;;  %1703 = vmatpush1.bf16.msra.mxu1 %v6053_v10  ;;  %v6135_v9 = vld [vmem:[#allocation2 + $0x6ac] ss:$16 sps:$4 sm:$0xff]   ;;  %v6130_v10 = vld [vmem:[#allocation2 + $0x6a0] ss:$16 sps:$4 sm:$0xff]  }
  0xe6   : > { %1653 = vmatprep.subr.bf16.mxu0 %v6058_v11  ;;  %1704 = vmatprep.subr.bf16.mxu1 %v6061_v12  ;;  %v6133_v11 = vld [vmem:[#allocation2 + $0x6a8] ss:$16 sps:$4 sm:$0xff]   ;;  %v6138_v12 = vld [vmem:[#allocation2 + $0x6c4] ss:$16 sps:$4 sm:$0xff]  }
  0xe9   : > { %1654 = vmatpush1.bf16.msra.mxu0 %v6056_v13  ;;  %1705 = vmatpush1.bf16.msra.mxu1 %v6059_v14  ;;  %v6141_v13 = vld [vmem:[#allocation2 + $0x6cc] ss:$16 sps:$4 sm:$0xff]   ;;  %v6136_v14 = vld [vmem:[#allocation2 + $0x6c0] ss:$16 sps:$4 sm:$0xff]  }
  0xea   : > { %1655 = vmatprep.subr.bf16.mxu0 %v6064_v15  ;;  %1706 = vmatprep.subr.bf16.mxu1 %v6067_v16  ;;  %v6139_v15 = vld [vmem:[#allocation2 + $0x6c8] ss:$16 sps:$4 sm:$0xff]   ;;  %v6144_v16 = vld [vmem:[#allocation2 + $0x6e4] ss:$16 sps:$4 sm:$0xff]  }
  0xed   : > { %1656 = vmatpush1.bf16.msra.mxu0 %v6062_v17  ;;  %1707 = vmatpush1.bf16.msra.mxu1 %v6065_v18  ;;  %v6147_v17 = vld [vmem:[#allocation2 + $0x6ec] ss:$16 sps:$4 sm:$0xff]   ;;  %v6142_v18 = vld [vmem:[#allocation2 + $0x6e0] ss:$16 sps:$4 sm:$0xff]  }
  0xee   : > { %1657 = vmatprep.subr.bf16.mxu0 %v6070_v19  ;;  %1708 = vmatprep.subr.bf16.mxu1 %v6073_v20  ;;  %v6145_v19 = vld [vmem:[#allocation2 + $0x6e8] ss:$16 sps:$4 sm:$0xff]   ;;  %v6150_v20 = vld [vmem:[#allocation2 + $0x704] ss:$16 sps:$4 sm:$0xff]  }
  0xf1   : > { %1658 = vmatpush1.bf16.msra.mxu0 %v6068_v21  ;;  %1709 = vmatpush1.bf16.msra.mxu1 %v6071_v22  ;;  %v6153_v21 = vld [vmem:[#allocation2 + $0x70c] ss:$16 sps:$4 sm:$0xff]   ;;  %v6148_v22 = vld [vmem:[#allocation2 + $0x700] ss:$16 sps:$4 sm:$0xff]  }
  0xf2   : > { %1659 = vmatprep.subr.bf16.mxu0 %v6076_v23  ;;  %1710 = vmatprep.subr.bf16.mxu1 %v6079_v24  ;;  %v6151_v23 = vld [vmem:[#allocation2 + $0x708] ss:$16 sps:$4 sm:$0xff]   ;;  %v6156_v24 = vld [vmem:[#allocation2 + $0x724] ss:$16 sps:$4 sm:$0xff]  }
  0xf5   : > { %1660 = vmatpush1.bf16.msra.mxu0 %v6074_v25  ;;  %1711 = vmatpush1.bf16.msra.mxu1 %v6077_v26  ;;  %v6159_v25 = vld [vmem:[#allocation2 + $0x72c] ss:$16 sps:$4 sm:$0xff]   ;;  %v6154_v26 = vld [vmem:[#allocation2 + $0x720] ss:$16 sps:$4 sm:$0xff]  }
  0xf6   : > { %1661 = vmatprep.subr.bf16.mxu0 %v6082_v27  ;;  %1712 = vmatprep.subr.bf16.mxu1 %v6085_v28  ;;  %v6157_v27 = vld [vmem:[#allocation2 + $0x728] ss:$16 sps:$4 sm:$0xff]   ;;  %v6162_v28 = vld [vmem:[#allocation2 + $0x744] ss:$16 sps:$4 sm:$0xff]  }
  0xf9   : > { %1662 = vmatpush1.bf16.msra.mxu0 %v6080_v29  ;;  %1713 = vmatpush1.bf16.msra.mxu1 %v6083_v30  ;;  %v6165_v29 = vld [vmem:[#allocation2 + $0x74c] ss:$16 sps:$4 sm:$0xff]   ;;  %v6160_v30 = vld [vmem:[#allocation2 + $0x740] ss:$16 sps:$4 sm:$0xff]  }
  0xfa   : > { %1663 = vmatprep.subr.bf16.mxu0 %v6088_v31  ;;  %1714 = vmatprep.subr.bf16.mxu1 %v6091_v32  ;;  %v6163_v31 = vld [vmem:[#allocation2 + $0x748] ss:$16 sps:$4 sm:$0xff]   ;;  %v6168_v32 = vld [vmem:[#allocation2 + $0x764] ss:$16 sps:$4 sm:$0xff]  }
  0xfd   : > { %1664 = vmatpush1.bf16.msra.mxu0 %v6086_v33  ;;  %1715 = vmatpush1.bf16.msra.mxu1 %v6089_v34  ;;  %v6171_v33 = vld [vmem:[#allocation2 + $0x76c] ss:$16 sps:$4 sm:$0xff]   ;;  %v6166_v34 = vld [vmem:[#allocation2 + $0x760] ss:$16 sps:$4 sm:$0xff]  }
  0xfe   : > { %1665 = vmatprep.subr.bf16.mxu0 %v6094_v35  ;;  %1716 = vmatprep.subr.bf16.mxu1 %v6097_v39  ;;  %v6169_v35 = vld [vmem:[#allocation2 + $0x768] ss:$16 sps:$4 sm:$0xff]   ;;  %v6177_v39 = vld [vmem:[#allocation2 + $0x78c] ss:$16 sps:$4 sm:$0xff]  }
 0x101   : > { %1666 = vmatpush1.bf16.msra.mxu0 %v6092_v40  ;;  %1717 = vmatpush1.bf16.msra.mxu1 %v6095_v41  ;;  %v6172_v40 = vld [vmem:[#allocation2 + $0x780] ss:$16 sps:$4 sm:$0xff]   ;;  %v6175_v41 = vld [vmem:[#allocation2 + $0x788] ss:$16 sps:$4 sm:$0xff]  }
 0x102   : > { %2157 = vmatprep.subr.bf16.mxu0 %v6102_v45  ;;  %2208 = vmatprep.subr.bf16.mxu1 %v6105_v0  ;;  %v6178_v45 = vld [vmem:[#allocation2 + $0x7a0] ss:$16 sps:$4 sm:$0xff]   ;;  %v6181_v0 = vld [vmem:[#allocation2 + $0x7a8] ss:$16 sps:$4 sm:$0xff]  }
 0x104   : > { %1668 = vmatmul.mubr.bf16.vlgmr.msra.gmra.mrb[0].mxu0 %v1307_v48  ;;  %1719 = vmatmul.mubr.bf16.vlgmr.msra.gmra.mrb[0].mxu1 %v1307_v48  ;;  %v6187_v48 = vld [vmem:[#allocation2 + $0x7c8] ss:$16 sps:$4 sm:$0xff]  }
 0x105   : > { %2158 = vmatpush1.bf16.msra.mxu0 %v6100_v46  ;;  %2209 = vmatpush1.bf16.msra.mxu1 %v6103_v47  ;;  %v6186_v46 = vld [vmem:[#allocation2 + $0x7c4] ss:$16 sps:$4 sm:$0xff]   ;;  %v6189_v47 = vld [vmem:[#allocation2 + $0x7cc] ss:$16 sps:$4 sm:$0xff]  }
 0x106   : > { %2159 = vmatprep.subr.bf16.mxu0 %v6108_v38  ;;  %2210 = vmatprep.subr.bf16.mxu1 %v6111_v52  ;;  %v6184_v38 = vld [vmem:[#allocation2 + $0x7c0] ss:$16 sps:$4 sm:$0xff]   ;;  %v6966_v52 = vcombine.low %v6942_v49, %v6936_v36  ;;  %v6202_v49 = vld [vmem:[#allocation2 + $0x804] ss:$16 sps:$4 sm:$0xff]  }
 0x107   : > { %1677 = vmatprep.mubr.bf16.mxu0 %v6929_v44  ;;  %1728 = vmatprep.mubr.bf16.mxu1 %v6929_v44  ;;  %v1832_v44 = vsel %vm1826_vm2, %v1830_v60, %v6960_v61 }
 0x108   : > { %v1827_v36 = vrot.slane %v6966_v52, 3 }
 0x109   : > { %2160 = vmatpush1.bf16.msra.mxu0 %v6106_v7  ;;  %2211 = vmatpush1.bf16.msra.mxu1 %v6109_v54  ;;  %v5293_v7 = vcombine.low %v6953_v55, %v6946_v51  ;;  %v6971_v54 = vld [vmem:[%s6885_s20 + $0x18] sm:$0xff] }
 0x10a   : > { %2161 = vmatprep.subr.bf16.mxu0 %v6114_v53  ;;  %2212 = vmatprep.subr.bf16.mxu1 %v6117_v57  ;;  %v6195_v53 = vld [vmem:[#allocation2 + $0x7ec] ss:$16 sps:$4 sm:$0xff]   ;;  %v6190_v57 = vld [vmem:[#allocation2 + $0x7e0] ss:$16 sps:$4 sm:$0xff]  }
 0x10b   : > { %v1828_v60 = vrot.slane %v5293_v7, 3  ;;  %v6205_v51 = vld [vmem:[#allocation2 + $0x80c] ss:$16 sps:$4 sm:$0xff]  }
 0x10c   : > { %1678 = vmatmul.mubr.bf16.gmra.mrb[12].mxu0 %v1306_v43  ;;  %1729 = vmatmul.mubr.bf16.gmra.mrb[12].mxu1 %v1306_v43  ;;  %v6183_v43 = vld [vmem:[#allocation2 + $0x7ac] ss:$16 sps:$4 sm:$0xff]  }
 0x10d   : > { %2162 = vmatpush1.bf16.msra.mxu0 %v6112_v58  ;;  %2213 = vmatpush1.bf16.msra.mxu1 %v6115_v59  ;;  %v5360_v58 = vcombine.high %v6953_v55, %v6971_v54  ;;  %v6193_v59 = vld [vmem:[#allocation2 + $0x7e8] ss:$16 sps:$4 sm:$0xff]  }
 0x10e   : > { %2163 = vmatprep.subr.bf16.mxu0 %v6120_v62  ;;  %2214 = vmatprep.subr.bf16.mxu1 %v6123_v63  ;;  %v6200_v62 = vld [vmem:[#allocation2 + $0x800] ss:$16 sps:$4 sm:$0xff]   ;;  %v2361_v63 = vshrl.u32 %v6950_v50, 16 }
 0x10f   : > { %2189 = vmatprep.mubr.bf16.mxu0 %v1832_v44  ;;  %2240 = vmatprep.mubr.bf16.mxu1 %v1832_v44  ;;  %v2372_v44 = vshll.u32 %v5360_v58, 16 }
 0x111   : > { %2164 = vmatpush1.bf16.msra.mxu0 %v6118_v1  ;;  %2215 = vmatpush1.bf16.msra.mxu1 %v6121_v2  ;;  %v2364_v1 = vshll.u32 %v6950_v50, 16  ;;  %v2369_v2 = vshrl.u32 %v5360_v58, 16  ;;  %v6209_v50 = vld [vmem:[#allocation2 + $0x828] ss:$16 sps:$4 sm:$0xff]  }
 0x112   : > { %2165 = vmatprep.subr.bf16.mxu0 %v6126_v3  ;;  %2216 = vmatprep.subr.bf16.mxu1 %v6129_v4  ;;  %v1829_v3 = vsel %vm1826_vm2, %v1827_v36, %v1828_v60  ;;  %v6203_v4 = vld [vmem:[#allocation2 + $0x808] ss:$16 sps:$4 sm:$0xff]   ;;  %v6262_v36 = vld [vmem:[#allocation2 + $0x944] ss:$16 sps:$4 sm:$0xff]  }
 0x115   : > { %2166 = vmatpush1.bf16.msra.mxu0 %v6124_v5  ;;  %2217 = vmatpush1.bf16.msra.mxu1 %v6127_v6  ;;  %v6208_v5 = vld [vmem:[#allocation2 + $0x824] ss:$16 sps:$4 sm:$0xff]   ;;  %v6211_v6 = vld [vmem:[#allocation2 + $0x82c] ss:$16 sps:$4 sm:$0xff]  }
 0x116   : > { %2167 = vmatprep.subr.bf16.mxu0 %v6132_v8  ;;  %2218 = vmatprep.subr.bf16.mxu1 %v6135_v9  ;;  %v6206_v8 = vld [vmem:[#allocation2 + $0x820] ss:$16 sps:$4 sm:$0xff]   ;;  %v2363_v9 = vrot.slane %v2361_v63, 3  ;;  %v6268_v63 = vld [vmem:[#allocation2 + $0x964] ss:$16 sps:$4 sm:$0xff]  }
 0x119   : > { %2168 = vmatpush1.bf16.msra.mxu0 %v6130_v10  ;;  %2219 = vmatpush1.bf16.msra.mxu1 %v6133_v11  ;;  %v2366_v10 = vrot.slane %v2364_v1, 4  ;;  %v2371_v11 = vrot.slane %v2369_v2, 3  ;;  %v6271_v1 = vld [vmem:[#allocation2 + $0x96c] ss:$16 sps:$4 sm:$0xff]   ;;  %v6266_v2 = vld [vmem:[#allocation2 + $0x960] ss:$16 sps:$4 sm:$0xff]  }
 0x11a   : > { %2169 = vmatprep.subr.bf16.mxu0 %v6138_v12  ;;  %2220 = vmatprep.subr.bf16.mxu1 %v6141_v13  ;;  %v2374_v12 = vrot.slane %v2372_v44, 4  ;;  %v6214_v13 = vld [vmem:[#allocation2 + $0x844] ss:$16 sps:$4 sm:$0xff]   ;;  %v6269_v44 = vld [vmem:[#allocation2 + $0x968] ss:$16 sps:$4 sm:$0xff]  }
 0x11d   : > { %2170 = vmatpush1.bf16.msra.mxu0 %v6136_v14  ;;  %2221 = vmatpush1.bf16.msra.mxu1 %v6139_v15  ;;  %v6217_v14 = vld [vmem:[#allocation2 + $0x84c] ss:$16 sps:$4 sm:$0xff]   ;;  %v6212_v15 = vld [vmem:[#allocation2 + $0x840] ss:$16 sps:$4 sm:$0xff]  }
 0x11e   : > { %2171 = vmatprep.subr.bf16.mxu0 %v6144_v16  ;;  %2222 = vmatprep.subr.bf16.mxu1 %v6147_v17  ;;  %v2367_v16 = vor.u32 %v2366_v10, %v2363_v9  ;;  %v6981_v17 = vor.u32 %v2374_v12, %v2371_v11  ;;  %v6280_v9 = vld [vmem:[#allocation2 + $0x9a4] ss:$16 sps:$4 sm:$0xff]   ;;  %v6283_v10 = vld [vmem:[#allocation2 + $0x9ac] ss:$16 sps:$4 sm:$0xff]   ;;  %v6278_v11 = vld [vmem:[#allocation2 + $0x9a0] ss:$16 sps:$4 sm:$0xff]  }
 0x11f   : > { %v2344_v12 = vshrl.u32 %v6966_v52, 16 }
 0x121   : > { %2172 = vmatpush1.bf16.msra.mxu0 %v6142_v18  ;;  %2223 = vmatpush1.bf16.msra.mxu1 %v6145_v19  ;;  %v6215_v18 = vld [vmem:[#allocation2 + $0x848] ss:$16 sps:$4 sm:$0xff]   ;;  %v6220_v19 = vld [vmem:[#allocation2 + $0x864] ss:$16 sps:$4 sm:$0xff]  }
 0x122   : > { %2173 = vmatprep.subr.bf16.mxu0 %v6150_v20  ;;  %2224 = vmatprep.subr.bf16.mxu1 %v6153_v21  ;;  %v6223_v20 = vld [vmem:[#allocation2 + $0x86c] ss:$16 sps:$4 sm:$0xff]   ;;  %v6218_v21 = vld [vmem:[#allocation2 + $0x860] ss:$16 sps:$4 sm:$0xff]  }
 0x125   : > { %2174 = vmatpush1.bf16.msra.mxu0 %v6148_v22  ;;  %2225 = vmatpush1.bf16.msra.mxu1 %v6151_v23  ;;  %v2376_v22 = vsel %vm2342_vm3, %v2367_v16, %v6981_v17  ;;  %v6226_v23 = vld [vmem:[#allocation2 + $0x884] ss:$16 sps:$4 sm:$0xff]  }
 0x126   : > { %2175 = vmatprep.subr.bf16.mxu0 %v6156_v24  ;;  %2226 = vmatprep.subr.bf16.mxu1 %v6159_v25  ;;  %v6229_v24 = vld [vmem:[#allocation2 + $0x88c] ss:$16 sps:$4 sm:$0xff]   ;;  %v6224_v25 = vld [vmem:[#allocation2 + $0x880] ss:$16 sps:$4 sm:$0xff]   ;;  %v6286_v16 = vld [vmem:[#allocation2 + $0x9c4] ss:$16 sps:$4 sm:$0xff]  }
 0x129   : > { %2176 = vmatpush1.bf16.msra.mxu0 %v6154_v26  ;;  %2227 = vmatpush1.bf16.msra.mxu1 %v6157_v27  ;;  %v6227_v26 = vld [vmem:[#allocation2 + $0x888] ss:$16 sps:$4 sm:$0xff]   ;;  %v6232_v27 = vld [vmem:[#allocation2 + $0x8a4] ss:$16 sps:$4 sm:$0xff]  }
 0x12a   : > { %2177 = vmatprep.subr.bf16.mxu0 %v6162_v28  ;;  %2228 = vmatprep.subr.bf16.mxu1 %v6165_v29  ;;  %v6235_v28 = vld [vmem:[#allocation2 + $0x8ac] ss:$16 sps:$4 sm:$0xff]   ;;  %v6230_v29 = vld [vmem:[#allocation2 + $0x8a0] ss:$16 sps:$4 sm:$0xff]  }
 0x12d   : > { %2178 = vmatpush1.bf16.msra.mxu0 %v6160_v30  ;;  %2229 = vmatpush1.bf16.msra.mxu1 %v6163_v31  ;;  %v6233_v30 = vld [vmem:[#allocation2 + $0x8a8] ss:$16 sps:$4 sm:$0xff]   ;;  %v6238_v31 = vld [vmem:[#allocation2 + $0x8c4] ss:$16 sps:$4 sm:$0xff]  }
 0x12e   : > { %2179 = vmatprep.subr.bf16.mxu0 %v6168_v32  ;;  %2230 = vmatprep.subr.bf16.mxu1 %v6171_v33  ;;  %v6241_v32 = vld [vmem:[#allocation2 + $0x8cc] ss:$16 sps:$4 sm:$0xff]   ;;  %v6236_v33 = vld [vmem:[#allocation2 + $0x8c0] ss:$16 sps:$4 sm:$0xff]  }
 0x131   : > { %2180 = vmatpush1.bf16.msra.mxu0 %v6166_v34  ;;  %2231 = vmatpush1.bf16.msra.mxu1 %v6169_v35  ;;  %v6239_v34 = vld [vmem:[#allocation2 + $0x8c8] ss:$16 sps:$4 sm:$0xff]   ;;  %v6244_v35 = vld [vmem:[#allocation2 + $0x8e4] ss:$16 sps:$4 sm:$0xff]  }
 0x132   : > { %2181 = vmatprep.subr.bf16.mxu0 %v6174_v37  ;;  %2232 = vmatprep.subr.bf16.mxu1 %v6177_v39  ;;  %v6247_v37 = vld [vmem:[#allocation2 + $0x8ec] ss:$16 sps:$4 sm:$0xff]   ;;  %v6242_v39 = vld [vmem:[#allocation2 + $0x8e0] ss:$16 sps:$4 sm:$0xff]  }
 0x135   : > { %2182 = vmatpush1.bf16.msra.mxu0 %v6172_v40  ;;  %2233 = vmatpush1.bf16.msra.mxu1 %v6175_v41  ;;  %v6245_v40 = vld [vmem:[#allocation2 + $0x8e8] ss:$16 sps:$4 sm:$0xff]   ;;  %v6250_v41 = vld [vmem:[#allocation2 + $0x904] ss:$16 sps:$4 sm:$0xff]  }
 0x136   : > { %2183 = vmatprep.subr.bf16.mxu0 %v6180_v42  ;;  %2234 = vmatprep.subr.bf16.mxu1 %v6183_v43  ;;  %v6253_v42 = vld [vmem:[#allocation2 + $0x90c] ss:$16 sps:$4 sm:$0xff]  }
 0x139   : > { %2184 = vmatpush1.bf16.msra.mxu0 %v6178_v45  ;;  %2235 = vmatpush1.bf16.msra.mxu1 %v6181_v0 }
 0x13a   : > { %2185 = vmatprep.subr.bf16.mxu0 %v6186_v46  ;;  %2236 = vmatprep.subr.bf16.mxu1 %v6189_v47  ;;  %v6248_v47 = vld [vmem:[#allocation2 + $0x900] ss:$16 sps:$4 sm:$0xff]  }
 0x13d   : > { %2186 = vmatpush1.bf16.msra.mxu0 %v6184_v38  ;;  %2237 = vmatpush1.bf16.msra.mxu1 %v6187_v48  ;;  %v6251_v38 = vld [vmem:[#allocation2 + $0x908] ss:$16 sps:$4 sm:$0xff]  }
 0x13e   : > { %2187 = vmatprep.subr.bf16.mxu0 %v6192_v56  ;;  %2238 = vmatprep.subr.bf16.mxu1 %v6195_v53  ;;  %v6256_v56 = vld [vmem:[#allocation2 + $0x924] ss:$16 sps:$4 sm:$0xff]   ;;  %v6259_v53 = vld [vmem:[#allocation2 + $0x92c] ss:$16 sps:$4 sm:$0xff]  }
 0x141   : > { %2188 = vmatpush1.bf16.msra.mxu0 %v6190_v57  ;;  %2239 = vmatpush1.bf16.msra.mxu1 %v6193_v59  ;;  %v6254_v59 = vld [vmem:[#allocation2 + $0x920] ss:$16 sps:$4 sm:$0xff]  }
 0x142   : > { %2701 = vmatprep.subr.bf16.mxu0 %v6202_v49  ;;  %2752 = vmatprep.subr.bf16.mxu1 %v6205_v51  ;;  %v6265_v49 = vld [vmem:[#allocation2 + $0x94c] ss:$16 sps:$4 sm:$0xff]   ;;  %v6260_v51 = vld [vmem:[#allocation2 + $0x940] ss:$16 sps:$4 sm:$0xff]  }
 0x144   : > { %2190 = vmatmul.mubr.bf16.vlgmr.msra.gmra.mrb[0].mxu0 %v1829_v3  ;;  %2241 = vmatmul.mubr.bf16.vlgmr.msra.gmra.mrb[0].mxu1 %v1829_v3  ;;  %v6274_v3 = vld [vmem:[#allocation2 + $0x984] ss:$16 sps:$4 sm:$0xff]  }
 0x145   : > { %2702 = vmatpush1.bf16.msra.mxu0 %v6200_v62  ;;  %2753 = vmatpush1.bf16.msra.mxu1 %v6203_v4  ;;  %v6263_v62 = vld [vmem:[#allocation2 + $0x948] ss:$16 sps:$4 sm:$0xff]   ;;  %v6277_v4 = vld [vmem:[#allocation2 + $0x98c] ss:$16 sps:$4 sm:$0xff]  }
 0x146   : > { %2703 = vmatprep.subr.bf16.mxu0 %v6208_v5  ;;  %2754 = vmatprep.subr.bf16.mxu1 %v6211_v6  ;;  %v6272_v5 = vld [vmem:[#allocation2 + $0x980] ss:$16 sps:$4 sm:$0xff]   ;;  %v6275_v6 = vld [vmem:[#allocation2 + $0x988] ss:$16 sps:$4 sm:$0xff]  }
 0x147   : > { %2199 = vmatprep.mubr.bf16.mxu0 %v6960_v61  ;;  %2250 = vmatprep.mubr.bf16.mxu1 %v6960_v61  ;;  %v6221_v61 = vld [vmem:[#allocation2 + $0x868] ss:$16 sps:$4 sm:$0xff]  }
 0x149   : > { %2704 = vmatpush1.bf16.msra.mxu0 %v6206_v8  ;;  %2755 = vmatpush1.bf16.msra.mxu1 %v6209_v50  ;;  %v5359_v8 = vcombine.low %v6953_v55, %v6971_v54  ;;  %v6281_v50 = vld [vmem:[#allocation2 + $0x9a8] ss:$16 sps:$4 sm:$0xff]   ;;  %v2346_v55 = vrot.slane %v2344_v12, 3 }
 0x14a   : > { %2705 = vmatprep.subr.bf16.mxu0 %v6214_v13  ;;  %2756 = vmatprep.subr.bf16.mxu1 %v6217_v14  ;;  %v2347_v13 = vshll.u32 %v6966_v52, 16  ;;  %v6287_v54 = vld [vmem:[#allocation2 + $0x9c8] ss:$16 sps:$4 sm:$0xff]   ;;  %v6290_v52 = vld [vmem:[#allocation2 + $0x9e0] ss:$16 sps:$4 sm:$0xff]  }
 0x14b   : > { %v2352_v14 = vshrl.u32 %v5359_v8, 16 }
 0x14c   : > { %2200 = vmatmul.mubr.bf16.gmra.mrb[16].mxu0 %v1828_v60  ;;  %2251 = vmatmul.mubr.bf16.gmra.mrb[16].mxu1 %v1828_v60  ;;  %v6257_v60 = vld [vmem:[#allocation2 + $0x928] ss:$16 sps:$4 sm:$0xff]  }
 0x14d   : > { %2706 = vmatpush1.bf16.msra.mxu0 %v6212_v15  ;;  %2757 = vmatpush1.bf16.msra.mxu1 %v6215_v18  ;;  %v2355_v15 = vshll.u32 %v5359_v8, 16  ;;  %v6289_v18 = vld [vmem:[#allocation2 + $0x9cc] ss:$16 sps:$4 sm:$0xff]  }
 0x14e   : > { %2707 = vmatprep.subr.bf16.mxu0 %v6220_v19  ;;  %2758 = vmatprep.subr.bf16.mxu1 %v6223_v20  ;;  %v6284_v19 = vld [vmem:[#allocation2 + $0x9c0] ss:$16 sps:$4 sm:$0xff]   ;;  %v2349_v20 = vrot.slane %v2347_v13, 4  ;;  %v6351_v8 = vld [vmem:[#allocation2 + $0xb0c] ss:$16 sps:$4 sm:$0xff]  }
 0x14f   : > { %2733 = vmatprep.mubr.bf16.mxu0 %v2376_v22  ;;  %2784 = vmatprep.mubr.bf16.mxu1 %v2376_v22  ;;  %v2357_v22 = vrot.slane %v2355_v15, 4 }
 0x151   : > { %2708 = vmatpush1.bf16.msra.mxu0 %v6218_v21  ;;  %2759 = vmatpush1.bf16.msra.mxu1 %v6221_v61  ;;  %v2354_v21 = vrot.slane %v2352_v14, 3  ;;  %v6292_v61 = vld [vmem:[#allocation2 + $0x9e4] ss:$16 sps:$4 sm:$0xff]  }
 0x152   : > { %2709 = vmatprep.subr.bf16.mxu0 %v6226_v23  ;;  %2760 = vmatprep.subr.bf16.mxu1 %v6229_v24  ;;  %v6295_v23 = vld [vmem:[#allocation2 + $0x9ec] ss:$16 sps:$4 sm:$0xff]   ;;  %v6293_v24 = vld [vmem:[#allocation2 + $0x9e8] ss:$16 sps:$4 sm:$0xff]  }
 0x155   : > { %2710 = vmatpush1.bf16.msra.mxu0 %v6224_v25  ;;  %2761 = vmatpush1.bf16.msra.mxu1 %v6227_v26  ;;  %v2350_v25 = vor.u32 %v2349_v20, %v2346_v55  ;;  %v2358_v26 = vor.u32 %v2357_v22, %v2354_v21  ;;  %v6352_v21 = vld [vmem:[#allocation2 + $0xb20] ss:$16 sps:$4 sm:$0xff]   ;;  %v6363_v22 = vld [vmem:[#allocation2 + $0xb4c] ss:$16 sps:$4 sm:$0xff]  }
 0x156   : > { %2711 = vmatprep.subr.bf16.mxu0 %v6232_v27  ;;  %2762 = vmatprep.subr.bf16.mxu1 %v6235_v28  ;;  %v6300_v27 = vld [vmem:[#allocation2 + $0xa04] ss:$16 sps:$4 sm:$0xff]   ;;  %v6303_v28 = vld [vmem:[#allocation2 + $0xa0c] ss:$16 sps:$4 sm:$0xff]  }
 0x159   : > { %2712 = vmatpush1.bf16.msra.mxu0 %v6230_v29  ;;  %2763 = vmatpush1.bf16.msra.mxu1 %v6233_v30  ;;  %v6298_v29 = vld [vmem:[#allocation2 + $0xa00] ss:$16 sps:$4 sm:$0xff]   ;;  %v6301_v30 = vld [vmem:[#allocation2 + $0xa08] ss:$16 sps:$4 sm:$0xff]  }
 0x15a   : > { %2713 = vmatprep.subr.bf16.mxu0 %v6238_v31  ;;  %2764 = vmatprep.subr.bf16.mxu1 %v6241_v32  ;;  %v2359_v31 = vsel %vm2342_vm3, %v2350_v25, %v2358_v26  ;;  %v6306_v32 = vld [vmem:[#allocation2 + $0xa24] ss:$16 sps:$4 sm:$0xff]   ;;  %v6364_v25 = vld [vmem:[#allocation2 + $0xb60] ss:$16 sps:$4 sm:$0xff]  }
 0x15d   : > { %2714 = vmatpush1.bf16.msra.mxu0 %v6236_v33  ;;  %2765 = vmatpush1.bf16.msra.mxu1 %v6239_v34  ;;  %v6309_v33 = vld [vmem:[#allocation2 + $0xa2c] ss:$16 sps:$4 sm:$0xff]   ;;  %v6304_v34 = vld [vmem:[#allocation2 + $0xa20] ss:$16 sps:$4 sm:$0xff]  }
 0x15e   : > { %2715 = vmatprep.subr.bf16.mxu0 %v6244_v35  ;;  %2766 = vmatprep.subr.bf16.mxu1 %v6247_v37  ;;  %v6307_v35 = vld [vmem:[#allocation2 + $0xa28] ss:$16 sps:$4 sm:$0xff]   ;;  %v6312_v37 = vld [vmem:[#allocation2 + $0xa44] ss:$16 sps:$4 sm:$0xff]  }
 0x15f   : > { %v6985_v43 = vpop.f32.mrb[4].mxu0  ;;  %v6987_v45 = vpop.f32.mrb[4].mxu1 }
 0x160   : > { %v6989_v0 = vpop.f32.mrb[5].mxu0  ;;  %v6991_v46 = vpop.f32.mrb[5].mxu1 }
 0x161   : > { %2716 = vmatpush1.bf16.msra.mxu0 %v6242_v39  ;;  %2767 = vmatpush1.bf16.msra.mxu1 %v6245_v40  ;;  %v751_v48 = vpop.f32.mrb[6].mxu0  ;;  %v802_v7 = vpop.f32.mrb[6].mxu1  ;;  %v6315_v39 = vld [vmem:[#allocation2 + $0xa4c] ss:$16 sps:$4 sm:$0xff]   ;;  %v6310_v40 = vld [vmem:[#allocation2 + $0xa40] ss:$16 sps:$4 sm:$0xff]  }
 0x162   : > { %2717 = vmatprep.subr.bf16.mxu0 %v6250_v41  ;;  %2768 = vmatprep.subr.bf16.mxu1 %v6253_v42  ;;  %v752_v57 = vpop.f32.mrb[7].mxu0  ;;  %v803_v58 = vpop.f32.mrb[7].mxu1  ;;  %v6313_v41 = vld [vmem:[#allocation2 + $0xa48] ss:$16 sps:$4 sm:$0xff]   ;;  %v6318_v42 = vld [vmem:[#allocation2 + $0xa64] ss:$16 sps:$4 sm:$0xff]  }
 0x163   : > { %v7004_v48 = vld [vmem:[%s6885_s20 + $0x10] sm:$0xff]  ;;  %v6327_v57 = vld [vmem:[#allocation2 + $0xa8c] ss:$16 sps:$4 sm:$0xff]  }
 0x164   : > { %v6322_v58 = vld [vmem:[#allocation2 + $0xa80] ss:$16 sps:$4 sm:$0xff]  }
 0x165   : > { %2718 = vmatpush1.bf16.msra.mxu0 %v6248_v47  ;;  %2769 = vmatpush1.bf16.msra.mxu1 %v6251_v38  ;;  %v6321_v47 = vld [vmem:[#allocation2 + $0xa6c] ss:$16 sps:$4 sm:$0xff]  }
 0x166   : > { %2719 = vmatprep.subr.bf16.mxu0 %v6256_v56  ;;  %2770 = vmatprep.subr.bf16.mxu1 %v6259_v53  ;;  %v7001_v38 = vld [vmem:[%s6885_s20 + $0x8] sm:$0xff]  ;;  %v6324_v53 = vld [vmem:[#allocation2 + $0xa84] ss:$16 sps:$4 sm:$0xff]  }
 0x167   : > { %v5426_v7 = vcombine.high %v7001_v38, %v7004_v48  ;;  %v6319_v56 = vld [vmem:[#allocation2 + $0xa68] ss:$16 sps:$4 sm:$0xff]  }
 0x169   : > { %2720 = vmatpush1.bf16.msra.mxu0 %v6254_v59  ;;  %2771 = vmatpush1.bf16.msra.mxu1 %v6257_v60  ;;  %v6325_v59 = vld [vmem:[#allocation2 + $0xa88] ss:$16 sps:$4 sm:$0xff]   ;;  %v6330_v60 = vld [vmem:[#allocation2 + $0xaa4] ss:$16 sps:$4 sm:$0xff]  }
 0x16a   : > { %2721 = vmatprep.subr.bf16.mxu0 %v6262_v36  ;;  %2772 = vmatprep.subr.bf16.mxu1 %v6265_v49  ;;  %v6333_v36 = vld [vmem:[#allocation2 + $0xaac] ss:$16 sps:$4 sm:$0xff]   ;;  %v6328_v49 = vld [vmem:[#allocation2 + $0xaa0] ss:$16 sps:$4 sm:$0xff]  }
 0x16d   : > { %2722 = vmatpush1.bf16.msra.mxu0 %v6260_v51  ;;  %2773 = vmatpush1.bf16.msra.mxu1 %v6263_v62  ;;  %v6331_v51 = vld [vmem:[#allocation2 + $0xaa8] ss:$16 sps:$4 sm:$0xff]   ;;  %v6336_v62 = vld [vmem:[#allocation2 + $0xac4] ss:$16 sps:$4 sm:$0xff]  }
 0x16e   : > { %2723 = vmatprep.subr.bf16.mxu0 %v6268_v63  ;;  %2774 = vmatprep.subr.bf16.mxu1 %v6271_v1  ;;  %v6339_v63 = vld [vmem:[#allocation2 + $0xacc] ss:$16 sps:$4 sm:$0xff]   ;;  %v6334_v1 = vld [vmem:[#allocation2 + $0xac0] ss:$16 sps:$4 sm:$0xff]  }
 0x171   : > { %2724 = vmatpush1.bf16.msra.mxu0 %v6266_v2  ;;  %2775 = vmatpush1.bf16.msra.mxu1 %v6269_v44  ;;  %v6337_v2 = vld [vmem:[#allocation2 + $0xac8] ss:$16 sps:$4 sm:$0xff]   ;;  %v6342_v44 = vld [vmem:[#allocation2 + $0xae4] ss:$16 sps:$4 sm:$0xff]  }
 0x172   : > { %2725 = vmatprep.subr.bf16.mxu0 %v6274_v3  ;;  %2776 = vmatprep.subr.bf16.mxu1 %v6277_v4  ;;  %v6345_v3 = vld [vmem:[#allocation2 + $0xaec] ss:$16 sps:$4 sm:$0xff]   ;;  %v6340_v4 = vld [vmem:[#allocation2 + $0xae0] ss:$16 sps:$4 sm:$0xff]  }
 0x175   : > { %2726 = vmatpush1.bf16.msra.mxu0 %v6272_v5  ;;  %2777 = vmatpush1.bf16.msra.mxu1 %v6275_v6  ;;  %v6343_v5 = vld [vmem:[#allocation2 + $0xae8] ss:$16 sps:$4 sm:$0xff]   ;;  %v6348_v6 = vld [vmem:[#allocation2 + $0xb04] ss:$16 sps:$4 sm:$0xff]  }
 0x176   : > { %2727 = vmatprep.subr.bf16.mxu0 %v6280_v9  ;;  %2778 = vmatprep.subr.bf16.mxu1 %v6283_v10 }
 0x179   : > { %2728 = vmatpush1.bf16.msra.mxu0 %v6278_v11  ;;  %2779 = vmatpush1.bf16.msra.mxu1 %v6281_v50 }
 0x17a   : > { %2729 = vmatprep.subr.bf16.mxu0 %v6286_v16  ;;  %2780 = vmatprep.subr.bf16.mxu1 %v6289_v18  ;;  %v6346_v16 = vld [vmem:[#allocation2 + $0xb00] ss:$16 sps:$4 sm:$0xff]   ;;  %v6349_v18 = vld [vmem:[#allocation2 + $0xb08] ss:$16 sps:$4 sm:$0xff]  }
 0x17d   : > { %2730 = vmatpush1.bf16.msra.mxu0 %v6284_v19  ;;  %2781 = vmatpush1.bf16.msra.mxu1 %v6287_v54  ;;  %v6357_v54 = vld [vmem:[#allocation2 + $0xb2c] ss:$16 sps:$4 sm:$0xff]  }
 0x17e   : > { %2731 = vmatprep.subr.bf16.mxu0 %v6292_v61  ;;  %2782 = vmatprep.subr.bf16.mxu1 %v6295_v23  ;;  %v6358_v61 = vld [vmem:[#allocation2 + $0xb40] ss:$16 sps:$4 sm:$0xff]   ;;  %v6361_v23 = vld [vmem:[#allocation2 + $0xb48] ss:$16 sps:$4 sm:$0xff]  }
 0x181   : > { %2732 = vmatpush1.bf16.msra.mxu0 %v6290_v52  ;;  %2783 = vmatpush1.bf16.msra.mxu1 %v6293_v24  ;;  %v6366_v52 = vld [vmem:[#allocation2 + $0xb64] ss:$16 sps:$4 sm:$0xff]   ;;  %v6369_v24 = vld [vmem:[#allocation2 + $0xb6c] ss:$16 sps:$4 sm:$0xff]  }
 0x182   : > { %3208 = vmatprep.subr.bf16.mxu0 %v6300_v27  ;;  %3259 = vmatprep.subr.bf16.mxu1 %v6303_v28  ;;  %v6372_v27 = vld [vmem:[#allocation2 + $0xb84] ss:$16 sps:$4 sm:$0xff]   ;;  %v6375_v28 = vld [vmem:[#allocation2 + $0xb8c] ss:$16 sps:$4 sm:$0xff]  }
 0x184   : > { %2734 = vmatmul.mubr.bf16.vlgmr.msra.gmra.mrb[0].mxu0 %v2359_v31  ;;  %2785 = vmatmul.mubr.bf16.vlgmr.msra.gmra.mrb[0].mxu1 %v2359_v31  ;;  %v6378_v31 = vld [vmem:[#allocation2 + $0xba4] ss:$16 sps:$4 sm:$0xff]  }
 0x185   : > { %3209 = vmatpush1.bf16.msra.mxu0 %v6298_v29  ;;  %3260 = vmatpush1.bf16.msra.mxu1 %v6301_v30  ;;  %v6370_v29 = vld [vmem:[#allocation2 + $0xb80] ss:$16 sps:$4 sm:$0xff]   ;;  %v6373_v30 = vld [vmem:[#allocation2 + $0xb88] ss:$16 sps:$4 sm:$0xff]  }
 0x186   : > { %3210 = vmatprep.subr.bf16.mxu0 %v6306_v32  ;;  %3261 = vmatprep.subr.bf16.mxu1 %v6309_v33  ;;  %v6381_v32 = vld [vmem:[#allocation2 + $0xbac] ss:$16 sps:$4 sm:$0xff]   ;;  %v6376_v33 = vld [vmem:[#allocation2 + $0xba0] ss:$16 sps:$4 sm:$0xff]  }
 0x187   : > { %2743 = vmatprep.mubr.bf16.mxu0 %v6981_v17  ;;  %2794 = vmatprep.mubr.bf16.mxu1 %v6981_v17  ;;  %v6316_v17 = vld [vmem:[#allocation2 + $0xa60] ss:$16 sps:$4 sm:$0xff]  }
 0x189   : > { %3211 = vmatpush1.bf16.msra.mxu0 %v6304_v34  ;;  %3262 = vmatpush1.bf16.msra.mxu1 %v6307_v35  ;;  %v6379_v34 = vld [vmem:[#allocation2 + $0xba8] ss:$16 sps:$4 sm:$0xff]   ;;  %v6384_v35 = vld [vmem:[#allocation2 + $0xbc4] ss:$16 sps:$4 sm:$0xff]  }
 0x18a   : > { %3212 = vmatprep.subr.bf16.mxu0 %v6312_v37  ;;  %3263 = vmatprep.subr.bf16.mxu1 %v6315_v39  ;;  %v6387_v37 = vld [vmem:[#allocation2 + $0xbcc] ss:$16 sps:$4 sm:$0xff]   ;;  %v6382_v39 = vld [vmem:[#allocation2 + $0xbc0] ss:$16 sps:$4 sm:$0xff]  }
 0x18c   : > { %2744 = vmatmul.mubr.bf16.gmra.mrb[20].mxu0 %v2358_v26  ;;  %2795 = vmatmul.mubr.bf16.gmra.mrb[20].mxu1 %v2358_v26  ;;  %v6367_v26 = vld [vmem:[#allocation2 + $0xb68] ss:$16 sps:$4 sm:$0xff]  }
 0x18d   : > { %3213 = vmatpush1.bf16.msra.mxu0 %v6310_v40  ;;  %3264 = vmatpush1.bf16.msra.mxu1 %v6313_v41  ;;  %v6385_v40 = vld [vmem:[#allocation2 + $0xbc8] ss:$16 sps:$4 sm:$0xff]   ;;  %v6390_v41 = vld [vmem:[#allocation2 + $0xbe4] ss:$16 sps:$4 sm:$0xff]  }
 0x18e   : > { %3214 = vmatprep.subr.bf16.mxu0 %v6318_v42  ;;  %3265 = vmatprep.subr.bf16.mxu1 %v6321_v47  ;;  %v6393_v42 = vld [vmem:[#allocation2 + $0xbec] ss:$16 sps:$4 sm:$0xff]   ;;  %v6388_v47 = vld [vmem:[#allocation2 + $0xbe0] ss:$16 sps:$4 sm:$0xff]  }
 0x18f   : > { %3240 = vmatprep.mubr.bf16.mxu0 %v5426_v7  ;;  %3291 = vmatprep.mubr.bf16.mxu1 %v5426_v7  ;;  %v6391_v7 = vld [vmem:[#allocation2 + $0xbe8] ss:$16 sps:$4 sm:$0xff]  }
 0x191   : > { %3215 = vmatpush1.bf16.msra.mxu0 %v6316_v17  ;;  %3266 = vmatpush1.bf16.msra.mxu1 %v6319_v56  ;;  %v6398_v17 = vld [vmem:[#allocation2 + $0xc04] ss:$16 sps:$4 sm:$0xff]   ;;  %v6401_v56 = vld [vmem:[#allocation2 + $0xc0c] ss:$16 sps:$4 sm:$0xff]  }
 0x192   : > { %3216 = vmatprep.subr.bf16.mxu0 %v6324_v53  ;;  %3267 = vmatprep.subr.bf16.mxu1 %v6327_v57  ;;  %v5425_v53 = vcombine.low %v7001_v38, %v7004_v48  ;;  %v6396_v57 = vld [vmem:[#allocation2 + $0xc00] ss:$16 sps:$4 sm:$0xff]  }
 0x195   : > { %3217 = vmatpush1.bf16.msra.mxu0 %v6322_v58  ;;  %3268 = vmatpush1.bf16.msra.mxu1 %v6325_v59  ;;  %v6399_v58 = vld [vmem:[#allocation2 + $0xc08] ss:$16 sps:$4 sm:$0xff]  }
 0x196   : > { %3218 = vmatprep.subr.bf16.mxu0 %v6330_v60  ;;  %3269 = vmatprep.subr.bf16.mxu1 %v6333_v36  ;;  %v7023_v59 = vld [vmem:[%s6885_s20 + $0x8] sm:$0xcc]  ;;  %v7026_v60 = vld [vmem:[%s6885_s20 + $0x10] sm:$0xff]  ;;  %v7029_v36 = vld [vmem:[%s6885_s20 + $0x20] sm:$0x33] }
 0x197   : > { %v7038_v38 = vcombine.high %v7023_v59, %v7026_v60 }
 0x199   : > { %3219 = vmatpush1.bf16.msra.mxu0 %v6328_v49  ;;  %3270 = vmatpush1.bf16.msra.mxu1 %v6331_v51  ;;  %v6404_v49 = vld [vmem:[#allocation2 + $0xc24] ss:$16 sps:$4 sm:$0xff]   ;;  %v6407_v51 = vld [vmem:[#allocation2 + $0xc2c] ss:$16 sps:$4 sm:$0xff]  }
 0x19a   : > { %3220 = vmatprep.subr.bf16.mxu0 %v6336_v62  ;;  %3271 = vmatprep.subr.bf16.mxu1 %v6339_v63  ;;  %v7032_v62 = vld [vmem:[%s6885_s20 + $0x18] sm:$0xff] }
 0x19b   : > { %v5428_v63 = vcombine.high %v7032_v62, %v7032_v62  ;;  %v5496_v48 = vcombine.high %v7032_v62, %v7029_v36 }
 0x19d   : > { %3221 = vmatpush1.bf16.msra.mxu0 %v6334_v1  ;;  %3272 = vmatpush1.bf16.msra.mxu1 %v6337_v2  ;;  %v6402_v1 = vld [vmem:[#allocation2 + $0xc20] ss:$16 sps:$4 sm:$0xff]   ;;  %v6405_v2 = vld [vmem:[#allocation2 + $0xc28] ss:$16 sps:$4 sm:$0xff]  }
 0x19e   : > { %3222 = vmatprep.subr.bf16.mxu0 %v6342_v44  ;;  %3273 = vmatprep.subr.bf16.mxu1 %v6345_v3  ;;  %v6412_v44 = vld [vmem:[#allocation2 + $0xc44] ss:$16 sps:$4 sm:$0xff]   ;;  %v6415_v3 = vld [vmem:[#allocation2 + $0xc4c] ss:$16 sps:$4 sm:$0xff]  }
 0x19f   : > { %v1175_v9 = vpop.f32.mrb[8].mxu0  ;;  %v1226_v10 = vpop.f32.mrb[8].mxu1 }
 0x1a0   : > { %v7009_v11 = vadd.f32 %v1175_v9, %v6985_v43  ;;  %v7012_v12 = vadd.f32 %v1226_v10, %v6987_v45  ;;  %v1177_v50 = vpop.f32.mrb[9].mxu0  ;;  %v1228_v13 = vpop.f32.mrb[9].mxu1  ;;  %v6354_v43 = vld [vmem:[#allocation2 + $0xb24] ss:$16 sps:$4 sm:$0xff]   ;;  %v6413_v9 = vld [vmem:[#allocation2 + $0xc48] ss:$16 sps:$4 sm:$0xff]  }
 0x1a1   : > { %v7015_v14 = vadd.f32 %v1177_v50, %v6989_v0  ;;  %v7018_v15 = vadd.f32 %v1228_v13, %v6991_v46  ;;  %3223 = vmatpush1.bf16.msra.mxu0 %v6340_v4  ;;  %3274 = vmatpush1.bf16.msra.mxu1 %v6343_v5  ;;  %v1179_v19 = vpop.f32.mrb[10].mxu0  ;;  %v1230_v55 = vpop.f32.mrb[10].mxu1  ;;  %v6355_v0 = vld [vmem:[#allocation2 + $0xb28] ss:$16 sps:$4 sm:$0xff]   ;;  %v6360_v46 = vld [vmem:[#allocation2 + $0xb44] ss:$16 sps:$4 sm:$0xff]   ;;  %v5427_v4 = vcombine.low %v7032_v62, %v7032_v62 }
 0x1a2   : > { %3224 = vmatprep.subr.bf16.mxu0 %v6348_v6  ;;  %3275 = vmatprep.subr.bf16.mxu1 %v6351_v8  ;;  %v1180_v45 = vpop.f32.mrb[11].mxu0  ;;  %v1231_v20 = vpop.f32.mrb[11].mxu1  ;;  %v3411_v5 = vrot.slane %v7038_v38, 2  ;;  %v7045_v6 = vrot.slane %v5496_v48, 2  ;;  %v6410_v8 = vld [vmem:[#allocation2 + $0xc40] ss:$16 sps:$4 sm:$0xff]  }
 0x1a3   : > { %v6418_v10 = vld [vmem:[#allocation2 + $0xc64] ss:$16 sps:$4 sm:$0xff]   ;;  %v6421_v50 = vld [vmem:[#allocation2 + $0xc6c] ss:$16 sps:$4 sm:$0xff]  }
 0x1a4   : > { %v3413_v13 = vsel %vm3407_vm4, %v3411_v5, %v7045_v6  ;;  %v6424_v19 = vld [vmem:[#allocation2 + $0xc84] ss:$16 sps:$4 sm:$0xff]   ;;  %v6427_v55 = vld [vmem:[#allocation2 + $0xc8c] ss:$16 sps:$4 sm:$0xff]   ;;  %v6476_v5 = vld [vmem:[#allocation2 + $0xda0] ss:$16 sps:$4 sm:$0xff]  }
 0x1a5   : > { %3225 = vmatpush1.bf16.msra.mxu0 %v6346_v16  ;;  %3276 = vmatpush1.bf16.msra.mxu1 %v6349_v18  ;;  %v6416_v16 = vld [vmem:[#allocation2 + $0xc60] ss:$16 sps:$4 sm:$0xff]   ;;  %v6419_v18 = vld [vmem:[#allocation2 + $0xc68] ss:$16 sps:$4 sm:$0xff]   ;;  %v6430_v45 = vld [vmem:[#allocation2 + $0xca4] ss:$16 sps:$4 sm:$0xff]  }
 0x1a6   : > { %3226 = vmatprep.subr.bf16.mxu0 %v6354_v43  ;;  %3277 = vmatprep.subr.bf16.mxu1 %v6357_v54  ;;  %v6422_v43 = vld [vmem:[#allocation2 + $0xc80] ss:$16 sps:$4 sm:$0xff]   ;;  %v6425_v54 = vld [vmem:[#allocation2 + $0xc88] ss:$16 sps:$4 sm:$0xff]   ;;  %v6433_v20 = vld [vmem:[#allocation2 + $0xcac] ss:$16 sps:$4 sm:$0xff]  }
 0x1a7   : > { %v6472_v48 = vld [vmem:[#allocation2 + $0xd84] ss:$16 sps:$4 sm:$0xff]  }
 0x1a9   : > { %3227 = vmatpush1.bf16.msra.mxu0 %v6352_v21  ;;  %3278 = vmatpush1.bf16.msra.mxu1 %v6355_v0  ;;  %v6428_v21 = vld [vmem:[#allocation2 + $0xca0] ss:$16 sps:$4 sm:$0xff]   ;;  %v6431_v0 = vld [vmem:[#allocation2 + $0xca8] ss:$16 sps:$4 sm:$0xff]  }
 0x1aa   : > { %3228 = vmatprep.subr.bf16.mxu0 %v6360_v46  ;;  %3279 = vmatprep.subr.bf16.mxu1 %v6363_v22  ;;  %v6436_v46 = vld [vmem:[#allocation2 + $0xcc4] ss:$16 sps:$4 sm:$0xff]   ;;  %v6439_v22 = vld [vmem:[#allocation2 + $0xccc] ss:$16 sps:$4 sm:$0xff]  }
 0x1ad   : > { %3229 = vmatpush1.bf16.msra.mxu0 %v6358_v61  ;;  %3280 = vmatpush1.bf16.msra.mxu1 %v6361_v23  ;;  %v6434_v61 = vld [vmem:[#allocation2 + $0xcc0] ss:$16 sps:$4 sm:$0xff]   ;;  %v6437_v23 = vld [vmem:[#allocation2 + $0xcc8] ss:$16 sps:$4 sm:$0xff]  }
 0x1ae   : > { %3230 = vmatprep.subr.bf16.mxu0 %v6366_v52  ;;  %3281 = vmatprep.subr.bf16.mxu1 %v6369_v24  ;;  %v6442_v52 = vld [vmem:[#allocation2 + $0xce4] ss:$16 sps:$4 sm:$0xff]   ;;  %v6445_v24 = vld [vmem:[#allocation2 + $0xcec] ss:$16 sps:$4 sm:$0xff]  }
 0x1b1   : > { %3231 = vmatpush1.bf16.msra.mxu0 %v6364_v25  ;;  %3282 = vmatpush1.bf16.msra.mxu1 %v6367_v26  ;;  %v6440_v25 = vld [vmem:[#allocation2 + $0xce0] ss:$16 sps:$4 sm:$0xff]   ;;  %v6443_v26 = vld [vmem:[#allocation2 + $0xce8] ss:$16 sps:$4 sm:$0xff]  }
 0x1b2   : > { %3232 = vmatprep.subr.bf16.mxu0 %v6372_v27  ;;  %3283 = vmatprep.subr.bf16.mxu1 %v6375_v28  ;;  %v6448_v27 = vld [vmem:[#allocation2 + $0xd04] ss:$16 sps:$4 sm:$0xff]   ;;  %v6451_v28 = vld [vmem:[#allocation2 + $0xd0c] ss:$16 sps:$4 sm:$0xff]  }
 0x1b5   : > { %3233 = vmatpush1.bf16.msra.mxu0 %v6370_v29  ;;  %3284 = vmatpush1.bf16.msra.mxu1 %v6373_v30 }
 0x1b6   : > { %3234 = vmatprep.subr.bf16.mxu0 %v6378_v31  ;;  %3285 = vmatprep.subr.bf16.mxu1 %v6381_v32 }
 0x1b9   : > { %3235 = vmatpush1.bf16.msra.mxu0 %v6376_v33  ;;  %3286 = vmatpush1.bf16.msra.mxu1 %v6379_v34 }
 0x1ba   : > { %3236 = vmatprep.subr.bf16.mxu0 %v6384_v35  ;;  %3287 = vmatprep.subr.bf16.mxu1 %v6387_v37 }
 0x1bd   : > { %3237 = vmatpush1.bf16.msra.mxu0 %v6382_v39  ;;  %3288 = vmatpush1.bf16.msra.mxu1 %v6385_v40  ;;  %v6446_v39 = vld [vmem:[#allocation2 + $0xd00] ss:$16 sps:$4 sm:$0xff]   ;;  %v6449_v40 = vld [vmem:[#allocation2 + $0xd08] ss:$16 sps:$4 sm:$0xff]  }
 0x1be   : > { %3238 = vmatprep.subr.bf16.mxu0 %v6390_v41  ;;  %3289 = vmatprep.subr.bf16.mxu1 %v6393_v42 }
 0x1c1   : > { %3239 = vmatpush1.bf16.msra.mxu0 %v6388_v47  ;;  %3290 = vmatpush1.bf16.msra.mxu1 %v6391_v7  ;;  %v6457_v47 = vld [vmem:[#allocation2 + $0xd2c] ss:$16 sps:$4 sm:$0xff]  }
 0x1c2   : > { %3738 = vmatprep.subr.bf16.mxu0 %v6398_v17  ;;  %3789 = vmatprep.subr.bf16.mxu1 %v6401_v56  ;;  %v6452_v17 = vld [vmem:[#allocation2 + $0xd20] ss:$16 sps:$4 sm:$0xff]   ;;  %v6463_v56 = vld [vmem:[#allocation2 + $0xd4c] ss:$16 sps:$4 sm:$0xff]  }
 0x1c4   : > { %3241 = vmatmul.mubr.bf16.vlgmr.msra.gmra.mrb[0].mxu0 %v5425_v53  ;;  %3292 = vmatmul.mubr.bf16.vlgmr.msra.gmra.mrb[0].mxu1 %v5425_v53  ;;  %v6458_v53 = vld [vmem:[#allocation2 + $0xd40] ss:$16 sps:$4 sm:$0xff]  }
 0x1c5   : > { %3739 = vmatpush1.bf16.msra.mxu0 %v6396_v57  ;;  %3790 = vmatpush1.bf16.msra.mxu1 %v6399_v58  ;;  %v6461_v57 = vld [vmem:[#allocation2 + $0xd48] ss:$16 sps:$4 sm:$0xff]   ;;  %v6466_v58 = vld [vmem:[#allocation2 + $0xd64] ss:$16 sps:$4 sm:$0xff]  }
 0x1c6   : > { %3740 = vmatprep.subr.bf16.mxu0 %v6404_v49  ;;  %3791 = vmatprep.subr.bf16.mxu1 %v6407_v51  ;;  %v6469_v49 = vld [vmem:[#allocation2 + $0xd6c] ss:$16 sps:$4 sm:$0xff]   ;;  %v6464_v51 = vld [vmem:[#allocation2 + $0xd60] ss:$16 sps:$4 sm:$0xff]  }
 0x1c7   : > { %3250 = vmatprep.mubr.bf16.mxu0 %v5428_v63  ;;  %3301 = vmatprep.mubr.bf16.mxu1 %v5428_v63  ;;  %v6467_v63 = vld [vmem:[#allocation2 + $0xd68] ss:$16 sps:$4 sm:$0xff]  }
 0x1c9   : > { %3741 = vmatpush1.bf16.msra.mxu0 %v6402_v1  ;;  %3792 = vmatpush1.bf16.msra.mxu1 %v6405_v2  ;;  %v6475_v1 = vld [vmem:[#allocation2 + $0xd8c] ss:$16 sps:$4 sm:$0xff]   ;;  %v6470_v2 = vld [vmem:[#allocation2 + $0xd80] ss:$16 sps:$4 sm:$0xff]  }
 0x1ca   : > { %3742 = vmatprep.subr.bf16.mxu0 %v6412_v44  ;;  %3793 = vmatprep.subr.bf16.mxu1 %v6415_v3  ;;  %v6473_v44 = vld [vmem:[#allocation2 + $0xd88] ss:$16 sps:$4 sm:$0xff]   ;;  %v6478_v3 = vld [vmem:[#allocation2 + $0xda4] ss:$16 sps:$4 sm:$0xff]  }
 0x1cc   : > { %3251 = vmatmul.mubr.bf16.gmra.mrb[24].mxu0 %v5427_v4  ;;  %3302 = vmatmul.mubr.bf16.gmra.mrb[24].mxu1 %v5427_v4  ;;  %v6481_v4 = vld [vmem:[#allocation2 + $0xdac] ss:$16 sps:$4 sm:$0xff]  }
 0x1cd   : > { %3743 = vmatpush1.bf16.msra.mxu0 %v6410_v8  ;;  %3794 = vmatpush1.bf16.msra.mxu1 %v6413_v9  ;;  %v6479_v8 = vld [vmem:[#allocation2 + $0xda8] ss:$16 sps:$4 sm:$0xff]   ;;  %v6484_v9 = vld [vmem:[#allocation2 + $0xdc4] ss:$16 sps:$4 sm:$0xff]  }
 0x1ce   : > { %3744 = vmatprep.subr.bf16.mxu0 %v6418_v10  ;;  %3795 = vmatprep.subr.bf16.mxu1 %v6421_v50  ;;  %v6487_v10 = vld [vmem:[#allocation2 + $0xdcc] ss:$16 sps:$4 sm:$0xff]   ;;  %v6482_v50 = vld [vmem:[#allocation2 + $0xdc0] ss:$16 sps:$4 sm:$0xff]  }
 0x1cf   : > { %3770 = vmatprep.mubr.bf16.mxu0 %v3413_v13  ;;  %3821 = vmatprep.mubr.bf16.mxu1 %v3413_v13  ;;  %v6485_v13 = vld [vmem:[#allocation2 + $0xdc8] ss:$16 sps:$4 sm:$0xff]  }
 0x1d1   : > { %3745 = vmatpush1.bf16.msra.mxu0 %v6416_v16  ;;  %3796 = vmatpush1.bf16.msra.mxu1 %v6419_v18  ;;  %v7063_v16 = vcombine.low %v7023_v59, %v7026_v60  ;;  %v5495_v18 = vcombine.low %v7032_v62, %v7029_v36  ;;  %v6500_v36 = vld [vmem:[#allocation2 + $0xe04] ss:$16 sps:$4 sm:$0xff]  }
 0x1d2   : > { %3746 = vmatprep.subr.bf16.mxu0 %v6424_v19  ;;  %3797 = vmatprep.subr.bf16.mxu1 %v6427_v55  ;;  %v7068_v19 = vld [vmem:[%s6885_s20 + $0x20] sm:$0x77] }
 0x1d3   : > { %v6490_v55 = vld [vmem:[#allocation2 + $0xde4] ss:$16 sps:$4 sm:$0xff]   ;;  %v3408_v59 = vrot.slane %v7063_v16, 2 }
 0x1d5   : > { %3747 = vmatpush1.bf16.msra.mxu0 %v6422_v43  ;;  %3798 = vmatpush1.bf16.msra.mxu1 %v6425_v54  ;;  %v6493_v43 = vld [vmem:[#allocation2 + $0xdec] ss:$16 sps:$4 sm:$0xff]   ;;  %v7072_v54 = vcombine.high %v7032_v62, %v7068_v19 }
 0x1d6   : > { %3748 = vmatprep.subr.bf16.mxu0 %v6430_v45  ;;  %3799 = vmatprep.subr.bf16.mxu1 %v6433_v20  ;;  %v6488_v45 = vld [vmem:[#allocation2 + $0xde0] ss:$16 sps:$4 sm:$0xff]   ;;  %v6491_v20 = vld [vmem:[#allocation2 + $0xde8] ss:$16 sps:$4 sm:$0xff]  }
 0x1d9   : > { %3749 = vmatpush1.bf16.msra.mxu0 %v6428_v21  ;;  %3800 = vmatpush1.bf16.msra.mxu1 %v6431_v0  ;;  %v3409_v21 = vrot.slane %v5495_v18, 2  ;;  %v6503_v0 = vld [vmem:[#allocation2 + $0xe0c] ss:$16 sps:$4 sm:$0xff]  }
 0x1da   : > { %3750 = vmatprep.subr.bf16.mxu0 %v6436_v46  ;;  %3801 = vmatprep.subr.bf16.mxu1 %v6439_v22  ;;  %v3942_v46 = vshrl.u32 %v7038_v38, 16  ;;  %v3945_v22 = vshll.u32 %v7038_v38, 16 }
 0x1dd   : > { %3751 = vmatpush1.bf16.msra.mxu0 %v6434_v61  ;;  %3802 = vmatpush1.bf16.msra.mxu1 %v6437_v23  ;;  %v3950_v61 = vshrl.u32 %v7072_v54, 16  ;;  %v3953_v23 = vshll.u32 %v7072_v54, 16 }
 0x1de   : > { %3752 = vmatprep.subr.bf16.mxu0 %v6442_v52  ;;  %3803 = vmatprep.subr.bf16.mxu1 %v6445_v24  ;;  %v3410_v52 = vsel %vm3407_vm4, %v3408_v59, %v3409_v21  ;;  %v6498_v24 = vld [vmem:[#allocation2 + $0xe00] ss:$16 sps:$4 sm:$0xff]  }
 0x1df   : > { %v1679_v29 = vpop.f32.mrb[12].mxu0  ;;  %v1730_v30 = vpop.f32.mrb[12].mxu1  ;;  %v3955_v38 = vrot.slane %v3953_v23, 3  ;;  %v6546_v59 = vld [vmem:[#allocation2 + $0xf00] ss:$16 sps:$4 sm:$0xff]  }
 0x1e0   : > { %v7050_v31 = vadd.f32 %v1679_v29, %v7009_v11  ;;  %v7053_v32 = vadd.f32 %v1730_v30, %v7012_v12  ;;  %v1681_v33 = vpop.f32.mrb[13].mxu0  ;;  %v1732_v34 = vpop.f32.mrb[13].mxu1  ;;  %v6454_v11 = vld [vmem:[#allocation2 + $0xd24] ss:$16 sps:$4 sm:$0xff]   ;;  %v3947_v29 = vrot.slane %v3945_v22, 3  ;;  %v3952_v30 = vrot.slane %v3950_v61, 2 }
 0x1e1   : > { %v7056_v35 = vadd.f32 %v1681_v33, %v7015_v14  ;;  %v7059_v37 = vadd.f32 %v1732_v34, %v7018_v15  ;;  %3753 = vmatpush1.bf16.msra.mxu0 %v6440_v25  ;;  %3804 = vmatpush1.bf16.msra.mxu1 %v6443_v26  ;;  %v1683_v41 = vpop.f32.mrb[14].mxu0  ;;  %v1734_v42 = vpop.f32.mrb[14].mxu1  ;;  %v6455_v14 = vld [vmem:[#allocation2 + $0xd28] ss:$16 sps:$4 sm:$0xff]   ;;  %v6460_v15 = vld [vmem:[#allocation2 + $0xd44] ss:$16 sps:$4 sm:$0xff]  }
 0x1e2   : > { %3754 = vmatprep.subr.bf16.mxu0 %v6448_v27  ;;  %3805 = vmatprep.subr.bf16.mxu1 %v6451_v28  ;;  %v1684_v12 = vpop.f32.mrb[15].mxu0  ;;  %v1735_v7 = vpop.f32.mrb[15].mxu1  ;;  %v6501_v25 = vld [vmem:[#allocation2 + $0xe08] ss:$16 sps:$4 sm:$0xff]   ;;  %v6506_v26 = vld [vmem:[#allocation2 + $0xe24] ss:$16 sps:$4 sm:$0xff]   ;;  %v7082_v42 = vor.u32 %v3955_v38, %v3952_v30 }
 0x1e3   : > { %v6509_v27 = vld [vmem:[#allocation2 + $0xe2c] ss:$16 sps:$4 sm:$0xff]   ;;  %v3944_v28 = vrot.slane %v3942_v46, 2  ;;  %v6504_v33 = vld [vmem:[#allocation2 + $0xe20] ss:$16 sps:$4 sm:$0xff]  }
 0x1e4   : > { %v6507_v34 = vld [vmem:[#allocation2 + $0xe28] ss:$16 sps:$4 sm:$0xff]   ;;  %v6518_v12 = vld [vmem:[#allocation2 + $0xe64] ss:$16 sps:$4 sm:$0xff]   ;;  %v6521_v7 = vld [vmem:[#allocation2 + $0xe6c] ss:$16 sps:$4 sm:$0xff]  }
 0x1e5   : > { %3755 = vmatpush1.bf16.msra.mxu0 %v6446_v39  ;;  %3806 = vmatpush1.bf16.msra.mxu1 %v6449_v40  ;;  %v6512_v39 = vld [vmem:[#allocation2 + $0xe44] ss:$16 sps:$4 sm:$0xff]   ;;  %v6515_v40 = vld [vmem:[#allocation2 + $0xe4c] ss:$16 sps:$4 sm:$0xff]   ;;  %v3948_v41 = vor.u32 %v3947_v29, %v3944_v28  ;;  %v6552_v23 = vld [vmem:[#allocation2 + $0xf20] ss:$16 sps:$4 sm:$0xff]  }
 0x1e6   : > { %3756 = vmatprep.subr.bf16.mxu0 %v6454_v11  ;;  %3807 = vmatprep.subr.bf16.mxu1 %v6457_v47  ;;  %v6510_v11 = vld [vmem:[#allocation2 + $0xe40] ss:$16 sps:$4 sm:$0xff]   ;;  %v6513_v47 = vld [vmem:[#allocation2 + $0xe48] ss:$16 sps:$4 sm:$0xff]   ;;  %v6557_v22 = vld [vmem:[#allocation2 + $0xf2c] ss:$16 sps:$4 sm:$0xff]  }
 0x1e7   : > { %v6564_v28 = vld [vmem:[#allocation2 + $0xf60] ss:$16 sps:$4 sm:$0xff]   ;;  %v6567_v29 = vld [vmem:[#allocation2 + $0xf68] ss:$16 sps:$4 sm:$0xff]   ;;  %v6572_v30 = vld [vmem:[#allocation2 + $0xf84] ss:$16 sps:$4 sm:$0xff]  }
 0x1e8   : > { %v6575_v38 = vld [vmem:[#allocation2 + $0xf8c] ss:$16 sps:$4 sm:$0xff]  }
 0x1e9   : > { %3757 = vmatpush1.bf16.msra.mxu0 %v6452_v17  ;;  %3808 = vmatpush1.bf16.msra.mxu1 %v6455_v14  ;;  %v3957_v17 = vsel %vm3923_vm5, %v3948_v41, %v7082_v42  ;;  %v6519_v14 = vld [vmem:[#allocation2 + $0xe68] ss:$16 sps:$4 sm:$0xff]   ;;  %v6581_v41 = vld [vmem:[#allocation2 + $0xfac] ss:$16 sps:$4 sm:$0xff]  }
 0x1ea   : > { %3758 = vmatprep.subr.bf16.mxu0 %v6460_v15  ;;  %3809 = vmatprep.subr.bf16.mxu1 %v6463_v56  ;;  %v6524_v15 = vld [vmem:[#allocation2 + $0xe84] ss:$16 sps:$4 sm:$0xff]   ;;  %v6527_v56 = vld [vmem:[#allocation2 + $0xe8c] ss:$16 sps:$4 sm:$0xff]  }
 0x1ed   : > { %3759 = vmatpush1.bf16.msra.mxu0 %v6458_v53  ;;  %3810 = vmatpush1.bf16.msra.mxu1 %v6461_v57  ;;  %v6522_v53 = vld [vmem:[#allocation2 + $0xe80] ss:$16 sps:$4 sm:$0xff]   ;;  %v6525_v57 = vld [vmem:[#allocation2 + $0xe88] ss:$16 sps:$4 sm:$0xff]  }
 0x1ee   : > { %3760 = vmatprep.subr.bf16.mxu0 %v6466_v58  ;;  %3811 = vmatprep.subr.bf16.mxu1 %v6469_v49  ;;  %v6530_v58 = vld [vmem:[#allocation2 + $0xea4] ss:$16 sps:$4 sm:$0xff]   ;;  %v6533_v49 = vld [vmem:[#allocation2 + $0xeac] ss:$16 sps:$4 sm:$0xff]  }
 0x1f1   : > { %3761 = vmatpush1.bf16.msra.mxu0 %v6464_v51  ;;  %3812 = vmatpush1.bf16.msra.mxu1 %v6467_v63  ;;  %v6528_v51 = vld [vmem:[#allocation2 + $0xea0] ss:$16 sps:$4 sm:$0xff]   ;;  %v6531_v63 = vld [vmem:[#allocation2 + $0xea8] ss:$16 sps:$4 sm:$0xff]  }
 0x1f2   : > { %3762 = vmatprep.subr.bf16.mxu0 %v6472_v48  ;;  %3813 = vmatprep.subr.bf16.mxu1 %v6475_v1  ;;  %v6536_v48 = vld [vmem:[#allocation2 + $0xec4] ss:$16 sps:$4 sm:$0xff]   ;;  %v6539_v1 = vld [vmem:[#allocation2 + $0xecc] ss:$16 sps:$4 sm:$0xff]  }
 0x1f5   : > { %3763 = vmatpush1.bf16.msra.mxu0 %v6470_v2  ;;  %3814 = vmatpush1.bf16.msra.mxu1 %v6473_v44  ;;  %v6534_v2 = vld [vmem:[#allocation2 + $0xec0] ss:$16 sps:$4 sm:$0xff]   ;;  %v6537_v44 = vld [vmem:[#allocation2 + $0xec8] ss:$16 sps:$4 sm:$0xff]  }
 0x1f6   : > { %3764 = vmatprep.subr.bf16.mxu0 %v6478_v3  ;;  %3815 = vmatprep.subr.bf16.mxu1 %v6481_v4  ;;  %v6542_v3 = vld [vmem:[#allocation2 + $0xee4] ss:$16 sps:$4 sm:$0xff]   ;;  %v6545_v4 = vld [vmem:[#allocation2 + $0xeec] ss:$16 sps:$4 sm:$0xff]  }
 0x1f9   : > { %3765 = vmatpush1.bf16.msra.mxu0 %v6476_v5  ;;  %3816 = vmatpush1.bf16.msra.mxu1 %v6479_v8  ;;  %v6540_v5 = vld [vmem:[#allocation2 + $0xee0] ss:$16 sps:$4 sm:$0xff]   ;;  %v6543_v8 = vld [vmem:[#allocation2 + $0xee8] ss:$16 sps:$4 sm:$0xff]  }
 0x1fa   : > { %3766 = vmatprep.subr.bf16.mxu0 %v6484_v9  ;;  %3817 = vmatprep.subr.bf16.mxu1 %v6487_v10  ;;  %v6548_v9 = vld [vmem:[#allocation2 + $0xf04] ss:$16 sps:$4 sm:$0xff]   ;;  %v6551_v10 = vld [vmem:[#allocation2 + $0xf0c] ss:$16 sps:$4 sm:$0xff]  }
 0x1fd   : > { %3767 = vmatpush1.bf16.msra.mxu0 %v6482_v50  ;;  %3818 = vmatpush1.bf16.msra.mxu1 %v6485_v13 }
 0x1fe   : > { %3768 = vmatprep.subr.bf16.mxu0 %v6490_v55  ;;  %3819 = vmatprep.subr.bf16.mxu1 %v6493_v43 }
 0x201   : > { %3769 = vmatpush1.bf16.msra.mxu0 %v6488_v45  ;;  %3820 = vmatpush1.bf16.msra.mxu1 %v6491_v20 }
 0x202   : > { %4282 = vmatprep.subr.bf16.mxu0 %v6500_v36  ;;  %4333 = vmatprep.subr.bf16.mxu1 %v6503_v0  ;;  %v6549_v36 = vld [vmem:[#allocation2 + $0xf08] ss:$16 sps:$4 sm:$0xff]  }
 0x204   : > { %3771 = vmatmul.mubr.bf16.vlgmr.msra.gmra.mrb[0].mxu0 %v3410_v52  ;;  %3822 = vmatmul.mubr.bf16.vlgmr.msra.gmra.mrb[0].mxu1 %v3410_v52  ;;  %v6563_v52 = vld [vmem:[#allocation2 + $0xf4c] ss:$16 sps:$4 sm:$0xff]  }
 0x205   : > { %4283 = vmatpush1.bf16.msra.mxu0 %v6498_v24  ;;  %4334 = vmatpush1.bf16.msra.mxu1 %v6501_v25  ;;  %v6558_v24 = vld [vmem:[#allocation2 + $0xf40] ss:$16 sps:$4 sm:$0xff]   ;;  %v6561_v25 = vld [vmem:[#allocation2 + $0xf48] ss:$16 sps:$4 sm:$0xff]  }
 0x206   : > { %4284 = vmatprep.subr.bf16.mxu0 %v6506_v26  ;;  %4335 = vmatprep.subr.bf16.mxu1 %v6509_v27  ;;  %v6566_v26 = vld [vmem:[#allocation2 + $0xf64] ss:$16 sps:$4 sm:$0xff]   ;;  %v6569_v27 = vld [vmem:[#allocation2 + $0xf6c] ss:$16 sps:$4 sm:$0xff]  }
 0x207   : > { %3780 = vmatprep.mubr.bf16.mxu0 %v7045_v6  ;;  %3831 = vmatprep.mubr.bf16.mxu1 %v7045_v6  ;;  %v6516_v6 = vld [vmem:[#allocation2 + $0xe60] ss:$16 sps:$4 sm:$0xff]  }
 0x209   : > { %4285 = vmatpush1.bf16.msra.mxu0 %v6504_v33  ;;  %4336 = vmatpush1.bf16.msra.mxu1 %v6507_v34  ;;  %v6570_v33 = vld [vmem:[#allocation2 + $0xf80] ss:$16 sps:$4 sm:$0xff]   ;;  %v6573_v34 = vld [vmem:[#allocation2 + $0xf88] ss:$16 sps:$4 sm:$0xff]  }
 0x20a   : > { %4286 = vmatprep.subr.bf16.mxu0 %v6512_v39  ;;  %4337 = vmatprep.subr.bf16.mxu1 %v6515_v40  ;;  %v7100_v39 = vcombine.low %v7032_v62, %v7068_v19  ;;  %v6578_v40 = vld [vmem:[#allocation2 + $0xfa4] ss:$16 sps:$4 sm:$0xff]   ;;  %v6587_v19 = vld [vmem:[#allocation2 + $0xfcc] ss:$16 sps:$4 sm:$0xff]  }
 0x20b   : > { %v6584_v62 = vld [vmem:[#allocation2 + $0xfc4] ss:$16 sps:$4 sm:$0xff]  }
 0x20c   : > { %3781 = vmatmul.mubr.bf16.gmra.mrb[28].mxu0 %v3409_v21  ;;  %3832 = vmatmul.mubr.bf16.gmra.mrb[28].mxu1 %v3409_v21 }
 0x20d   : > { %4287 = vmatpush1.bf16.msra.mxu0 %v6510_v11  ;;  %4338 = vmatpush1.bf16.msra.mxu1 %v6513_v47  ;;  %v6576_v11 = vld [vmem:[#allocation2 + $0xfa0] ss:$16 sps:$4 sm:$0xff]   ;;  %v6579_v47 = vld [vmem:[#allocation2 + $0xfa8] ss:$16 sps:$4 sm:$0xff]  }
 0x20e   : > { %4288 = vmatprep.subr.bf16.mxu0 %v6518_v12  ;;  %4339 = vmatprep.subr.bf16.mxu1 %v6521_v7  ;;  %v3925_v12 = vshrl.u32 %v7063_v16, 16  ;;  %v3928_v7 = vshll.u32 %v7063_v16, 16  ;;  %v6593_v16 = vld [vmem:[#allocation2 + $0xfec] ss:$16 sps:$4 sm:$0xff]  }
 0x20f   : > { %4314 = vmatprep.mubr.bf16.mxu0 %v3957_v17  ;;  %4365 = vmatprep.mubr.bf16.mxu1 %v3957_v17  ;;  %v3933_v17 = vshrl.u32 %v7100_v39, 16 }
 0x211   : > { %4289 = vmatpush1.bf16.msra.mxu0 %v6516_v6  ;;  %4340 = vmatpush1.bf16.msra.mxu1 %v6519_v14  ;;  %v3936_v6 = vshll.u32 %v7100_v39, 16  ;;  %v6582_v14 = vld [vmem:[#allocation2 + $0xfc0] ss:$16 sps:$4 sm:$0xff]  }
 0x212   : > { %4290 = vmatprep.subr.bf16.mxu0 %v6524_v15  ;;  %4341 = vmatprep.subr.bf16.mxu1 %v6527_v56  ;;  %v6585_v15 = vld [vmem:[#allocation2 + $0xfc8] ss:$16 sps:$4 sm:$0xff]   ;;  %v3927_v56 = vrot.slane %v3925_v12, 2 }
 0x215   : > { %4291 = vmatpush1.bf16.msra.mxu0 %v6522_v53  ;;  %4342 = vmatpush1.bf16.msra.mxu1 %v6525_v57  ;;  %v3930_v53 = vrot.slane %v3928_v7, 3  ;;  %v3935_v57 = vrot.slane %v3933_v17, 2 }
 0x216   : > { %4292 = vmatprep.subr.bf16.mxu0 %v6530_v58  ;;  %4343 = vmatprep.subr.bf16.mxu1 %v6533_v49  ;;  %v3938_v58 = vrot.slane %v3936_v6, 3  ;;  %v6590_v49 = vld [vmem:[#allocation2 + $0xfe4] ss:$16 sps:$4 sm:$0xff]  }
 0x219   : > { %4293 = vmatpush1.bf16.msra.mxu0 %v6528_v51  ;;  %4344 = vmatpush1.bf16.msra.mxu1 %v6531_v63  ;;  %v6588_v51 = vld [vmem:[#allocation2 + $0xfe0] ss:$16 sps:$4 sm:$0xff]   ;;  %v6591_v63 = vld [vmem:[#allocation2 + $0xfe8] ss:$16 sps:$4 sm:$0xff]  }
 0x21a   : > { %4294 = vmatprep.subr.bf16.mxu0 %v6536_v48  ;;  %4345 = vmatprep.subr.bf16.mxu1 %v6539_v1  ;;  %v3931_v48 = vor.u32 %v3930_v53, %v3927_v56  ;;  %v3939_v1 = vor.u32 %v3938_v58, %v3935_v57  ;;  %v6644_v56 = vld [vmem:[#allocation2 + $0x1100] ss:$16 sps:$4 sm:$0xff]   ;;  %v6647_v53 = vld [vmem:[#allocation2 + $0x1108] ss:$16 sps:$4 sm:$0xff]  }
 0x21d   : > { %4295 = vmatpush1.bf16.msra.mxu0 %v6534_v2  ;;  %4346 = vmatpush1.bf16.msra.mxu1 %v6537_v44  ;;  %v6598_v2 = vld [vmem:[#allocation2 + $0x1004] ss:$16 sps:$4 sm:$0xff]   ;;  %v6601_v44 = vld [vmem:[#allocation2 + $0x100c] ss:$16 sps:$4 sm:$0xff]  }
 0x21e   : > { %4296 = vmatprep.subr.bf16.mxu0 %v6542_v3  ;;  %4347 = vmatprep.subr.bf16.mxu1 %v6545_v4  ;;  %v3940_v3 = vsel %vm3923_vm5, %v3931_v48, %v3939_v1  ;;  %v6596_v4 = vld [vmem:[#allocation2 + $0x1000] ss:$16 sps:$4 sm:$0xff]  }
 0x21f   : > { %v2201_v50 = vpop.f32.mrb[16].mxu0  ;;  %v2252_v13 = vpop.f32.mrb[16].mxu1  ;;  %v6656_v48 = vld [vmem:[#allocation2 + $0x1140] ss:$16 sps:$4 sm:$0xff]  }
 0x220   : > { %v7087_v18 = vadd.f32 %v2201_v50, %v7050_v31  ;;  %v7090_v55 = vadd.f32 %v2252_v13, %v7053_v32  ;;  %v2203_v43 = vpop.f32.mrb[17].mxu0  ;;  %v2254_v45 = vpop.f32.mrb[17].mxu1  ;;  %v6554_v31 = vld [vmem:[#allocation2 + $0xf24] ss:$16 sps:$4 sm:$0xff]   ;;  %v6602_v13 = vld [vmem:[#allocation2 + $0x1020] ss:$16 sps:$4 sm:$0xff]  }
 0x221   : > { %v7093_v20 = vadd.f32 %v2203_v43, %v7056_v35  ;;  %v7096_v21 = vadd.f32 %v2254_v45, %v7059_v37  ;;  %4297 = vmatpush1.bf16.msra.mxu0 %v6540_v5  ;;  %4348 = vmatpush1.bf16.msra.mxu1 %v6543_v8  ;;  %v2205_v0 = vpop.f32.mrb[18].mxu0  ;;  %v2256_v46 = vpop.f32.mrb[18].mxu1  ;;  %v6555_v35 = vld [vmem:[#allocation2 + $0xf28] ss:$16 sps:$4 sm:$0xff]   ;;  %v6560_v37 = vld [vmem:[#allocation2 + $0xf44] ss:$16 sps:$4 sm:$0xff]  }
 0x222   : > { %4298 = vmatprep.subr.bf16.mxu0 %v6548_v9  ;;  %4349 = vmatprep.subr.bf16.mxu1 %v6551_v10  ;;  %v2206_v32 = vpop.f32.mrb[19].mxu0  ;;  %v2257_v61 = vpop.f32.mrb[19].mxu1  ;;  %v6599_v5 = vld [vmem:[#allocation2 + $0x1008] ss:$16 sps:$4 sm:$0xff]   ;;  %v6604_v9 = vld [vmem:[#allocation2 + $0x1024] ss:$16 sps:$4 sm:$0xff]  }
 0x223   : > { %v7108_v8 = vld [vmem:[%s6885_s20 + $0x8] sm:$0x88]  ;;  %v6610_v45 = vld [vmem:[#allocation2 + $0x1044] ss:$16 sps:$4 sm:$0xff]   ;;  %v7115_v0 = vrot.slane %v7072_v54, 3 }
 0x224   : > { %v6607_v10 = vld [vmem:[#allocation2 + $0x102c] ss:$16 sps:$4 sm:$0xff]   ;;  %v5628_v50 = vcombine.high %v7108_v8, %v7026_v60  ;;  %v6605_v43 = vld [vmem:[#allocation2 + $0x1028] ss:$16 sps:$4 sm:$0xff]   ;;  %v6608_v46 = vld [vmem:[#allocation2 + $0x1040] ss:$16 sps:$4 sm:$0xff]  }
 0x225   : > { %4299 = vmatpush1.bf16.msra.mxu0 %v6546_v59  ;;  %4350 = vmatpush1.bf16.msra.mxu1 %v6549_v36  ;;  %v6613_v59 = vld [vmem:[#allocation2 + $0x104c] ss:$16 sps:$4 sm:$0xff]   ;;  %v6622_v54 = vld [vmem:[#allocation2 + $0x1084] ss:$16 sps:$4 sm:$0xff]  }
 0x226   : > { %4300 = vmatprep.subr.bf16.mxu0 %v6554_v31  ;;  %4351 = vmatprep.subr.bf16.mxu1 %v6557_v22  ;;  %v4470_v36 = vrot.slane %v5628_v50, 3  ;;  %v6611_v31 = vld [vmem:[#allocation2 + $0x1048] ss:$16 sps:$4 sm:$0xff]   ;;  %v6616_v22 = vld [vmem:[#allocation2 + $0x1064] ss:$16 sps:$4 sm:$0xff]  }
 0x227   : > { %v6619_v32 = vld [vmem:[#allocation2 + $0x106c] ss:$16 sps:$4 sm:$0xff]   ;;  %v6671_v50 = vld [vmem:[#allocation2 + $0x1188] ss:$16 sps:$4 sm:$0xff]  }
 0x228   : > { %v4472_v61 = vsel %vm1826_vm2, %v4470_v36, %v7115_v0  ;;  %v6682_v36 = vld [vmem:[#allocation2 + $0x11c4] ss:$16 sps:$4 sm:$0xff]  }
 0x229   : > { %4301 = vmatpush1.bf16.msra.mxu0 %v6552_v23  ;;  %4352 = vmatpush1.bf16.msra.mxu1 %v6555_v35  ;;  %v6617_v23 = vld [vmem:[#allocation2 + $0x1068] ss:$16 sps:$4 sm:$0xff]   ;;  %v6625_v35 = vld [vmem:[#allocation2 + $0x108c] ss:$16 sps:$4 sm:$0xff]  }
 0x22a   : > { %4302 = vmatprep.subr.bf16.mxu0 %v6560_v37  ;;  %4353 = vmatprep.subr.bf16.mxu1 %v6563_v52  ;;  %v6620_v37 = vld [vmem:[#allocation2 + $0x1080] ss:$16 sps:$4 sm:$0xff]   ;;  %v6623_v52 = vld [vmem:[#allocation2 + $0x1088] ss:$16 sps:$4 sm:$0xff]  }
 0x22d   : > { %4303 = vmatpush1.bf16.msra.mxu0 %v6558_v24  ;;  %4354 = vmatpush1.bf16.msra.mxu1 %v6561_v25  ;;  %v6628_v24 = vld [vmem:[#allocation2 + $0x10a4] ss:$16 sps:$4 sm:$0xff]   ;;  %v6631_v25 = vld [vmem:[#allocation2 + $0x10ac] ss:$16 sps:$4 sm:$0xff]  }
 0x22e   : > { %4304 = vmatprep.subr.bf16.mxu0 %v6566_v26  ;;  %4355 = vmatprep.subr.bf16.mxu1 %v6569_v27  ;;  %v6626_v26 = vld [vmem:[#allocation2 + $0x10a0] ss:$16 sps:$4 sm:$0xff]   ;;  %v6629_v27 = vld [vmem:[#allocation2 + $0x10a8] ss:$16 sps:$4 sm:$0xff]  }
 0x231   : > { %4305 = vmatpush1.bf16.msra.mxu0 %v6564_v28  ;;  %4356 = vmatpush1.bf16.msra.mxu1 %v6567_v29  ;;  %v6634_v28 = vld [vmem:[#allocation2 + $0x10c4] ss:$16 sps:$4 sm:$0xff]   ;;  %v6637_v29 = vld [vmem:[#allocation2 + $0x10cc] ss:$16 sps:$4 sm:$0xff]  }
 0x232   : > { %4306 = vmatprep.subr.bf16.mxu0 %v6572_v30  ;;  %4357 = vmatprep.subr.bf16.mxu1 %v6575_v38  ;;  %v6632_v30 = vld [vmem:[#allocation2 + $0x10c0] ss:$16 sps:$4 sm:$0xff]   ;;  %v6635_v38 = vld [vmem:[#allocation2 + $0x10c8] ss:$16 sps:$4 sm:$0xff]  }
 0x235   : > { %4307 = vmatpush1.bf16.msra.mxu0 %v6570_v33  ;;  %4358 = vmatpush1.bf16.msra.mxu1 %v6573_v34  ;;  %v6640_v33 = vld [vmem:[#allocation2 + $0x10e4] ss:$16 sps:$4 sm:$0xff]   ;;  %v6643_v34 = vld [vmem:[#allocation2 + $0x10ec] ss:$16 sps:$4 sm:$0xff]  }
 0x236   : > { %4308 = vmatprep.subr.bf16.mxu0 %v6578_v40  ;;  %4359 = vmatprep.subr.bf16.mxu1 %v6581_v41  ;;  %v6638_v40 = vld [vmem:[#allocation2 + $0x10e0] ss:$16 sps:$4 sm:$0xff]   ;;  %v6641_v41 = vld [vmem:[#allocation2 + $0x10e8] ss:$16 sps:$4 sm:$0xff]  }
 0x239   : > { %4309 = vmatpush1.bf16.msra.mxu0 %v6576_v11  ;;  %4360 = vmatpush1.bf16.msra.mxu1 %v6579_v47  ;;  %v6646_v11 = vld [vmem:[#allocation2 + $0x1104] ss:$16 sps:$4 sm:$0xff]   ;;  %v6649_v47 = vld [vmem:[#allocation2 + $0x110c] ss:$16 sps:$4 sm:$0xff]  }
 0x23a   : > { %4310 = vmatprep.subr.bf16.mxu0 %v6584_v62  ;;  %4361 = vmatprep.subr.bf16.mxu1 %v6587_v19 }
 0x23d   : > { %4311 = vmatpush1.bf16.msra.mxu0 %v6582_v14  ;;  %4362 = vmatpush1.bf16.msra.mxu1 %v6585_v15 }
 0x23e   : > { %4312 = vmatprep.subr.bf16.mxu0 %v6590_v49  ;;  %4363 = vmatprep.subr.bf16.mxu1 %v6593_v16  ;;  %v6655_v49 = vld [vmem:[#allocation2 + $0x112c] ss:$16 sps:$4 sm:$0xff]  }
 0x241   : > { %4313 = vmatpush1.bf16.msra.mxu0 %v6588_v51  ;;  %4364 = vmatpush1.bf16.msra.mxu1 %v6591_v63  ;;  %v6650_v51 = vld [vmem:[#allocation2 + $0x1120] ss:$16 sps:$4 sm:$0xff]   ;;  %v6661_v63 = vld [vmem:[#allocation2 + $0x114c] ss:$16 sps:$4 sm:$0xff]  }
 0x242   : > { %4797 = vmatprep.subr.bf16.mxu0 %v6598_v2  ;;  %4848 = vmatprep.subr.bf16.mxu1 %v6601_v44  ;;  %v6664_v2 = vld [vmem:[#allocation2 + $0x1164] ss:$16 sps:$4 sm:$0xff]   ;;  %v6667_v44 = vld [vmem:[#allocation2 + $0x116c] ss:$16 sps:$4 sm:$0xff]  }
 0x244   : > { %4315 = vmatmul.mubr.bf16.vlgmr.msra.gmra.mrb[0].mxu0 %v3940_v3  ;;  %4366 = vmatmul.mubr.bf16.vlgmr.msra.gmra.mrb[0].mxu1 %v3940_v3  ;;  %v6662_v3 = vld [vmem:[#allocation2 + $0x1160] ss:$16 sps:$4 sm:$0xff]  }
 0x245   : > { %4798 = vmatpush1.bf16.msra.mxu0 %v6596_v4  ;;  %4849 = vmatpush1.bf16.msra.mxu1 %v6599_v5  ;;  %v6665_v4 = vld [vmem:[#allocation2 + $0x1168] ss:$16 sps:$4 sm:$0xff]   ;;  %v6670_v5 = vld [vmem:[#allocation2 + $0x1184] ss:$16 sps:$4 sm:$0xff]  }
 0x246   : > { %4799 = vmatprep.subr.bf16.mxu0 %v6604_v9  ;;  %4850 = vmatprep.subr.bf16.mxu1 %v6607_v10  ;;  %v6673_v9 = vld [vmem:[#allocation2 + $0x118c] ss:$16 sps:$4 sm:$0xff]   ;;  %v6668_v10 = vld [vmem:[#allocation2 + $0x1180] ss:$16 sps:$4 sm:$0xff]  }
 0x247   : > { %4324 = vmatprep.mubr.bf16.mxu0 %v7082_v42  ;;  %4375 = vmatprep.mubr.bf16.mxu1 %v7082_v42  ;;  %v6614_v42 = vld [vmem:[#allocation2 + $0x1060] ss:$16 sps:$4 sm:$0xff]  }
 0x249   : > { %4800 = vmatpush1.bf16.msra.mxu0 %v6602_v13  ;;  %4851 = vmatpush1.bf16.msra.mxu1 %v6605_v43  ;;  %v6676_v13 = vld [vmem:[#allocation2 + $0x11a4] ss:$16 sps:$4 sm:$0xff]   ;;  %v6679_v43 = vld [vmem:[#allocation2 + $0x11ac] ss:$16 sps:$4 sm:$0xff]  }
 0x24a   : > { %4801 = vmatprep.subr.bf16.mxu0 %v6610_v45  ;;  %4852 = vmatprep.subr.bf16.mxu1 %v6613_v59  ;;  %v6674_v45 = vld [vmem:[#allocation2 + $0x11a0] ss:$16 sps:$4 sm:$0xff]   ;;  %v6677_v59 = vld [vmem:[#allocation2 + $0x11a8] ss:$16 sps:$4 sm:$0xff]  }
 0x24c   : > { %4325 = vmatmul.mubr.bf16.gmra.mrb[32].mxu0 %v3939_v1  ;;  %4376 = vmatmul.mubr.bf16.gmra.mrb[32].mxu1 %v3939_v1  ;;  %v6659_v1 = vld [vmem:[#allocation2 + $0x1148] ss:$16 sps:$4 sm:$0xff]  }
 0x24d   : > { %4802 = vmatpush1.bf16.msra.mxu0 %v6608_v46  ;;  %4853 = vmatpush1.bf16.msra.mxu1 %v6611_v31  ;;  %v6685_v46 = vld [vmem:[#allocation2 + $0x11cc] ss:$16 sps:$4 sm:$0xff]   ;;  %v6680_v31 = vld [vmem:[#allocation2 + $0x11c0] ss:$16 sps:$4 sm:$0xff]  }
 0x24e   : > { %4803 = vmatprep.subr.bf16.mxu0 %v6616_v22  ;;  %4854 = vmatprep.subr.bf16.mxu1 %v6619_v32  ;;  %v6683_v22 = vld [vmem:[#allocation2 + $0x11c8] ss:$16 sps:$4 sm:$0xff]   ;;  %v5627_v32 = vcombine.low %v7108_v8, %v7026_v60 }
 0x24f   : > { %4829 = vmatprep.mubr.bf16.mxu0 %v4472_v61  ;;  %4880 = vmatprep.mubr.bf16.mxu1 %v4472_v61  ;;  %v6688_v61 = vld [vmem:[#allocation2 + $0x11e4] ss:$16 sps:$4 sm:$0xff]  }
 0x251   : > { %4804 = vmatpush1.bf16.msra.mxu0 %v6614_v42  ;;  %4855 = vmatpush1.bf16.msra.mxu1 %v6617_v23  ;;  %v6691_v42 = vld [vmem:[#allocation2 + $0x11ec] ss:$16 sps:$4 sm:$0xff]   ;;  %v6686_v23 = vld [vmem:[#allocation2 + $0x11e0] ss:$16 sps:$4 sm:$0xff]  }
 0x252   : > { %4805 = vmatprep.subr.bf16.mxu0 %v6622_v54  ;;  %4856 = vmatprep.subr.bf16.mxu1 %v6625_v35  ;;  %v6689_v54 = vld [vmem:[#allocation2 + $0x11e8] ss:$16 sps:$4 sm:$0xff]   ;;  %v4467_v35 = vrot.slane %v5627_v32, 3 }
 0x255   : > { %4806 = vmatpush1.bf16.msra.mxu0 %v6620_v37  ;;  %4857 = vmatpush1.bf16.msra.mxu1 %v6623_v52  ;;  %v4468_v37 = vrot.slane %v7100_v39, 3 }
 0x256   : > { %4807 = vmatprep.subr.bf16.mxu0 %v6628_v24  ;;  %4858 = vmatprep.subr.bf16.mxu1 %v6631_v25 }
 0x257   : > { %v4469_v52 = vsel %vm1826_vm2, %v4467_v35, %v4468_v37 }
 0x259   : > { %4808 = vmatpush1.bf16.msra.mxu0 %v6626_v26  ;;  %4859 = vmatpush1.bf16.msra.mxu1 %v6629_v27 }
 0x25a   : > { %4809 = vmatprep.subr.bf16.mxu0 %v6634_v28  ;;  %4860 = vmatprep.subr.bf16.mxu1 %v6637_v29 }
 0x25d   : > { %4810 = vmatpush1.bf16.msra.mxu0 %v6632_v30  ;;  %4861 = vmatpush1.bf16.msra.mxu1 %v6635_v38 }
 0x25e   : > { %4811 = vmatprep.subr.bf16.mxu0 %v6640_v33  ;;  %4862 = vmatprep.subr.bf16.mxu1 %v6643_v34 }
 0x25f   : > { %v2745_v12 = vpop.f32.mrb[20].mxu0  ;;  %v2796_v7 = vpop.f32.mrb[20].mxu1 }
 0x260   : > { %v7120_v17 = vadd.f32 %v2745_v12, %v7087_v18  ;;  %v7123_v6 = vadd.f32 %v2796_v7, %v7090_v55  ;;  %v2747_v62 = vpop.f32.mrb[21].mxu0  ;;  %v2798_v19 = vpop.f32.mrb[21].mxu1  ;;  %v6652_v18 = vld [vmem:[#allocation2 + $0x1124] ss:$16 sps:$4 sm:$0xff]  }
 0x261   : > { %v7126_v14 = vadd.f32 %v2747_v62, %v7093_v20  ;;  %v7129_v15 = vadd.f32 %v2798_v19, %v7096_v21  ;;  %4812 = vmatpush1.bf16.msra.mxu0 %v6638_v40  ;;  %4863 = vmatpush1.bf16.msra.mxu1 %v6641_v41  ;;  %v2749_v57 = vpop.f32.mrb[22].mxu0  ;;  %v2800_v58 = vpop.f32.mrb[22].mxu1  ;;  %v6653_v20 = vld [vmem:[#allocation2 + $0x1128] ss:$16 sps:$4 sm:$0xff]   ;;  %v6658_v21 = vld [vmem:[#allocation2 + $0x1144] ss:$16 sps:$4 sm:$0xff]  }
 0x262   : > { %4813 = vmatprep.subr.bf16.mxu0 %v6646_v11  ;;  %4864 = vmatprep.subr.bf16.mxu1 %v6649_v47  ;;  %v2750_v55 = vpop.f32.mrb[23].mxu0  ;;  %v2801_v16 = vpop.f32.mrb[23].mxu1 }
 0x265   : > { %4814 = vmatpush1.bf16.msra.mxu0 %v6644_v56  ;;  %4865 = vmatpush1.bf16.msra.mxu1 %v6647_v53 }
 0x266   : > { %4815 = vmatprep.subr.bf16.mxu0 %v6652_v18  ;;  %4866 = vmatprep.subr.bf16.mxu1 %v6655_v49 }
 0x269   : > { %4816 = vmatpush1.bf16.msra.mxu0 %v6650_v51  ;;  %4867 = vmatpush1.bf16.msra.mxu1 %v6653_v20 }
 0x26a   : > { %4817 = vmatprep.subr.bf16.mxu0 %v6658_v21  ;;  %4868 = vmatprep.subr.bf16.mxu1 %v6661_v63  ;;  %v4913_v21 = vlaneseq }
 0x26c   : > { %v4914_v63 = vshrl.u32 %v4913_v21, 7 }
 0x26d   : > { %4818 = vmatpush1.bf16.msra.mxu0 %v6656_v48  ;;  %4869 = vmatpush1.bf16.msra.mxu1 %v6659_v1 }
 0x26e   : > { %4819 = vmatprep.subr.bf16.mxu0 %v6664_v2  ;;  %4870 = vmatprep.subr.bf16.mxu1 %v6667_v44  ;;  %v4915_v48 = vsub.s32 0, %v4914_v63  ;;  %v4923_v1 = vsub.s32 2, %v4914_v63  ;;  %v4911_v2 = vld [vmem:[#allocation4] sm:$0xf]  ;;  %v4919_v44 = vsub.s32 1, %v4914_v63 }
 0x271   : > { %4820 = vmatpush1.bf16.msra.mxu0 %v6662_v3  ;;  %4871 = vmatpush1.bf16.msra.mxu1 %v6665_v4  ;;  %v4927_v3 = vsub.s32 3, %v4914_v63  ;;  %v4916_v4 = vrot.slane %v4911_v2, %v4915_v48 }
 0x272   : > { %4821 = vmatprep.subr.bf16.mxu0 %v6670_v5  ;;  %4872 = vmatprep.subr.bf16.mxu1 %v6673_v9  ;;  %v4924_v5 = vrot.slane %v4911_v2, %v4923_v1  ;;  %v4920_v9 = vrot.slane %v4911_v2, %v4919_v44 }
 0x275   : > { %4822 = vmatpush1.bf16.msra.mxu0 %v6668_v10  ;;  %4873 = vmatpush1.bf16.msra.mxu1 %v6671_v50  ;;  %v4928_v10 = vrot.slane %v4911_v2, %v4927_v3 }
 0x276   : > { %4823 = vmatprep.subr.bf16.mxu0 %v6676_v13  ;;  %4874 = vmatprep.subr.bf16.mxu1 %v6679_v43 }
 0x279   : > { %4824 = vmatpush1.bf16.msra.mxu0 %v6674_v45  ;;  %4875 = vmatpush1.bf16.msra.mxu1 %v6677_v59 }
 0x27a   : > { %4825 = vmatprep.subr.bf16.mxu0 %v6682_v36  ;;  %4876 = vmatprep.subr.bf16.mxu1 %v6685_v46 }
 0x27d   : > { %4826 = vmatpush1.bf16.msra.mxu0 %v6680_v31  ;;  %4877 = vmatpush1.bf16.msra.mxu1 %v6683_v22 }
 0x27e   : > { %4827 = vmatprep.subr.bf16.mxu0 %v6688_v61  ;;  %4878 = vmatprep.subr.bf16.mxu1 %v6691_v42 }
 0x281   : > { %4828 = vmatpush1.bf16.msra.mxu0 %v6686_v23  ;;  %4879 = vmatpush1.bf16.msra.mxu1 %v6689_v54 }
 0x284   : > { %4830 = vmatmul.mubr.bf16.vlgmr.msra.gmra.mrb[0].mxu0 %v4469_v52  ;;  %4881 = vmatmul.mubr.bf16.vlgmr.msra.gmra.mrb[0].mxu1 %v4469_v52 }
 0x285   : > { %4839 = vmatprep.mubr.bf16.mxu0 %v7115_v0  ;;  %4890 = vmatprep.mubr.bf16.mxu1 %v7115_v0 }
 0x28c   : > { %4840 = vmatmul.mubr.bf16.gmra.mrb[36].mxu0 %v4468_v37  ;;  %4891 = vmatmul.mubr.bf16.gmra.mrb[36].mxu1 %v4468_v37 }
 0x29f   : > { %v3252_v60 = vpop.f32.mrb[24].mxu0  ;;  %v3303_v8 = vpop.f32.mrb[24].mxu1 }
 0x2a0   : > { %v3318_v24 = vadd.f32 %v3252_v60, %v7120_v17  ;;  %v3320_v39 = vadd.f32 %v3303_v8, %v7123_v6  ;;  %v3254_v25 = vpop.f32.mrb[25].mxu0  ;;  %v3305_v26 = vpop.f32.mrb[25].mxu1 }
 0x2a1   : > { %v3319_v27 = vadd.f32 %v3254_v25, %v7126_v14  ;;  %v3321_v28 = vadd.f32 %v3305_v26, %v7129_v15  ;;  %v3256_v29 = vpop.f32.mrb[26].mxu0  ;;  %v3307_v30 = vpop.f32.mrb[26].mxu1 }
 0x2a2   : > { %v3257_v38 = vpop.f32.mrb[27].mxu0  ;;  %v3308_v33 = vpop.f32.mrb[27].mxu1 }
 0x2df   : > { %v3782_v34 = vpop.f32.mrb[28].mxu0  ;;  %v3833_v0 = vpop.f32.mrb[28].mxu1 }
 0x2e0   : > { %v3848_v40 = vadd.f32 %v3782_v34, %v3318_v24  ;;  %v3850_v41 = vadd.f32 %v3833_v0, %v3320_v39  ;;  %v3784_v11 = vpop.f32.mrb[29].mxu0  ;;  %v3835_v47 = vpop.f32.mrb[29].mxu1 }
 0x2e1   : > { %v3849_v12 = vadd.f32 %v3784_v11, %v3319_v27  ;;  %v3851_v7 = vadd.f32 %v3835_v47, %v3321_v28  ;;  %v3786_v17 = vpop.f32.mrb[30].mxu0  ;;  %v3837_v6 = vpop.f32.mrb[30].mxu1 }
 0x2e2   : > { %v3787_v62 = vpop.f32.mrb[31].mxu0  ;;  %v3838_v19 = vpop.f32.mrb[31].mxu1 }
 0x31f   : > { %v4326_v56 = vpop.f32.mrb[32].mxu0  ;;  %v4377_v14 = vpop.f32.mrb[32].mxu1 }
 0x320   : > { %v4392_v53 = vadd.f32 %v4326_v56, %v3848_v40  ;;  %v4394_v15 = vadd.f32 %v4377_v14, %v3850_v41  ;;  %v4328_v57 = vpop.f32.mrb[33].mxu0  ;;  %v4379_v58 = vpop.f32.mrb[33].mxu1 }
 0x321   : > { %v4393_v18 = vadd.f32 %v4328_v57, %v3849_v12  ;;  %v4395_v49 = vadd.f32 %v4379_v58, %v3851_v7  ;;  %v4330_v55 = vpop.f32.mrb[34].mxu0  ;;  %v4381_v16 = vpop.f32.mrb[34].mxu1 }
 0x322   : > { %v4331_v51 = vpop.f32.mrb[35].mxu0  ;;  %v4382_v20 = vpop.f32.mrb[35].mxu1 }
 0x357   : > { %v4831_v50 = vpop.f32.mrb[0].mxu0  ;;  %v4882_v13 = vpop.f32.mrb[0].mxu1 }
 0x358   : > { %v4933_v43 = vadd.f32 %v4916_v4, %v4831_v50  ;;  %v4935_v45 = vadd.f32 %v4924_v5, %v4882_v13  ;;  %v4833_v59 = vpop.f32.mrb[1].mxu0  ;;  %v4884_v36 = vpop.f32.mrb[1].mxu1 }
 0x359   : > { %v4934_v46 = vadd.f32 %v4920_v9, %v4833_v59  ;;  %v4936_v31 = vadd.f32 %v4928_v10, %v4884_v36  ;;  %v4835_v22 = vpop.f32.mrb[2].mxu0  ;;  %v4886_v32 = vpop.f32.mrb[2].mxu1 }
 0x35a   : > { %v4945_v61 = vmax.f32 %v4933_v43, 0.0  ;;  %v4947_v42 = vmax.f32 %v4935_v45, 0.0  ;;  %v4937_v23 = vadd.f32 %v4916_v4, %v4835_v22  ;;  %v4939_v54 = vadd.f32 %v4924_v5, %v4886_v32  ;;  %v4837_v35 = vpop.f32.mrb[3].mxu0  ;;  %v4888_v37 = vpop.f32.mrb[3].mxu1 }
 0x35b   : > { %v4946_v52 = vmax.f32 %v4934_v46, 0.0  ;;  %v4948_v60 = vmax.f32 %v4936_v31, 0.0  ;;  %v4938_v8 = vadd.f32 %v4920_v9, %v4837_v35  ;;  %v4940_v24 = vadd.f32 %v4928_v10, %v4888_v37 }
 0x35c   : > { %v4949_v39 = vmax.f32 %v4937_v23, 0.0  ;;  %v4951_v25 = vmax.f32 %v4939_v54, 0.0 }
 0x35d   : > { %v5701_v26 = vpack.c.bf16 %v4946_v52, %v4945_v61  ;;  %v5702_v27 = vpack.c.bf16 %v4948_v60, %v4947_v42  ;;  %v4950_v28 = vmax.f32 %v4938_v8, 0.0  ;;  %v4952_v29 = vmax.f32 %v4940_v24, 0.0 }
 0x35f   : > { %4997 = vst [vmem:[%s7145_s13] sm:$0xff] %v5701_v26  ;;  %4998 = vst [vmem:[%s7145_s13 + $0x8] sm:$0xff] %v5702_v27  ;;  %v5703_v30 = vpack.c.bf16 %v4950_v28, %v4949_v39  ;;  %v5704_v38 = vpack.c.bf16 %v4952_v29, %v4951_v25  ;;  %v4841_v33 = vpop.f32.mrb[36].mxu0  ;;  %v4892_v34 = vpop.f32.mrb[36].mxu1 }
 0x360   : > { %v4907_v0 = vadd.f32 %v4841_v33, %v4392_v53  ;;  %v4909_v40 = vadd.f32 %v4892_v34, %v4394_v15  ;;  %v4843_v41 = vpop.f32.mrb[37].mxu0  ;;  %v4894_v11 = vpop.f32.mrb[37].mxu1 }
 0x361   : > { %4999 = vst [vmem:[%s7145_s13 + $0x10] sm:$0xff] %v5703_v30  ;;  %5000 = vst [vmem:[%s7145_s13 + $0x18] sm:$0xff] %v5704_v38  ;;  %v4908_v47 = vadd.f32 %v4843_v41, %v4393_v18  ;;  %v4910_v12 = vadd.f32 %v4894_v11, %v4395_v49  ;;  %v4845_v7 = vpop.f32.mrb[38].mxu0  ;;  %v4896_v17 = vpop.f32.mrb[38].mxu1 }
 0x362   : > { %v4941_v6 = vadd.f32 %v4916_v4, %v4907_v0  ;;  %v4943_v62 = vadd.f32 %v4924_v5, %v4909_v40  ;;  %v4846_v19 = vpop.f32.mrb[39].mxu0  ;;  %v4897_v56 = vpop.f32.mrb[39].mxu1 }
 0x363   : > { %v4942_v14 = vadd.f32 %v4920_v9, %v4908_v47  ;;  %v4944_v57 = vadd.f32 %v4928_v10, %v4910_v12 }
 0x364   : > { %v4953_v58 = vmax.f32 %v4941_v6, 0.0  ;;  %v4955_v55 = vmax.f32 %v4943_v62, 0.0 }
 0x365   : > { %v4954_v53 = vmax.f32 %v4942_v14, 0.0  ;;  %v4956_v15 = vmax.f32 %v4944_v57, 0.0 }
 0x367   : > { %v5705_v16 = vpack.c.bf16 %v4954_v53, %v4953_v58  ;;  %v5706_v51 = vpack.c.bf16 %v4956_v15, %v4955_v55 }
 0x369   : > { %5001 = vst [vmem:[%s7145_s13 + $0x20] sm:$0xff] %v5705_v16  ;;  %5002 = vst [vmem:[%s7145_s13 + $0x28] sm:$0xff] %v5706_v51 }
 0x36a PF: > { %s15_s12 = sadd.s32 1, %s6769_s12  }
 0x36b   : > { %p12_p9 = scmp.ge.s32.totalorder %s15_s12, 4  }
 0x36d   :  { %14 = sbr.rel (!%p12_p9) target bundleno = 2 (0x2), region = 79 }
 0x374   :  { %5024 = vsyncpa [#allocation3], 1 }
 0x375   :  { %5026 = vsyncpa [#allocation3 + $0x1], 1 }
 0x376   :  { %5027 = vsyncpa [#allocation5], 1 }

// kernel: generator_forward.7
= control target key start
LH: loop header
LB: loop body
LE: loop exit
PB: predicated region body
PF: predicated region fallthrough
CT: control target
= control target key end

     0   :  { %s5493_s12 = smov 0   ;;  %s6514_s0 = inlined_call_operand.vmem [shape: bf16[2,326,64], index: 0, kind: input, shape index: {}]   ;;  %s6515_s1 = inlined_call_operand.vmem [shape: bf16[9,64,12], index: 1, kind: input, shape index: {}]   ;;  %s6516_s2 = inlined_call_operand.vmem [shape: f32[1,12], index: 2, kind: input, shape index: {}]   ;;  %s6517_s3 = inlined_call_operand.vmem [shape: f32[2,288,12], index: 3, kind: output, shape index: {}]  }
   0x1 LB: > { %s4042_s13 = sadd.s32 4294967295, %s5471_s12   ;;  %p4046_p0 = scmp.ge.s32.totalorder %s5471_s12, 1  ;;  %s5471_s12 = sphi %s5493_s12, %s13_s12  }
   0x2   : > { %p137_p1 = scmp.lt.s32.totalorder %s5471_s12, 3 }
   0x4   : > { %p138_p2 = pnand %p4046_p0, %p137_p1 }
   0x5   : > { %v5276_v0 = vld [vmem:[%s6515_s1 + $0x20] sm:$0xff] (!%p138_p2)   ;;  %p161_p3 = scmp.lt.s32.totalorder (!%p138_p2), %s4042_s13, 1  ;;  %v5278_v2 = vld [vmem:[%s6515_s1 + $0x28] sm:$0xff] (!%p138_p2)   ;;  %v5280_v4 = vld [vmem:[%s6515_s1 + $0x30] sm:$0xff] (!%p138_p2)   ;;  %vm492_vm0 = vcmask (!%p138_p2), 523264   ;;  %vm2258_vm3 = vcmask (!%p138_p2), 1045504  }
   0x6   : > { %141 = sbr.rel (%p138_p2) target bundleno = 581 (0x245), region = 32  ;;  %v5277_v1 = vld [vmem:[%s6515_s1 + $0x80] sm:$0xff] (!%p138_p2)   ;;  %4574 = vmatprep.subr.bf16.mxu1 (!%p138_p2), %v5276_v0  ;;  %v5279_v3 = vld [vmem:[%s6515_s1 + $0x88] sm:$0xff] (!%p138_p2)   ;;  %v5281_v5 = vld [vmem:[%s6515_s1 + $0x90] sm:$0xff] (!%p138_p2)   ;;  %vm319_vm1 = vsmask.f32 (!%p138_p2), 7424 }
   0x7   : > { %4750 = vmatprep.subr.bf16.mxu0 (!%p138_p2), %v5277_v1  ;;  %4575 = vmatpush3.bf16.msra.mxu1 (!%p138_p2), %v5276_v0  ;;  %v5282_v6 = vld [vmem:[%s6515_s1 + $0x38] sm:$0xff] (!%p138_p2)   ;;  %vm1783_vm2 = vsmask.f32 (!%p138_p2), 6400  ;;  %v5290_v38 = vld [vmem:[%s6515_s1 + $0xa0] sm:$0xff] (!%p138_p2)   ;;  %v5296_v61 = vld [vmem:[%s6515_s1 + $0xa8] sm:$0xff] (!%p138_p2)   ;;  %vm974_vm4 = vcmask (!%p138_p2), 1046528  }
   0x8   : > { %4751 = vmatpush3.bf16.msra.mxu0 (!%p138_p2), %v5277_v1  ;;  %4576 = vmatprep.subr.bf16.mxu1 (!%p138_p2), %v5278_v2  ;;  %v5283_v7 = vld [vmem:[%s6515_s1 + $0x98] sm:$0xff] (!%p138_p2)   ;;  %v5294_v56 = vld [vmem:[%s6515_s1] sm:$0xff] (!%p138_p2)   ;;  %vm3067_vm5 = vsmask.f32 (!%p138_p2), 5376  ;;  %vm3542_vm6 = vcmask (!%p138_p2), 1044480   ;;  %vm3950_vm7 = vcmask (!%p138_p2), 97280  }
   0x9   : > { %4752 = vmatprep.subr.bf16.mxu0 (!%p138_p2), %v5279_v3 }
   0xb   : > { %4577 = vmatpush3.bf16.msra.mxu1 (!%p138_p2), %v5278_v2 }
   0xc   : > { %4753 = vmatpush3.bf16.msra.mxu0 (!%p138_p2), %v5279_v3  ;;  %4578 = vmatprep.subr.bf16.mxu1 (!%p138_p2), %v5280_v4 }
   0xd   : > { %s6519_s13 = smov (!%p161_p3, %s4042_s13), 1  ;;  %4754 = vmatprep.subr.bf16.mxu0 %v5281_v5 }
   0xe   : > { %s5266_s24 = smul.u32 164, %s6519_s13 }
   0xf   : > { %4579 = vmatpush3.bf16.msra.mxu1 %v5280_v4  ;;  %s5267_s26 = smul.u32 288, %s6519_s13 }
  0x10   : > { %s5528_s4 = scalar_lea.vmem %s6514_s0, %s5266_s24  ;;  %4755 = vmatpush3.bf16.msra.mxu0 %v5281_v5  ;;  %4580 = vmatprep.subr.bf16.mxu1 %v5282_v6 }
  0x11   : > { %v172_v8 = vld [vmem:[%s5528_s4] sm:$0xf]  ;;  %v173_v9 = vld [vmem:[%s5528_s4 + $0x4] sm:$0xf]  ;;  %v5538_v11 = vld [vmem:[%s5528_s4 + $0x8] sm:$0xff]   ;;  %4756 = vmatprep.subr.bf16.mxu0 %v5283_v7  ;;  %s6399_s29 = scalar_lea.vmem %s6517_s3, %s5267_s26 }
  0x12   : > { %v5535_v10 = vcombine.low %v172_v8, %v173_v9  ;;  %v5541_v12 = vld [vmem:[%s5528_s4 + $0x10] sm:$0xff]   ;;  %v1303_v13 = vld [vmem:[%s5528_s4 + $0x8] sm:$0xe]  ;;  %v5545_v14 = vld [vmem:[%s5528_s4 + $0xc] sm:$0xf]  ;;  %v328_v17 = vshll.u32 %v5538_v11, 16 }
  0x13   : > { %v332_v18 = vshrl.u32 %v5538_v11, 16  ;;  %v5552_v19 = vcombine.low %v1303_v13, %v5545_v14  ;;  %v1793_v20 = vshrl.u32 %v5541_v12, 16  ;;  %v1796_v21 = vshll.u32 %v5541_v12, 16  ;;  %v5557_v24 = vld [vmem:[%s5528_s4 + $0x10] sm:$0xff]   ;;  %v5560_v25 = vld [vmem:[%s5528_s4 + $0x18] sm:$0xff]   ;;  %4581 = vmatpush3.bf16.msra.mxu1 %v5282_v6  ;;  %v5577_v46 = vld [vmem:[%s5528_s4 + $0x20] sm:$0xff]  }
  0x14   : > { %v321_v15 = vshrl.u32 %v5535_v10, 16  ;;  %v323_v16 = vshll.u32 %v5535_v10, 16  ;;  %v330_v23 = vrot.slane %v328_v17, 1  ;;  %v336_v32 = vshll.u32 %v5557_v24, 16  ;;  %4757 = vmatpush3.bf16.msra.mxu0 %v5283_v7  ;;  %v5573_v44 = vld [vmem:[%s5528_s4 + $0x18] sm:$0xff]   ;;  %v5584_v52 = vld [vmem:[%s5528_s4 + $0x20] sm:$0xff]   ;;  %4618 = vmatprep.subr.bf16.mxu1 %v5294_v56 }
  0x15   : > { %v1785_v26 = vshrl.u32 %v5552_v19, 16  ;;  %v1788_v27 = vshll.u32 %v5552_v19, 16  ;;  %v1795_v28 = vrot.slane %v1793_v20, 1  ;;  %v1798_v29 = vrot.slane %v1796_v21, 2  ;;  %4794 = vmatprep.subr.bf16.mxu0 %v5290_v38  ;;  %v5596_v60 = vld [vmem:[%s5528_s4 + $0x28] sm:$0xff]   ;;  %v5611_v8 = vld [vmem:[%s5528_s4 + $0x30] sm:$0xff]  }
  0x16   : > { %v325_v22 = vrot.slane %v323_v16, 1  ;;  %v334_v31 = vor.u32 %v332_v18, %v330_v23  ;;  %v1802_v33 = vshrl.u32 %v5560_v25, 16  ;;  %v1805_v37 = vshll.u32 %v5560_v25, 16  ;;  %v5607_v6 = vld [vmem:[%s5528_s4 + $0x28] sm:$0xff]  }
  0x17   : > { %v1787_v34 = vrot.slane %v1785_v26, 1  ;;  %v1790_v35 = vrot.slane %v1788_v27, 2  ;;  %v1799_v36 = vor.u32 %v1798_v29, %v1795_v28  ;;  %v338_v40 = vrot.slane %v336_v32, 1  ;;  %v5626_v29 = vld [vmem:[%s5528_s4 + $0x38] sm:$0xff]  }
  0x18   : > { %v326_v30 = vor.u32 %v325_v22, %v321_v15  ;;  %v1804_v41 = vrot.slane %v1802_v33, 1  ;;  %v1807_v43 = vrot.slane %v1805_v37, 2  ;;  %v340_v45 = vshrl.u32 %v5557_v24, 16  ;;  %v5615_v15 = vld [vmem:[%s5528_s4 + $0x30] sm:$0xff]  }
  0x19   : > { %v1791_v42 = vor.u32 %v1790_v35, %v1787_v34  ;;  %v339_v47 = vsel %vm319_vm1, %v334_v31, %v338_v40  ;;  %v344_v51 = vshll.u32 %v5573_v44, 16  ;;  %v1811_v53 = vshrl.u32 %v5577_v46, 16  ;;  %v5301_v33 = vld [vmem:[%s6515_s1 + $0xb0] sm:$0xff]  }
  0x1a   : > { %v331_v39 = vsel %vm319_vm1, %v326_v30, %v330_v23  ;;  %v1808_v49 = vor.u32 %v1807_v43, %v1804_v41  ;;  %v342_v50 = vor.u32 %v340_v45, %v338_v40  ;;  %v1814_v54 = vshll.u32 %v5577_v46, 16  ;;  %v5645_v43 = vld [vmem:[%s5528_s4 + $0x40] sm:$0xff]  }
  0x1b   : > { %4582 = vmatprep.mubr.msk.bf16.mxu1 %vm492_vm0, %v331_v39  ;;  %v1800_v48 = vsel %vm1783_vm2, %v1791_v42, %v1799_v36  ;;  %v348_v55 = vshrl.u32 %v5573_v44, 16  ;;  %v346_v58 = vrot.slane %v344_v51, 1  ;;  %v352_v59 = vshll.u32 %v5584_v52, 16  ;;  %v5642_v42 = vld [vmem:[%s5528_s4 + $0x40] sm:$0xff]  }
  0x1c   : > { %4583 = vmatmul.mubr.msk.bf16.vlgmr.msra.gmra.mrb[0].mxu1 %vm492_vm0, %v339_v47  ;;  %4758 = vmatprep.mubr.msk.bf16.mxu0 %vm492_vm0, %v1800_v48  ;;  %v1809_v57 = vsel %vm1783_vm2, %v1799_v36, %v1808_v49  ;;  %v1813_v62 = vrot.slane %v1811_v53, 1  ;;  %v1816_v63 = vrot.slane %v1814_v54, 2  ;;  %v1820_v3 = vshrl.u32 %v5596_v60, 16 }
  0x1d   : > { %4759 = vmatmul.mubr.msk.bf16.vlgmr.msra.gmra.mrb[0].mxu0 %vm492_vm0, %v1809_v57  ;;  %v347_v0 = vsel %vm319_vm1, %v342_v50, %v346_v58  ;;  %v350_v1 = vor.u32 %v348_v55, %v346_v58  ;;  %v354_v2 = vrot.slane %v352_v59, 1  ;;  %4619 = vmatpush3.bf16.msra.mxu1 %v5294_v56  ;;  %v1823_v5 = vshll.u32 %v5596_v60, 16  ;;  %v5656_v58 = vld [vmem:[%s5528_s4 + $0x48] sm:$0xff]  }
  0x1e   : > { %4795 = vmatpush3.bf16.msra.mxu0 %v5290_v38  ;;  %4586 = vmatprep.mubr.msk.bf16.mxu1 %vm492_vm0, %v347_v0  ;;  %v1817_v4 = vor.u32 %v1816_v63, %v1813_v62  ;;  %v356_v7 = vshrl.u32 %v5584_v52, 16  ;;  %v1822_v13 = vrot.slane %v1820_v3, 1  ;;  %v360_v20 = vshll.u32 %v5607_v6, 16  ;;  %v5635_v38 = vld [vmem:[%s5528_s4 + $0x38] sm:$0xff]   ;;  %v5306_v59 = vld [vmem:[%s6515_s1 + $0x8] sm:$0xff]  }
  0x1f   : > { %4796 = vmatprep.subr.bf16.mxu0 %v5296_v61  ;;  %v355_v9 = vsel %vm319_vm1, %v350_v1, %v354_v2  ;;  %v1825_v17 = vrot.slane %v1823_v5, 2  ;;  %v1829_v21 = vshrl.u32 %v5611_v8, 16  ;;  %v1832_v22 = vshll.u32 %v5611_v8, 16  ;;  %v5307_v63 = vld [vmem:[%s6515_s1 + $0xb8] sm:$0xff]   ;;  %4620 = vmatprep.subr.bf16.mxu1 %v5306_v59 }
  0x20   : > { %v1818_v16 = vsel %vm1783_vm2, %v1808_v49, %v1817_v4  ;;  %v358_v18 = vor.u32 %v356_v7, %v354_v2  ;;  %v364_v23 = vshrl.u32 %v5607_v6, 16  ;;  %v368_v26 = vshll.u32 %v5615_v15, 16 }
  0x21   : > { %4762 = vmatprep.mubr.msk.bf16.mxu0 %vm492_vm0, %v1818_v16  ;;  %v1826_v27 = vor.u32 %v1825_v17, %v1822_v13  ;;  %v362_v28 = vrot.slane %v360_v20, 1  ;;  %v1831_v30 = vrot.slane %v1829_v21, 1  ;;  %v1834_v31 = vrot.slane %v1832_v22, 2  ;;  %4621 = vmatpush3.bf16.msra.mxu1 %v5306_v59  ;;  %v5671_v13 = vld [vmem:[%s5528_s4 + $0x48] sm:$0xff]   ;;  %v5677_v21 = vld [vmem:[%s5528_s4 + $0x50] sm:$0xff]  }
  0x22   : > { %4797 = vmatpush3.bf16.msra.mxu0 %v5296_v61  ;;  %v370_v32 = vrot.slane %v368_v26, 1  ;;  %v1838_v37 = vshrl.u32 %v5626_v29, 16  ;;  %v1841_v40 = vshll.u32 %v5626_v29, 16  ;;  %v372_v41 = vshrl.u32 %v5615_v15, 16  ;;  %v5680_v22 = vld [vmem:[%s5528_s4 + $0x50] sm:$0xff]  }
  0x23   : > { %v1827_v34 = vsel %vm1783_vm2, %v1817_v4, %v1826_v27  ;;  %v363_v35 = vsel %vm319_vm1, %v358_v18, %v362_v28  ;;  %v366_v36 = vor.u32 %v364_v23, %v362_v28  ;;  %v1835_v39 = vor.u32 %v1834_v31, %v1831_v30  ;;  %4798 = vmatprep.subr.bf16.mxu0 %v5301_v33 }
  0x24   : > { %4587 = vmatmul.mubr.msk.bf16.gmra.mrb[4].mxu1 %vm492_vm0, %v355_v9  ;;  %v1840_v47 = vrot.slane %v1838_v37, 1  ;;  %v376_v48 = vshll.u32 %v5635_v38, 16  ;;  %v1843_v50 = vrot.slane %v1841_v40, 2  ;;  %v374_v51 = vor.u32 %v372_v41, %v370_v32 }
  0x25   : > { %4763 = vmatmul.mubr.msk.bf16.gmra.mrb[4].mxu0 %vm492_vm0, %v1827_v34  ;;  %4590 = vmatprep.mubr.msk.bf16.mxu1 %vm492_vm0, %v363_v35  ;;  %v371_v45 = vsel %vm319_vm1, %v366_v36, %v370_v32  ;;  %v1836_v49 = vsel %vm1783_vm2, %v1826_v27, %v1835_v39  ;;  %v1847_v53 = vshrl.u32 %v5642_v42, 16  ;;  %v1850_v55 = vshll.u32 %v5642_v42, 16  ;;  %v5690_v34 = vld [vmem:[%s5528_s4 + $0x58] sm:$0xff]  }
  0x26   : > { %4799 = vmatpush3.bf16.msra.mxu0 %v5301_v33  ;;  %4766 = vmatprep.mubr.msk.bf16.mxu0 %vm492_vm0, %v1836_v49  ;;  %v378_v54 = vrot.slane %v376_v48, 1  ;;  %v380_v56 = vshrl.u32 %v5635_v38, 16  ;;  %v384_v57 = vshll.u32 %v5645_v43, 16  ;;  %v1844_v61 = vor.u32 %v1843_v50, %v1840_v47  ;;  %v5693_v36 = vld [vmem:[%s5528_s4 + $0x58] sm:$0xff]   ;;  %v5699_v47 = vld [vmem:[%s5528_s4 + $0x60] sm:$0xff]  }
  0x27   : > { %v1849_v62 = vrot.slane %v1847_v53, 1  ;;  %v1852_v1 = vrot.slane %v1850_v55, 2  ;;  %v1856_v5 = vshrl.u32 %v5656_v58, 16  ;;  %v1859_v7 = vshll.u32 %v5656_v58, 16  ;;  %4800 = vmatprep.subr.bf16.mxu0 %v5307_v63 }
  0x28   : > { %v379_v0 = vsel %vm319_vm1, %v374_v51, %v378_v54  ;;  %v382_v2 = vor.u32 %v380_v56, %v378_v54  ;;  %v386_v3 = vrot.slane %v384_v57, 1  ;;  %v1845_v4 = vsel %vm1783_vm2, %v1835_v39, %v1844_v61 }
  0x29   : > { %v1853_v9 = vor.u32 %v1852_v1, %v1849_v62  ;;  %v388_v16 = vshrl.u32 %v5645_v43, 16  ;;  %v1858_v18 = vrot.slane %v1856_v5, 1  ;;  %v1861_v20 = vrot.slane %v1859_v7, 2  ;;  %v5315_v62 = vld [vmem:[%s6515_s1 + $0xc0] sm:$0xff]  }
  0x2a   : > { %v387_v17 = vsel %vm319_vm1, %v382_v2, %v386_v3  ;;  %v392_v27 = vshll.u32 %v5671_v13, 16  ;;  %4801 = vmatpush3.bf16.msra.mxu0 %v5307_v63  ;;  %v396_v28 = vshrl.u32 %v5671_v13, 16  ;;  %v1865_v31 = vshrl.u32 %v5677_v21, 16 }
  0x2b   : > { %v1854_v23 = vsel %vm1783_vm2, %v1844_v61, %v1853_v9  ;;  %v390_v26 = vor.u32 %v388_v16, %v386_v3  ;;  %v1862_v30 = vor.u32 %v1861_v20, %v1858_v18  ;;  %v1868_v32 = vshll.u32 %v5677_v21, 16  ;;  %v5719_v3 = vld [vmem:[%s5528_s4 + $0x68] sm:$0xff]   ;;  %4838 = vmatprep.subr.bf16.mxu0 %v5315_v62  ;;  %v5731_v20 = vld [vmem:[%s5528_s4 + $0x70] sm:$0xff]  }
  0x2c   : > { %4591 = vmatmul.mubr.msk.bf16.gmra.mrb[8].mxu1 %vm492_vm0, %v371_v45  ;;  %v400_v33 = vshll.u32 %v5680_v22, 16  ;;  %v394_v35 = vrot.slane %v392_v27, 1  ;;  %v1867_v39 = vrot.slane %v1865_v31, 1  ;;  %v2245_v45 = vld [vmem:[%s5528_s4 + $0x8] sm:$0xc]  ;;  %v1874_v50 = vshrl.u32 %v5690_v34, 16 }
  0x2d   : > { %4594 = vmatprep.mubr.msk.bf16.mxu1 %vm492_vm0, %v379_v0  ;;  %4767 = vmatmul.mubr.msk.bf16.gmra.mrb[8].mxu0 %vm492_vm0, %v1845_v4  ;;  %v1863_v37 = vsel %vm1783_vm2, %v1853_v9, %v1862_v30  ;;  %v1870_v40 = vrot.slane %v1868_v32, 2  ;;  %v1877_v51 = vshll.u32 %v5690_v34, 16  ;;  %v404_v54 = vshrl.u32 %v5680_v22, 16  ;;  %v5738_v31 = vld [vmem:[%s5528_s4 + $0x78] sm:$0xff]  }
  0x2e   : > { %4770 = vmatprep.mubr.msk.bf16.mxu0 %vm492_vm0, %v1854_v23  ;;  %v402_v41 = vrot.slane %v400_v33, 1  ;;  %v395_v48 = vsel %vm319_vm1, %v390_v26, %v394_v35  ;;  %v398_v49 = vor.u32 %v396_v28, %v394_v35  ;;  %v408_v55 = vshll.u32 %v5693_v36, 16  ;;  %v5322_v35 = vld [vmem:[%s6515_s1 + $0x18] sm:$0xff]  }
  0x2f   : > { %v1871_v53 = vor.u32 %v1870_v40, %v1867_v39  ;;  %v4239_v56 = vcombine.low %v2245_v45, %v5545_v14  ;;  %v1876_v59 = vrot.slane %v1874_v50, 1  ;;  %v1879_v61 = vrot.slane %v1877_v51, 2  ;;  %v5316_v14 = vld [vmem:[%s6515_s1 + $0x10] sm:$0xff]   ;;  %v5321_v50 = vld [vmem:[%s6515_s1 + $0xc8] sm:$0xff]  }
  0x30   : > { %v403_v57 = vsel %vm319_vm1, %v398_v49, %v402_v41  ;;  %v406_v0 = vor.u32 %v404_v54, %v402_v41  ;;  %v410_v1 = vrot.slane %v408_v55, 1  ;;  %v2260_v2 = vrot.slane %v5541_v12, 2  ;;  %4622 = vmatprep.subr.bf16.mxu1 %v5316_v14  ;;  %v5755_v49 = vld [vmem:[%s5528_s4 + $0x80] sm:$0xff]  }
  0x31   : > { %v1872_v63 = vsel %vm1783_vm2, %v1862_v30, %v1871_v53  ;;  %v5722_v4 = vor.u32 %v1879_v61, %v1876_v59  ;;  %v2259_v5 = vrot.slane %v4239_v56, 2  ;;  %v412_v7 = vshrl.u32 %v5693_v36, 16  ;;  %4623 = vmatpush3.bf16.msra.mxu1 %v5316_v14 }
  0x32   : > { %v416_v9 = vshll.u32 %v5699_v47, 16  ;;  %v411_v12 = vsel %vm319_vm1, %v406_v0, %v410_v1  ;;  %v420_v16 = vshrl.u32 %v5699_v47, 16  ;;  %v2262_v32 = vrot.slane %v5560_v25, 2  ;;  %4624 = vmatprep.subr.bf16.mxu1 %v5322_v35 }
  0x33   : > { %v1881_v23 = vsel %vm1783_vm2, %v1871_v53, %v5722_v4  ;;  %v414_v26 = vor.u32 %v412_v7, %v410_v1  ;;  %v2261_v27 = vsel %vm2258_vm3, %v2259_v5, %v2260_v2  ;;  %v432_v33 = vshll.u32 %v5731_v20, 16  ;;  %v5763_v53 = vld [vmem:[%s5528_s4 + $0x88] sm:$0xff]   ;;  %v5786_v5 = vld [vmem:[%s5528_s4 + $0x90] ss:$0 sps:$4 sm:$0x11]  }
  0x34   : > { %4595 = vmatmul.mubr.msk.bf16.gmra.mrb[12].mxu1 %vm492_vm0, %v387_v17  ;;  %v424_v17 = vshll.u32 %v5719_v3, 16  ;;  %v418_v18 = vrot.slane %v416_v9, 1  ;;  %v2264_v39 = vrot.slane %v5577_v46, 2  ;;  %v428_v40 = vshrl.u32 %v5719_v3, 16 }
  0x35   : > { %4598 = vmatprep.mubr.msk.bf16.mxu1 %vm492_vm0, %v395_v48  ;;  %4771 = vmatmul.mubr.msk.bf16.gmra.mrb[12].mxu0 %vm492_vm0, %v1863_v37  ;;  %v436_v45 = vshrl.u32 %v5731_v20, 16  ;;  %v440_v25 = vshll.u32 %v5738_v31, 16  ;;  %v434_v48 = vrot.slane %v432_v33, 1  ;;  %v2263_v46 = vsel %vm2258_vm3, %v2260_v2, %v2262_v32  ;;  %v5806_v33 = vld [vmem:[%s6515_s1 + $0xe0] sm:$0xff]  }
  0x36   : > { %4774 = vmatprep.mubr.msk.bf16.mxu0 %vm492_vm0, %v1872_v63  ;;  %v422_v28 = vor.u32 %v420_v16, %v418_v18  ;;  %v426_v30 = vrot.slane %v424_v17, 1  ;;  %v419_v37 = vsel %vm319_vm1, %v414_v26, %v418_v18  ;;  %4625 = vmatpush3.bf16.msra.mxu1 %v5322_v35  ;;  %v2265_v54 = vsel %vm2258_vm3, %v2262_v32, %v2264_v39  ;;  %v5331_v18 = vld [vmem:[%s6515_s1 + $0xd8] sm:$0xff]  }
  0x37   : > { %v438_v55 = vor.u32 %v436_v45, %v434_v48  ;;  %v442_v56 = vrot.slane %v440_v25, 1  ;;  %v2266_v59 = vrot.slane %v5596_v60, 2  ;;  %v2268_v61 = vrot.slane %v5611_v8, 2  ;;  %v5325_v8 = vld [vmem:[%s6515_s1 + $0xd0] sm:$0xff]  }
  0x38   : > { %v427_v41 = vsel %vm319_vm1, %v422_v28, %v426_v30  ;;  %v430_v51 = vor.u32 %v428_v40, %v426_v30  ;;  %v448_v63 = vshll.u32 %v5755_v49, 16  ;;  %v444_v1 = vshrl.u32 %v5738_v31, 16 }
  0x39   : > { %v452_v2 = vshrl.u32 %v5755_v49, 16  ;;  %v443_v14 = vsel %vm319_vm1, %v438_v55, %v442_v56  ;;  %v456_v60 = vshll.u32 %v5763_v53, 16  ;;  %v2267_v7 = vsel %vm2258_vm3, %v2264_v39, %v2266_v59  ;;  %v5347_v55 = vld [vmem:[%s6515_s1 + $0x58] sm:$0xff]  }
  0x3a   : > { %v435_v0 = vsel %vm319_vm1, %v430_v51, %v434_v48  ;;  %v446_v9 = vor.u32 %v444_v1, %v442_v56  ;;  %v464_v28 = vshll.u32 %v5786_v5, 16  ;;  %v2272_v32 = vrot.slane %v5642_v42, 2  ;;  %v5824_v48 = vld [vmem:[%s5528_s4 + $0x60] sm:$0xff]   ;;  %v5884_v1 = vld [vmem:[%s5528_s4 + $0x88] sm:$0xff]  }
  0x3b   : > { %v458_v17 = vrot.slane %v456_v60, 1  ;;  %v2274_v40 = vrot.slane %v5656_v58, 2  ;;  %v2278_v58 = vrot.slane %v5690_v34, 2  ;;  %v5843_v34 = vld [vmem:[%s5528_s4 + $0x70] sm:$0xff]   ;;  %v2290_v60 = vrot.slane %v5884_v1, 2 }
  0x3c   : > { %4599 = vmatmul.mubr.msk.bf16.gmra.mrb[16].mxu1 %vm492_vm0, %v403_v57  ;;  %v5769_v57 = vld [vmem:[%s6515_s1 + $0x40] sm:$0xff]  }
  0x3d   : > { %4602 = vmatprep.mubr.msk.bf16.mxu1 %vm492_vm0, %v411_v12  ;;  %4775 = vmatmul.mubr.msk.bf16.gmra.mrb[16].mxu0 %vm492_vm0, %v1881_v23  ;;  %v2269_v12 = vsel %vm2258_vm3, %v2266_v59, %v2268_v61  ;;  %v2270_v23 = vrot.slane %v5626_v29, 2  ;;  %v2275_v45 = vsel %vm2258_vm3, %v2272_v32, %v2274_v40 }
  0x3e   : > { %4802 = vmatprep.mubr.msk.bf16.mxu0 %vm492_vm0, %v2261_v27  ;;  %4662 = vmatprep.subr.bf16.mxu1 %v5769_v57  ;;  %v460_v27 = vshrl.u32 %v5763_v53, 16 }
  0x3f   : > { %v2271_v29 = vsel %vm2258_vm3, %v2268_v61, %v2270_v23  ;;  %v2273_v39 = vsel %vm2258_vm3, %v2270_v23, %v2272_v32  ;;  %v5866_v61 = vld [vmem:[%s5528_s4 + $0x80] sm:$0xff]  }
  0x40   : > { %v462_v35 = vor.u32 %v460_v27, %v458_v17 }
  0x44   : > { %4603 = vmatmul.mubr.msk.bf16.gmra.mrb[20].mxu1 %vm492_vm0, %v419_v37  ;;  %v466_v37 = vrot.slane %v464_v28, 1 }
  0x45   : > { %4606 = vmatprep.mubr.msk.bf16.mxu1 %vm492_vm0, %v427_v41  ;;  %4803 = vmatmul.mubr.msk.bf16.vlgmr.msra.gmra.mrb[0].mxu0 %vm492_vm0, %v2263_v46  ;;  %v2276_v41 = vrot.slane %v5677_v21, 2  ;;  %v2280_v21 = vrot.slane %v5824_v48, 2 }
  0x46   : > { %4839 = vmatpush3.bf16.msra.mxu0 %v5315_v62  ;;  %4806 = vmatprep.mubr.msk.bf16.mxu0 %vm492_vm0, %v2265_v54  ;;  %v450_v62 = vrot.slane %v448_v63, 1  ;;  %v467_v42 = vsel %vm319_vm1, %v462_v35, %v466_v37  ;;  %v5871_v63 = vld [vmem:[%s6515_s1 + $0x60] sm:$0xff]  }
  0x47   : > { %4840 = vmatprep.subr.bf16.mxu0 %v5321_v50  ;;  %v2277_v25 = vsel %vm2258_vm3, %v2274_v40, %v2276_v41  ;;  %v2279_v46 = vsel %vm2258_vm3, %v2276_v41, %v2278_v58  ;;  %v2281_v51 = vsel %vm2258_vm3, %v2278_v58, %v2280_v21  ;;  %v5944_v41 = vld [vmem:[%s5528_s4 + $0x38] sm:$0xff]  }
  0x48   : > { %v454_v16 = vor.u32 %v452_v2, %v450_v62  ;;  %v451_v26 = vsel %vm319_vm1, %v446_v9, %v450_v62  ;;  %v2587_v62 = vld [vmem:[%s5528_s4 + $0x10] sm:$0xc]  ;;  %v2735_v58 = vrot.slane %v5944_v41, 2 }
  0x4a   : > { %4841 = vmatpush3.bf16.msra.mxu0 %v5321_v50  ;;  %v459_v30 = vsel %vm319_vm1, %v454_v16, %v458_v17  ;;  %v5334_v50 = vld [vmem:[%s6515_s1 + $0x48] sm:$0xff]  }
  0x4b   : > { %4842 = vmatprep.subr.bf16.mxu0 %v5325_v8 }
  0x4c   : > { %4607 = vmatmul.mubr.msk.bf16.gmra.mrb[24].mxu1 %vm492_vm0, %v435_v0 }
  0x4d   : > { %4610 = vmatprep.mubr.msk.bf16.mxu1 %vm492_vm0, %v443_v14  ;;  %4807 = vmatmul.mubr.msk.bf16.gmra.mrb[4].mxu0 %vm492_vm0, %v2267_v7  ;;  %v5888_v14 = vld [vmem:[%s5528_s4 + $0x90] sm:$0xff]  }
  0x4e   : > { %4810 = vmatprep.mubr.msk.bf16.mxu0 %vm492_vm0, %v2269_v12  ;;  %4843 = vmatpush3.bf16.msra.mxu0 %v5325_v8  ;;  %v2292_v8 = vrot.slane %v5888_v14, 2  ;;  %v5896_v7 = vld [vmem:[%s5528_s4 + $0x14] sm:$0xf]  ;;  %v5904_v12 = vld [vmem:[%s5528_s4 + $0x98] ss:$0 sps:$4 sm:$0x33]  }
  0x4f   : > { %4844 = vmatprep.subr.bf16.mxu0 %v5331_v18  ;;  %v5908_v17 = vcombine.low %v2587_v62, %v5896_v7  ;;  %v2294_v23 = vrot.slane %v5904_v12, 2 }
  0x50   : > { %v2293_v16 = vsel %vm2258_vm3, %v2290_v60, %v2292_v8 }
  0x51   : > { %v2295_v28 = vsel %vm2258_vm3, %v2292_v8, %v2294_v23  ;;  %v5447_v8 = vld [vmem:[%s5528_s4 + $0x8] sm:$0xff]  }
  0x52   : > { %4845 = vmatpush3.bf16.msra.mxu0 %v5331_v18  ;;  %v5911_v18 = vld [vmem:[%s5528_s4 + $0x18] sm:$0xff]   ;;  %v976_v62 = vrot.slane %v5447_v8, 1 }
  0x53   : > { %4882 = vmatprep.subr.bf16.mxu0 %v5806_v33  ;;  %v2727_v27 = vrot.slane %v5911_v18, 2 }
  0x54   : > { %4611 = vmatmul.mubr.msk.bf16.gmra.mrb[28].mxu1 %vm492_vm0, %v451_v26  ;;  %v2726_v26 = vrot.slane %v5908_v17, 2 }
  0x55   : > { %4614 = vmatprep.mubr.msk.bf16.mxu1 %vm492_vm0, %v459_v30  ;;  %4811 = vmatmul.mubr.msk.bf16.gmra.mrb[8].mxu0 %vm492_vm0, %v2271_v29  ;;  %v5924_v30 = vld [vmem:[%s5528_s4 + $0x20] sm:$0xff]   ;;  %v5928_v29 = vld [vmem:[%s5528_s4 + $0x28] sm:$0xff]  }
  0x56   : > { %4814 = vmatprep.mubr.msk.bf16.mxu0 %vm492_vm0, %v2273_v39  ;;  %v2728_v32 = vsel %vm2258_vm3, %v2726_v26, %v2727_v27  ;;  %v2729_v35 = vrot.slane %v5924_v30, 2  ;;  %v2731_v37 = vrot.slane %v5928_v29, 2 }
  0x58   : > { %v2730_v39 = vsel %vm2258_vm3, %v2727_v27, %v2729_v35  ;;  %v2732_v40 = vsel %vm2258_vm3, %v2729_v35, %v2731_v37  ;;  %v6008_v35 = vld [vmem:[%s5528_s4 + $0x60] sm:$0xff]  }
  0x5c   : > { %4615 = vmatmul.mubr.msk.bf16.gmra.mrb[32].mxu1 %vm492_vm0, %v467_v42  ;;  %v5940_v42 = vld [vmem:[%s5528_s4 + $0x30] sm:$0xff]  }
  0x5d   : > { %4626 = vmatprep.mubr.msk.bf16.mxu1 %vm492_vm0, %v5535_v10  ;;  %4815 = vmatmul.mubr.msk.bf16.gmra.mrb[12].mxu0 %vm492_vm0, %v2275_v45  ;;  %v5836_v10 = vld [vmem:[%s5528_s4 + $0x68] sm:$0xff]  }
  0x5e   : > { %4818 = vmatprep.mubr.msk.bf16.mxu0 %vm492_vm0, %v2277_v25  ;;  %v2282_v54 = vrot.slane %v5836_v10, 2  ;;  %v5346_v45 = vld [vmem:[%s6515_s1 + $0xe8] sm:$0xff]   ;;  %v2733_v25 = vrot.slane %v5940_v42, 2 }
  0x60   : > { %v2283_v56 = vsel %vm2258_vm3, %v2280_v21, %v2282_v54  ;;  %v5353_v21 = vld [vmem:[%s6515_s1 + $0xf0] sm:$0xff]  }
  0x64   : > { %4627 = vmatmul.mubr.msk.bf16.vlgmr.msra.gmra.mrb[0].mxu1 %vm492_vm0, %v5538_v11  ;;  %v5341_v11 = vld [vmem:[%s6515_s1 + $0x50] sm:$0xff]  }
  0x65   : > { %4630 = vmatprep.mubr.msk.bf16.mxu1 %vm492_vm0, %v5557_v24  ;;  %4663 = vmatpush3.bf16.msra.mxu1 %v5769_v57  ;;  %v2284_v24 = vrot.slane %v5843_v34, 2  ;;  %v5862_v57 = vld [vmem:[%s5528_s4 + $0x78] sm:$0xff]  }
  0x66   : > { %4664 = vmatprep.subr.bf16.mxu1 %v5334_v50  ;;  %4819 = vmatmul.mubr.msk.bf16.gmra.mrb[16].mxu0 %vm492_vm0, %v2279_v46  ;;  %v2736_v46 = vsel %vm2258_vm3, %v2733_v25, %v2735_v58 }
  0x67   : > { %4822 = vmatprep.mubr.msk.bf16.mxu0 %vm492_vm0, %v2281_v51  ;;  %v2285_v59 = vsel %vm2258_vm3, %v2282_v54, %v2284_v24  ;;  %v5967_v51 = vld [vmem:[%s5528_s4 + $0x48] sm:$0xff]   ;;  %v961_v54 = vld [vmem:[%s5528_s4] sm:$0xe] }
  0x69   : > { %4665 = vmatpush3.bf16.msra.mxu1 %v5334_v50  ;;  %v2734_v50 = vsel %vm2258_vm3, %v2731_v37, %v2733_v25 }
  0x6a   : > { %4666 = vmatprep.subr.bf16.mxu1 %v5341_v11 }
  0x6c   : > { %4631 = vmatmul.mubr.msk.bf16.gmra.mrb[4].mxu1 %vm492_vm0, %v5573_v44  ;;  %v2286_v44 = vrot.slane %v5862_v57, 2 }
  0x6d   : > { %4634 = vmatprep.mubr.msk.bf16.mxu1 %vm492_vm0, %v5584_v52  ;;  %4667 = vmatpush3.bf16.msra.mxu1 %v5341_v11  ;;  %v2288_v52 = vrot.slane %v5866_v61, 2  ;;  %v5359_v11 = vld [vmem:[%s6515_s1 + $0xf8] sm:$0xff]  }
  0x6e   : > { %4668 = vmatprep.subr.bf16.mxu1 %v5347_v55  ;;  %4823 = vmatmul.mubr.msk.bf16.gmra.mrb[20].mxu0 %vm492_vm0, %v2283_v56  ;;  %v2287_v0 = vsel %vm2258_vm3, %v2284_v24, %v2286_v44  ;;  %v5446_v56 = vld [vmem:[%s5528_s4 + $0x4] sm:$0xf] }
  0x6f   : > { %4826 = vmatprep.mubr.msk.bf16.mxu0 %vm492_vm0, %v2285_v59  ;;  %v2289_v2 = vsel %vm2258_vm3, %v2286_v44, %v2288_v52  ;;  %v2291_v9 = vsel %vm2258_vm3, %v2288_v52, %v2290_v60  ;;  %v4128_v59 = vcombine.low %v961_v54, %v5446_v56  ;;  %v5981_v44 = vld [vmem:[%s6515_s1 + $0x100] sm:$0xff]  }
  0x70   : > { %v5450_v54 = vld [vmem:[%s5528_s4 + $0x20] sm:$0xff]  }
  0x71   : > { %4669 = vmatpush3.bf16.msra.mxu1 %v5347_v55  ;;  %v2739_v55 = vrot.slane %v5967_v51, 2  ;;  %v975_v60 = vrot.slane %v4128_v59, 1  ;;  %v984_v59 = vrot.slane %v5607_v6, 1 }
  0x72   : > { %4706 = vmatprep.subr.bf16.mxu1 %v5871_v63 }
  0x73   : > { %v977_v23 = vsel %vm974_vm4, %v975_v60, %v976_v62 }
  0x74   : > { %4635 = vmatmul.mubr.msk.bf16.gmra.mrb[8].mxu1 %vm492_vm0, %v5607_v6 }
  0x75   : > { %4638 = vmatprep.mubr.msk.bf16.mxu1 %vm492_vm0, %v5615_v15 }
  0x76   : > { %4827 = vmatmul.mubr.msk.bf16.gmra.mrb[24].mxu0 %vm492_vm0, %v2287_v0  ;;  %v5989_v0 = vld [vmem:[%s5528_s4 + $0x50] sm:$0xff]  }
  0x77   : > { %4830 = vmatprep.mubr.msk.bf16.mxu0 %vm492_vm0, %v2289_v2 }
  0x7c   : > { %4639 = vmatmul.mubr.msk.bf16.gmra.mrb[12].mxu1 %vm492_vm0, %v5635_v38 }
  0x7d   : > { %4642 = vmatprep.mubr.msk.bf16.mxu1 %vm492_vm0, %v5645_v43 }
  0x7e   : > { %4831 = vmatmul.mubr.msk.bf16.gmra.mrb[28].mxu0 %vm492_vm0, %v2291_v9  ;;  %v5994_v9 = vld [vmem:[%s5528_s4 + $0x58] sm:$0xff]  }
  0x7f   : > { %4834 = vmatprep.mubr.msk.bf16.mxu0 %vm492_vm0, %v2293_v16  ;;  %v2741_v16 = vrot.slane %v5989_v0, 2  ;;  %v2743_v26 = vrot.slane %v5994_v9, 2 }
  0x81   : > { %v2742_v27 = vsel %vm2258_vm3, %v2739_v55, %v2741_v16  ;;  %v2744_v37 = vsel %vm2258_vm3, %v2741_v16, %v2743_v26 }
  0x84   : > { %4643 = vmatmul.mubr.msk.bf16.gmra.mrb[16].mxu1 %vm492_vm0, %v5671_v13 }
  0x85   : > { %4646 = vmatprep.mubr.msk.bf16.mxu1 %vm492_vm0, %v5680_v22 }
  0x86   : > { %4835 = vmatmul.mubr.msk.bf16.gmra.mrb[32].mxu0 %vm492_vm0, %v2295_v28  ;;  %v5448_v28 = vld [vmem:[%s5528_s4 + $0x10] sm:$0xff]  }
  0x87   : > { %4846 = vmatprep.mubr.msk.bf16.mxu0 %vm492_vm0, %v2728_v32  ;;  %v978_v32 = vrot.slane %v5448_v28, 1  ;;  %v988_v28 = vrot.slane %v5635_v38, 1  ;;  %v6070_v38 = vld [vmem:[%s6515_s1 + $0x80] sm:$0xff]  }
  0x89   : > { %v979_v25 = vsel %vm974_vm4, %v976_v62, %v978_v32  ;;  %v5368_v62 = vld [vmem:[%s6515_s1 + $0x78] sm:$0xff]  }
  0x8c   : > { %4647 = vmatmul.mubr.msk.bf16.gmra.mrb[20].mxu1 %vm492_vm0, %v5693_v36 }
  0x8d   : > { %4650 = vmatprep.mubr.msk.bf16.mxu1 %vm492_vm0, %v5699_v47 }
  0x8e   : > { %4847 = vmatmul.mubr.msk.bf16.vlgmr.msra.gmra.mrb[0].mxu0 %vm492_vm0, %v2730_v39  ;;  %v5449_v39 = vld [vmem:[%s5528_s4 + $0x18] sm:$0xff]  }
  0x8f   : > { %4883 = vmatpush3.bf16.msra.mxu0 %v5806_v33  ;;  %4850 = vmatprep.mubr.msk.bf16.mxu0 %vm492_vm0, %v2732_v40  ;;  %v5963_v33 = vld [vmem:[%s5528_s4 + $0x40] sm:$0xff]   ;;  %v980_v40 = vrot.slane %v5449_v39, 1 }
  0x90   : > { %4884 = vmatprep.subr.bf16.mxu0 %v5346_v45  ;;  %v2737_v24 = vrot.slane %v5963_v33, 2 }
  0x92   : > { %v2738_v52 = vsel %vm2258_vm3, %v2735_v58, %v2737_v24  ;;  %v2740_v2 = vsel %vm2258_vm3, %v2737_v24, %v2739_v55  ;;  %v2745_v58 = vrot.slane %v6008_v35, 2  ;;  %v982_v24 = vrot.slane %v5450_v54, 1  ;;  %v6029_v55 = vld [vmem:[%s5528_s4 + $0x70] sm:$0xff]  }
  0x93   : > { %4885 = vmatpush3.bf16.msra.mxu0 %v5346_v45  ;;  %v6013_v45 = vld [vmem:[%s5528_s4 + $0x68] sm:$0xff]  }
  0x94   : > { %4651 = vmatmul.mubr.msk.bf16.gmra.mrb[24].mxu1 %vm492_vm0, %v5719_v3  ;;  %4886 = vmatprep.subr.bf16.mxu0 %v5353_v21  ;;  %v983_v60 = vsel %vm974_vm4, %v980_v40, %v982_v24  ;;  %v985_v6 = vsel %vm974_vm4, %v982_v24, %v984_v59 }
  0x95   : > { %4654 = vmatprep.mubr.msk.bf16.mxu1 %vm492_vm0, %v5731_v20 }
  0x96   : > { %4851 = vmatmul.mubr.msk.bf16.gmra.mrb[4].mxu0 %vm492_vm0, %v2734_v50  ;;  %v2747_v50 = vrot.slane %v6013_v45, 2 }
  0x97   : > { %4854 = vmatprep.mubr.msk.bf16.mxu0 %vm492_vm0, %v2736_v46  ;;  %4887 = vmatpush3.bf16.msra.mxu0 %v5353_v21  ;;  %v981_v21 = vsel %vm974_vm4, %v978_v32, %v980_v40  ;;  %v5362_v46 = vld [vmem:[%s6515_s1 + $0x68] sm:$0xff]  }
  0x98   : > { %4888 = vmatprep.subr.bf16.mxu0 %v5359_v11  ;;  %v2748_v56 = vsel %vm2258_vm3, %v2745_v58, %v2747_v50  ;;  %v6059_v32 = vld [vmem:[%s5528_s4 + $0x88] sm:$0xff]  }
  0x99   : > { %v2755_v40 = vrot.slane %v6059_v32, 2 }
  0x9b   : > { %4889 = vmatpush3.bf16.msra.mxu0 %v5359_v11  ;;  %v2746_v11 = vsel %vm2258_vm3, %v2743_v26, %v2745_v58  ;;  %v6054_v26 = vld [vmem:[%s5528_s4 + $0x80] sm:$0xff]   ;;  %v990_v58 = vrot.slane %v5645_v43, 1  ;;  %v3069_v43 = vshrl.u32 %v5908_v17, 16 }
  0x9c   : > { %4655 = vmatmul.mubr.msk.bf16.gmra.mrb[28].mxu1 %vm492_vm0, %v5738_v31  ;;  %4926 = vmatprep.subr.bf16.mxu0 %v5981_v44 }
  0x9d   : > { %4658 = vmatprep.mubr.msk.bf16.mxu1 %vm492_vm0, %v5755_v49  ;;  %v991_v54 = vsel %vm974_vm4, %v988_v28, %v990_v58 }
  0x9e   : > { %4855 = vmatmul.mubr.msk.bf16.gmra.mrb[8].mxu0 %vm492_vm0, %v2738_v52  ;;  %v6035_v52 = vld [vmem:[%s5528_s4 + $0x78] sm:$0xff]  }
  0x9f   : > { %4858 = vmatprep.mubr.msk.bf16.mxu0 %vm492_vm0, %v2740_v2  ;;  %v5366_v2 = vld [vmem:[%s6515_s1 + $0x70] sm:$0xff]   ;;  %v2751_v8 = vrot.slane %v6035_v52, 2 }
  0xa4   : > { %4659 = vmatmul.mubr.msk.bf16.gmra.mrb[32].mxu1 %vm492_vm0, %v5763_v53 }
  0xa5   : > { %4670 = vmatprep.mubr.msk.bf16.mxu1 %vm492_vm0, %v977_v23  ;;  %v986_v23 = vrot.slane %v5615_v15, 1  ;;  %v2753_v15 = vrot.slane %v6054_v26, 2 }
  0xa6   : > { %4859 = vmatmul.mubr.msk.bf16.gmra.mrb[12].mxu0 %vm492_vm0, %v2742_v27 }
  0xa7   : > { %4862 = vmatprep.mubr.msk.bf16.mxu0 %vm492_vm0, %v2744_v37  ;;  %v987_v37 = vsel %vm974_vm4, %v984_v59, %v986_v23  ;;  %v989_v39 = vsel %vm974_vm4, %v986_v23, %v988_v28 }
  0xac   : > { %4671 = vmatmul.mubr.msk.bf16.vlgmr.msra.gmra.mrb[0].mxu1 %vm492_vm0, %v979_v25  ;;  %v2754_v25 = vsel %vm2258_vm3, %v2751_v8, %v2753_v15 }
  0xad   : > { %4674 = vmatprep.mubr.msk.bf16.mxu1 %vm492_vm0, %v981_v21  ;;  %4707 = vmatpush3.bf16.msra.mxu1 %v5871_v63  ;;  %v2749_v63 = vrot.slane %v6029_v55, 2  ;;  %v6078_v21 = vld [vmem:[%s5528_s4 + $0x90] sm:$0xff]  }
  0xae   : > { %4708 = vmatprep.subr.bf16.mxu1 %v5362_v46  ;;  %4863 = vmatmul.mubr.msk.bf16.gmra.mrb[16].mxu0 %vm492_vm0, %v2746_v11  ;;  %v6083_v11 = vld [vmem:[%s5528_s4 + $0x98] sm:$0xff]   ;;  %v2757_v24 = vrot.slane %v6078_v21, 2 }
  0xaf   : > { %4866 = vmatprep.mubr.msk.bf16.mxu0 %vm492_vm0, %v2748_v56  ;;  %v2750_v16 = vsel %vm2258_vm3, %v2747_v50, %v2749_v63  ;;  %v2752_v27 = vsel %vm2258_vm3, %v2749_v63, %v2751_v8  ;;  %v992_v50 = vrot.slane %v5671_v13, 1  ;;  %v2759_v59 = vrot.slane %v6083_v11, 2  ;;  %v5364_v8 = vld [vmem:[%s5528_s4 + $0xa0] ss:$0 sps:$4 sm:$0x33]  }
  0xb0   : > { %v3072_v13 = vshll.u32 %v5908_v17, 16  ;;  %v994_v63 = vrot.slane %v5680_v22, 1  ;;  %v2761_v22 = vrot.slane %v5364_v8, 2  ;;  %v3107_v8 = vshll.u32 %v5940_v42, 16 }
  0xb1   : > { %4709 = vmatpush3.bf16.msra.mxu1 %v5362_v46  ;;  %v2756_v46 = vsel %vm2258_vm3, %v2753_v15, %v2755_v40  ;;  %v993_v56 = vsel %vm974_vm4, %v990_v58, %v992_v50  ;;  %v2760_v23 = vsel %vm2258_vm3, %v2757_v24, %v2759_v59  ;;  %v3095_v58 = vshrl.u32 %v5928_v29, 16 }
  0xb2   : > { %4710 = vmatprep.subr.bf16.mxu1 %v5366_v2 }
  0xb4   : > { %4675 = vmatmul.mubr.msk.bf16.gmra.mrb[4].mxu1 %vm492_vm0, %v983_v60  ;;  %v3080_v60 = vshll.u32 %v5911_v18, 16 }
  0xb5   : > { %4678 = vmatprep.mubr.msk.bf16.mxu1 %vm492_vm0, %v985_v6  ;;  %4711 = vmatpush3.bf16.msra.mxu1 %v5366_v2  ;;  %v3077_v2 = vshrl.u32 %v5911_v18, 16  ;;  %v2758_v6 = vsel %vm2258_vm3, %v2755_v40, %v2757_v24  ;;  %v3089_v40 = vshll.u32 %v5924_v30, 16 }
  0xb6   : > { %4712 = vmatprep.subr.bf16.mxu1 %v5368_v62  ;;  %4867 = vmatmul.mubr.msk.bf16.gmra.mrb[20].mxu0 %vm492_vm0, %v2750_v16  ;;  %v3071_v16 = vrot.slane %v3069_v43, 2  ;;  %v3082_v28 = vrot.slane %v3080_v60, 3 }
  0xb7   : > { %4870 = vmatprep.mubr.msk.bf16.mxu0 %vm492_vm0, %v2752_v27  ;;  %v3074_v27 = vrot.slane %v3072_v13, 3  ;;  %v3079_v17 = vrot.slane %v3077_v2, 2  ;;  %v1000_v13 = vrot.slane %v5719_v3, 1  ;;  %v3097_v2 = vrot.slane %v3095_v58, 2 }
  0xb8   : > { %v3116_v3 = vshll.u32 %v5944_v41, 16  ;;  %v3125_v58 = vshll.u32 %v5963_v33, 16 }
  0xb9   : > { %4713 = vmatpush3.bf16.msra.mxu1 %v5368_v62  ;;  %v996_v62 = vrot.slane %v5693_v36, 1  ;;  %v3075_v36 = vor.u32 %v3074_v27, %v3071_v16 }
  0xba   : > { %4970 = vmatprep.subr.bf16.mxu1 %v6070_v38 }
  0xbb   : > { %v997_v15 = vsel %vm974_vm4, %v994_v63, %v996_v62 }
  0xbc   : > { %4679 = vmatmul.mubr.msk.bf16.gmra.mrb[8].mxu1 %vm492_vm0, %v987_v37  ;;  %v995_v37 = vsel %vm974_vm4, %v992_v50, %v994_v63  ;;  %v2762_v50 = vsel %vm2258_vm3, %v2759_v59, %v2761_v22  ;;  %v3104_v59 = vshrl.u32 %v5940_v42, 16  ;;  %v1004_v22 = vrot.slane %v5738_v31, 1 }
  0xbd   : > { %4682 = vmatprep.mubr.msk.bf16.mxu1 %vm492_vm0, %v989_v39  ;;  %v3086_v39 = vshrl.u32 %v5924_v30, 16 }
  0xbe   : > { %4871 = vmatmul.mubr.msk.bf16.gmra.mrb[24].mxu0 %vm492_vm0, %v2754_v25  ;;  %v3083_v25 = vor.u32 %v3082_v28, %v3079_v17  ;;  %v3106_v17 = vrot.slane %v3104_v59, 2  ;;  %v3109_v28 = vrot.slane %v3107_v8, 3  ;;  %v5370_v59 = vld [vmem:[%s6515_s1 + $0x118] sm:$0xff]  }
  0xbf   : > { %4874 = vmatprep.mubr.msk.bf16.mxu0 %vm492_vm0, %v2756_v46  ;;  %v3098_v46 = vshll.u32 %v5928_v29, 16  ;;  %v3088_v24 = vrot.slane %v3086_v39, 2  ;;  %v3118_v39 = vrot.slane %v3116_v3, 3  ;;  %v3149_v3 = vshrl.u32 %v5994_v9, 16 }
  0xc0   : > { %v3084_v43 = vsel %vm3067_vm5, %v3075_v36, %v3083_v25  ;;  %v3110_v36 = vor.u32 %v3109_v28, %v3106_v17 }
  0xc1   : > { %v3100_v60 = vrot.slane %v3098_v46, 3 }
  0xc3   : > { %v3101_v16 = vor.u32 %v3100_v60, %v3097_v2  ;;  %v1008_v60 = vrot.slane %v5763_v53, 1 }
  0xc4   : > { %4683 = vmatmul.mubr.msk.bf16.gmra.mrb[12].mxu1 %vm492_vm0, %v991_v54  ;;  %v998_v54 = vrot.slane %v5699_v47, 1 }
  0xc5   : > { %4686 = vmatprep.mubr.msk.bf16.mxu1 %vm492_vm0, %v993_v56  ;;  %v3091_v56 = vrot.slane %v3089_v40, 3  ;;  %v5367_v40 = vld [vmem:[%s6515_s1 + $0x108] sm:$0xff]  }
  0xc6   : > { %4875 = vmatmul.mubr.msk.bf16.gmra.mrb[28].mxu0 %vm492_vm0, %v2758_v6  ;;  %v999_v63 = vsel %vm974_vm4, %v996_v62, %v998_v54  ;;  %v1001_v47 = vsel %vm974_vm4, %v998_v54, %v1000_v13  ;;  %v1002_v62 = vrot.slane %v5731_v20, 1  ;;  %v3134_v54 = vshll.u32 %v5967_v51, 16 }
  0xc7   : > { %4878 = vmatprep.mubr.msk.bf16.mxu0 %vm492_vm0, %v2760_v23  ;;  %v3092_v6 = vor.u32 %v3091_v56, %v3088_v24  ;;  %v3113_v23 = vshrl.u32 %v5944_v41, 16  ;;  %v3111_v24 = vsel %vm3067_vm5, %v3101_v16, %v3110_v36  ;;  %v1006_v56 = vrot.slane %v5755_v49, 1 }
  0xc8   : > { %v1003_v20 = vsel %vm974_vm4, %v1000_v13, %v1002_v62  ;;  %v1005_v31 = vsel %vm974_vm4, %v1002_v62, %v1004_v22  ;;  %v3127_v13 = vrot.slane %v3125_v58, 3  ;;  %v1010_v62 = vrot.slane %v5786_v5, 1 }
  0xc9   : > { %v3093_v27 = vsel %vm3067_vm5, %v3083_v25, %v3092_v6  ;;  %v3122_v25 = vshrl.u32 %v5963_v33, 16  ;;  %v1007_v49 = vsel %vm974_vm4, %v1004_v22, %v1006_v56  ;;  %v1009_v53 = vsel %vm974_vm4, %v1006_v56, %v1008_v60 }
  0xca   : > { %v1442_v22 = vrot.slane %v5552_v19, 1  ;;  %v1011_v5 = vsel %vm974_vm4, %v1008_v60, %v1010_v62  ;;  %v3158_v58 = vshrl.u32 %v6008_v35, 16  ;;  %v3161_v19 = vshll.u32 %v6008_v35, 16  ;;  %v5454_v60 = vld [vmem:[%s5528_s4 + $0x20] sm:$0xff]  }
  0xcc   : > { %4687 = vmatmul.mubr.msk.bf16.gmra.mrb[16].mxu1 %vm492_vm0, %v995_v37  ;;  %v3102_v37 = vsel %vm3067_vm5, %v3092_v6, %v3101_v16  ;;  %v3136_v6 = vrot.slane %v3134_v54, 3  ;;  %v3143_v16 = vshll.u32 %v5989_v0, 16  ;;  %v3170_v54 = vshll.u32 %v6013_v45, 16 }
  0xcd   : > { %4690 = vmatprep.mubr.msk.bf16.mxu1 %vm492_vm0, %v997_v15  ;;  %v3115_v15 = vrot.slane %v3113_v23, 2 }
  0xce   : > { %4879 = vmatmul.mubr.msk.bf16.gmra.mrb[32].mxu0 %vm492_vm0, %v2762_v50  ;;  %v3131_v50 = vshrl.u32 %v5967_v51, 16 }
  0xcf   : > { %4890 = vmatprep.mubr.msk.bf16.mxu0 %vm492_vm0, %v3084_v43  ;;  %v3119_v46 = vor.u32 %v3118_v39, %v3115_v15  ;;  %v3124_v43 = vrot.slane %v3122_v25, 2  ;;  %v5452_v39 = vld [vmem:[%s5528_s4 + $0x10] sm:$0xff]  }
  0xd1   : > { %v3120_v2 = vsel %vm3067_vm5, %v3110_v36, %v3119_v46  ;;  %v3128_v8 = vor.u32 %v3127_v13, %v3124_v43  ;;  %v3160_v43 = vrot.slane %v3158_v58, 2  ;;  %v3163_v13 = vrot.slane %v3161_v19, 3 }
  0xd2   : > { %v3197_v19 = vshll.u32 %v6054_v26, 16 }
  0xd3   : > { %v3129_v17 = vsel %vm3067_vm5, %v3119_v46, %v3128_v8 }
  0xd4   : > { %4691 = vmatmul.mubr.msk.bf16.gmra.mrb[20].mxu1 %vm492_vm0, %v999_v63  ;;  %v3133_v63 = vrot.slane %v3131_v50, 2  ;;  %v3167_v50 = vshrl.u32 %v6013_v45, 16 }
  0xd5   : > { %4694 = vmatprep.mubr.msk.bf16.mxu1 %vm492_vm0, %v1001_v47  ;;  %v3140_v47 = vshrl.u32 %v5989_v0, 16 }
  0xd6   : > { %4891 = vmatmul.mubr.msk.bf16.vlgmr.msra.gmra.mrb[0].mxu0 %vm492_vm0, %v3093_v27  ;;  %v3137_v23 = vor.u32 %v3136_v6, %v3133_v63  ;;  %v3152_v27 = vshll.u32 %v5994_v9, 16  ;;  %v1447_v63 = vrot.slane %v5454_v60, 1  ;;  %v3169_v6 = vrot.slane %v3167_v50, 2 }
  0xd7   : > { %4927 = vmatpush3.bf16.msra.mxu0 %v5981_v44  ;;  %4894 = vmatprep.mubr.msk.bf16.mxu0 %vm492_vm0, %v3102_v37  ;;  %v5369_v44 = vld [vmem:[%s6515_s1 + $0x110] sm:$0xff]   ;;  %v3142_v28 = vrot.slane %v3140_v47, 2  ;;  %v3145_v37 = vrot.slane %v3143_v16, 3  ;;  %v3176_v47 = vshrl.u32 %v6029_v55, 16  ;;  %v3179_v16 = vshll.u32 %v6029_v55, 16 }
  0xd8   : > { %4928 = vmatprep.subr.bf16.mxu0 %v5367_v40  ;;  %v3138_v15 = vsel %vm3067_vm5, %v3128_v8, %v3137_v23  ;;  %v3154_v36 = vrot.slane %v3152_v27, 3  ;;  %v3164_v8 = vor.u32 %v3163_v13, %v3160_v43  ;;  %v3188_v27 = vshll.u32 %v6035_v52, 16 }
  0xd9   : > { %v3146_v25 = vor.u32 %v3145_v37, %v3142_v28  ;;  %v3178_v37 = vrot.slane %v3176_v47, 2  ;;  %v3203_v50 = vshrl.u32 %v6059_v32, 16 }
  0xdb   : > { %4929 = vmatpush3.bf16.msra.mxu0 %v5367_v40  ;;  %v1443_v40 = vrot.slane %v5452_v39, 1  ;;  %v5456_v39 = vld [vmem:[%s5528_s4 + $0x30] sm:$0xff]  }
  0xdc   : > { %4695 = vmatmul.mubr.msk.bf16.gmra.mrb[24].mxu1 %vm492_vm0, %v1003_v20  ;;  %4930 = vmatprep.subr.bf16.mxu0 %v5369_v44  ;;  %v3151_v20 = vrot.slane %v3149_v3, 2  ;;  %v3185_v3 = vshrl.u32 %v6035_v52, 16 }
  0xdd   : > { %4698 = vmatprep.mubr.msk.bf16.mxu1 %vm492_vm0, %v1005_v31  ;;  %v1444_v31 = vsel %vm974_vm4, %v1442_v22, %v1443_v40  ;;  %v3181_v22 = vrot.slane %v3179_v16, 3 }
  0xde   : > { %4895 = vmatmul.mubr.msk.bf16.gmra.mrb[4].mxu0 %vm492_vm0, %v3111_v24  ;;  %v3155_v46 = vor.u32 %v3154_v36, %v3151_v20  ;;  %v5453_v24 = vld [vmem:[%s5528_s4 + $0x18] sm:$0xff]   ;;  %v3187_v20 = vrot.slane %v3185_v3, 2  ;;  %v3190_v36 = vrot.slane %v3188_v27, 3 }
  0xdf   : > { %4898 = vmatprep.mubr.msk.bf16.mxu0 %vm492_vm0, %v3120_v2  ;;  %4931 = vmatpush3.bf16.msra.mxu0 %v5369_v44  ;;  %v3147_v44 = vsel %vm3067_vm5, %v3137_v23, %v3146_v25  ;;  %v1445_v56 = vrot.slane %v5453_v24, 1  ;;  %v3182_v58 = vor.u32 %v3181_v22, %v3178_v37  ;;  %v5462_v37 = vld [vmem:[%s5528_s4 + $0x48] sm:$0xff]  }
  0xe0   : > { %4932 = vmatprep.subr.bf16.mxu0 %v5370_v59  ;;  %v3156_v2 = vsel %vm3067_vm5, %v3146_v25, %v3155_v46  ;;  %v3165_v62 = vsel %vm3067_vm5, %v3155_v46, %v3164_v8  ;;  %v3191_v46 = vor.u32 %v3190_v36, %v3187_v20  ;;  %v1457_v22 = vrot.slane %v5462_v37, 1  ;;  %v5463_v36 = vld [vmem:[%s5528_s4 + $0x50] sm:$0xff]  }
  0xe1   : > { %v1469_v37 = vrot.slane %v5862_v57, 1 }
  0xe2   : > { %v3192_v60 = vsel %vm3067_vm5, %v3182_v58, %v3191_v46 }
  0xe3   : > { %4933 = vmatpush3.bf16.msra.mxu0 %v5370_v59  ;;  %v3172_v59 = vrot.slane %v3170_v54, 3  ;;  %v3206_v54 = vshll.u32 %v6059_v32, 16 }
  0xe4   : > { %4699 = vmatmul.mubr.msk.bf16.gmra.mrb[28].mxu1 %vm492_vm0, %v1007_v49  ;;  %v1446_v49 = vsel %vm974_vm4, %v1443_v40, %v1445_v56  ;;  %v1451_v40 = vrot.slane %v5456_v39, 1 }
  0xe5   : > { %4702 = vmatprep.mubr.msk.bf16.mxu1 %vm492_vm0, %v1009_v53  ;;  %v1448_v53 = vsel %vm974_vm4, %v1445_v56, %v1447_v63  ;;  %v3173_v23 = vor.u32 %v3172_v59, %v3169_v6  ;;  %v5459_v56 = vld [vmem:[%s5528_s4 + $0x38] sm:$0xff]   ;;  %v3205_v59 = vrot.slane %v3203_v50, 2 }
  0xe6   : > { %4899 = vmatmul.mubr.msk.bf16.gmra.mrb[8].mxu0 %vm492_vm0, %v3129_v17  ;;  %v5455_v17 = vld [vmem:[%s5528_s4 + $0x28] sm:$0xff]   ;;  %v1453_v43 = vrot.slane %v5459_v56, 1  ;;  %v5464_v56 = vld [vmem:[%s5528_s4 + $0x58] sm:$0xff]  }
  0xe7   : > { %4902 = vmatprep.mubr.msk.bf16.mxu0 %vm492_vm0, %v3138_v15  ;;  %v1449_v28 = vrot.slane %v5455_v17, 1  ;;  %v3174_v15 = vsel %vm3067_vm5, %v3164_v8, %v3173_v23  ;;  %v3183_v24 = vsel %vm3067_vm5, %v3173_v23, %v3182_v58  ;;  %v5461_v8 = vld [vmem:[%s6515_s1 + $0x98] sm:$0xff]   ;;  %v3215_v23 = vshll.u32 %v6078_v21, 16 }
  0xe8   : > { %v1454_v47 = vsel %vm974_vm4, %v1451_v40, %v1453_v43  ;;  %v3224_v17 = vshll.u32 %v6083_v11, 16 }
  0xe9   : > { %v1450_v25 = vsel %vm974_vm4, %v1447_v63, %v1449_v28  ;;  %v5460_v63 = vld [vmem:[%s5528_s4 + $0x40] sm:$0xff]   ;;  %v3217_v39 = vrot.slane %v3215_v23, 3 }
  0xea   : > { %v1455_v6 = vrot.slane %v5460_v63, 1  ;;  %v3226_v58 = vrot.slane %v3224_v17, 3  ;;  %v1463_v63 = vrot.slane %v5824_v48, 1  ;;  %v3548_v17 = vrot.slane %v5928_v29, 3 }
  0xeb   : > { %v3550_v29 = vrot.slane %v5940_v42, 3  ;;  %v1886_v42 = vshll.u32 %v5824_v48, 16 }
  0xec   : > { %4703 = vmatmul.mubr.msk.bf16.gmra.mrb[32].mxu1 %vm492_vm0, %v1011_v5  ;;  %v5457_v5 = vld [vmem:[%s6515_s1 + $0x88] sm:$0xff]   ;;  %v1456_v3 = vsel %vm974_vm4, %v1453_v43, %v1455_v6  ;;  %v1461_v43 = vrot.slane %v5464_v56, 1  ;;  %v1892_v56 = vshrl.u32 %v5836_v10, 16 }
  0xed   : > { %4714 = vmatprep.mubr.msk.bf16.mxu1 %vm492_vm0, %v1444_v31  ;;  %v1452_v31 = vsel %vm974_vm4, %v1449_v28, %v1451_v40  ;;  %v6234_v40 = vld [vmem:[%s5528_s4 + $0xa0] ss:$0 sps:$4 sm:$0x77]  }
  0xee   : > { %4903 = vmatmul.mubr.msk.bf16.gmra.mrb[12].mxu0 %vm492_vm0, %v3147_v44  ;;  %v5458_v44 = vld [vmem:[%s6515_s1 + $0x90] sm:$0xff]  }
  0xef   : > { %4906 = vmatprep.mubr.msk.bf16.mxu0 %vm492_vm0, %v3156_v2  ;;  %v3199_v2 = vrot.slane %v3197_v19, 3 }
  0xf4   : > { %4715 = vmatmul.mubr.msk.bf16.vlgmr.msra.gmra.mrb[0].mxu1 %vm492_vm0, %v1446_v49  ;;  %v3208_v49 = vrot.slane %v3206_v54, 3 }
  0xf5   : > { %4718 = vmatprep.mubr.msk.bf16.mxu1 %vm492_vm0, %v1448_v53  ;;  %4974 = vmatpush3.bf16.msra.mxu1 %v6070_v38  ;;  %v3194_v38 = vshrl.u32 %v6054_v26, 16  ;;  %v3212_v53 = vshrl.u32 %v6078_v21, 16 }
  0xf6   : > { %4971 = vmatprep.subr.bf16.mxu1 %v5457_v5  ;;  %4907 = vmatmul.mubr.msk.bf16.gmra.mrb[16].mxu0 %vm492_vm0, %v3165_v62  ;;  %v3209_v27 = vor.u32 %v3208_v49, %v3205_v59  ;;  %v3221_v62 = vshrl.u32 %v6083_v11, 16 }
  0xf7   : > { %4910 = vmatprep.mubr.msk.bf16.mxu0 %vm492_vm0, %v3174_v15  ;;  %v3196_v13 = vrot.slane %v3194_v38, 2  ;;  %v3214_v15 = vrot.slane %v3212_v53, 2  ;;  %v1458_v38 = vsel %vm974_vm4, %v1455_v6, %v1457_v22 }
  0xf9   : > { %4975 = vmatpush3.bf16.msra.mxu1 %v5457_v5  ;;  %v3200_v16 = vor.u32 %v3199_v2, %v3196_v13  ;;  %v1459_v5 = vrot.slane %v5463_v36, 1  ;;  %v3218_v19 = vor.u32 %v3217_v39, %v3214_v15  ;;  %v1471_v15 = vrot.slane %v5866_v61, 1 }
  0xfa   : > { %4972 = vmatprep.subr.bf16.mxu1 %v5458_v44  ;;  %v3551_v36 = vsel %vm3542_vm6, %v3548_v17, %v3550_v29 }
  0xfb   : > { %v3201_v28 = vsel %vm3067_vm5, %v3191_v46, %v3200_v16  ;;  %v3210_v20 = vsel %vm3067_vm5, %v3200_v16, %v3209_v27  ;;  %v3233_v46 = vshll.u32 %v6234_v40, 16  ;;  %v1460_v50 = vsel %vm974_vm4, %v1457_v22, %v1459_v5 }
  0xfc   : > { %4719 = vmatmul.mubr.msk.bf16.gmra.mrb[4].mxu1 %vm492_vm0, %v1450_v25  ;;  %v3223_v25 = vrot.slane %v3221_v62, 2  ;;  %v1462_v59 = vsel %vm974_vm4, %v1459_v5, %v1461_v43  ;;  %v3544_v16 = vrot.slane %v5911_v18, 3  ;;  %v3546_v18 = vrot.slane %v5924_v30, 3 }
  0xfd   : > { %4722 = vmatprep.mubr.msk.bf16.mxu1 %vm492_vm0, %v1452_v31  ;;  %4976 = vmatpush3.bf16.msra.mxu1 %v5458_v44  ;;  %v3230_v31 = vshrl.u32 %v6234_v40, 16  ;;  %v3529_v44 = vld [vmem:[%s5528_s4 + $0x10] sm:$0x8]  ;;  %v3235_v2 = vrot.slane %v3233_v46, 3  ;;  %v1472_v39 = vsel %vm974_vm4, %v1469_v37, %v1471_v15  ;;  %v1473_v5 = vrot.slane %v5884_v1, 1 }
  0xfe   : > { %4973 = vmatprep.subr.bf16.mxu1 %v5461_v8  ;;  %4911 = vmatmul.mubr.msk.bf16.gmra.mrb[20].mxu0 %vm492_vm0, %v3183_v24  ;;  %v3227_v54 = vor.u32 %v3226_v58, %v3223_v25  ;;  %v3219_v24 = vsel %vm3067_vm5, %v3209_v27, %v3218_v19  ;;  %v4350_v6 = vcombine.low %v3529_v44, %v5896_v7  ;;  %v1465_v7 = vrot.slane %v5836_v10, 1 }
  0xff   : > { %4914 = vmatprep.mubr.msk.bf16.mxu0 %vm492_vm0, %v3192_v60  ;;  %v3232_v13 = vrot.slane %v3230_v31, 2  ;;  %v3549_v22 = vsel %vm3542_vm6, %v3546_v18, %v3548_v17  ;;  %v1475_v58 = vrot.slane %v5888_v14, 1  ;;  %v5373_v31 = vld [vmem:[%s5528_s4 + $0x98] ss:$0 sps:$4 sm:$0x11]   ;;  %v1888_v44 = vrot.slane %v1886_v42, 2 }
 0x100   : > { %v3228_v60 = vsel %vm3067_vm5, %v3218_v19, %v3227_v54  ;;  %v1466_v27 = vsel %vm974_vm4, %v1463_v63, %v1465_v7  ;;  %v3554_v19 = vrot.slane %v5963_v33, 3 }
 0x101   : > { %4977 = vmatpush3.bf16.msra.mxu1 %v5461_v8  ;;  %v3236_v49 = vor.u32 %v3235_v2, %v3232_v13  ;;  %v1464_v8 = vsel %vm974_vm4, %v1461_v43, %v1463_v63  ;;  %v1476_v46 = vsel %vm974_vm4, %v1473_v5, %v1475_v58  ;;  %v1895_v43 = vshll.u32 %v5836_v10, 16 }
 0x102   : > { %v1901_v2 = vshrl.u32 %v5843_v34, 16  ;;  %v3558_v63 = vrot.slane %v5989_v0, 3  ;;  %v1913_v0 = vshll.u32 %v5862_v57, 16 }
 0x103   : > { %v3237_v53 = vsel %vm3067_vm5, %v3227_v54, %v3236_v49  ;;  %v3560_v49 = vrot.slane %v5994_v9, 3  ;;  %v1922_v9 = vshll.u32 %v5866_v61, 16 }
 0x104   : > { %4723 = vmatmul.mubr.msk.bf16.gmra.mrb[8].mxu1 %vm492_vm0, %v1454_v47  ;;  %v3543_v47 = vrot.slane %v4350_v6, 3  ;;  %v1894_v6 = vrot.slane %v1892_v56, 1 }
 0x105   : > { %4726 = vmatprep.mubr.msk.bf16.mxu1 %vm492_vm0, %v1456_v3  ;;  %v1467_v3 = vrot.slane %v5843_v34, 1 }
 0x106   : > { %4915 = vmatmul.mubr.msk.bf16.gmra.mrb[24].mxu0 %vm492_vm0, %v3201_v28  ;;  %v3545_v23 = vsel %vm3542_vm6, %v3543_v47, %v3544_v16  ;;  %v3547_v28 = vsel %vm3542_vm6, %v3544_v16, %v3546_v18 }
 0x107   : > { %4918 = vmatprep.mubr.msk.bf16.mxu0 %vm492_vm0, %v3210_v20  ;;  %v1468_v62 = vsel %vm974_vm4, %v1465_v7, %v1467_v3  ;;  %v1470_v30 = vsel %vm974_vm4, %v1467_v3, %v1469_v37  ;;  %v3552_v20 = vrot.slane %v5944_v41, 3  ;;  %v1474_v41 = vsel %vm974_vm4, %v1471_v15, %v1473_v5 }
 0x108   : > { %v3561_v7 = vsel %vm3542_vm6, %v3558_v63, %v3560_v49  ;;  %v1924_v37 = vrot.slane %v1922_v9, 2  ;;  %v1928_v15 = vshrl.u32 %v5884_v1, 16 }
 0x109   : > { %v3553_v25 = vsel %vm3542_vm6, %v3550_v29, %v3552_v20 }
 0x10a   : > { %v1930_v5 = vrot.slane %v1928_v15, 1 }
 0x10c   : > { %4727 = vmatmul.mubr.msk.bf16.gmra.mrb[12].mxu1 %vm492_vm0, %v1458_v38  ;;  %v1883_v38 = vshrl.u32 %v5824_v48, 16  ;;  %v1477_v48 = vrot.slane %v5373_v31, 1  ;;  %v1949_v31 = vshll.u32 %v5904_v12, 16 }
 0x10d   : > { %4730 = vmatprep.mubr.msk.bf16.mxu1 %vm492_vm0, %v1460_v50  ;;  %v3556_v50 = vrot.slane %v5967_v51, 3  ;;  %v1904_v51 = vshll.u32 %v5843_v34, 16 }
 0x10e   : > { %4919 = vmatmul.mubr.msk.bf16.gmra.mrb[28].mxu0 %vm492_vm0, %v3219_v24  ;;  %v1885_v54 = vrot.slane %v1883_v38, 1  ;;  %v3555_v24 = vsel %vm3542_vm6, %v3552_v20, %v3554_v19 }
 0x10f   : > { %4922 = vmatprep.mubr.msk.bf16.mxu0 %vm492_vm0, %v3228_v60  ;;  %v3557_v33 = vsel %vm3542_vm6, %v3554_v19, %v3556_v50  ;;  %v1478_v60 = vsel %vm974_vm4, %v1475_v58, %v1477_v48  ;;  %v1906_v47 = vrot.slane %v1904_v51, 2  ;;  %v3559_v34 = vsel %vm3542_vm6, %v3556_v50, %v3558_v63 }
 0x110   : > { %v1889_v13 = vor.u32 %v1888_v44, %v1885_v54  ;;  %v1946_v19 = vshrl.u32 %v5904_v12, 16  ;;  %v3570_v50 = vrot.slane %v6054_v26, 3  ;;  %v1951_v44 = vrot.slane %v1949_v31, 2 }
 0x111   : > { %v3572_v48 = vrot.slane %v6059_v32, 3  ;;  %v3578_v51 = vrot.slane %v6234_v40, 3 }
 0x112   : > { %v1890_v10 = vsel %vm1783_vm2, %v5722_v4, %v1889_v13  ;;  %v1919_v4 = vshrl.u32 %v5866_v61, 16  ;;  %v1948_v54 = vrot.slane %v1946_v19, 1 }
 0x114   : > { %4731 = vmatmul.mubr.msk.bf16.gmra.mrb[16].mxu1 %vm492_vm0, %v1462_v59  ;;  %v1897_v59 = vrot.slane %v1895_v43, 2  ;;  %v1952_v56 = vor.u32 %v1951_v44, %v1948_v54  ;;  %v3573_v43 = vsel %vm3542_vm6, %v3570_v50, %v3572_v48 }
 0x115   : > { %4734 = vmatprep.mubr.msk.bf16.mxu1 %vm492_vm0, %v1464_v8  ;;  %v1903_v8 = vrot.slane %v1901_v2, 1 }
 0x116   : > { %4923 = vmatmul.mubr.msk.bf16.gmra.mrb[32].mxu0 %vm492_vm0, %v3237_v53  ;;  %v1898_v16 = vor.u32 %v1897_v59, %v1894_v6  ;;  %v1910_v53 = vshrl.u32 %v5862_v57, 16  ;;  %v3564_v57 = vrot.slane %v6013_v45, 3  ;;  %v1940_v45 = vshll.u32 %v5888_v14, 16 }
 0x117   : > { %4934 = vmatprep.mubr.msk.bf16.mxu0 %vm492_vm0, %v3545_v23  ;;  %v1907_v23 = vor.u32 %v1906_v47, %v1903_v8 }
 0x118   : > { %v1899_v3 = vsel %vm1783_vm2, %v1889_v13, %v1898_v16  ;;  %v1912_v18 = vrot.slane %v1910_v53, 1  ;;  %v1942_v42 = vrot.slane %v1940_v45, 2  ;;  %v3576_v13 = vrot.slane %v6083_v11, 3 }
 0x119   : > { %v1908_v17 = vsel %vm1783_vm2, %v1898_v16, %v1907_v23 }
 0x11c   : > { %4735 = vmatmul.mubr.msk.bf16.gmra.mrb[20].mxu1 %vm492_vm0, %v1466_v27  ;;  %v3562_v27 = vrot.slane %v6008_v35, 3 }
 0x11d   : > { %4738 = vmatprep.mubr.msk.bf16.mxu1 %vm492_vm0, %v1468_v62  ;;  %v1915_v62 = vrot.slane %v1913_v0, 2 }
 0x11e   : > { %4935 = vmatmul.mubr.msk.bf16.vlgmr.msra.gmra.mrb[0].mxu0 %vm492_vm0, %v3547_v28  ;;  %v1921_v28 = vrot.slane %v1919_v4, 1  ;;  %v3563_v61 = vsel %vm3542_vm6, %v3560_v49, %v3562_v27  ;;  %v3565_v35 = vsel %vm3542_vm6, %v3562_v27, %v3564_v57 }
 0x11f   : > { %4938 = vmatprep.mubr.msk.bf16.mxu0 %vm492_vm0, %v3549_v22  ;;  %v1916_v22 = vor.u32 %v1915_v62, %v1912_v18  ;;  %v6387_v62 = vld [vmem:[%s6516_s2] ss:$0 sm:$0xff] }
 0x120   : > { %v1925_v29 = vor.u32 %v1924_v37, %v1921_v28 }
 0x121   : > { %v1917_v20 = vsel %vm1783_vm2, %v1907_v23, %v1916_v22 }
 0x122   : > { %v1926_v58 = vsel %vm1783_vm2, %v1916_v22, %v1925_v29 }
 0x124   : > { %4739 = vmatmul.mubr.msk.bf16.gmra.mrb[24].mxu1 %vm492_vm0, %v1470_v30  ;;  %v1931_v30 = vshll.u32 %v5884_v1, 16  ;;  %v3568_v1 = vrot.slane %v6035_v52, 3 }
 0x125   : > { %4742 = vmatprep.mubr.msk.bf16.mxu1 %vm492_vm0, %v1472_v39  ;;  %v1937_v39 = vshrl.u32 %v5888_v14, 16 }
 0x126   : > { %4939 = vmatmul.mubr.msk.bf16.gmra.mrb[4].mxu0 %vm492_vm0, %v3551_v36  ;;  %v3566_v36 = vrot.slane %v6029_v55, 3  ;;  %v3571_v12 = vsel %vm3542_vm6, %v3568_v1, %v3570_v50 }
 0x127   : > { %4942 = vmatprep.mubr.msk.bf16.mxu0 %vm492_vm0, %v3553_v25  ;;  %v1933_v25 = vrot.slane %v1931_v30, 2  ;;  %v1939_v38 = vrot.slane %v1937_v39, 1 }
 0x128   : > { %v3567_v14 = vsel %vm3542_vm6, %v3564_v57, %v3566_v36  ;;  %v3569_v55 = vsel %vm3542_vm6, %v3566_v36, %v3568_v1 }
 0x12c   : > { %4743 = vmatmul.mubr.msk.bf16.gmra.mrb[28].mxu1 %vm492_vm0, %v1474_v41  ;;  %v1934_v41 = vor.u32 %v1933_v25, %v1930_v5 }
 0x12d   : > { %4746 = vmatprep.mubr.msk.bf16.mxu1 %vm492_vm0, %v1476_v46  ;;  %v1943_v46 = vor.u32 %v1942_v42, %v1939_v38 }
 0x12e   : > { %4943 = vmatmul.mubr.msk.bf16.gmra.mrb[8].mxu0 %vm492_vm0, %v3555_v24  ;;  %v1935_v52 = vsel %vm1783_vm2, %v1925_v29, %v1934_v41 }
 0x12f   : > { %4946 = vmatprep.mubr.msk.bf16.mxu0 %vm492_vm0, %v3557_v33  ;;  %v1944_v24 = vsel %vm1783_vm2, %v1934_v41, %v1943_v46  ;;  %v1953_v26 = vsel %vm1783_vm2, %v1943_v46, %v1952_v56  ;;  %v3574_v33 = vrot.slane %v6078_v21, 3 }
 0x131   : > { %v3575_v32 = vsel %vm3542_vm6, %v3572_v48, %v3574_v33  ;;  %v3577_v2 = vsel %vm3542_vm6, %v3574_v33, %v3576_v13 }
 0x134   : > { %4747 = vmatmul.mubr.msk.bf16.gmra.mrb[32].mxu1 %vm492_vm0, %v1478_v60  ;;  %v3579_v60 = vsel %vm3542_vm6, %v3576_v13, %v3578_v51 }
 0x135   : > { %4778 = vmatprep.mubr.msk.bf16.mxu1 %vm492_vm0, %v1890_v10 }
 0x136   : > { %4947 = vmatmul.mubr.msk.bf16.gmra.mrb[12].mxu0 %vm492_vm0, %v3559_v34 }
 0x137   : > { %4950 = vmatprep.mubr.msk.bf16.mxu0 %vm492_vm0, %v3561_v7 }
 0x13c   : > { %4779 = vmatmul.mubr.msk.bf16.vlgmr.msra.gmra.mrb[20].mxu1 %vm492_vm0, %v1899_v3 }
 0x13d   : > { %4782 = vmatprep.mubr.msk.bf16.mxu1 %vm492_vm0, %v1908_v17 }
 0x13e   : > { %4951 = vmatmul.mubr.msk.bf16.gmra.mrb[16].mxu0 %vm492_vm0, %v3563_v61 }
 0x13f   : > { %4954 = vmatprep.mubr.msk.bf16.mxu0 %vm492_vm0, %v3565_v35 }
 0x144   : > { %4783 = vmatmul.mubr.msk.bf16.gmra.mrb[24].mxu1 %vm492_vm0, %v1917_v20 }
 0x145   : > { %4786 = vmatprep.mubr.msk.bf16.mxu1 %vm492_vm0, %v1926_v58 }
 0x146   : > { %4955 = vmatmul.mubr.msk.bf16.gmra.mrb[20].mxu0 %vm492_vm0, %v3567_v14 }
 0x147   : > { %4958 = vmatprep.mubr.msk.bf16.mxu0 %vm492_vm0, %v3569_v55 }
 0x14c   : > { %4787 = vmatmul.mubr.msk.bf16.gmra.mrb[28].mxu1 %vm492_vm0, %v1935_v52 }
 0x14d   : > { %4790 = vmatprep.mubr.msk.bf16.mxu1 %vm492_vm0, %v1944_v24 }
 0x14e   : > { %4959 = vmatmul.mubr.msk.bf16.gmra.mrb[24].mxu0 %vm492_vm0, %v3571_v12 }
 0x14f   : > { %4962 = vmatprep.mubr.msk.bf16.mxu0 %vm492_vm0, %v3573_v43 }
 0x154   : > { %4791 = vmatmul.mubr.msk.bf16.gmra.mrb[32].mxu1 %vm492_vm0, %v1953_v26 }
 0x156   : > { %4963 = vmatmul.mubr.msk.bf16.gmra.mrb[28].mxu0 %vm492_vm0, %v3575_v32 }
 0x157   : > { %4966 = vmatprep.mubr.msk.bf16.mxu0 %vm492_vm0, %v3577_v2 }
 0x15e   : > { %4967 = vmatmul.mubr.msk.bf16.gmra.mrb[32].mxu0 %vm492_vm0, %v3579_v60 }
 0x1c7   : > { %v4716_v63 = vpop.f32.mrb[0].mxu1 }
 0x1c8   : > { %v1591_v21 = vpop.f32.mrb[1].mxu1 }
 0x1c9   : > { %v4717_v6 = vpop.f32.mrb[2].mxu1 }
 0x1ca   : > { %v1594_v11 = vpop.f32.mrb[3].mxu1 }
 0x1cf   : > { %v4720_v59 = vpop.f32.mrb[4].mxu1 }
 0x1d0   : > { %v1607_v10 = vpop.f32.mrb[5].mxu1 }
 0x1d1   : > { %v4721_v49 = vpop.f32.mrb[6].mxu1 }
 0x1d2   : > { %v1610_v8 = vpop.f32.mrb[7].mxu1 }
 0x1d7   : > { %v4724_v47 = vpop.f32.mrb[8].mxu1 }
 0x1d8   : > { %v1623_v34 = vpop.f32.mrb[9].mxu1 }
 0x1d9   : > { %v4725_v16 = vpop.f32.mrb[10].mxu1 }
 0x1da   : > { %v1626_v53 = vpop.f32.mrb[11].mxu1 }
 0x1df   : > { %v6368_v0 = vpop.f32.mrb[12].mxu1 }
 0x1e0   : > { %v6370_v7 = vpop.f32.mrb[13].mxu1 }
 0x1e1   : > { %v6372_v40 = vpop.f32.mrb[14].mxu1 }
 0x1e2   : > { %v6374_v23 = vpop.f32.mrb[15].mxu1 }
 0x1e7   : > { %v6376_v4 = vpop.f32.mrb[16].mxu1 }
 0x1e8   : > { %v6378_v9 = vpop.f32.mrb[17].mxu1 }
 0x1e9   : > { %v6380_v3 = vpop.f32.mrb[18].mxu1 }
 0x1ea   : > { %v6382_v27 = vpop.f32.mrb[19].mxu1 }
 0x1f1   : > { %v4936_v18 = vpop.f32.mrb[0].mxu0 }
 0x1f2   : > { %v4978_v17 = vadd.f32 %v4936_v18, %v4716_v63  ;;  %v3692_v57 = vpop.f32.mrb[1].mxu0 }
 0x1f3   : > { %v4979_v28 = vadd.f32 %v3692_v57, %v1591_v21  ;;  %v4937_v37 = vpop.f32.mrb[2].mxu0 }
 0x1f4   : > { %v3880_v61 = vadd.f32 %v4978_v17, %v6387_v62  ;;  %v4980_v22 = vadd.f32 %v4937_v37, %v4717_v6  ;;  %v3695_v15 = vpop.f32.mrb[3].mxu0 }
 0x1f5   : > { %v3878_v30 = vadd.f32 %v4979_v28, %v6387_v62  ;;  %v4981_v35 = vadd.f32 %v3695_v15, %v1594_v11 }
 0x1f6   : > { %5374 = vtanh.f32 %v3880_v61  ;;  %v3881_v29 = vadd.f32 %v4980_v22, %v6387_v62 }
 0x1f7   : > { %5376 = vtanh.f32 %v3878_v30  ;;  %v3879_v39 = vadd.f32 %v4981_v35, %v6387_v62 }
 0x1f8   : > { %5378 = vtanh.f32 %v3881_v29 }
 0x1f9   : > { %5380 = vtanh.f32 %v3879_v39  ;;  %v4940_v45 = vpop.f32.mrb[4].mxu0 }
 0x1fa   : > { %v4982_v20 = vadd.f32 %v4940_v45, %v4720_v59  ;;  %v3708_v36 = vpop.f32.mrb[5].mxu0 }
 0x1fb   : > { %v4983_v5 = vadd.f32 %v3708_v36, %v1607_v10  ;;  %v4941_v25 = vpop.f32.mrb[6].mxu0 }
 0x1fc   : > { %v3884_v58 = vadd.f32 %v4982_v20, %v6387_v62  ;;  %v4984_v1 = vadd.f32 %v4941_v25, %v4721_v49  ;;  %v3711_v38 = vpop.f32.mrb[7].mxu0 }
 0x1fd   : > { %v3882_v42 = vadd.f32 %v4983_v5, %v6387_v62  ;;  %v4985_v14 = vadd.f32 %v3711_v38, %v1610_v8 }
 0x1fe   : > { %5382 = vtanh.f32 %v3884_v58  ;;  %v3885_v41 = vadd.f32 %v4984_v1, %v6387_v62 }
 0x1ff   : > { %5384 = vtanh.f32 %v3882_v42  ;;  %v3883_v19 = vadd.f32 %v4985_v14, %v6387_v62 }
 0x200   : > { %v5375_v31 = vpop.eup %5374  ;;  %5386 = vtanh.f32 %v3885_v41 }
 0x201   : > { %v5377_v55 = vpop.eup %5376  ;;  %3953 = vst.msk [vmem:[%s6399_s29 + $0x10] sm:$0xff] %vm3950_vm7, %v5375_v31  ;;  %5388 = vtanh.f32 %v3883_v19  ;;  %v4944_v46 = vpop.f32.mrb[8].mxu0 }
 0x202   : > { %v5379_v52 = vpop.eup %5378  ;;  %3951 = vst.msk [vmem:[%s6399_s29] sm:$0xff] %vm3950_vm7, %v5377_v55  ;;  %v4986_v50 = vadd.f32 %v4944_v46, %v4724_v47  ;;  %v3724_v54 = vpop.f32.mrb[9].mxu0 }
 0x203   : > { %v5381_v44 = vpop.eup %5380  ;;  %3954 = vst.msk [vmem:[%s6399_s29 + $0x18] sm:$0xff] %vm3950_vm7, %v5379_v52  ;;  %v4987_v24 = vadd.f32 %v3724_v54, %v1623_v34  ;;  %v4945_v48 = vpop.f32.mrb[10].mxu0 }
 0x204   : > { %3952 = vst.msk [vmem:[%s6399_s29 + $0x8] sm:$0xff] %vm3950_vm7, %v5381_v44  ;;  %v3888_v12 = vadd.f32 %v4986_v50, %v6387_v62  ;;  %v4988_v56 = vadd.f32 %v4945_v48, %v4725_v16  ;;  %v3727_v43 = vpop.f32.mrb[11].mxu0 }
 0x205   : > { %v3886_v26 = vadd.f32 %v4987_v24, %v6387_v62  ;;  %v4989_v33 = vadd.f32 %v3727_v43, %v1626_v53 }
 0x206   : > { %5390 = vtanh.f32 %v3888_v12  ;;  %v3889_v13 = vadd.f32 %v4988_v56, %v6387_v62 }
 0x207   : > { %5392 = vtanh.f32 %v3886_v26  ;;  %v3887_v32 = vadd.f32 %v4989_v33, %v6387_v62 }
 0x208   : > { %v5383_v2 = vpop.eup %5382  ;;  %5394 = vtanh.f32 %v3889_v13 }
 0x209   : > { %v5385_v51 = vpop.eup %5384  ;;  %3957 = vst.msk [vmem:[%s6399_s29 + $0x30] sm:$0xff] %vm3950_vm7, %v5383_v2  ;;  %5396 = vtanh.f32 %v3887_v32  ;;  %v4948_v60 = vpop.f32.mrb[12].mxu0 }
 0x20a   : > { %v5387_v63 = vpop.eup %5386  ;;  %3955 = vst.msk [vmem:[%s6399_s29 + $0x20] sm:$0xff] %vm3950_vm7, %v5385_v51  ;;  %v4990_v21 = vadd.f32 %v4948_v60, %v6368_v0  ;;  %v3740_v6 = vpop.f32.mrb[13].mxu0 }
 0x20b   : > { %v5389_v11 = vpop.eup %5388  ;;  %3958 = vst.msk [vmem:[%s6399_s29 + $0x38] sm:$0xff] %vm3950_vm7, %v5387_v63  ;;  %v4991_v59 = vadd.f32 %v3740_v6, %v6370_v7  ;;  %v4949_v10 = vpop.f32.mrb[14].mxu0 }
 0x20c   : > { %3956 = vst.msk [vmem:[%s6399_s29 + $0x28] sm:$0xff] %vm3950_vm7, %v5389_v11  ;;  %v3892_v49 = vadd.f32 %v4990_v21, %v6387_v62  ;;  %v4992_v8 = vadd.f32 %v4949_v10, %v6372_v40  ;;  %v3743_v47 = vpop.f32.mrb[15].mxu0 }
 0x20d   : > { %v3890_v34 = vadd.f32 %v4991_v59, %v6387_v62  ;;  %v4993_v16 = vadd.f32 %v3743_v47, %v6374_v23 }
 0x20e   : > { %5398 = vtanh.f32 %v3892_v49  ;;  %v3893_v0 = vadd.f32 %v4992_v8, %v6387_v62 }
 0x20f   : > { %v4780_v53 = vpop.f32.mrb[20].mxu1  ;;  %5400 = vtanh.f32 %v3890_v34  ;;  %v3891_v7 = vadd.f32 %v4993_v16, %v6387_v62 }
 0x210   : > { %v2146_v18 = vpop.f32.mrb[21].mxu1  ;;  %v5391_v57 = vpop.eup %5390  ;;  %5402 = vtanh.f32 %v3893_v0 }
 0x211   : > { %v4781_v17 = vpop.f32.mrb[22].mxu1  ;;  %v5393_v28 = vpop.eup %5392  ;;  %3961 = vst.msk [vmem:[%s6399_s29 + $0x50] sm:$0xff] %vm3950_vm7, %v5391_v57  ;;  %5404 = vtanh.f32 %v3891_v7 }
 0x212   : > { %v2149_v40 = vpop.f32.mrb[23].mxu1  ;;  %v4952_v23 = vpop.f32.mrb[16].mxu0  ;;  %3959 = vst.msk [vmem:[%s6399_s29 + $0x40] sm:$0xff] %vm3950_vm7, %v5393_v28 }
 0x213   : > { %v5395_v37 = vpop.eup %5394  ;;  %v4994_v61 = vadd.f32 %v4952_v23, %v6376_v4  ;;  %v3756_v22 = vpop.f32.mrb[17].mxu0 }
 0x214   : > { %v5397_v15 = vpop.eup %5396  ;;  %3962 = vst.msk [vmem:[%s6399_s29 + $0x58] sm:$0xff] %vm3950_vm7, %v5395_v37  ;;  %v4995_v30 = vadd.f32 %v3756_v22, %v6378_v9  ;;  %v4953_v35 = vpop.f32.mrb[18].mxu0 }
 0x215   : > { %3960 = vst.msk [vmem:[%s6399_s29 + $0x48] sm:$0xff] %vm3950_vm7, %v5397_v15  ;;  %v3896_v29 = vadd.f32 %v4994_v61, %v6387_v62  ;;  %v4996_v39 = vadd.f32 %v4953_v35, %v6380_v3  ;;  %v3759_v45 = vpop.f32.mrb[19].mxu0 }
 0x216   : > { %v3894_v20 = vadd.f32 %v4995_v30, %v6387_v62  ;;  %v4997_v36 = vadd.f32 %v3759_v45, %v6382_v27 }
 0x217   : > { %v4784_v4 = vpop.f32.mrb[24].mxu1  ;;  %5406 = vtanh.f32 %v3896_v29  ;;  %v3897_v5 = vadd.f32 %v4996_v39, %v6387_v62 }
 0x218   : > { %v2162_v25 = vpop.f32.mrb[25].mxu1  ;;  %5408 = vtanh.f32 %v3894_v20  ;;  %v3895_v9 = vadd.f32 %v4997_v36, %v6387_v62  ;;  %v5399_v1 = vpop.eup %5398 }
 0x219   : > { %v4785_v58 = vpop.f32.mrb[26].mxu1  ;;  %5410 = vtanh.f32 %v3897_v5  ;;  %v5401_v38 = vpop.eup %5400  ;;  %3965 = vst.msk [vmem:[%s6399_s29 + $0x70] sm:$0xff] %vm3950_vm7, %v5399_v1 }
 0x21a   : > { %v2165_v3 = vpop.f32.mrb[27].mxu1  ;;  %5412 = vtanh.f32 %v3895_v9  ;;  %v4956_v27 = vpop.f32.mrb[20].mxu0  ;;  %3963 = vst.msk [vmem:[%s6399_s29 + $0x60] sm:$0xff] %vm3950_vm7, %v5401_v38 }
 0x21b   : > { %v5403_v42 = vpop.eup %5402  ;;  %v4998_v14 = vadd.f32 %v4956_v27, %v4780_v53  ;;  %v3772_v41 = vpop.f32.mrb[21].mxu0 }
 0x21c   : > { %v5405_v19 = vpop.eup %5404  ;;  %3966 = vst.msk [vmem:[%s6399_s29 + $0x78] sm:$0xff] %vm3950_vm7, %v5403_v42  ;;  %v4999_v31 = vadd.f32 %v3772_v41, %v2146_v18  ;;  %v4957_v55 = vpop.f32.mrb[22].mxu0 }
 0x21d   : > { %3964 = vst.msk [vmem:[%s6399_s29 + $0x68] sm:$0xff] %vm3950_vm7, %v5405_v19  ;;  %v3900_v46 = vadd.f32 %v4998_v14, %v6387_v62  ;;  %v5000_v52 = vadd.f32 %v4957_v55, %v4781_v17  ;;  %v3775_v50 = vpop.f32.mrb[23].mxu0 }
 0x21e   : > { %v3898_v54 = vadd.f32 %v4999_v31, %v6387_v62  ;;  %v5001_v44 = vadd.f32 %v3775_v50, %v2149_v40 }
 0x21f   : > { %v4788_v24 = vpop.f32.mrb[28].mxu1  ;;  %5414 = vtanh.f32 %v3900_v46  ;;  %v3901_v48 = vadd.f32 %v5000_v52, %v6387_v62 }
 0x220   : > { %v2178_v12 = vpop.f32.mrb[29].mxu1  ;;  %5416 = vtanh.f32 %v3898_v54  ;;  %v3899_v56 = vadd.f32 %v5001_v44, %v6387_v62 }
 0x221   : > { %v4789_v43 = vpop.f32.mrb[30].mxu1  ;;  %v5407_v26 = vpop.eup %5406  ;;  %5418 = vtanh.f32 %v3901_v48 }
 0x222   : > { %v2181_v33 = vpop.f32.mrb[31].mxu1  ;;  %v5409_v13 = vpop.eup %5408  ;;  %3969 = vst.msk [vmem:[%s6399_s29 + $0x90] sm:$0xff] %vm3950_vm7, %v5407_v26  ;;  %5420 = vtanh.f32 %v3899_v56 }
 0x223   : > { %v4960_v32 = vpop.f32.mrb[24].mxu0  ;;  %v5411_v2 = vpop.eup %5410  ;;  %3967 = vst.msk [vmem:[%s6399_s29 + $0x80] sm:$0xff] %vm3950_vm7, %v5409_v13 }
 0x224   : > { %v5002_v51 = vadd.f32 %v4960_v32, %v4784_v4  ;;  %v3788_v60 = vpop.f32.mrb[25].mxu0  ;;  %v5413_v63 = vpop.eup %5412  ;;  %3970 = vst.msk [vmem:[%s6399_s29 + $0x98] sm:$0xff] %vm3950_vm7, %v5411_v2 }
 0x225   : > { %v5003_v21 = vadd.f32 %v3788_v60, %v2162_v25  ;;  %v4961_v6 = vpop.f32.mrb[26].mxu0  ;;  %3968 = vst.msk [vmem:[%s6399_s29 + $0x88] sm:$0xff] %vm3950_vm7, %v5413_v63 }
 0x226   : > { %v3904_v11 = vadd.f32 %v5002_v51, %v6387_v62  ;;  %v5004_v59 = vadd.f32 %v4961_v6, %v4785_v58  ;;  %v3791_v10 = vpop.f32.mrb[27].mxu0 }
 0x227   : > { %v3902_v49 = vadd.f32 %v5003_v21, %v6387_v62  ;;  %v5005_v8 = vadd.f32 %v3791_v10, %v2165_v3  ;;  %v4792_v47 = vpop.f32.mrb[32].mxu1 }
 0x228   : > { %5422 = vtanh.f32 %v3904_v11  ;;  %v3905_v34 = vadd.f32 %v5004_v59, %v6387_v62  ;;  %v2194_v16 = vpop.f32.mrb[33].mxu1 }
 0x229   : > { %5424 = vtanh.f32 %v3902_v49  ;;  %v3903_v53 = vadd.f32 %v5005_v8, %v6387_v62  ;;  %v4793_v0 = vpop.f32.mrb[34].mxu1  ;;  %v5415_v18 = vpop.eup %5414 }
 0x22a   : > { %5426 = vtanh.f32 %v3905_v34  ;;  %v2197_v7 = vpop.f32.mrb[35].mxu1  ;;  %v5417_v17 = vpop.eup %5416  ;;  %3973 = vst.msk [vmem:[%s6399_s29 + $0xb0] sm:$0xff] %vm3950_vm7, %v5415_v18 }
 0x22b   : > { %5428 = vtanh.f32 %v3903_v53  ;;  %v4964_v57 = vpop.f32.mrb[28].mxu0  ;;  %v5419_v40 = vpop.eup %5418  ;;  %3971 = vst.msk [vmem:[%s6399_s29 + $0xa0] sm:$0xff] %vm3950_vm7, %v5417_v17 }
 0x22c   : > { %v5006_v28 = vadd.f32 %v4964_v57, %v4788_v24  ;;  %v3804_v23 = vpop.f32.mrb[29].mxu0  ;;  %v5421_v37 = vpop.eup %5420  ;;  %3974 = vst.msk [vmem:[%s6399_s29 + $0xb8] sm:$0xff] %vm3950_vm7, %v5419_v40 }
 0x22d   : > { %v5007_v61 = vadd.f32 %v3804_v23, %v2178_v12  ;;  %v4965_v22 = vpop.f32.mrb[30].mxu0  ;;  %3972 = vst.msk [vmem:[%s6399_s29 + $0xa8] sm:$0xff] %vm3950_vm7, %v5421_v37 }
 0x22e   : > { %v3908_v15 = vadd.f32 %v5006_v28, %v6387_v62  ;;  %v5008_v30 = vadd.f32 %v4965_v22, %v4789_v43  ;;  %v3807_v35 = vpop.f32.mrb[31].mxu0 }
 0x22f   : > { %v3906_v29 = vadd.f32 %v5007_v61, %v6387_v62  ;;  %v5009_v39 = vadd.f32 %v3807_v35, %v2181_v33 }
 0x230   : > { %5430 = vtanh.f32 %v3908_v15  ;;  %v3909_v45 = vadd.f32 %v5008_v30, %v6387_v62 }
 0x231   : > { %5432 = vtanh.f32 %v3906_v29  ;;  %v3907_v20 = vadd.f32 %v5009_v39, %v6387_v62  ;;  %v4968_v5 = vpop.f32.mrb[32].mxu0 }
 0x232   : > { %v5423_v36 = vpop.eup %5422  ;;  %5434 = vtanh.f32 %v3909_v45  ;;  %v5010_v9 = vadd.f32 %v4968_v5, %v4792_v47  ;;  %v3820_v58 = vpop.f32.mrb[33].mxu0 }
 0x233   : > { %v5425_v4 = vpop.eup %5424  ;;  %3977 = vst.msk [vmem:[%s6399_s29 + $0xd0] sm:$0xff] %vm3950_vm7, %v5423_v36  ;;  %5436 = vtanh.f32 %v3907_v20  ;;  %v5011_v3 = vadd.f32 %v3820_v58, %v2194_v16  ;;  %v4969_v38 = vpop.f32.mrb[34].mxu0 }
 0x234   : > { %v5427_v25 = vpop.eup %5426  ;;  %3975 = vst.msk [vmem:[%s6399_s29 + $0xc0] sm:$0xff] %vm3950_vm7, %v5425_v4  ;;  %v3912_v27 = vadd.f32 %v5010_v9, %v6387_v62  ;;  %v5012_v42 = vadd.f32 %v4969_v38, %v4793_v0  ;;  %v3823_v14 = vpop.f32.mrb[35].mxu0 }
 0x235   : > { %v5429_v1 = vpop.eup %5428  ;;  %3978 = vst.msk [vmem:[%s6399_s29 + $0xd8] sm:$0xff] %vm3950_vm7, %v5427_v25  ;;  %v3910_v41 = vadd.f32 %v5011_v3, %v6387_v62  ;;  %v5013_v19 = vadd.f32 %v3823_v14, %v2197_v7 }
 0x236   : > { %3976 = vst.msk [vmem:[%s6399_s29 + $0xc8] sm:$0xff] %vm3950_vm7, %v5429_v1  ;;  %5438 = vtanh.f32 %v3912_v27  ;;  %v3913_v31 = vadd.f32 %v5012_v42, %v6387_v62 }
 0x237   : > { %5440 = vtanh.f32 %v3910_v41  ;;  %v3911_v55 = vadd.f32 %v5013_v19, %v6387_v62 }
 0x238   : > { %5442 = vtanh.f32 %v3913_v31 }
 0x239   : > { %5444 = vtanh.f32 %v3911_v55 }
 0x23a   : > { %v5431_v46 = vpop.eup %5430 }
 0x23b   : > { %v5433_v52 = vpop.eup %5432  ;;  %3981 = vst.msk [vmem:[%s6399_s29 + $0xf0] sm:$0xff] %vm3950_vm7, %v5431_v46 }
 0x23c   : > { %v5435_v50 = vpop.eup %5434  ;;  %3979 = vst.msk [vmem:[%s6399_s29 + $0xe0] sm:$0xff] %vm3950_vm7, %v5433_v52 }
 0x23d   : > { %v5437_v54 = vpop.eup %5436  ;;  %3982 = vst.msk [vmem:[%s6399_s29 + $0xf8] sm:$0xff] %vm3950_vm7, %v5435_v50 }
 0x23e   : > { %3980 = vst.msk [vmem:[%s6399_s29 + $0xe8] sm:$0xff] %vm3950_vm7, %v5437_v54 }
 0x240   : > { %v5439_v44 = vpop.eup %5438 }
 0x241   : > { %v5441_v24 = vpop.eup %5440  ;;  %3985 = vst.msk [vmem:[%s6399_s29 + $0x110] sm:$0xff] %vm3950_vm7, %v5439_v44 }
 0x242   : > { %v5443_v62 = vpop.eup %5442  ;;  %3983 = vst.msk [vmem:[%s6399_s29 + $0x100] sm:$0xff] %vm3950_vm7, %v5441_v24 }
 0x243   : > { %v5445_v48 = vpop.eup %5444  ;;  %3986 = vst.msk [vmem:[%s6399_s29 + $0x118] sm:$0xff] %vm3950_vm7, %v5443_v62 }
 0x244   : > { %3984 = vst.msk [vmem:[%s6399_s29 + $0x108] sm:$0xff] %vm3950_vm7, %v5445_v48 }
 0x245 PF: > { %s13_s12 = sadd.s32 1, %s5471_s12  }
 0x246   : > { %p10_p4 = scmp.ge.s32.totalorder %s13_s12, 4  }
 0x248   :  { %12 = sbr.rel (!%p10_p4) target bundleno = 1 (0x1), region = 70 }

</bundles_post_ra>
